<compile_context>
chip_gen: v7x
topology: tpu7x:2x2x1
jax: 0.10.0
libtpu: 0.0.40
codegen_flags: <defaults>
</compile_context>

<pallas_src>
import functools

import jax
import jax.numpy as jnp
from jax.experimental import pallas as pl
from jax.experimental.pallas import tpu as pltpu


def _audio_embed_kernel(h_ref, w1_ref, b1_ref, w2_ref, b2_ref,
                        pooled_ref, proj_ref, acc_ref,
                        *, seq_len, mask_tail):
    t = pl.program_id(1)
    nt = pl.num_programs(1)

    # New batch tile: zero the f32 pooling accumulator.
    @pl.when(t == 0)
    def _():
        acc_ref[...] = jnp.zeros_like(acc_ref)

    # Stream one (tB, tT, D) tile; accumulate the time-sum in f32.
    h = h_ref[...].astype(jnp.float32)

    if mask_tail:
        tile_t = h_ref.shape[1]

        # All tiles except the last are fully valid: plain accumulate, no mask.
        @pl.when(t < nt - 1)
        def _():
            acc_ref[...] += jnp.sum(h, axis=1)

        # Only the final time tile can straddle seq_len; build the mask from a
        # tiny (1, tT, 1) iota instead of a full-tile int32 temp.
        @pl.when(t == nt - 1)
        def _():
            t_idx = jax.lax.broadcasted_iota(jnp.int32, (1, tile_t, 1), 1)
            valid = (t * tile_t + t_idx) < seq_len
            acc_ref[...] += jnp.sum(jnp.where(valid, h, 0.0), axis=1)
    else:
        acc_ref[...] += jnp.sum(h, axis=1)

    # Last time tile: finalize mean and run the projection MLP exactly once.
    @pl.when(t == nt - 1)
    def _():
        pooled = acc_ref[...] * jnp.float32(1.0 / seq_len)          # fold 1/T once
        pooled_ref[...] = pooled.reshape(pooled_ref.shape).astype(pooled_ref.dtype)

        # Feed the MLP weights in their stored (ideally bf16, MXU-native) dtype;
        # accumulate in f32. No f32 upcast temp of the weight tiles.
        z = jnp.dot(pooled.astype(w1_ref.dtype), w1_ref[...],
                    preferred_element_type=jnp.float32)
        z = jnp.maximum(z + b1_ref[...].astype(jnp.float32), 0.0)

        proj = jnp.dot(z.astype(w2_ref.dtype), w2_ref[...],
                       preferred_element_type=jnp.float32)
        proj = proj + b2_ref[...].astype(jnp.float32)
        proj_ref[...] = proj.reshape(proj_ref.shape).astype(proj_ref.dtype)


def audio_embedding_forward(hidden_states, w1, b1, w2, b2,
                            *, time_block_bytes=8 << 20, vmem_limit_bytes=None):
    """hidden_states: [B, T, D]; w1: [D, D]; b1: [1, D]; w2: [D, P]; b2: [1, P].

    Weights are pre-transposed to [in, out] (y = x @ W + b == PyTorch x @ W.T + b);
    weights may be bf16 (recommended) or f32; accumulation is always f32.
    """
    B, T, D = hidden_states.shape
    P = w2.shape[1]
    itemsize = jnp.dtype(hidden_states.dtype).itemsize

    # --- batch tiling: guarantee >= 2 "parallel" grid steps whenever B >= 2 so
    # both TensorCores on v7x stream half the batch each; multiples of 8 sublanes
    # (capped at 128 rows) for larger batches.
    if B <= 1:
        tB = 1
    elif B <= 8:
        tB = -(-B // 2)                       # ceil(B/2) -> 2 parallel steps
    else:
        tB = min(128, max(8, ((-(-B // 2)) + 7) // 8 * 8))
    nb = pl.cdiv(B, tB)

    # --- time tiling: sublane-pack aligned for the streamed dtype and sized so
    # per-grid-step overhead (~0.35us) is negligible versus tile DMA time.
    pack = max(8, 32 // itemsize)             # 8 rows f32, 16 bf16, 32 int8/fp8
    block_bytes = time_block_bytes
    if tB >= 8:                               # large-batch: keep tT >= ~128 rows
        block_bytes = max(block_bytes, tB * 128 * D * itemsize)
    block_bytes = min(block_bytes, 16 << 20)

    if tB * T * D * itemsize <= block_bytes:
        tT = T
    else:
        tT = (block_bytes // (tB * D * itemsize)) // pack * pack
        tT = min(T, max(pack, tT))
    nt = pl.cdiv(T, tT)
    mask_tail = (T % tT) != 0

    # --- explicit VMEM budget (don't rely on v5e's 16 MiB default scoped limit;
    # stay well under v7x's 64 MiB physical VMEM): double-buffered stream +
    # weights (counted double-buffered as worst case) + outputs + headroom.
    if vmem_limit_bytes is None:
        w_bytes = sum(int(x.size) * jnp.dtype(x.dtype).itemsize
                      for x in (w1, b1, w2, b2))
        need = (2 * tB * tT * D * itemsize        # double-buffered stream
                + 2 * w_bytes                      # resident weights (worst case)
                + 2 * tB * (D + P) * 4             # outputs
                + tB * D * 4                       # f32 accumulator
                + (4 << 20))                       # headroom / compiler scratch
        vmem_limit_bytes = int(min(max(need, 24 << 20), 48 << 20))

    kernel = functools.partial(_audio_embed_kernel, seq_len=T, mask_tail=mask_tail)

    def run(single_buffer_weights):
        # Constant-index weights: a second pipeline buffer is pure VMEM waste.
        w_kw = {"pipeline_mode": pl.Buffered(1)} if single_buffer_weights else {}
        grid_spec = pltpu.PrefetchScalarGridSpec(
            num_scalar_prefetch=0,
            grid=(nb, nt),
            in_specs=[
                # Streamed activations.
                pl.BlockSpec((tB, tT, D), lambda b, t: (b, t, 0)),
                # Resident weights/biases: constant block index + innermost T
                # axis => DMA'd once, never re-fetched per time tile.
                pl.BlockSpec((D, D), lambda b, t: (0, 0), **w_kw),
                pl.BlockSpec((1, D), lambda b, t: (0, 0), **w_kw),
                pl.BlockSpec((D, P), lambda b, t: (0, 0), **w_kw),
                pl.BlockSpec((1, P), lambda b, t: (0, 0), **w_kw),
            ],
            out_specs=(
                # [B, 1, D]/[B, 1, P] layout keeps the last two block dims
                # (1, lane) compliant for any tB (including tB < 8).
                pl.BlockSpec((tB, 1, D), lambda b, t: (b, 0, 0)),
                pl.BlockSpec((tB, 1, P), lambda b, t: (b, 0, 0)),
            ),
            scratch_shapes=[pltpu.VMEM((tB, D), jnp.float32)],
        )
        return pl.pallas_call(
            kernel,
            out_shape=(
                jax.ShapeDtypeStruct((B, 1, D), jnp.float32),
                jax.ShapeDtypeStruct((B, 1, P), jnp.float32),
            ),
            grid_spec=grid_spec,
            compiler_params=pltpu.CompilerParams(
                dimension_semantics=("parallel", "arbitrary"),
                vmem_limit_bytes=vmem_limit_bytes,
            ),
        )(hidden_states, w1, b1, w2, b2)

    try:
        pooled, proj = run(True)
    except Exception:
        # pipeline_mode=pl.Buffered(1) unsupported on this jax build: fall back
        # to default (double-buffered) weight blocks; everything else unchanged.
        pooled, proj = run(False)

    return pooled[:, 0, :], proj[:, 0, :]


def _reference(hidden_states, w1, b1, w2, b2):
    pooled = jnp.mean(hidden_states.astype(jnp.float32), axis=1)
    z = jnp.maximum(pooled @ w1.astype(jnp.float32) + b1, 0.0)
    proj = z @ w2.astype(jnp.float32) + b2
    return pooled, proj


if __name__ == "__main__":
    # Small shapes consistent with the module: batch=2, seq=8,
    # embedding_dim=768, projection_dim=256 (module __init__ defaults).
    B, T, D, P = 2, 8, 768, 256

    key = jax.random.PRNGKey(0)
    k_h, k_w1, k_b1, k_w2, k_b2 = jax.random.split(key, 5)

    # Stand-in for HuBERT's last_hidden_state (backbone not translated).
    hidden_states = jax.random.normal(k_h, (B, T, D), dtype=jnp.float32)

    # nn.Linear(D,D) and nn.Linear(D,P), pre-transposed to [in, out].
    w1 = jax.random.normal(k_w1, (D, D), dtype=jnp.float32) * (1.0 / jnp.sqrt(D))
    b1 = jax.random.normal(k_b1, (1, D), dtype=jnp.float32) * 0.01
    w2 = jax.random.normal(k_w2, (D, P), dtype=jnp.float32) * (1.0 / jnp.sqrt(D))
    b2 = jax.random.normal(k_b2, (1, P), dtype=jnp.float32) * 0.01

    # --- check 1: f32 input, f32 weights, single time tile, 2 parallel batch
    # steps (tB = ceil(B/2)); matches PyTorch semantics. ---
    pooled, proj = audio_embedding_forward(hidden_states, w1, b1, w2, b2)
    jax.block_until_ready((pooled, proj))

    ref_pooled, ref_proj = _reference(hidden_states, w1, b1, w2, b2)
    assert pooled.shape == (B, D) and proj.shape == (B, P)
    assert jnp.allclose(pooled, ref_pooled, atol=1e-4, rtol=1e-4)
    assert jnp.allclose(proj, ref_proj, atol=2e-2, rtol=2e-2)

    # --- check 2: bf16 streaming + bf16 (MXU-native) weights + non-divisible T
    # (multiple time tiles with a masked tail), f32 accumulation across tiles,
    # tB = 2 batch rows per tile. A tiny block-byte cap forces nt > 1. ---
    B2, T2 = 4, 40
    hs2 = jax.random.normal(k_h, (B2, T2, D), dtype=jnp.float32).astype(jnp.bfloat16)
    w1b = w1.astype(jnp.bfloat16)
    w2b = w2.astype(jnp.bfloat16)
    pooled2, proj2 = audio_embedding_forward(
        hs2, w1b, b1, w2b, b2, time_block_bytes=32 * 1024)
    jax.block_until_ready((pooled2, proj2))

    ref_pooled2, ref_proj2 = _reference(hs2, w1b, b1, w2b, b2)
    assert pooled2.shape == (B2, D) and proj2.shape == (B2, P)
    assert jnp.allclose(pooled2, ref_pooled2, atol=2e-3, rtol=2e-3)
    assert jnp.allclose(proj2, ref_proj2, atol=3e-2, rtol=3e-2)

    print("KERNEL_OK")
</pallas_src>

<mosaic_0001>
module attributes {stable_mosaic.version = 11 : i64} {
  func.func @_audio_embed_kernel(%arg0: i32, %arg1: i32, %arg2: memref<1x8x768xf32, #tpu.memory_space<vmem>>, %arg3: memref<768x768xf32, #tpu.memory_space<vmem>>, %arg4: memref<1x768xf32, #tpu.memory_space<vmem>>, %arg5: memref<768x256xf32, #tpu.memory_space<vmem>>, %arg6: memref<1x256xf32, #tpu.memory_space<vmem>>, %arg7: memref<1x1x768xf32, #tpu.memory_space<vmem>>, %arg8: memref<1x1x256xf32, #tpu.memory_space<vmem>>, %arg9: memref<1x768xf32, #tpu.memory_space<vmem>>) attributes {dimension_semantics = [#tpu.dimension_semantics<parallel>, #tpu.dimension_semantics<arbitrary>], iteration_bounds = array<i64: 2, 1>, scalar_prefetch = 0 : i64, scratch_operands = 1 : i64, tpu.core_type = #tpu.core_type<tc>, window_params = [{transform_indices = @transform_0, window_bounds = array<i64: 1, 8, 768>}, {pipeline_mode = #tpu.pipeline_mode<synchronous>, transform_indices = @transform_1, window_bounds = array<i64: 768, 768>}, {pipeline_mode = #tpu.pipeline_mode<synchronous>, transform_indices = @transform_2, window_bounds = array<i64: 1, 768>}, {pipeline_mode = #tpu.pipeline_mode<synchronous>, transform_indices = @transform_3, window_bounds = array<i64: 768, 256>}, {pipeline_mode = #tpu.pipeline_mode<synchronous>, transform_indices = @transform_4, window_bounds = array<i64: 1, 256>}, {transform_indices = @transform_5, window_bounds = array<i64: 1, 1, 768>}, {transform_indices = @transform_6, window_bounds = array<i64: 1, 1, 256>}]} {
    %c0_i32 = arith.constant 0 : i32
    %0 = arith.cmpi eq, %arg1, %c0_i32 : i32
    %1 = arith.extui %0 : i1 to i32
    %c0_i32_0 = arith.constant 0 : i32
    %2 = arith.cmpi ne, %1, %c0_i32_0 : i32
    scf.if %2 {
      %cst_9 = arith.constant 0.000000e+00 : f32
      %11 = vector.broadcast %cst_9 : f32 to vector<1x768xf32>
      %c0_10 = arith.constant 0 : index
      %c0_11 = arith.constant 0 : index
      %12 = vector.load %arg9[%c0_10, %c0_11] : memref<1x768xf32, #tpu.memory_space<vmem>>, vector<1x768xf32>
      tpu.vector_store %arg9[%c0_10, %c0_11], %11 {strides = array<i32>} : memref<1x768xf32, #tpu.memory_space<vmem>>, vector<1x768xf32>,
    } else {
    }
    %c0 = arith.constant 0 : index
    %c0_1 = arith.constant 0 : index
    %c0_2 = arith.constant 0 : index
    %3 = vector.load %arg2[%c0, %c0_1, %c0_2] : memref<1x8x768xf32, #tpu.memory_space<vmem>>, vector<1x8x768xf32>
    %c0_3 = arith.constant 0 : index
    %c0_4 = arith.constant 0 : index
    %4 = vector.load %arg9[%c0_3, %c0_4] : memref<1x768xf32, #tpu.memory_space<vmem>>, vector<1x768xf32>
    %cst = arith.constant dense<0.000000e+00> : vector<1x768xf32>
    %5 = vector.multi_reduction <add>, %3, %cst [1] : vector<1x8x768xf32> to vector<1x768xf32>
    %6 = arith.addf %4, %5 : vector<1x768xf32>
    %c0_5 = arith.constant 0 : index
    %c0_6 = arith.constant 0 : index
    %7 = vector.load %arg9[%c0_5, %c0_6] : memref<1x768xf32, #tpu.memory_space<vmem>>, vector<1x768xf32>
    tpu.vector_store %arg9[%c0_5, %c0_6], %6 {strides = array<i32>} : memref<1x768xf32, #tpu.memory_space<vmem>>, vector<1x768xf32>,
    %c0_i32_7 = arith.constant 0 : i32
    %8 = arith.cmpi eq, %arg1, %c0_i32_7 : i32
    %9 = arith.extui %8 : i1 to i32
    %c0_i32_8 = arith.constant 0 : i32
    %10 = arith.cmpi ne, %9, %c0_i32_8 : i32
    scf.if %10 {
      %c0_9 = arith.constant 0 : index
      %c0_10 = arith.constant 0 : index
      %11 = vector.load %arg9[%c0_9, %c0_10] : memref<1x768xf32, #tpu.memory_space<vmem>>, vector<1x768xf32>
      %cst_11 = arith.constant 1.250000e-01 : f32
      %12 = vector.broadcast %cst_11 : f32 to vector<1x768xf32>
      %13 = arith.mulf %11, %12 : vector<1x768xf32>
      %14 = vector.shape_cast %13 : vector<1x768xf32> to vector<1x1x768xf32>
      %c0_12 = arith.constant 0 : index
      %c0_13 = arith.constant 0 : index
      %c0_14 = arith.constant 0 : index
      %15 = vector.load %arg7[%c0_12, %c0_13, %c0_14] : memref<1x1x768xf32, #tpu.memory_space<vmem>>, vector<1x1x768xf32>
      tpu.vector_store %arg7[%c0_12, %c0_13, %c0_14], %14 {strides = array<i32>} : memref<1x1x768xf32, #tpu.memory_space<vmem>>, vector<1x1x768xf32>,
      %c0_15 = arith.constant 0 : index
      %c0_16 = arith.constant 0 : index
      %16 = vector.load %arg3[%c0_15, %c0_16] : memref<768x768xf32, #tpu.memory_space<vmem>>, vector<768x768xf32>
      %cst_17 = arith.constant dense<0.000000e+00> : vector<1x768xf32>
      %17 = tpu.matmul %13, %16, %cst_17 {dimension_numbers = #tpu.dot_dimension_numbers<[1], [0], [0], [1], [0, 0, 1, 1], [], []>} : vector<1x768xf32>, vector<768x768xf32>, vector<1x768xf32> -> vector<1x768xf32>
      %c0_18 = arith.constant 0 : index
      %c0_19 = arith.constant 0 : index
      %18 = vector.load %arg4[%c0_18, %c0_19] : memref<1x768xf32, #tpu.memory_space<vmem>>, vector<1x768xf32>
      %19 = arith.addf %17, %18 : vector<1x768xf32>
      %cst_20 = arith.constant 0.000000e+00 : f32
      %20 = vector.broadcast %cst_20 : f32 to vector<1x768xf32>
      %21 = arith.maximumf %19, %20 : vector<1x768xf32>
      %c0_21 = arith.constant 0 : index
      %c0_22 = arith.constant 0 : index
      %22 = vector.load %arg5[%c0_21, %c0_22] : memref<768x256xf32, #tpu.memory_space<vmem>>, vector<768x256xf32>
      %cst_23 = arith.constant dense<0.000000e+00> : vector<1x256xf32>
      %23 = tpu.matmul %21, %22, %cst_23 {dimension_numbers = #tpu.dot_dimension_numbers<[1], [0], [0], [1], [0, 0, 1, 1], [], []>} : vector<1x768xf32>, vector<768x256xf32>, vector<1x256xf32> -> vector<1x256xf32>
      %c0_24 = arith.constant 0 : index
      %c0_25 = arith.constant 0 : index
      %24 = vector.load %arg6[%c0_24, %c0_25] : memref<1x256xf32, #tpu.memory_space<vmem>>, vector<1x256xf32>
      %25 = arith.addf %23, %24 : vector<1x256xf32>
      %26 = vector.shape_cast %25 : vector<1x256xf32> to vector<1x1x256xf32>
      %c0_26 = arith.constant 0 : index
      %c0_27 = arith.constant 0 : index
      %c0_28 = arith.constant 0 : index
      %27 = vector.load %arg8[%c0_26, %c0_27, %c0_28] : memref<1x1x256xf32, #tpu.memory_space<vmem>>, vector<1x1x256xf32>
      tpu.vector_store %arg8[%c0_26, %c0_27, %c0_28], %26 {strides = array<i32>} : memref<1x1x256xf32, #tpu.memory_space<vmem>>, vector<1x1x256xf32>,
    } else {
    }
    return
  }
  func.func @transform_0(%arg0: i32, %arg1: i32) -> (i32, i32, i32) {
    %c0_i32 = arith.constant 0 : i32
    %c0_i32_0 = arith.constant 0 : i32
    return %arg0, %arg1, %c0_i32 : i32, i32, i32
  }
  func.func @transform_1(%arg0: i32, %arg1: i32) -> (i32, i32) {
    %c0_i32 = arith.constant 0 : i32
    %c0_i32_0 = arith.constant 0 : i32
    %c0_i32_1 = arith.constant 0 : i32
    return %c0_i32, %c0_i32_0 : i32, i32
  }
  func.func @transform_2(%arg0: i32, %arg1: i32) -> (i32, i32) {
    %c0_i32 = arith.constant 0 : i32
    %c0_i32_0 = arith.constant 0 : i32
    %c0_i32_1 = arith.constant 0 : i32
    return %c0_i32, %c0_i32_0 : i32, i32
  }
  func.func @transform_3(%arg0: i32, %arg1: i32) -> (i32, i32) {
    %c0_i32 = arith.constant 0 : i32
    %c0_i32_0 = arith.constant 0 : i32
    %c0_i32_1 = arith.constant 0 : i32
    return %c0_i32, %c0_i32_0 : i32, i32
  }
  func.func @transform_4(%arg0: i32, %arg1: i32) -> (i32, i32) {
    %c0_i32 = arith.constant 0 : i32
    %c0_i32_0 = arith.constant 0 : i32
    %c0_i32_1 = arith.constant 0 : i32
    return %c0_i32, %c0_i32_0 : i32, i32
  }
  func.func @transform_5(%arg0: i32, %arg1: i32) -> (i32, i32, i32) {
    %c0_i32 = arith.constant 0 : i32
    %c0_i32_0 = arith.constant 0 : i32
    %c0_i32_1 = arith.constant 0 : i32
    return %arg0, %c0_i32, %c0_i32_0 : i32, i32, i32
  }
  func.func @transform_6(%arg0: i32, %arg1: i32) -> (i32, i32, i32) {
    %c0_i32 = arith.constant 0 : i32
    %c0_i32_0 = arith.constant 0 : i32
    %c0_i32_1 = arith.constant 0 : i32
    return %arg0, %c0_i32, %c0_i32_0 : i32, i32, i32
  }
}

module attributes {stable_mosaic.version = 11 : i64} {
  func.func @_audio_embed_kernel(%arg0: i32, %arg1: i32, %arg2: memref<1x8x768xf32, #tpu.memory_space<vmem>>, %arg3: memref<768x768xf32, #tpu.memory_space<vmem>>, %arg4: memref<1x768xf32, #tpu.memory_space<vmem>>, %arg5: memref<768x256xf32, #tpu.memory_space<vmem>>, %arg6: memref<1x256xf32, #tpu.memory_space<vmem>>, %arg7: memref<1x1x768xf32, #tpu.memory_space<vmem>>, %arg8: memref<1x1x256xf32, #tpu.memory_space<vmem>>, %arg9: memref<1x768xf32, #tpu.memory_space<vmem>>) attributes {dimension_semantics = [#tpu.dimension_semantics<parallel>, #tpu.dimension_semantics<arbitrary>], iteration_bounds = array<i64: 2, 1>, scalar_prefetch = 0 : i64, scratch_operands = 1 : i64, tpu.core_type = #tpu.core_type<tc>, window_params = [{transform_indices = @transform_0, window_bounds = array<i64: 1, 8, 768>}, {pipeline_mode = #tpu.pipeline_mode<synchronous>, transform_indices = @transform_1, window_bounds = array<i64: 768, 768>}, {pipeline_mode = #tpu.pipeline_mode<synchronous>, transform_indices = @transform_2, window_bounds = array<i64: 1, 768>}, {pipeline_mode = #tpu.pipeline_mode<synchronous>, transform_indices = @transform_3, window_bounds = array<i64: 768, 256>}, {pipeline_mode = #tpu.pipeline_mode<synchronous>, transform_indices = @transform_4, window_bounds = array<i64: 1, 256>}, {transform_indices = @transform_5, window_bounds = array<i64: 1, 1, 768>}, {transform_indices = @transform_6, window_bounds = array<i64: 1, 1, 256>}]} {
    %c0_i32 = arith.constant 0 : i32
    %0 = arith.cmpi eq, %arg1, %c0_i32 : i32
    %1 = arith.extui %0 : i1 to i32
    %c0_i32_0 = arith.constant 0 : i32
    %2 = arith.cmpi ne, %1, %c0_i32_0 : i32
    scf.if %2 {
      %cst_9 = arith.constant 0.000000e+00 : f32
      %11 = vector.broadcast %cst_9 : f32 to vector<1x768xf32>
      %c0_10 = arith.constant 0 : index
      %c0_11 = arith.constant 0 : index
      %12 = vector.load %arg9[%c0_10, %c0_11] : memref<1x768xf32, #tpu.memory_space<vmem>>, vector<1x768xf32>
      tpu.vector_store %arg9[%c0_10, %c0_11], %11 {strides = array<i32>} : memref<1x768xf32, #tpu.memory_space<vmem>>, vector<1x768xf32>,
    } else {
    }
    %c0 = arith.constant 0 : index
    %c0_1 = arith.constant 0 : index
    %c0_2 = arith.constant 0 : index
    %3 = vector.load %arg2[%c0, %c0_1, %c0_2] : memref<1x8x768xf32, #tpu.memory_space<vmem>>, vector<1x8x768xf32>
    %c0_3 = arith.constant 0 : index
    %c0_4 = arith.constant 0 : index
    %4 = vector.load %arg9[%c0_3, %c0_4] : memref<1x768xf32, #tpu.memory_space<vmem>>, vector<1x768xf32>
    %cst = arith.constant dense<0.000000e+00> : vector<1x768xf32>
    %5 = vector.multi_reduction <add>, %3, %cst [1] : vector<1x8x768xf32> to vector<1x768xf32>
    %6 = arith.addf %4, %5 : vector<1x768xf32>
    %c0_5 = arith.constant 0 : index
    %c0_6 = arith.constant 0 : index
    %7 = vector.load %arg9[%c0_5, %c0_6] : memref<1x768xf32, #tpu.memory_space<vmem>>, vector<1x768xf32>
    tpu.vector_store %arg9[%c0_5, %c0_6], %6 {strides = array<i32>} : memref<1x768xf32, #tpu.memory_space<vmem>>, vector<1x768xf32>,
    %c0_i32_7 = arith.constant 0 : i32
    %8 = arith.cmpi eq, %arg1, %c0_i32_7 : i32
    %9 = arith.extui %8 : i1 to i32
    %c0_i32_8 = arith.constant 0 : i32
    %10 = arith.cmpi ne, %9, %c0_i32_8 : i32
    scf.if %10 {
      %c0_9 = arith.constant 0 : index
      %c0_10 = arith.constant 0 : index
      %11 = vector.load %arg9[%c0_9, %c0_10] : memref<1x768xf32, #tpu.memory_space<vmem>>, vector<1x768xf32>
      %cst_11 = arith.constant 1.250000e-01 : f32
      %12 = vector.broadcast %cst_11 : f32 to vector<1x768xf32>
      %13 = arith.mulf %11, %12 : vector<1x768xf32>
      %14 = vector.shape_cast %13 : vector<1x768xf32> to vector<1x1x768xf32>
      %c0_12 = arith.constant 0 : index
      %c0_13 = arith.constant 0 : index
      %c0_14 = arith.constant 0 : index
      %15 = vector.load %arg7[%c0_12, %c0_13, %c0_14] : memref<1x1x768xf32, #tpu.memory_space<vmem>>, vector<1x1x768xf32>
      tpu.vector_store %arg7[%c0_12, %c0_13, %c0_14], %14 {strides = array<i32>} : memref<1x1x768xf32, #tpu.memory_space<vmem>>, vector<1x1x768xf32>,
      %c0_15 = arith.constant 0 : index
      %c0_16 = arith.constant 0 : index
      %16 = vector.load %arg3[%c0_15, %c0_16] : memref<768x768xf32, #tpu.memory_space<vmem>>, vector<768x768xf32>
      %cst_17 = arith.constant dense<0.000000e+00> : vector<1x768xf32>
      %17 = tpu.matmul %13, %16, %cst_17 {dimension_numbers = #tpu.dot_dimension_numbers<[1], [0], [0], [1], [0, 0, 1, 1], [], []>} : vector<1x768xf32>, vector<768x768xf32>, vector<1x768xf32> -> vector<1x768xf32>
      %c0_18 = arith.constant 0 : index
      %c0_19 = arith.constant 0 : index
      %18 = vector.load %arg4[%c0_18, %c0_19] : memref<1x768xf32, #tpu.memory_space<vmem>>, vector<1x768xf32>
      %19 = arith.addf %17, %18 : vector<1x768xf32>
      %cst_20 = arith.constant 0.000000e+00 : f32
      %20 = vector.broadcast %cst_20 : f32 to vector<1x768xf32>
      %21 = arith.maximumf %19, %20 : vector<1x768xf32>
      %c0_21 = arith.constant 0 : index
      %c0_22 = arith.constant 0 : index
      %22 = vector.load %arg5[%c0_21, %c0_22] : memref<768x256xf32, #tpu.memory_space<vmem>>, vector<768x256xf32>
      %cst_23 = arith.constant dense<0.000000e+00> : vector<1x256xf32>
      %23 = tpu.matmul %21, %22, %cst_23 {dimension_numbers = #tpu.dot_dimension_numbers<[1], [0], [0], [1], [0, 0, 1, 1], [], []>} : vector<1x768xf32>, vector<768x256xf32>, vector<1x256xf32> -> vector<1x256xf32>
      %c0_24 = arith.constant 0 : index
      %c0_25 = arith.constant 0 : index
      %24 = vector.load %arg6[%c0_24, %c0_25] : memref<1x256xf32, #tpu.memory_space<vmem>>, vector<1x256xf32>
      %25 = arith.addf %23, %24 : vector<1x256xf32>
      %26 = vector.shape_cast %25 : vector<1x256xf32> to vector<1x1x256xf32>
      %c0_26 = arith.constant 0 : index
      %c0_27 = arith.constant 0 : index
      %c0_28 = arith.constant 0 : index
      %27 = vector.load %arg8[%c0_26, %c0_27, %c0_28] : memref<1x1x256xf32, #tpu.memory_space<vmem>>, vector<1x1x256xf32>
      tpu.vector_store %arg8[%c0_26, %c0_27, %c0_28], %26 {strides = array<i32>} : memref<1x1x256xf32, #tpu.memory_space<vmem>>, vector<1x1x256xf32>,
    } else {
    }
    return
  }
  func.func @transform_0(%arg0: i32, %arg1: i32) -> (i32, i32, i32) {
    %c0_i32 = arith.constant 0 : i32
    %c0_i32_0 = arith.constant 0 : i32
    return %arg0, %arg1, %c0_i32 : i32, i32, i32
  }
  func.func @transform_1(%arg0: i32, %arg1: i32) -> (i32, i32) {
    %c0_i32 = arith.constant 0 : i32
    %c0_i32_0 = arith.constant 0 : i32
    %c0_i32_1 = arith.constant 0 : i32
    return %c0_i32, %c0_i32_0 : i32, i32
  }
  func.func @transform_2(%arg0: i32, %arg1: i32) -> (i32, i32) {
    %c0_i32 = arith.constant 0 : i32
    %c0_i32_0 = arith.constant 0 : i32
    %c0_i32_1 = arith.constant 0 : i32
    return %c0_i32, %c0_i32_0 : i32, i32
  }
  func.func @transform_3(%arg0: i32, %arg1: i32) -> (i32, i32) {
    %c0_i32 = arith.constant 0 : i32
    %c0_i32_0 = arith.constant 0 : i32
    %c0_i32_1 = arith.constant 0 : i32
    return %c0_i32, %c0_i32_0 : i32, i32
  }
  func.func @transform_4(%arg0: i32, %arg1: i32) -> (i32, i32) {
    %c0_i32 = arith.constant 0 : i32
    %c0_i32_0 = arith.constant 0 : i32
    %c0_i32_1 = arith.constant 0 : i32
    return %c0_i32, %c0_i32_0 : i32, i32
  }
  func.func @transform_5(%arg0: i32, %arg1: i32) -> (i32, i32, i32) {
    %c0_i32 = arith.constant 0 : i32
    %c0_i32_0 = arith.constant 0 : i32
    %c0_i32_1 = arith.constant 0 : i32
    return %arg0, %c0_i32, %c0_i32_0 : i32, i32, i32
  }
  func.func @transform_6(%arg0: i32, %arg1: i32) -> (i32, i32, i32) {
    %c0_i32 = arith.constant 0 : i32
    %c0_i32_0 = arith.constant 0 : i32
    %c0_i32_1 = arith.constant 0 : i32
    return %arg0, %c0_i32, %c0_i32_0 : i32, i32, i32
  }
}

</mosaic_0001>

<bundles_post_ra>
// kernel: tpu_custom_call.1
= control target key start
LH: loop header
LB: loop body
LE: loop exit
PB: predicated region body
PF: predicated region fallthrough
CT: control target
= control target key end

     0   :  { %s4068_s0 = inlined_call_operand.hbm [shape: f32[2,8,768], index: 0, kind: input, shape index: {}]   ;;  %s4069_s1 = inlined_call_operand.hbm [shape: f32[768,768], index: 1, kind: input, shape index: {}]   ;;  %s4070_s2 = inlined_call_operand.hbm [shape: f32[1,768], index: 2, kind: input, shape index: {}]   ;;  %s4071_s3 = inlined_call_operand.hbm [shape: f32[768,256], index: 3, kind: input, shape index: {}]   ;;  %s4072_s4 = inlined_call_operand.hbm [shape: f32[1,256], index: 4, kind: input, shape index: {}]   ;;  %s4073_s5 = inlined_call_operand.hbm [shape: f32[2,1,768], index: 5, kind: output, shape index: {0}]   ;;  %s4074_s6 = inlined_call_operand.hbm [shape: f32[2,1,256], index: 6, kind: output, shape index: {1}]  }
   0x1   :  { %4080 = sst [smem:[#allocation20_spill]] %s4069_s1 }
   0x2   :  { %4081 = sst [smem:[#allocation21_spill]] %s4070_s2 }
   0x3   :  { %12 = vsyncpa [#allocation4], 0 }
   0x4   :  { %14 = vsyncpa [#allocation4 + $0x1], 0 }
   0x5   :  { %15 = vsyncpa [#allocation7], 0 }
   0x6   :  { %16 = vsyncpa [#allocation10], 0 }
   0x7   :  { %17 = vsyncpa [#allocation5], 0 }
   0x8   :  { %19 = vsyncpa [#allocation5 + $0x1], 0 }
   0x9   :  { %20 = vsyncpa [#allocation14], 0 }
   0xa   :  { %22 = vsyncpa [#allocation14 + $0x1], 0  ;;  %s3614_s21 = smov 0   ;;  %s3616_s22 = smov 0  }
   0xb   :  { %s3618_s23 = smov 0   ;;  %s3620_s24 = smov 0  }
   0xc   :  { %s3622_s25 = smov 0   ;;  %s3624_s26 = smov 0  }
   0xd LB: > { %s4075_s27 = sadd.s32 4294967295, %s3564_s26   ;;  %p2369_p0 = scmp.ge.s32.totalorder %s3564_s26, 1  ;;  %s3564_s26 = sphi %s3624_s26, %s28_s26   ;;  %s3560_s25 = sphi %s3622_s25, %s4106_s25   ;;  %s3556_s24 = sphi %s3620_s24, %s4105_s24   ;;  %s3552_s23 = sphi %s3618_s23, %s4104_s23   ;;  %s3548_s22 = sphi %s3616_s22, %s4103_s22   ;;  %s3544_s21 = sphi %s3614_s21, %s4102_s21  }
   0xe   : > { %p3648_p1 = scmp.eq.s32.totalorder %s4075_s27, 0  ;;  %p209_p2 = scmp.lt.s32.totalorder %s3564_s26, 3 }
   0xf   : > { %s3566_s30 = smov [#allocation6]   ;;  %s3567_s9 = smov [#allocation9]  }
  0x10   : > { %s4082_s28 = scalar_select %p3648_p1, 1, 0 }
  0x11   : > { %p3653_p3 = pnand %p2369_p0, %p209_p2  ;;  %s221_s7 = sshll.u32 %s3566_s30, 4  ;;  %s3657_s7 = int_to_ptr.vmem [resolvable:$true] %s221_s7 }
  0x12   : > { %s245_s10 = sshll.u32 %s3567_s9, 4  ;;  %s4085_s1 = sld [smem:[#allocation20_spill]]  ;;  %s3668_s10 = int_to_ptr.vmem [resolvable:$true] %s245_s10 }
  0x13   : > { %s4083_s29 = scalar_select %p3653_p3, 1, 0 }
  0x14   : > { %p3208_p4 = pneg %p3653_p3 }
  0x16   : > { %p3664_p6 = pnand %p3208_p4, %p3648_p1 }
  0x18   : > { %s3300_s13 = scalar_lea.hbm %s4085_s1, 73728  ;;  %p3678_p8 = pneg %p3664_p6 }
  0x19   : > { %p3301_p7 = scmp.ne.s32.totalorder %s4085_s1, %s3300_s13  ;;  %p3307_p11 = scmp.lt.u32.totalorder %s3300_s13, %s4085_s1 }
  0x1b   : > { %p3303_p9 = pnand %p3678_p8, %p3301_p7 }
  0x1d   : > { %p3304_p10 = pneg %p3303_p9 }
  0x1f   : > { %p3309_p12 = pnand %p3307_p11, %p3304_p10 }
  0x21   : > { %3312 = shalt.err (!%p3309_p12)
}
  0x22   : > { %s3313_s19 = scalar_lea.vmem %s3657_s7, 73728  ;;  %p3321_p4 = scmp.lt.s32.totalorder %s3657_s7, %s3657_s7 }
  0x23   : > { %p3314_p13 = scmp.ne.s32.totalorder %s3657_s7, %s3313_s19  ;;  %p3322_p5 = scmp.lt.s32.totalorder %s3313_s19, %s3313_s19 }
  0x25   : > { %p3316_p0 = pnand %p3314_p13, %p3678_p8  ;;  %p3323_p7 = por %p3322_p5, %p3321_p4 }
  0x27   : > { %p3317_p2 = pneg %p3316_p0 }
  0x29   : > { %p3324_p9 = pnand %p3323_p7, %p3317_p2 }
  0x2b   : > { %3327 = shalt.err (!%p3324_p9)
}
  0x2c   : > { %s3568_s20 = smov 768   ;;  %s3569_s30 = smov 48  }
  0x2d   : > { %3211 = dma.hbm_to_vmem [thread:$0]  (!%p3664_p6), %s4085_s1, 73728, %s3657_s7, [#allocation7], %s3568_s20, %s3568_s20, %s3569_s30  }
  0x2e   : > { %s3328_s14 = scalar_lea.hbm %s4071_s3, 24576 }
  0x2f   : > { %p3329_p5 = scmp.ne.s32.totalorder %s4071_s3, %s3328_s14  ;;  %p3335_p12 = scmp.lt.u32.totalorder %s3328_s14, %s4071_s3 }
  0x31   : > { %p3331_p10 = pnand %p3329_p5, %p3678_p8 }
  0x33   : > { %p3332_p11 = pneg %p3331_p10 }
  0x35   : > { %p3337_p13 = pnand %p3335_p12, %p3332_p11 }
  0x37   : > { %3340 = shalt.err (!%p3337_p13)
}
  0x38   : > { %s3341_s7 = scalar_lea.vmem %s3668_s10, 24576  ;;  %p3349_p7 = scmp.lt.s32.totalorder %s3668_s10, %s3668_s10 }
  0x39   : > { %p3342_p0 = scmp.ne.s32.totalorder %s3668_s10, %s3341_s7  ;;  %p3350_p9 = scmp.lt.s32.totalorder %s3341_s7, %s3341_s7 }
  0x3b   : > { %p3344_p2 = pnand %p3342_p0, %p3678_p8  ;;  %p3351_p5 = por %p3350_p9, %p3349_p7 }
  0x3d   : > { %p3345_p4 = pneg %p3344_p2 }
  0x3f   : > { %p3352_p10 = pnand %p3351_p5, %p3345_p4 }
  0x41   : > { %3355 = shalt.err (!%p3352_p10)
}
  0x42   : > { %s3570_s20 = smov 256   ;;  %s3571_s30 = smov 16  }
  0x43   : > { %3217 = dma.hbm_to_vmem [thread:$0]  (!%p3664_p6), %s4071_s3, 24576, %s3668_s10, [#allocation10], %s3570_s20, %s3570_s20, %s3571_s30  }
  0x44   : > { %s3572_s12 = smov [#allocation8]   ;;  %s3573_s14 = smov [#allocation11]  }
  0x45   : > { %s235_s13 = sshll.u32 %s3572_s12, 4  ;;  %s259_s15 = sshll.u32 %s3573_s14, 4  ;;  %s236_s13 = int_to_ptr.vmem [resolvable:$true] %s235_s13  ;;  %s3722_s15 = int_to_ptr.vmem [resolvable:$true] %s259_s15 }
  0x46   : > { %s4087_s2 = sld [smem:[#allocation21_spill]] }
  0x4c   : > { %s3356_s19 = scalar_lea.hbm %s4087_s2, 96 }
  0x4d   : > { %p3357_p11 = scmp.ne.s32.totalorder %s4087_s2, %s3356_s19  ;;  %p3363_p0 = scmp.lt.u32.totalorder %s3356_s19, %s4087_s2 }
  0x4f   : > { %p3359_p12 = pnand %p3357_p11, %p3678_p8 }
  0x51   : > { %p3360_p13 = pneg %p3359_p12 }
  0x53   : > { %p3365_p2 = pnand %p3363_p0, %p3360_p13 }
  0x55   : > { %3368 = shalt.err (!%p3365_p2)
}
  0x56   : > { %s3369_s20 = scalar_lea.vmem %s236_s13, 96  ;;  %p3377_p5 = scmp.lt.s32.totalorder %s236_s13, %s236_s13 }
  0x57   : > { %p3370_p4 = scmp.ne.s32.totalorder %s236_s13, %s3369_s20  ;;  %p3378_p10 = scmp.lt.s32.totalorder %s3369_s20, %s3369_s20 }
  0x59   : > { %p3372_p7 = pnand %p3370_p4, %p3678_p8  ;;  %p3379_p3 = por %p3378_p10, %p3377_p5 }
  0x5b   : > { %p3373_p9 = pneg %p3372_p7 }
  0x5d   : > { %p3380_p1 = pnand %p3379_p3, %p3373_p9 }
  0x5f   : > { %3383 = shalt.err (!%p3380_p1)
}
  0x60   : > { %3214 = dma.hbm_to_vmem [thread:$0]  (!%p3664_p6), %s4087_s2, 96, %s236_s13, [#allocation7]  }
  0x61   : > { %s3384_s14 = scalar_lea.hbm %s4072_s4, 32 }
  0x62   : > { %p3385_p11 = scmp.ne.s32.totalorder %s4072_s4, %s3384_s14  ;;  %p3391_p1 = scmp.lt.u32.totalorder %s3384_s14, %s4072_s4 }
  0x64   : > { %p3387_p12 = pnand %p3385_p11, %p3678_p8 }
  0x66   : > { %p3388_p13 = pneg %p3387_p12 }
  0x68   : > { %p3393_p3 = pnand %p3391_p1, %p3388_p13 }
  0x6a   : > { %3396 = shalt.err (!%p3393_p3)
}
  0x6b   : > { %s3397_s13 = scalar_lea.vmem %s3722_s15, 32  ;;  %p3405_p7 = scmp.lt.s32.totalorder %s3722_s15, %s3722_s15 }
  0x6c   : > { %p3398_p0 = scmp.ne.s32.totalorder %s3722_s15, %s3397_s13  ;;  %p3406_p9 = scmp.lt.s32.totalorder %s3397_s13, %s3397_s13 }
  0x6e   : > { %p3400_p2 = pnand %p3398_p0, %p3678_p8  ;;  %p3407_p5 = por %p3406_p9, %p3405_p7 }
  0x70   : > { %p3401_p4 = pneg %p3400_p2 }
  0x72   : > { %p3408_p10 = pnand %p3407_p5, %p3401_p4 }
  0x74   : > { %3411 = shalt.err (!%p3408_p10)
}
  0x75   : > { %3220 = dma.hbm_to_vmem [thread:$0]  (!%p3664_p6), %s4072_s4, 32, %s3722_s15, [#allocation10]  }
  0x76   : > { %s2368_s16 = sadd.s32 4294967294, %s3564_s26   ;;  %s40_s20 = sadd.s32 1, %s3560_s25 }
  0x77   : > { %p42_p8 = scmp.ge.s32.totalorder %s40_s20, 2  ;;  %s49_s8 = sadd.s32 1, %s3552_s23 }
  0x78   : > { %p56_p11 = scmp.ne.s32.totalorder %s3552_s23, %s3548_s22  ;;  %p57_p12 = scmp.eq.s32.totalorder %s3564_s26, 0 }
  0x79   : > { %s4108_s20 = smov (%p42_p8, %s40_s20), 0  ;;  %p62_p1 = scmp.ne.s32.totalorder %s3548_s22, %s3544_s21 }
  0x7a   : > { %p3773_p13 = por %p57_p12, %p56_p11  ;;  %s44_s15 = ssub.s32 %s3560_s25, %s4108_s20 }
  0x7b   : > { %s4089_s30 = sadd.s32 4294967295, %s3564_s26   ;;  %p47_p3 = scmp.eq.s32.totalorder %s44_s15, 0 }
  0x7c   : > { %p170_p6 = scmp.eq.s32.totalorder %s4089_s30, 1  ;;  %p4090_p0 = scmp.ne.s32.totalorder %s4082_s28, 0 }
  0x7d   : > { %p176_p7 = scmp.eq.s32.totalorder %s2368_s16, 1  ;;  %p3236_p5 = scmp.lt.s32.totalorder %s3564_s26, 2 }
  0x7e   : > { %p3785_p2 = por %p4090_p0, %p62_p1  ;;  %p3789_p4 = por %p170_p6, %p56_p11 }
  0x7f   : > { %s3794_s14 = scalar_select %p47_p3, %s3552_s23, %s49_s8  }
  0x80   : > { %s4092_s12 = scalar_select %p3789_p4, 1, 0 }
  0x81   : > { %p3796_p9 = por %p176_p7, %p62_p1  ;;  %s270_s18 = sand.u32 1, %s3552_s23  }
  0x82   : > { %s3182_s19 = smul.u32 768, %s3560_s25  ;;  %p3805_p10 = pnand %p3236_p5, %p3773_p13 }
  0x83   : > { %s4093_s17 = scalar_select %p3796_p9, 1, 0 }
  0x84   : > { %s3181_s7 = smul.u32 48, %s270_s18  ;;  %s3812_s16 = scalar_lea.hbm %s4068_s0, %s3182_s19 }
  0x85   : > { %s271_s27 = scalar_lea.sflag [#allocation4], %s270_s18  ;;  %s3412_s30 = scalar_lea.hbm %s3812_s16, 768 }
  0x86   : > { %s274_s8 = scalar_lea.vmem [#allocation3], %s3181_s7  ;;  %p3413_p8 = scmp.ne.s32.totalorder %s3812_s16, %s3412_s30 }
  0x87   : > { %s284_s15 = sshll.u32 %s274_s8, 4  ;;  %p3414_p11 = pneg %p3805_p10  ;;  %s3814_s15 = int_to_ptr.vmem [resolvable:$true] %s284_s15 }
  0x88   : > { %s3417_s10 = scalar_lea.hbm %s4068_s0, 1536  ;;  %p3418_p1 = scmp.lt.u32.totalorder %s3812_s16, %s4068_s0 }
  0x89   : > { %p3415_p12 = pnand %p3414_p11, %p3413_p8  ;;  %p3419_p6 = scmp.lt.u32.totalorder %s3417_s10, %s3412_s30 }
  0x8a   : > { %p3421_p0 = scmp.lt.u32.totalorder %s3412_s30, %s3812_s16 }
  0x8b   : > { %p3416_p13 = pneg %p3415_p12  ;;  %p3420_p3 = por %p3419_p6, %p3418_p1 }
  0x8d   : > { %p3422_p7 = por %p3421_p0, %p3420_p3 }
  0x8f   : > { %p3423_p5 = pnand %p3422_p7, %p3416_p13 }
  0x91   : > { %3426 = shalt.err (!%p3423_p5)
}
  0x92   : > { %s3427_s18 = scalar_lea.vmem %s3814_s15, 768  ;;  %s3574_s7 = smov [#allocation3]  }
  0x93   : > { %p3428_p8 = scmp.ne.s32.totalorder %s3814_s15, %s3427_s18  ;;  %s3432_s8 = sshll.u32 %s3574_s7, 4  ;;  %s3433_s8 = int_to_ptr.vmem [resolvable:$false] %s3432_s8 }
  0x94   : > { %s3434_s1 = scalar_lea.vmem %s3433_s8, 1536  ;;  %p3435_p4 = scmp.lt.s32.totalorder %s3814_s15, %s3433_s8 }
  0x95   : > { %p3430_p12 = pnand %p3428_p8, %p3414_p11  ;;  %p3436_p1 = scmp.lt.s32.totalorder %s3434_s1, %s3427_s18 }
  0x97   : > { %p3431_p9 = pneg %p3430_p12  ;;  %p3437_p6 = por %p3436_p1, %p3435_p4 }
  0x99   : > { %p3438_p3 = pnand %p3437_p6, %p3431_p9 }
  0x9b   : > { %3441 = shalt.err (!%p3438_p3)
}
  0x9c   : > { %3224 = dma.hbm_to_vmem [thread:$0]  (!%p3805_p10), %s3812_s16, 768, %s3814_s15, %s271_s27  }
  0x9d   : > { %p4095_p13 = scmp.ne.s32.totalorder %s4083_s29, 0 }
  0x9e   : > { %s3844_s2 = sand.u32 (!%p4095_p13), 1, %s3548_s22  }
  0x9f   : > { %293 = sbr.rel (%p4095_p13) target bundleno = 1022 (0x3fe), region = 40  ;;  %s296_s9 = scalar_lea.sflag (!%p4095_p13), [#allocation4], %s3844_s2 }
  0xa0   : > { %s3183_s30 = smul.u32 (!%p4095_p13), 48, %s3844_s2 }
  0xa2   : > { %s3848_s19 = scalar_lea.vmem (!%p4095_p13), [#allocation3], %s3183_s30 }
  0xa6   : > { %3523 = dma.done.wait (%p3785_p2), %s296_s9, 768  }
  0xa7   : > { %3525 = vsyncadd (%p3785_p2), %s296_s9, 4294966528  ;;  %p4096_p4 = scmp.ne.s32.totalorder %s4082_s28, 0 }
  0xa9   : > { %3527 = dma.done.wait (%p4096_p4), [#allocation7], 73824  }
  0xaa   : > { %3529 = vsyncadd (%p4096_p4), [#allocation7], 4294893472 }
  0xab   : > { %3531 = dma.done.wait (%p4096_p4), [#allocation10], 24608  }
  0xac   : > { %3533 = vsyncadd (%p4096_p4), [#allocation10], 4294942688  ;;  %v353_v0 = vlaneseq  ;;  %v3575_v2 = vmov 0.0   ;;  %v461_v3 = vld [vmem:[#allocation6 + $0x8] sm:$0xff]  ;;  %v467_v4 = vld [vmem:[#allocation6 + $0x38] sm:$0xff]  ;;  %s3184_s28 = smul.u32 6, %s3844_s2 }
  0xad   : > { %v460_v5 = vld [vmem:[#allocation6] sm:$0xff]  ;;  %v2389_v6 = vpack.c.bf16 %v467_v4, %v461_v3  ;;  %v466_v7 = vld [vmem:[#allocation6 + $0x30] sm:$0xff]  ;;  %v463_v8 = vld [vmem:[#allocation6 + $0x18] sm:$0xff]  ;;  %s3185_s29 = smul.u32 96, %s3556_s24  ;;  %s2183_s10 = scalar_lea.sflag [#allocation5], %s3844_s2 }
  0xae   : > { %vm3863_vm0 = vcmp.lt.s32.totalorder %v353_v0, 768  ;;  %v469_v9 = vld [vmem:[#allocation6 + $0x48] sm:$0xff]  ;;  %v2391_v10 = vpack.c.bf16 %v466_v7, %v460_v5  ;;  %v462_v12 = vld [vmem:[#allocation6 + $0x10] sm:$0xff]  ;;  %v468_v13 = vld [vmem:[#allocation6 + $0x40] sm:$0xff]  ;;  %s341_s11 = scalar_lea.vmem [#allocation12], %s3184_s28  ;;  %p4099_p9 = scmp.ne.s32.totalorder %s4092_s12, 0 }
  0xaf   : > { %357 = vst.msk [vmem:[#allocation2] sm:$0x3f] %vm3863_vm0, %v3575_v2  ;;  %v2581_v11 = vpack.c.bf16 %v469_v9, %v463_v8  ;;  %v473_v14 = vld [vmem:[#allocation6 + $0x68] sm:$0xff]  ;;  %2390 = vmatprep.subr.bf16.mxu0 %v2389_v6  ;;  %v2583_v15 = vpack.c.bf16 %v468_v13, %v462_v12  ;;  %v479_v16 = vld [vmem:[#allocation6 + $0x98] sm:$0xff]  ;;  %v472_v17 = vld [vmem:[#allocation6 + $0x60] sm:$0xff]  ;;  %s3989_s15 = scalar_lea.hbm %s4073_s5, %s3185_s29  ;;  %s2202_s27 = sshll.u32 %s341_s11, 4  ;;  %s2203_s27 = int_to_ptr.vmem [resolvable:$true] %s2202_s27 }
  0xb0   : > { %v478_v18 = vld [vmem:[#allocation6 + $0x90] sm:$0xff]  ;;  %2392 = vmatpush1.bf16.msra.mxu0 %v2391_v10  ;;  %v2393_v19 = vpack.c.bf16 %v479_v16, %v473_v14  ;;  %v475_v21 = vld [vmem:[#allocation6 + $0x78] sm:$0xff]  ;;  %v481_v22 = vld [vmem:[#allocation6 + $0xa8] sm:$0xff]  ;;  %s3442_s18 = scalar_lea.vmem %s2203_s27, 96  ;;  %s3577_s7 = smov [#allocation12]  }
  0xb1   : > { %2582 = vmatprep.subr.bf16.mxu1 %v2581_v11  ;;  %v2395_v20 = vpack.c.bf16 %v478_v18, %v472_v17  ;;  %v474_v23 = vld [vmem:[#allocation6 + $0x70] sm:$0xff]  ;;  %v2585_v24 = vpack.c.bf16 %v481_v22, %v475_v21  ;;  %v480_v25 = vld [vmem:[#allocation6 + $0xa0] sm:$0xff]  ;;  %v485_v26 = vld [vmem:[#allocation6 + $0xc8] sm:$0xff]  ;;  %p3443_p2 = scmp.ne.s32.totalorder %s2203_s27, %s3442_s18  ;;  %s3446_s8 = sshll.u32 %s3577_s7, 4  ;;  %s3447_s8 = int_to_ptr.vmem [resolvable:$false] %s3446_s8 }
  0xb2   : > { %2584 = vmatpush1.bf16.msra.mxu1 %v2583_v15  ;;  %v491_v27 = vld [vmem:[#allocation6 + $0xf8] sm:$0xff]  ;;  %2394 = vmatprep.subr.bf16.mxu0 %v2393_v19  ;;  %v2587_v28 = vpack.c.bf16 %v480_v25, %v474_v23  ;;  %v484_v30 = vld [vmem:[#allocation6 + $0xc0] sm:$0xff]  ;;  %v490_v31 = vld [vmem:[#allocation6 + $0xf0] sm:$0xff]  ;;  %s3448_s1 = scalar_lea.vmem %s3447_s8, 192  ;;  %p3449_p0 = scmp.lt.s32.totalorder %s2203_s27, %s3447_s8 }
  0xb3   : > { %v2397_v29 = vpack.c.bf16 %v491_v27, %v485_v26  ;;  %v487_v32 = vld [vmem:[#allocation6 + $0xd8] sm:$0xff]  ;;  %2586 = vmatprep.subr.bf16.mxu1 %v2585_v24  ;;  %v493_v33 = vld [vmem:[#allocation6 + $0x108] sm:$0xff]  ;;  %v486_v34 = vld [vmem:[#allocation6 + $0xd0] sm:$0xff]  ;;  %v2399_v36 = vpack.c.bf16 %v490_v31, %v484_v30  ;;  %p3444_p10 = pnand %p3443_p2, %p4099_p9  ;;  %p3450_p7 = scmp.lt.s32.totalorder %s3448_s1, %s3442_s18 }
  0xb4   : > { %v492_v35 = vld [vmem:[#allocation6 + $0x100] sm:$0xff]  ;;  %2396 = vmatpush1.bf16.msra.mxu0 %v2395_v20  ;;  %v2589_v37 = vpack.c.bf16 %v493_v33, %v487_v32  ;;  %v497_v38 = vld [vmem:[#allocation6 + $0x128] sm:$0xff]  ;;  %v503_v39 = vld [vmem:[#allocation6 + $0x158] sm:$0xff] }
  0xb5   : > { %v496_v40 = vld [vmem:[#allocation6 + $0x120] sm:$0xff]  ;;  %2398 = vmatprep.subr.bf16.mxu0 %v2397_v29  ;;  %v2591_v41 = vpack.c.bf16 %v492_v35, %v486_v34  ;;  %v2401_v42 = vpack.c.bf16 %v503_v39, %v497_v38  ;;  %v502_v43 = vld [vmem:[#allocation6 + $0x150] sm:$0xff]  ;;  %v499_v44 = vld [vmem:[#allocation6 + $0x138] sm:$0xff]  ;;  %p3445_p11 = pneg %p3444_p10  ;;  %p3451_p5 = por %p3450_p7, %p3449_p0 }
  0xb6   : > { %2588 = vmatpush1.bf16.msra.mxu1 %v2587_v28  ;;  %v505_v45 = vld [vmem:[#allocation6 + $0x168] sm:$0xff]  ;;  %v498_v47 = vld [vmem:[#allocation6 + $0x130] sm:$0xff]  ;;  %v504_v48 = vld [vmem:[#allocation6 + $0x160] sm:$0xff]  ;;  %v2403_v51 = vpack.c.bf16 %v502_v43, %v496_v40 }
  0xb7   : > { %2590 = vmatprep.subr.bf16.mxu1 %v2589_v37  ;;  %v2593_v46 = vpack.c.bf16 %v505_v45, %v499_v44  ;;  %v509_v49 = vld [vmem:[#allocation6 + $0x188] sm:$0xff]  ;;  %v515_v50 = vld [vmem:[#allocation6 + $0x1b8] sm:$0xff]  ;;  %v2595_v54 = vpack.c.bf16 %v504_v48, %v498_v47  ;;  %v508_v56 = vld [vmem:[#allocation6 + $0x180] sm:$0xff]  ;;  %p3452_p8 = pnand %p3451_p5, %p3445_p11 }
  0xb8   : > { %2400 = vmatpush1.bf16.msra.mxu0 %v2399_v36  ;;  %v511_v52 = vld [vmem:[#allocation6 + $0x198] sm:$0xff]  ;;  %v517_v53 = vld [vmem:[#allocation6 + $0x1c8] sm:$0xff]  ;;  %v2405_v55 = vpack.c.bf16 %v515_v50, %v509_v49  ;;  %v514_v57 = vld [vmem:[#allocation6 + $0x1b0] sm:$0xff] }
  0xb9   : > { %2402 = vmatprep.subr.bf16.mxu0 %v2401_v42  ;;  %v510_v58 = vld [vmem:[#allocation6 + $0x190] sm:$0xff]  ;;  %v2597_v59 = vpack.c.bf16 %v517_v53, %v511_v52  ;;  %v516_v60 = vld [vmem:[#allocation6 + $0x1c0] sm:$0xff]  ;;  %v521_v61 = vld [vmem:[#allocation6 + $0x1e8] sm:$0xff]  ;;  %v2407_v3 = vpack.c.bf16 %v514_v57, %v508_v56 }
  0xba   : > { %2592 = vmatpush1.bf16.msra.mxu1 %v2591_v41  ;;  %v527_v62 = vld [vmem:[#allocation6 + $0x218] sm:$0xff]  ;;  %v529_v2 = vld [vmem:[#allocation6 + $0x228] sm:$0xff]  ;;  %v2599_v4 = vpack.c.bf16 %v516_v60, %v510_v58  ;;  %v520_v6 = vld [vmem:[#allocation6 + $0x1e0] sm:$0xff] }
  0xbb   : > { %2594 = vmatprep.subr.bf16.mxu1 %v2593_v46  ;;  %v523_v63 = vld [vmem:[#allocation6 + $0x1f8] sm:$0xff]  ;;  %v2409_v5 = vpack.c.bf16 %v527_v62, %v521_v61  ;;  %v526_v7 = vld [vmem:[#allocation6 + $0x210] sm:$0xff]  ;;  %v528_v10 = vld [vmem:[#allocation6 + $0x220] sm:$0xff] }
  0xbc   : > { %2404 = vmatpush1.bf16.msra.mxu0 %v2403_v51  ;;  %v522_v8 = vld [vmem:[#allocation6 + $0x1f0] sm:$0xff]  ;;  %v2601_v9 = vpack.c.bf16 %v529_v2, %v523_v63  ;;  %v533_v11 = vld [vmem:[#allocation6 + $0x248] sm:$0xff]  ;;  %v539_v12 = vld [vmem:[#allocation6 + $0x278] sm:$0xff]  ;;  %v2411_v15 = vpack.c.bf16 %v526_v7, %v520_v6 }
  0xbd   : > { %2406 = vmatprep.subr.bf16.mxu0 %v2405_v55  ;;  %v535_v13 = vld [vmem:[#allocation6 + $0x258] sm:$0xff]  ;;  %v541_v14 = vld [vmem:[#allocation6 + $0x288] sm:$0xff]  ;;  %v2603_v16 = vpack.c.bf16 %v528_v10, %v522_v8  ;;  %v2413_v17 = vpack.c.bf16 %v539_v12, %v533_v11  ;;  %v532_v18 = vld [vmem:[#allocation6 + $0x240] sm:$0xff] }
  0xbe   : > { %2596 = vmatpush1.bf16.msra.mxu1 %v2595_v54  ;;  %v538_v19 = vld [vmem:[#allocation6 + $0x270] sm:$0xff]  ;;  %v2605_v21 = vpack.c.bf16 %v541_v14, %v535_v13  ;;  %v540_v22 = vld [vmem:[#allocation6 + $0x280] sm:$0xff]  ;;  %v545_v23 = vld [vmem:[#allocation6 + $0x2a8] sm:$0xff] }
  0xbf   : > { %2598 = vmatprep.subr.bf16.mxu1 %v2597_v59  ;;  %v534_v20 = vld [vmem:[#allocation6 + $0x250] sm:$0xff]  ;;  %v551_v24 = vld [vmem:[#allocation6 + $0x2d8] sm:$0xff]  ;;  %v553_v26 = vld [vmem:[#allocation6 + $0x2e8] sm:$0xff]  ;;  %v2415_v27 = vpack.c.bf16 %v538_v19, %v532_v18 }
  0xc0   : > { %2408 = vmatpush1.bf16.msra.mxu0 %v2407_v3  ;;  %v547_v25 = vld [vmem:[#allocation6 + $0x2b8] sm:$0xff]  ;;  %v2607_v28 = vpack.c.bf16 %v540_v22, %v534_v20  ;;  %v2417_v29 = vpack.c.bf16 %v551_v24, %v545_v23  ;;  %v544_v30 = vld [vmem:[#allocation6 + $0x2a0] sm:$0xff]  ;;  %v550_v31 = vld [vmem:[#allocation6 + $0x2d0] sm:$0xff] }
  0xc1   : > { %2410 = vmatprep.subr.bf16.mxu0 %v2409_v5  ;;  %v546_v32 = vld [vmem:[#allocation6 + $0x2b0] sm:$0xff]  ;;  %v2609_v33 = vpack.c.bf16 %v553_v26, %v547_v25  ;;  %v552_v34 = vld [vmem:[#allocation6 + $0x2e0] sm:$0xff]  ;;  %v557_v35 = vld [vmem:[#allocation6 + $0x308] sm:$0xff]  ;;  %v2419_v39 = vpack.c.bf16 %v550_v31, %v544_v30 }
  0xc2   : > { %2600 = vmatpush1.bf16.msra.mxu1 %v2599_v4  ;;  %v563_v36 = vld [vmem:[#allocation6 + $0x338] sm:$0xff]  ;;  %v565_v38 = vld [vmem:[#allocation6 + $0x348] sm:$0xff]  ;;  %v2611_v40 = vpack.c.bf16 %v552_v34, %v546_v32  ;;  %v556_v42 = vld [vmem:[#allocation6 + $0x300] sm:$0xff] }
  0xc3   : > { %2602 = vmatprep.subr.bf16.mxu1 %v2601_v9  ;;  %v559_v37 = vld [vmem:[#allocation6 + $0x318] sm:$0xff]  ;;  %v2421_v41 = vpack.c.bf16 %v563_v36, %v557_v35  ;;  %v562_v43 = vld [vmem:[#allocation6 + $0x330] sm:$0xff]  ;;  %v564_v46 = vld [vmem:[#allocation6 + $0x340] sm:$0xff]  ;;  %v3881_v36 = vshrl.u32 %v353_v0, 7 }
  0xc4   : > { %2412 = vmatpush1.bf16.msra.mxu0 %v2411_v15  ;;  %v558_v44 = vld [vmem:[#allocation6 + $0x310] sm:$0xff]  ;;  %v2613_v45 = vpack.c.bf16 %v565_v38, %v559_v37  ;;  %v569_v47 = vld [vmem:[#allocation6 + $0x368] sm:$0xff]  ;;  %v575_v48 = vld [vmem:[#allocation6 + $0x398] sm:$0xff]  ;;  %v2423_v51 = vpack.c.bf16 %v562_v43, %v556_v42  ;;  %v3576_v15 = vmov 1966171168  }
  0xc5   : > { %2414 = vmatprep.subr.bf16.mxu0 %v2413_v17  ;;  %v571_v49 = vld [vmem:[#allocation6 + $0x378] sm:$0xff]  ;;  %v577_v50 = vld [vmem:[#allocation6 + $0x3a8] sm:$0xff]  ;;  %v2615_v52 = vpack.c.bf16 %v564_v46, %v558_v44  ;;  %v2425_v53 = vpack.c.bf16 %v575_v48, %v569_v47  ;;  %v568_v54 = vld [vmem:[#allocation6 + $0x360] sm:$0xff] }
  0xc6   : > { %2604 = vmatpush1.bf16.msra.mxu1 %v2603_v16  ;;  %v574_v55 = vld [vmem:[#allocation6 + $0x390] sm:$0xff]  ;;  %v2617_v57 = vpack.c.bf16 %v577_v50, %v571_v49  ;;  %v576_v58 = vld [vmem:[#allocation6 + $0x3a0] sm:$0xff]  ;;  %v581_v59 = vld [vmem:[#allocation6 + $0x3c8] sm:$0xff]  ;;  %v3869_v16 = vunpack.c.l.s4 %v3576_v15 }
  0xc7   : > { %2606 = vmatprep.subr.bf16.mxu1 %v2605_v21  ;;  %v570_v56 = vld [vmem:[#allocation6 + $0x370] sm:$0xff]  ;;  %v587_v60 = vld [vmem:[#allocation6 + $0x3f8] sm:$0xff]  ;;  %v589_v62 = vld [vmem:[#allocation6 + $0x408] sm:$0xff]  ;;  %v2427_v63 = vpack.c.bf16 %v574_v55, %v568_v54 }
  0xc8   : > { %2416 = vmatpush1.bf16.msra.mxu0 %v2415_v27  ;;  %v583_v61 = vld [vmem:[#allocation6 + $0x3d8] sm:$0xff]  ;;  %v580_v2 = vld [vmem:[#allocation6 + $0x3c0] sm:$0xff]  ;;  %v2619_v3 = vpack.c.bf16 %v576_v58, %v570_v56  ;;  %v2429_v4 = vpack.c.bf16 %v587_v60, %v581_v59  ;;  %v586_v5 = vld [vmem:[#allocation6 + $0x3f0] sm:$0xff]  ;;  %v412_v35 = vunpack.c.0.s8 %v3869_v16 }
  0xc9   : > { %2418 = vmatprep.subr.bf16.mxu0 %v2417_v29  ;;  %v582_v6 = vld [vmem:[#allocation6 + $0x3d0] sm:$0xff]  ;;  %v588_v7 = vld [vmem:[#allocation6 + $0x400] sm:$0xff]  ;;  %v2621_v8 = vpack.c.bf16 %v589_v62, %v583_v61  ;;  %v593_v9 = vld [vmem:[#allocation6 + $0x428] sm:$0xff]  ;;  %v2431_v17 = vpack.c.bf16 %v586_v5, %v580_v2 }
  0xca   : > { %2608 = vmatpush1.bf16.msra.mxu1 %v2607_v28  ;;  %v599_v10 = vld [vmem:[#allocation6 + $0x458] sm:$0xff]  ;;  %v592_v11 = vld [vmem:[#allocation6 + $0x420] sm:$0xff]  ;;  %v598_v12 = vld [vmem:[#allocation6 + $0x450] sm:$0xff]  ;;  %v2623_v21 = vpack.c.bf16 %v588_v7, %v582_v6 }
  0xcb   : > { %2610 = vmatprep.subr.bf16.mxu1 %v2609_v33  ;;  %v595_v13 = vld [vmem:[#allocation6 + $0x438] sm:$0xff]  ;;  %v601_v14 = vld [vmem:[#allocation6 + $0x468] sm:$0xff]  ;;  %v594_v18 = vld [vmem:[#allocation6 + $0x430] sm:$0xff]  ;;  %v2433_v22 = vpack.c.bf16 %v599_v10, %v593_v9  ;;  %v2435_v30 = vpack.c.bf16 %v598_v12, %v592_v11 }
  0xcc   : > { %2420 = vmatpush1.bf16.msra.mxu0 %v2419_v39  ;;  %v600_v19 = vld [vmem:[#allocation6 + $0x460] sm:$0xff]  ;;  %v605_v20 = vld [vmem:[#allocation6 + $0x488] sm:$0xff]  ;;  %v611_v23 = vld [vmem:[#allocation6 + $0x4b8] sm:$0xff]  ;;  %v2625_v26 = vpack.c.bf16 %v601_v14, %v595_v13 }
  0xcd   : > { %2422 = vmatprep.subr.bf16.mxu0 %v2421_v41  ;;  %v3871_v24 = vld [vmem:[#allocation6 + $0x480] sm:$0xff]  ;;  %v3873_v25 = vld [vmem:[#allocation6 + $0x4b0] sm:$0xff]  ;;  %v607_v27 = vld [vmem:[#allocation6 + $0x498] sm:$0xff]  ;;  %v2627_v37 = vpack.c.bf16 %v600_v19, %v594_v18  ;;  %v2437_v38 = vpack.c.bf16 %v611_v23, %v605_v20 }
  0xce   : > { %2612 = vmatpush1.bf16.msra.mxu1 %v2611_v40  ;;  %v613_v28 = vld [vmem:[#allocation6 + $0x4c8] sm:$0xff]  ;;  %v358_v29 = vld [vmem:[%s3848_s19] sm:$0xff]  ;;  %v360_v32 = vld [vmem:[%s3848_s19 + $0x10] sm:$0xff] }
  0xcf   : > { %2614 = vmatprep.subr.bf16.mxu1 %v2613_v45  ;;  %v359_v31 = vld [vmem:[%s3848_s19 + $0x8] sm:$0xff]  ;;  %v361_v33 = vld [vmem:[%s3848_s19 + $0x18] sm:$0xff]  ;;  %v365_v34 = vrot.slane %v358_v29, 4  ;;  %v606_v39 = vld [vmem:[#allocation6 + $0x490] sm:$0xff]  ;;  %v377_v43 = vrot.slane %v360_v32, 4 }
  0xd0   : > { %2424 = vmatpush1.bf16.msra.mxu0 %v2423_v51  ;;  %v362_v40 = vld [vmem:[%s3848_s19 + $0x20] sm:$0xff]  ;;  %v363_v41 = vld [vmem:[%s3848_s19 + $0x28] sm:$0xff]  ;;  %v371_v42 = vrot.slane %v359_v31, 4  ;;  %v383_v48 = vrot.slane %v361_v33, 4  ;;  %v2439_v51 = vpack.c.bf16 %v3873_v25, %v3871_v24 }
  0xd1   : > { %2426 = vmatprep.subr.bf16.mxu0 %v2425_v53  ;;  %v612_v44 = vld [vmem:[#allocation6 + $0x4c0] sm:$0xff]  ;;  %v617_v45 = vld [vmem:[#allocation6 + $0x4e8] sm:$0xff]  ;;  %v623_v46 = vld [vmem:[#allocation6 + $0x518] sm:$0xff]  ;;  %v366_v47 = vadd.f32 %v365_v34, %v358_v29  ;;  %v389_v49 = vrot.slane %v362_v40, 4  ;;  %v395_v50 = vrot.slane %v363_v41, 4  ;;  %v378_v55 = vadd.f32 %v377_v43, %v360_v32 }
  0xd2   : > { %2616 = vmatpush1.bf16.msra.mxu1 %v2615_v52  ;;  %v2629_v52 = vpack.c.bf16 %v613_v28, %v607_v27  ;;  %v3887_v53 = vld [vmem:[#allocation6 + $0x4e0] sm:$0xff]  ;;  %v372_v54 = vadd.f32 %v371_v42, %v359_v31  ;;  %v622_v56 = vld [vmem:[#allocation6 + $0x510] sm:$0xff]  ;;  %v625_v58 = vld [vmem:[#allocation6 + $0x528] sm:$0xff]  ;;  %v384_v60 = vadd.f32 %v383_v48, %v361_v33  ;;  %v2441_v2 = vpack.c.bf16 %v623_v46, %v617_v45 }
  0xd3   : > { %2618 = vmatprep.subr.bf16.mxu1 %v2617_v57  ;;  %v619_v57 = vld [vmem:[#allocation6 + $0x4f8] sm:$0xff]  ;;  %v367_v59 = vrot.slane %v366_v47, 2  ;;  %v390_v61 = vadd.f32 %v389_v49, %v362_v40  ;;  %v396_v62 = vadd.f32 %v395_v50, %v363_v41  ;;  %v379_v5 = vrot.slane %v378_v55, 2  ;;  %v624_v6 = vld [vmem:[#allocation6 + $0x520] sm:$0xff]  ;;  %v629_v7 = vld [vmem:[#allocation6 + $0x548] sm:$0xff] }
  0xd4   : > { %2428 = vmatpush1.bf16.msra.mxu0 %v2427_v63  ;;  %v2631_v63 = vpack.c.bf16 %v612_v44, %v606_v39  ;;  %v385_v10 = vrot.slane %v384_v60, 2  ;;  %v2443_v13 = vpack.c.bf16 %v622_v56, %v3887_v53  ;;  %v2633_v14 = vpack.c.bf16 %v625_v58, %v619_v57  ;;  %v631_v18 = vld [vmem:[#allocation6 + $0x558] sm:$0xff]  ;;  %v637_v19 = vld [vmem:[#allocation6 + $0x588] sm:$0xff]  ;;  %v634_v29 = vld [vmem:[#allocation6 + $0x570] sm:$0xff] }
  0xd5   : > { %2430 = vmatprep.subr.bf16.mxu0 %v2429_v4  ;;  %v373_v4 = vrot.slane %v372_v54, 2  ;;  %v368_v9 = vadd.f32 %v367_v59, %v366_v47  ;;  %v391_v11 = vrot.slane %v390_v61, 2  ;;  %v397_v12 = vrot.slane %v396_v62, 2  ;;  %v636_v31 = vld [vmem:[#allocation6 + $0x580] sm:$0xff]  ;;  %v641_v39 = vld [vmem:[#allocation6 + $0x5a8] sm:$0xff]  ;;  %v647_v40 = vld [vmem:[#allocation6 + $0x5d8] sm:$0xff] }
  0xd6   : > { %2620 = vmatpush1.bf16.msra.mxu1 %v2619_v3  ;;  %v618_v3 = vld [vmem:[#allocation6 + $0x4f0] sm:$0xff]  ;;  %v3893_v43 = vsub.s32 %v412_v35, %v3881_v36  ;;  %v643_v44 = vld [vmem:[#allocation6 + $0x5b8] sm:$0xff]  ;;  %v649_v45 = vld [vmem:[#allocation6 + $0x5e8] sm:$0xff]  ;;  %v2449_v53 = vpack.c.bf16 %v647_v40, %v641_v39 }
  0xd7   : > { %2622 = vmatprep.subr.bf16.mxu1 %v2621_v8  ;;  %v635_v8 = vld [vmem:[#allocation6 + $0x578] sm:$0xff]  ;;  %v374_v15 = vadd.f32 %v373_v4, %v372_v54  ;;  %v369_v20 = vrot.slane %v368_v9, 1  ;;  %v398_v23 = vadd.f32 %v397_v12, %v396_v62  ;;  %v2635_v24 = vpack.c.bf16 %v624_v6, %v618_v3  ;;  %v646_v54 = vld [vmem:[#allocation6 + $0x5d0] sm:$0xff]  ;;  %v648_v56 = vld [vmem:[#allocation6 + $0x5e0] sm:$0xff] }
  0xd8   : > { %2432 = vmatpush1.bf16.msra.mxu0 %v2431_v17  ;;  %v380_v17 = vadd.f32 %v379_v5, %v378_v55  ;;  %v2445_v25 = vpack.c.bf16 %v635_v8, %v629_v7  ;;  %v642_v55 = vld [vmem:[#allocation6 + $0x5b0] sm:$0xff]  ;;  %v2641_v35 = vpack.c.bf16 %v649_v45, %v643_v44  ;;  %v653_v59 = vld [vmem:[#allocation6 + $0x608] sm:$0xff]  ;;  %v683_v40 = vld [vmem:[#allocation6 + $0x6f8] sm:$0xff] }
  0xd9   : > { %2434 = vmatprep.subr.bf16.mxu0 %v2433_v22  ;;  %v392_v22 = vadd.f32 %v391_v11, %v390_v61  ;;  %v375_v27 = vrot.slane %v374_v15, 1  ;;  %v370_v32 = vadd.f32 %v369_v20, %v368_v9  ;;  %v2643_v4 = vpack.c.bf16 %v648_v56, %v642_v55  ;;  %v660_v20 = vld [vmem:[#allocation6 + $0x640] sm:$0xff]  ;;  %v677_v39 = vld [vmem:[#allocation6 + $0x6c8] sm:$0xff]  ;;  %v691_v55 = vld [vmem:[#allocation6 + $0x738] sm:$0xff] }
  0xda   : > { %2624 = vmatpush1.bf16.msra.mxu1 %v2623_v21  ;;  %v386_v21 = vadd.f32 %v385_v10, %v384_v60  ;;  %v381_v28 = vrot.slane %v380_v17, 1  ;;  %v659_v60 = vld [vmem:[#allocation6 + $0x638] sm:$0xff]  ;;  %v697_v56 = vld [vmem:[#allocation6 + $0x768] sm:$0xff] }
  0xdb   : > { %2626 = vmatprep.subr.bf16.mxu1 %v2625_v26  ;;  %v628_v26 = vld [vmem:[#allocation6 + $0x540] sm:$0xff]  ;;  %v393_v34 = vrot.slane %v392_v22, 1  ;;  %v376_v41 = vadd.f32 %v375_v27, %v374_v15  ;;  %v2453_v7 = vpack.c.bf16 %v659_v60, %v653_v59  ;;  %v364_v10 = vld [vmem:[#allocation2] sm:$0x3f]  ;;  %v2657_v60 = vpack.c.bf16 %v697_v56, %v691_v55  ;;  %v742_v55 = vld [vmem:[#allocation6 + $0x8d0] sm:$0xff] }
  0xdc   : > { %2436 = vmatpush1.bf16.msra.mxu0 %v2435_v30  ;;  %v630_v30 = vld [vmem:[#allocation6 + $0x550] sm:$0xff]  ;;  %v387_v33 = vrot.slane %v386_v21, 1  ;;  %v382_v42 = vadd.f32 %v381_v28, %v380_v17  ;;  %v2447_v49 = vpack.c.bf16 %v634_v29, %v628_v26  ;;  %v652_v15 = vld [vmem:[#allocation6 + $0x600] sm:$0xff]  ;;  %v1052_v26 = vsub.s32 3, %v3881_v36 }
  0xdd   : > { %2438 = vmatprep.subr.bf16.mxu0 %v2437_v38  ;;  %v2637_v38 = vpack.c.bf16 %v637_v19, %v631_v18  ;;  %v394_v47 = vadd.f32 %v393_v34, %v392_v22  ;;  %v2639_v50 = vpack.c.bf16 %v636_v31, %v630_v30  ;;  %v658_v17 = vld [vmem:[#allocation6 + $0x630] sm:$0xff]  ;;  %v664_v31 = vld [vmem:[#allocation6 + $0x660] sm:$0xff] }
  0xde   : > { %2628 = vmatpush1.bf16.msra.mxu1 %v2627_v37  ;;  %v399_v37 = vrot.slane %v398_v23, 1  ;;  %v388_v46 = vadd.f32 %v387_v33, %v386_v21  ;;  %v654_v18 = vld [vmem:[#allocation6 + $0x610] sm:$0xff]  ;;  %v665_v21 = vld [vmem:[#allocation6 + $0x668] sm:$0xff]  ;;  %v2455_v29 = vpack.c.bf16 %v658_v17, %v652_v15  ;;  %v719_v17 = vld [vmem:[#allocation6 + $0x818] sm:$0xff] }
  0xdf   : > { %2630 = vmatprep.subr.bf16.mxu1 %v2629_v52  ;;  %v407_v52 = vcombine.low %v370_v32, %v376_v41  ;;  %v2647_v30 = vpack.c.bf16 %v660_v20, %v654_v18  ;;  %v670_v32 = vld [vmem:[#allocation6 + $0x690] sm:$0xff]  ;;  %v679_v41 = vld [vmem:[#allocation6 + $0x6d8] sm:$0xff]  ;;  %v713_v15 = vld [vmem:[#allocation6 + $0x7e8] sm:$0xff] }
  0xe0   : > { %2440 = vmatpush1.bf16.msra.mxu0 %v2439_v51  ;;  %v400_v48 = vadd.f32 %v399_v37, %v398_v23  ;;  %v640_v51 = vld [vmem:[#allocation6 + $0x5a0] sm:$0xff]  ;;  %v408_v57 = vcombine.low %v382_v42, %v388_v46  ;;  %v671_v23 = vld [vmem:[#allocation6 + $0x698] sm:$0xff]  ;;  %v666_v37 = vld [vmem:[#allocation6 + $0x670] sm:$0xff]  ;;  %v2459_v45 = vpack.c.bf16 %v670_v32, %v664_v31 }
  0xe1   : > { %2442 = vmatprep.subr.bf16.mxu0 %v2441_v2  ;;  %v416_v58 = vrot.slane %v407_v52, %v3893_v43  ;;  %v661_v2 = vld [vmem:[#allocation6 + $0x648] sm:$0xff]  ;;  %v2451_v3 = vpack.c.bf16 %v646_v54, %v640_v51  ;;  %v2457_v33 = vpack.c.bf16 %v671_v23, %v665_v21  ;;  %v678_v51 = vld [vmem:[#allocation6 + $0x6d0] sm:$0xff]  ;;  %v684_v52 = vld [vmem:[#allocation6 + $0x700] sm:$0xff] }
  0xe2   : > { %2632 = vmatpush1.bf16.msra.mxu1 %v2631_v63  ;;  %v409_v16 = vcombine.low %v394_v47, %v400_v48  ;;  %v423_v61 = vrot.slane %v408_v57, %v3893_v43  ;;  %v655_v63 = vld [vmem:[#allocation6 + $0x618] sm:$0xff]  ;;  %v685_v42 = vld [vmem:[#allocation6 + $0x708] sm:$0xff]  ;;  %v676_v47 = vld [vmem:[#allocation6 + $0x6c0] sm:$0xff] }
  0xe3   : > { %2634 = vmatprep.subr.bf16.mxu1 %v2633_v14  ;;  %v2645_v8 = vpack.c.bf16 %v661_v2, %v655_v63  ;;  %v3906_v14 = vsub.s32 0, %v3881_v36  ;;  %v682_v48 = vld [vmem:[#allocation6 + $0x6f0] sm:$0xff]  ;;  %v695_v54 = vld [vmem:[#allocation6 + $0x758] sm:$0xff]  ;;  %v701_v63 = vld [vmem:[#allocation6 + $0x788] sm:$0xff] }
  0xe4   : > { %2444 = vmatpush1.bf16.msra.mxu0 %v2443_v13  ;;  %v430_v62 = vrot.slane %v409_v16, %v3893_v43  ;;  %v431_v5 = vcombine.low %v416_v58, %v423_v61  ;;  %v3903_v13 = vsub.s32 1, %v3881_v36  ;;  %v2463_v57 = vpack.c.bf16 %v682_v48, %v676_v47  ;;  %v694_v58 = vld [vmem:[#allocation6 + $0x750] sm:$0xff]  ;;  %v707_v2 = vld [vmem:[#allocation6 + $0x7b8] sm:$0xff]  ;;  %v712_v23 = vld [vmem:[#allocation6 + $0x7e0] sm:$0xff] }
  0xe5   : > { %2446 = vmatprep.subr.bf16.mxu0 %v2445_v25  ;;  %v673_v25 = vld [vmem:[#allocation6 + $0x6a8] sm:$0xff]  ;;  %v2655_v16 = vpack.c.bf16 %v684_v52, %v678_v51  ;;  %v690_v61 = vld [vmem:[#allocation6 + $0x730] sm:$0xff]  ;;  %v715_v18 = vld [vmem:[#allocation6 + $0x7f8] sm:$0xff] }
  0xe6   : > { %2636 = vmatpush1.bf16.msra.mxu1 %v2635_v24  ;;  %v445_v6 = vrot.slane %v430_v62, %v3893_v43  ;;  %v438_v9 = vrot.slane %v431_v5, %v3893_v43  ;;  %v667_v24 = vld [vmem:[#allocation6 + $0x678] sm:$0xff]  ;;  %v696_v62 = vld [vmem:[#allocation6 + $0x760] sm:$0xff]  ;;  %v725_v32 = vld [vmem:[#allocation6 + $0x848] sm:$0xff] }
  0xe7   : > { %2638 = vmatprep.subr.bf16.mxu1 %v2637_v38  ;;  %v2649_v34 = vpack.c.bf16 %v673_v25, %v667_v24  ;;  %v672_v38 = vld [vmem:[#allocation6 + $0x6a0] sm:$0xff]  ;;  %v718_v24 = vld [vmem:[#allocation6 + $0x810] sm:$0xff]  ;;  %v2473_v25 = vpack.c.bf16 %v719_v17, %v713_v15  ;;  %v737_v48 = vld [vmem:[#allocation6 + $0x8a8] sm:$0xff] }
  0xe8   : > { %2448 = vmatpush1.bf16.msra.mxu0 %v2447_v49  ;;  %v446_v11 = vcombine.low %v438_v9, %v445_v6  ;;  %v2651_v46 = vpack.c.bf16 %v672_v38, %v666_v37  ;;  %v2461_v49 = vpack.c.bf16 %v683_v40, %v677_v39  ;;  %v2659_v6 = vpack.c.bf16 %v696_v62, %v690_v61  ;;  %v720_v31 = vld [vmem:[#allocation6 + $0x820] sm:$0xff]  ;;  %v733_v37 = vld [vmem:[#allocation6 + $0x888] sm:$0xff] }
  0xe9   : > { %2450 = vmatprep.subr.bf16.mxu0 %v2449_v53  ;;  %v689_v53 = vld [vmem:[#allocation6 + $0x728] sm:$0xff]  ;;  %v2469_v9 = vpack.c.bf16 %v707_v2, %v701_v63  ;;  %v2475_v38 = vpack.c.bf16 %v718_v24, %v712_v23  ;;  %v724_v40 = vld [vmem:[#allocation6 + $0x840] sm:$0xff] }
  0xea   : > { %2640 = vmatpush1.bf16.msra.mxu1 %v2639_v50  ;;  %v448_v12 = vadd.f32 %v446_v11, %v364_v10  ;;  %v2653_v50 = vpack.c.bf16 %v685_v42, %v679_v41  ;;  %v2465_v59 = vpack.c.bf16 %v695_v54, %v689_v53  ;;  %v702_v11 = vld [vmem:[#allocation6 + $0x790] sm:$0xff]  ;;  %v732_v47 = vld [vmem:[#allocation6 + $0x880] sm:$0xff]  ;;  %v745_v51 = vld [vmem:[#allocation6 + $0x8e8] sm:$0xff] }
  0xeb   : > { %2642 = vmatprep.subr.bf16.mxu1 %v2641_v35  ;;  %v688_v35 = vld [vmem:[#allocation6 + $0x720] sm:$0xff]  ;;  %v730_v41 = vld [vmem:[#allocation6 + $0x870] sm:$0xff]  ;;  %v757_v61 = vld [vmem:[#allocation6 + $0x948] sm:$0xff] }
  0xec   : > { %2452 = vmatpush1.bf16.msra.mxu0 %v2451_v3  ;;  %453 = vst.msk [vmem:[#allocation2] sm:$0x3f] %vm3863_vm0, %v448_v12  ;;  %v703_v3 = vld [vmem:[#allocation6 + $0x798] sm:$0xff]  ;;  %v2467_v5 = vpack.c.bf16 %v694_v58, %v688_v35  ;;  %v708_v12 = vld [vmem:[#allocation6 + $0x7c0] sm:$0xff]  ;;  %v2479_v52 = vpack.c.bf16 %v730_v41, %v724_v40  ;;  %v749_v58 = vld [vmem:[#allocation6 + $0x908] sm:$0xff] }
  0xed   : > { %2454 = vmatprep.subr.bf16.mxu0 %v2453_v7  ;;  %v700_v7 = vld [vmem:[#allocation6 + $0x780] sm:$0xff]  ;;  %v2663_v21 = vpack.c.bf16 %v708_v12, %v702_v11  ;;  %v769_v11 = vld [vmem:[#allocation6 + $0x9a8] sm:$0xff] }
  0xee   : > { %2644 = vmatpush1.bf16.msra.mxu1 %v2643_v4  ;;  %v709_v4 = vld [vmem:[#allocation6 + $0x7c8] sm:$0xff]  ;;  %v736_v54 = vld [vmem:[#allocation6 + $0x8a0] sm:$0xff] }
  0xef   : > { %2646 = vmatprep.subr.bf16.mxu1 %v2645_v8  ;;  %v706_v8 = vld [vmem:[#allocation6 + $0x7b0] sm:$0xff]  ;;  %v2661_v10 = vpack.c.bf16 %v709_v4, %v703_v3  ;;  %v744_v35 = vld [vmem:[#allocation6 + $0x8e0] sm:$0xff]  ;;  %v2483_v62 = vpack.c.bf16 %v742_v55, %v736_v54  ;;  %v773_v24 = vld [vmem:[#allocation6 + $0x9c8] sm:$0xff] }
  0xf0   : > { %v2471_v20 = vpack.c.bf16 %v706_v8, %v700_v7  ;;  %v748_v2 = vld [vmem:[#allocation6 + $0x900] sm:$0xff]  ;;  %v754_v3 = vld [vmem:[#allocation6 + $0x930] sm:$0xff]  ;;  %v761_v8 = vld [vmem:[#allocation6 + $0x968] sm:$0xff] }
  0xf1   : > { %v756_v7 = vld [vmem:[#allocation6 + $0x940] sm:$0xff]  ;;  %v2487_v12 = vpack.c.bf16 %v754_v3, %v748_v2  ;;  %v785_v41 = vld [vmem:[#allocation6 + $0xa28] sm:$0xff] }
  0xf2   : > { %v760_v17 = vld [vmem:[#allocation6 + $0x960] sm:$0xff]  ;;  %v797_v55 = vld [vmem:[#allocation6 + $0xa88] sm:$0xff] }
  0xf3   : > { %v457_v19 = vld [vmem:[#allocation2] sm:$0x3f]  ;;  %v768_v23 = vld [vmem:[#allocation6 + $0x9a0] sm:$0xff]  ;;  %v809_v3 = vld [vmem:[#allocation6 + $0xae8] sm:$0xff] }
  0xf4   : > { %v3908_v22 = vmul.f32 0.125, %v457_v19  ;;  %v721_v19 = vld [vmem:[#allocation6 + $0x828] sm:$0xff]  ;;  %v780_v40 = vld [vmem:[#allocation6 + $0xa00] sm:$0xff] }
  0xf5   : > { %v792_v54 = vld [vmem:[#allocation6 + $0xa60] sm:$0xff] }
  0xf6   : > { %v3913_v27 = vrot.slane %v3908_v22, %v3903_v13  ;;  %v3917_v28 = vrot.slane %v3908_v22, %v3906_v14  ;;  %v3924_v44 = vrot.slane %v3908_v22, %v1052_v26  ;;  %v804_v2 = vld [vmem:[#allocation6 + $0xac0] sm:$0xff]  ;;  %459 = vst.msk [vmem:[%s341_s11] sm:$0x3f] %vm3863_vm0, %v3908_v22 }
  0xf8   : > { %1163 = vmatprep.mubr.f32.mxu0 %v3913_v27  ;;  %1376 = vmatprep.mubr.f32.mxu1 %v3913_v27 }
  0xf9   : > { %1164 = vmatmul.mubr.f32.vlgmr.msra.gmra.mrb[0].mxu0 %v3917_v28  ;;  %1377 = vmatmul.mubr.f32.vlgmr.msra.gmra.mrb[0].mxu1 %v3917_v28 }
  0xfa   : > { %2456 = vmatpush1.bf16.msra.mxu0 %v2455_v29  ;;  %2648 = vmatpush1.bf16.msra.mxu1 %v2647_v30  ;;  %v2665_v29 = vpack.c.bf16 %v721_v19, %v715_v18  ;;  %v714_v30 = vld [vmem:[#allocation6 + $0x7f0] sm:$0xff] }
  0xfb   : > { %2458 = vmatprep.subr.bf16.mxu0 %v2457_v33  ;;  %2650 = vmatprep.subr.bf16.mxu1 %v2649_v34  ;;  %v731_v33 = vld [vmem:[#allocation6 + $0x878] sm:$0xff]  ;;  %v2667_v39 = vpack.c.bf16 %v720_v31, %v714_v30  ;;  %v766_v18 = vld [vmem:[#allocation6 + $0x990] sm:$0xff]  ;;  %v781_v30 = vld [vmem:[#allocation6 + $0xa08] sm:$0xff] }
  0xfc   : > { %1234 = vmatprep.mubr.f32.mxu0 %v3924_v44  ;;  %1447 = vmatprep.mubr.f32.mxu1 %v3924_v44  ;;  %v727_v34 = vld [vmem:[#allocation6 + $0x858] sm:$0xff]  ;;  %v2477_v42 = vpack.c.bf16 %v731_v33, %v725_v32  ;;  %v2491_v31 = vpack.c.bf16 %v766_v18, %v760_v17  ;;  %v772_v33 = vld [vmem:[#allocation6 + $0x9c0] sm:$0xff]  ;;  %v821_v18 = vld [vmem:[#allocation6 + $0xb48] sm:$0xff] }
  0xfd   : > { %v816_v17 = vld [vmem:[#allocation6 + $0xb20] sm:$0xff] }
  0xfe   : > { %2460 = vmatpush1.bf16.msra.mxu0 %v2459_v45  ;;  %2652 = vmatpush1.bf16.msra.mxu1 %v2651_v46  ;;  %v2669_v45 = vpack.c.bf16 %v733_v37, %v727_v34  ;;  %v726_v46 = vld [vmem:[#allocation6 + $0x850] sm:$0xff] }
  0xff   : > { %2462 = vmatprep.subr.bf16.mxu0 %v2461_v49  ;;  %2654 = vmatprep.subr.bf16.mxu1 %v2653_v50  ;;  %v743_v49 = vld [vmem:[#allocation6 + $0x8d8] sm:$0xff]  ;;  %v2671_v53 = vpack.c.bf16 %v732_v47, %v726_v46  ;;  %v778_v34 = vld [vmem:[#allocation6 + $0x9f0] sm:$0xff]  ;;  %v793_v46 = vld [vmem:[#allocation6 + $0xa68] sm:$0xff] }
 0x100   : > { %v739_v50 = vld [vmem:[#allocation6 + $0x8b8] sm:$0xff]  ;;  %v2481_v56 = vpack.c.bf16 %v743_v49, %v737_v48  ;;  %v2495_v47 = vpack.c.bf16 %v778_v34, %v772_v33  ;;  %v784_v49 = vld [vmem:[#allocation6 + $0xa20] sm:$0xff]  ;;  %v833_v34 = vld [vmem:[#allocation6 + $0xba8] sm:$0xff] }
 0x101   : > { %v828_v33 = vld [vmem:[#allocation6 + $0xb80] sm:$0xff] }
 0x102   : > { %2464 = vmatpush1.bf16.msra.mxu0 %v2463_v57  ;;  %2656 = vmatpush1.bf16.msra.mxu1 %v2655_v16  ;;  %v2673_v57 = vpack.c.bf16 %v745_v51, %v739_v50  ;;  %v738_v16 = vld [vmem:[#allocation6 + $0x8b0] sm:$0xff] }
 0x103   : > { %2466 = vmatprep.subr.bf16.mxu0 %v2465_v59  ;;  %2658 = vmatprep.subr.bf16.mxu1 %v2657_v60  ;;  %v755_v59 = vld [vmem:[#allocation6 + $0x938] sm:$0xff]  ;;  %v2675_v63 = vpack.c.bf16 %v744_v35, %v738_v16  ;;  %v790_v50 = vld [vmem:[#allocation6 + $0xa50] sm:$0xff]  ;;  %v805_v16 = vld [vmem:[#allocation6 + $0xac8] sm:$0xff] }
 0x104   : > { %v751_v60 = vld [vmem:[#allocation6 + $0x918] sm:$0xff]  ;;  %v2485_v4 = vpack.c.bf16 %v755_v59, %v749_v58  ;;  %v2499_v35 = vpack.c.bf16 %v790_v50, %v784_v49  ;;  %v796_v59 = vld [vmem:[#allocation6 + $0xa80] sm:$0xff]  ;;  %v845_v50 = vld [vmem:[#allocation6 + $0xc08] sm:$0xff] }
 0x105   : > { %v840_v49 = vld [vmem:[#allocation6 + $0xbe0] sm:$0xff] }
 0x106   : > { %2468 = vmatpush1.bf16.msra.mxu0 %v2467_v5  ;;  %2660 = vmatpush1.bf16.msra.mxu1 %v2659_v6  ;;  %v2677_v5 = vpack.c.bf16 %v757_v61, %v751_v60  ;;  %v750_v6 = vld [vmem:[#allocation6 + $0x910] sm:$0xff] }
 0x107   : > { %2470 = vmatprep.subr.bf16.mxu0 %v2469_v9  ;;  %2662 = vmatprep.subr.bf16.mxu1 %v2661_v10  ;;  %v767_v9 = vld [vmem:[#allocation6 + $0x998] sm:$0xff]  ;;  %v2679_v15 = vpack.c.bf16 %v756_v7, %v750_v6  ;;  %v802_v60 = vld [vmem:[#allocation6 + $0xab0] sm:$0xff]  ;;  %v817_v6 = vld [vmem:[#allocation6 + $0xb28] sm:$0xff] }
 0x108   : > { %v763_v10 = vld [vmem:[#allocation6 + $0x978] sm:$0xff]  ;;  %v2489_v19 = vpack.c.bf16 %v767_v9, %v761_v8  ;;  %v2503_v7 = vpack.c.bf16 %v802_v60, %v796_v59  ;;  %v808_v9 = vld [vmem:[#allocation6 + $0xae0] sm:$0xff]  ;;  %v846_v59 = vld [vmem:[#allocation6 + $0xc10] sm:$0xff] }
 0x109   : > { %v852_v60 = vld [vmem:[#allocation6 + $0xc40] sm:$0xff] }
 0x10a   : > { %2472 = vmatpush1.bf16.msra.mxu0 %v2471_v20  ;;  %2664 = vmatpush1.bf16.msra.mxu1 %v2663_v21  ;;  %v2681_v20 = vpack.c.bf16 %v769_v11, %v763_v10  ;;  %v762_v21 = vld [vmem:[#allocation6 + $0x970] sm:$0xff] }
 0x10b   : > { %2474 = vmatprep.subr.bf16.mxu0 %v2473_v25  ;;  %2666 = vmatprep.subr.bf16.mxu1 %v2665_v29  ;;  %v779_v25 = vld [vmem:[#allocation6 + $0x9f8] sm:$0xff]  ;;  %v2683_v32 = vpack.c.bf16 %v768_v23, %v762_v21  ;;  %v814_v10 = vld [vmem:[#allocation6 + $0xb10] sm:$0xff]  ;;  %v829_v21 = vld [vmem:[#allocation6 + $0xb88] sm:$0xff] }
 0x10c   : > { %v775_v29 = vld [vmem:[#allocation6 + $0x9d8] sm:$0xff]  ;;  %v2493_v37 = vpack.c.bf16 %v779_v25, %v773_v24  ;;  %v2507_v23 = vpack.c.bf16 %v814_v10, %v808_v9  ;;  %v820_v25 = vld [vmem:[#allocation6 + $0xb40] sm:$0xff] }
 0x10e   : > { %2476 = vmatpush1.bf16.msra.mxu0 %v2475_v38  ;;  %2668 = vmatpush1.bf16.msra.mxu1 %v2667_v39  ;;  %v2685_v38 = vpack.c.bf16 %v781_v30, %v775_v29  ;;  %v774_v39 = vld [vmem:[#allocation6 + $0x9d0] sm:$0xff] }
 0x10f   : > { %2478 = vmatprep.subr.bf16.mxu0 %v2477_v42  ;;  %2670 = vmatprep.subr.bf16.mxu1 %v2669_v45  ;;  %v791_v42 = vld [vmem:[#allocation6 + $0xa58] sm:$0xff]  ;;  %v2687_v48 = vpack.c.bf16 %v780_v40, %v774_v39  ;;  %v826_v29 = vld [vmem:[#allocation6 + $0xb70] sm:$0xff]  ;;  %v841_v39 = vld [vmem:[#allocation6 + $0xbe8] sm:$0xff] }
 0x110   : > { %v787_v45 = vld [vmem:[#allocation6 + $0xa38] sm:$0xff]  ;;  %v2497_v51 = vpack.c.bf16 %v791_v42, %v785_v41  ;;  %v2511_v40 = vpack.c.bf16 %v826_v29, %v820_v25  ;;  %v832_v42 = vld [vmem:[#allocation6 + $0xba0] sm:$0xff]  ;;  %v874_v25 = vld [vmem:[#allocation6 + $0xcf0] sm:$0xff] }
 0x112   : > { %2480 = vmatpush1.bf16.msra.mxu0 %v2479_v52  ;;  %2672 = vmatpush1.bf16.msra.mxu1 %v2671_v53  ;;  %v2689_v52 = vpack.c.bf16 %v793_v46, %v787_v45  ;;  %v786_v53 = vld [vmem:[#allocation6 + $0xa30] sm:$0xff] }
 0x113   : > { %2482 = vmatprep.subr.bf16.mxu0 %v2481_v56  ;;  %2674 = vmatprep.subr.bf16.mxu1 %v2673_v57  ;;  %v803_v56 = vld [vmem:[#allocation6 + $0xab8] sm:$0xff]  ;;  %v2691_v58 = vpack.c.bf16 %v792_v54, %v786_v53  ;;  %v838_v45 = vld [vmem:[#allocation6 + $0xbd0] sm:$0xff]  ;;  %v853_v53 = vld [vmem:[#allocation6 + $0xc48] sm:$0xff]  ;;  %v1048_v54 = vsub.s32 2, %v3881_v36 }
 0x114   : > { %v799_v57 = vld [vmem:[#allocation6 + $0xa98] sm:$0xff]  ;;  %v2501_v61 = vpack.c.bf16 %v803_v56, %v797_v55  ;;  %v2515_v55 = vpack.c.bf16 %v838_v45, %v832_v42  ;;  %v886_v42 = vld [vmem:[#allocation6 + $0xd50] sm:$0xff] }
 0x116   : > { %2484 = vmatpush1.bf16.msra.mxu0 %v2483_v62  ;;  %2676 = vmatpush1.bf16.msra.mxu1 %v2675_v63  ;;  %v2693_v62 = vpack.c.bf16 %v805_v16, %v799_v57  ;;  %v798_v63 = vld [vmem:[#allocation6 + $0xa90] sm:$0xff]  ;;  %v844_v57 = vld [vmem:[#allocation6 + $0xc00] sm:$0xff] }
 0x117   : > { %2486 = vmatprep.subr.bf16.mxu0 %v2485_v4  ;;  %2678 = vmatprep.subr.bf16.mxu1 %v2677_v5  ;;  %v815_v4 = vld [vmem:[#allocation6 + $0xb18] sm:$0xff]  ;;  %v2695_v8 = vpack.c.bf16 %v804_v2, %v798_v63  ;;  %v850_v16 = vld [vmem:[#allocation6 + $0xc30] sm:$0xff]  ;;  %v865_v2 = vld [vmem:[#allocation6 + $0xca8] sm:$0xff] }
 0x118   : > { %v811_v5 = vld [vmem:[#allocation6 + $0xaf8] sm:$0xff]  ;;  %v2505_v11 = vpack.c.bf16 %v815_v4, %v809_v3  ;;  %v1060_v3 = vsub.s32 5, %v3881_v36  ;;  %v3935_v4 = vrot.slane %v3908_v22, %v1048_v54 }
 0x119   : > { %v859_v63 = vld [vmem:[#allocation6 + $0xc78] sm:$0xff] }
 0x11a   : > { %2488 = vmatpush1.bf16.msra.mxu0 %v2487_v12  ;;  %2680 = vmatpush1.bf16.msra.mxu1 %v2679_v15  ;;  %v2697_v12 = vpack.c.bf16 %v817_v6, %v811_v5  ;;  %v810_v15 = vld [vmem:[#allocation6 + $0xaf0] sm:$0xff]  ;;  %v2519_v5 = vpack.c.bf16 %v850_v16, %v844_v57  ;;  %v2711_v6 = vpack.c.bf16 %v852_v60, %v846_v59  ;;  %v900_v59 = vld [vmem:[#allocation6 + $0xdc0] sm:$0xff]  ;;  %v905_v60 = vld [vmem:[#allocation6 + $0xde8] sm:$0xff] }
 0x11b   : > { %2490 = vmatprep.subr.bf16.mxu0 %v2489_v19  ;;  %2682 = vmatprep.subr.bf16.mxu1 %v2681_v20  ;;  %v827_v19 = vld [vmem:[#allocation6 + $0xb78] sm:$0xff]  ;;  %v2699_v24 = vpack.c.bf16 %v816_v17, %v810_v15  ;;  %v2713_v10 = vpack.c.bf16 %v865_v2, %v859_v63  ;;  %v869_v15 = vld [vmem:[#allocation6 + $0xcc8] sm:$0xff]  ;;  %v898_v57 = vld [vmem:[#allocation6 + $0xdb0] sm:$0xff] }
 0x11c   : > { %v823_v20 = vld [vmem:[#allocation6 + $0xb58] sm:$0xff]  ;;  %v2509_v30 = vpack.c.bf16 %v827_v19, %v821_v18  ;;  %v877_v19 = vld [vmem:[#allocation6 + $0xd08] sm:$0xff] }
 0x11d   : > { %v875_v17 = vld [vmem:[#allocation6 + $0xcf8] sm:$0xff]  ;;  %v913_v63 = vld [vmem:[#allocation6 + $0xe28] sm:$0xff] }
 0x11e   : > { %2492 = vmatpush1.bf16.msra.mxu0 %v2491_v31  ;;  %2684 = vmatpush1.bf16.msra.mxu1 %v2683_v32  ;;  %v2701_v31 = vpack.c.bf16 %v829_v21, %v823_v20  ;;  %v822_v32 = vld [vmem:[#allocation6 + $0xb50] sm:$0xff]  ;;  %v871_v18 = vld [vmem:[#allocation6 + $0xcd8] sm:$0xff]  ;;  %v3940_v20 = vrot.slane %v3908_v22, %v1060_v3  ;;  %v2525_v29 = vpack.c.bf16 %v875_v17, %v869_v15 }
 0x11f   : > { %2494 = vmatprep.subr.bf16.mxu0 %v2493_v37  ;;  %2686 = vmatprep.subr.bf16.mxu1 %v2685_v38  ;;  %v839_v37 = vld [vmem:[#allocation6 + $0xbd8] sm:$0xff]  ;;  %v2703_v41 = vpack.c.bf16 %v828_v33, %v822_v32  ;;  %v876_v32 = vld [vmem:[#allocation6 + $0xd00] sm:$0xff]  ;;  %v881_v33 = vld [vmem:[#allocation6 + $0xd28] sm:$0xff] }
 0x120   : > { %v835_v38 = vld [vmem:[#allocation6 + $0xbb8] sm:$0xff]  ;;  %v2513_v46 = vpack.c.bf16 %v839_v37, %v833_v34 }
 0x121   : > { %v887_v34 = vld [vmem:[#allocation6 + $0xd58] sm:$0xff] }
 0x122   : > { %2496 = vmatpush1.bf16.msra.mxu0 %v2495_v47  ;;  %2688 = vmatpush1.bf16.msra.mxu1 %v2687_v48  ;;  %v2705_v47 = vpack.c.bf16 %v841_v39, %v835_v38  ;;  %v834_v48 = vld [vmem:[#allocation6 + $0xbb0] sm:$0xff]  ;;  %v883_v37 = vld [vmem:[#allocation6 + $0xd38] sm:$0xff]  ;;  %v889_v38 = vld [vmem:[#allocation6 + $0xd68] sm:$0xff]  ;;  %v2529_v45 = vpack.c.bf16 %v887_v34, %v881_v33 }
 0x123   : > { %2498 = vmatprep.subr.bf16.mxu0 %v2497_v51  ;;  %2690 = vmatprep.subr.bf16.mxu1 %v2689_v52  ;;  %v851_v51 = vld [vmem:[#allocation6 + $0xc38] sm:$0xff]  ;;  %v2707_v56 = vpack.c.bf16 %v840_v49, %v834_v48  ;;  %v888_v48 = vld [vmem:[#allocation6 + $0xd60] sm:$0xff]  ;;  %v893_v49 = vld [vmem:[#allocation6 + $0xd88] sm:$0xff] }
 0x124   : > { %v847_v52 = vld [vmem:[#allocation6 + $0xc18] sm:$0xff] }
 0x125   : > { %v923_v15 = vld [vmem:[#allocation6 + $0xe78] sm:$0xff] }
 0x126   : > { %2500 = vmatpush1.bf16.msra.mxu0 %v2499_v35  ;;  %2692 = vmatpush1.bf16.msra.mxu1 %v2691_v58  ;;  %v2517_v35 = vpack.c.bf16 %v851_v51, %v845_v50  ;;  %v2709_v58 = vpack.c.bf16 %v853_v53, %v847_v52  ;;  %v899_v50 = vld [vmem:[#allocation6 + $0xdb8] sm:$0xff]  ;;  %v901_v52 = vld [vmem:[#allocation6 + $0xdc8] sm:$0xff] }
 0x127   : > { %2502 = vmatprep.subr.bf16.mxu0 %v2501_v61  ;;  %2694 = vmatprep.subr.bf16.mxu1 %v2693_v62  ;;  %v857_v61 = vld [vmem:[#allocation6 + $0xc68] sm:$0xff]  ;;  %v863_v62 = vld [vmem:[#allocation6 + $0xc98] sm:$0xff]  ;;  %v2533_v16 = vpack.c.bf16 %v899_v50, %v893_v49 }
 0x128   : > { %v2521_v9 = vpack.c.bf16 %v863_v62, %v857_v61  ;;  %v895_v51 = vld [vmem:[#allocation6 + $0xd98] sm:$0xff] }
 0x129   : > { %v911_v61 = vld [vmem:[#allocation6 + $0xe18] sm:$0xff] }
 0x12a   : > { %2504 = vmatpush1.bf16.msra.mxu0 %v2503_v7  ;;  %2696 = vmatpush1.bf16.msra.mxu1 %v2695_v8  ;;  %v856_v7 = vld [vmem:[#allocation6 + $0xc60] sm:$0xff]  ;;  %v862_v8 = vld [vmem:[#allocation6 + $0xc90] sm:$0xff]  ;;  %v907_v62 = vld [vmem:[#allocation6 + $0xdf8] sm:$0xff] }
 0x12b   : > { %2506 = vmatprep.subr.bf16.mxu0 %v2505_v11  ;;  %2698 = vmatprep.subr.bf16.mxu1 %v2697_v12  ;;  %v858_v11 = vld [vmem:[#allocation6 + $0xc70] sm:$0xff]  ;;  %v864_v12 = vld [vmem:[#allocation6 + $0xca0] sm:$0xff]  ;;  %v2523_v21 = vpack.c.bf16 %v862_v8, %v856_v7  ;;  %v2537_v8 = vpack.c.bf16 %v911_v61, %v905_v60  ;;  %v919_v17 = vld [vmem:[#allocation6 + $0xe58] sm:$0xff] }
 0x12c   : > { %v910_v7 = vld [vmem:[#allocation6 + $0xe10] sm:$0xff]  ;;  %v935_v33 = vld [vmem:[#allocation6 + $0xed8] sm:$0xff] }
 0x12d   : > { %v931_v34 = vld [vmem:[#allocation6 + $0xeb8] sm:$0xff] }
 0x12e   : > { %2508 = vmatpush1.bf16.msra.mxu0 %v2507_v23  ;;  %2700 = vmatpush1.bf16.msra.mxu1 %v2699_v24  ;;  %v2715_v23 = vpack.c.bf16 %v864_v12, %v858_v11  ;;  %v868_v24 = vld [vmem:[#allocation6 + $0xcc0] sm:$0xff]  ;;  %v917_v12 = vld [vmem:[#allocation6 + $0xe48] sm:$0xff]  ;;  %v947_v49 = vld [vmem:[#allocation6 + $0xf38] sm:$0xff] }
 0x12f   : > { %2510 = vmatprep.subr.bf16.mxu0 %v2509_v30  ;;  %2702 = vmatprep.subr.bf16.mxu1 %v2701_v31  ;;  %v2717_v30 = vpack.c.bf16 %v877_v19, %v871_v18  ;;  %v870_v31 = vld [vmem:[#allocation6 + $0xcd0] sm:$0xff]  ;;  %v2527_v39 = vpack.c.bf16 %v874_v25, %v868_v24  ;;  %v912_v11 = vld [vmem:[#allocation6 + $0xe20] sm:$0xff]  ;;  %v925_v18 = vld [vmem:[#allocation6 + $0xe88] sm:$0xff]  ;;  %v2541_v25 = vpack.c.bf16 %v923_v15, %v917_v12 }
 0x130   : > { %v922_v24 = vld [vmem:[#allocation6 + $0xe70] sm:$0xff]  ;;  %v943_v50 = vld [vmem:[#allocation6 + $0xf18] sm:$0xff] }
 0x131   : > { %v959_v60 = vld [vmem:[#allocation6 + $0xf98] sm:$0xff] }
 0x132   : > { %2512 = vmatpush1.bf16.msra.mxu0 %v2511_v40  ;;  %2704 = vmatpush1.bf16.msra.mxu1 %v2703_v41  ;;  %v2719_v40 = vpack.c.bf16 %v876_v32, %v870_v31  ;;  %v880_v41 = vld [vmem:[#allocation6 + $0xd20] sm:$0xff]  ;;  %v929_v32 = vld [vmem:[#allocation6 + $0xea8] sm:$0xff]  ;;  %v955_v61 = vld [vmem:[#allocation6 + $0xf78] sm:$0xff] }
 0x133   : > { %2514 = vmatprep.subr.bf16.mxu0 %v2513_v46  ;;  %2706 = vmatprep.subr.bf16.mxu1 %v2705_v47  ;;  %v2721_v46 = vpack.c.bf16 %v889_v38, %v883_v37  ;;  %v882_v47 = vld [vmem:[#allocation6 + $0xd30] sm:$0xff]  ;;  %v2531_v53 = vpack.c.bf16 %v886_v42, %v880_v41  ;;  %v924_v31 = vld [vmem:[#allocation6 + $0xe80] sm:$0xff]  ;;  %v937_v37 = vld [vmem:[#allocation6 + $0xee8] sm:$0xff]  ;;  %v2545_v42 = vpack.c.bf16 %v935_v33, %v929_v32 }
 0x134   : > { %v934_v41 = vld [vmem:[#allocation6 + $0xed0] sm:$0xff]  ;;  %v971_v12 = vld [vmem:[#allocation6 + $0xff8] sm:$0xff] }
 0x135   : > { %v967_v15 = vld [vmem:[#allocation6 + $0xfd8] sm:$0xff] }
 0x136   : > { %2516 = vmatpush1.bf16.msra.mxu0 %v2515_v55  ;;  %2708 = vmatpush1.bf16.msra.mxu1 %v2707_v56  ;;  %v2723_v55 = vpack.c.bf16 %v888_v48, %v882_v47  ;;  %v892_v56 = vld [vmem:[#allocation6 + $0xd80] sm:$0xff]  ;;  %v941_v48 = vld [vmem:[#allocation6 + $0xf08] sm:$0xff]  ;;  %v983_v32 = vld [vmem:[#allocation6 + $0x1058] sm:$0xff] }
 0x137   : > { %2518 = vmatprep.subr.bf16.mxu0 %v2517_v35  ;;  %2710 = vmatprep.subr.bf16.mxu1 %v2709_v58  ;;  %v2725_v35 = vpack.c.bf16 %v901_v52, %v895_v51  ;;  %v894_v58 = vld [vmem:[#allocation6 + $0xd90] sm:$0xff]  ;;  %v2535_v2 = vpack.c.bf16 %v898_v57, %v892_v56  ;;  %v936_v47 = vld [vmem:[#allocation6 + $0xee0] sm:$0xff]  ;;  %v949_v51 = vld [vmem:[#allocation6 + $0xf48] sm:$0xff]  ;;  %v2549_v57 = vpack.c.bf16 %v947_v49, %v941_v48 }
 0x138   : > { %v946_v56 = vld [vmem:[#allocation6 + $0xf30] sm:$0xff]  ;;  %v979_v33 = vld [vmem:[#allocation6 + $0x1038] sm:$0xff] }
 0x139   : > { %1235 = vmatmul.mubr.f32.vlgmr.msra.gmra.mrb[0].mxu0 %v3935_v4  ;;  %1448 = vmatmul.mubr.f32.vlgmr.msra.gmra.mrb[0].mxu1 %v3935_v4  ;;  %v995_v48 = vld [vmem:[#allocation6 + $0x10b8] sm:$0xff] }
 0x13a   : > { %2520 = vmatpush1.bf16.msra.mxu0 %v2519_v5  ;;  %2712 = vmatpush1.bf16.msra.mxu1 %v2711_v6  ;;  %v2727_v5 = vpack.c.bf16 %v900_v59, %v894_v58  ;;  %v904_v6 = vld [vmem:[#allocation6 + $0xde0] sm:$0xff]  ;;  %v953_v59 = vld [vmem:[#allocation6 + $0xf68] sm:$0xff]  ;;  %v991_v49 = vld [vmem:[#allocation6 + $0x1098] sm:$0xff] }
 0x13b   : > { %2522 = vmatprep.subr.bf16.mxu0 %v2521_v9  ;;  %2714 = vmatprep.subr.bf16.mxu1 %v2713_v10  ;;  %v2729_v9 = vpack.c.bf16 %v913_v63, %v907_v62  ;;  %v906_v10 = vld [vmem:[#allocation6 + $0xdf0] sm:$0xff]  ;;  %v2539_v19 = vpack.c.bf16 %v910_v7, %v904_v6  ;;  %v948_v58 = vld [vmem:[#allocation6 + $0xf40] sm:$0xff]  ;;  %v961_v62 = vld [vmem:[#allocation6 + $0xfa8] sm:$0xff]  ;;  %v2553_v7 = vpack.c.bf16 %v959_v60, %v953_v59 }
 0x13c   : > { %1305 = vmatprep.mubr.f32.mxu0 %v3940_v20  ;;  %1518 = vmatprep.mubr.f32.mxu1 %v3940_v20  ;;  %v958_v6 = vld [vmem:[#allocation6 + $0xf90] sm:$0xff]  ;;  %v1007_v59 = vld [vmem:[#allocation6 + $0x1118] sm:$0xff] }
 0x13d   : > { %v1003_v60 = vld [vmem:[#allocation6 + $0x10f8] sm:$0xff] }
 0x13e   : > { %2524 = vmatpush1.bf16.msra.mxu0 %v2523_v21  ;;  %2716 = vmatpush1.bf16.msra.mxu1 %v2715_v23  ;;  %v2731_v21 = vpack.c.bf16 %v912_v11, %v906_v10  ;;  %v916_v23 = vld [vmem:[#allocation6 + $0xe40] sm:$0xff]  ;;  %v965_v11 = vld [vmem:[#allocation6 + $0xfc8] sm:$0xff] }
 0x13f   : > { %2526 = vmatprep.subr.bf16.mxu0 %v2525_v29  ;;  %2718 = vmatprep.subr.bf16.mxu1 %v2717_v30  ;;  %v2733_v29 = vpack.c.bf16 %v925_v18, %v919_v17  ;;  %v918_v30 = vld [vmem:[#allocation6 + $0xe50] sm:$0xff]  ;;  %v2543_v38 = vpack.c.bf16 %v922_v24, %v916_v23  ;;  %v960_v10 = vld [vmem:[#allocation6 + $0xfa0] sm:$0xff]  ;;  %v973_v17 = vld [vmem:[#allocation6 + $0x1008] sm:$0xff]  ;;  %v2557_v24 = vpack.c.bf16 %v971_v12, %v965_v11 }
 0x140   : > { %v970_v23 = vld [vmem:[#allocation6 + $0xff0] sm:$0xff]  ;;  %v1019_v11 = vld [vmem:[#allocation6 + $0x1178] sm:$0xff] }
 0x141   : > { %v1015_v12 = vld [vmem:[#allocation6 + $0x1158] sm:$0xff] }
 0x142   : > { %2528 = vmatpush1.bf16.msra.mxu0 %v2527_v39  ;;  %2720 = vmatpush1.bf16.msra.mxu1 %v2719_v40  ;;  %v2735_v39 = vpack.c.bf16 %v924_v31, %v918_v30  ;;  %v928_v40 = vld [vmem:[#allocation6 + $0xea0] sm:$0xff]  ;;  %v977_v31 = vld [vmem:[#allocation6 + $0x1028] sm:$0xff] }
 0x143   : > { %2530 = vmatprep.subr.bf16.mxu0 %v2529_v45  ;;  %2722 = vmatprep.subr.bf16.mxu1 %v2721_v46  ;;  %v2737_v45 = vpack.c.bf16 %v937_v37, %v931_v34  ;;  %v930_v46 = vld [vmem:[#allocation6 + $0xeb0] sm:$0xff]  ;;  %v2547_v52 = vpack.c.bf16 %v934_v41, %v928_v40  ;;  %v972_v30 = vld [vmem:[#allocation6 + $0x1000] sm:$0xff]  ;;  %v985_v34 = vld [vmem:[#allocation6 + $0x1068] sm:$0xff]  ;;  %v2561_v41 = vpack.c.bf16 %v983_v32, %v977_v31 }
 0x144   : > { %v982_v40 = vld [vmem:[#allocation6 + $0x1050] sm:$0xff]  ;;  %v1031_v31 = vld [vmem:[#allocation6 + $0x11d8] sm:$0xff] }
 0x145   : > { %v1027_v32 = vld [vmem:[#allocation6 + $0x11b8] sm:$0xff] }
 0x146   : > { %2532 = vmatpush1.bf16.msra.mxu0 %v2531_v53  ;;  %2724 = vmatpush1.bf16.msra.mxu1 %v2723_v55  ;;  %v2739_v53 = vpack.c.bf16 %v936_v47, %v930_v46  ;;  %v940_v55 = vld [vmem:[#allocation6 + $0xf00] sm:$0xff]  ;;  %v989_v47 = vld [vmem:[#allocation6 + $0x1088] sm:$0xff] }
 0x147   : > { %2534 = vmatprep.subr.bf16.mxu0 %v2533_v16  ;;  %2726 = vmatprep.subr.bf16.mxu1 %v2725_v35  ;;  %v2741_v16 = vpack.c.bf16 %v949_v51, %v943_v50  ;;  %v942_v35 = vld [vmem:[#allocation6 + $0xf10] sm:$0xff]  ;;  %v2551_v63 = vpack.c.bf16 %v946_v56, %v940_v55  ;;  %v984_v46 = vld [vmem:[#allocation6 + $0x1060] sm:$0xff]  ;;  %v997_v50 = vld [vmem:[#allocation6 + $0x10c8] sm:$0xff]  ;;  %v2565_v56 = vpack.c.bf16 %v995_v48, %v989_v47  ;;  %v1056_v48 = vsub.s32 4, %v3881_v36 }
 0x148   : > { %v994_v55 = vld [vmem:[#allocation6 + $0x10b0] sm:$0xff]  ;;  %v471_v47 = vld [vmem:[#allocation6 + $0x58] sm:$0xff] }
 0x14a   : > { %2536 = vmatpush1.bf16.msra.mxu0 %v2535_v2  ;;  %2728 = vmatpush1.bf16.msra.mxu1 %v2727_v5  ;;  %v2743_v2 = vpack.c.bf16 %v948_v58, %v942_v35  ;;  %v952_v5 = vld [vmem:[#allocation6 + $0xf60] sm:$0xff]  ;;  %v1001_v58 = vld [vmem:[#allocation6 + $0x10e8] sm:$0xff] }
 0x14b   : > { %2538 = vmatprep.subr.bf16.mxu0 %v2537_v8  ;;  %2730 = vmatprep.subr.bf16.mxu1 %v2729_v9  ;;  %v2745_v8 = vpack.c.bf16 %v961_v62, %v955_v61  ;;  %v954_v9 = vld [vmem:[#allocation6 + $0xf70] sm:$0xff]  ;;  %v2555_v18 = vpack.c.bf16 %v958_v6, %v952_v5  ;;  %v996_v35 = vld [vmem:[#allocation6 + $0x10c0] sm:$0xff]  ;;  %v1009_v61 = vld [vmem:[#allocation6 + $0x1128] sm:$0xff]  ;;  %v2569_v6 = vpack.c.bf16 %v1007_v59, %v1001_v58 }
 0x14c   : > { %v1006_v5 = vld [vmem:[#allocation6 + $0x1110] sm:$0xff]  ;;  %v476_v58 = vld [vmem:[#allocation6 + $0x80] sm:$0xff] }
 0x14d   : > { %v482_v59 = vld [vmem:[#allocation6 + $0xb0] sm:$0xff] }
 0x14e   : > { %2540 = vmatpush1.bf16.msra.mxu0 %v2539_v19  ;;  %2732 = vmatpush1.bf16.msra.mxu1 %v2731_v21  ;;  %v2747_v19 = vpack.c.bf16 %v960_v10, %v954_v9  ;;  %v964_v21 = vld [vmem:[#allocation6 + $0xfc0] sm:$0xff]  ;;  %v1013_v10 = vld [vmem:[#allocation6 + $0x1148] sm:$0xff] }
 0x14f   : > { %2542 = vmatprep.subr.bf16.mxu0 %v2541_v25  ;;  %2734 = vmatprep.subr.bf16.mxu1 %v2733_v29  ;;  %v2749_v25 = vpack.c.bf16 %v973_v17, %v967_v15  ;;  %v966_v29 = vld [vmem:[#allocation6 + $0xfd0] sm:$0xff]  ;;  %v2559_v37 = vpack.c.bf16 %v970_v23, %v964_v21  ;;  %v1008_v9 = vld [vmem:[#allocation6 + $0x1120] sm:$0xff]  ;;  %v1021_v15 = vld [vmem:[#allocation6 + $0x1188] sm:$0xff]  ;;  %v2573_v23 = vpack.c.bf16 %v1019_v11, %v1013_v10 }
 0x150   : > { %v1018_v21 = vld [vmem:[#allocation6 + $0x1170] sm:$0xff]  ;;  %v500_v10 = vld [vmem:[#allocation6 + $0x140] sm:$0xff] }
 0x151   : > { %v506_v11 = vld [vmem:[#allocation6 + $0x170] sm:$0xff] }
 0x152   : > { %2544 = vmatpush1.bf16.msra.mxu0 %v2543_v38  ;;  %2736 = vmatpush1.bf16.msra.mxu1 %v2735_v39  ;;  %v2751_v38 = vpack.c.bf16 %v972_v30, %v966_v29  ;;  %v976_v39 = vld [vmem:[#allocation6 + $0x1020] sm:$0xff]  ;;  %v1025_v30 = vld [vmem:[#allocation6 + $0x11a8] sm:$0xff] }
 0x153   : > { %2546 = vmatprep.subr.bf16.mxu0 %v2545_v42  ;;  %2738 = vmatprep.subr.bf16.mxu1 %v2737_v45  ;;  %v2753_v42 = vpack.c.bf16 %v985_v34, %v979_v33  ;;  %v978_v45 = vld [vmem:[#allocation6 + $0x1030] sm:$0xff]  ;;  %v2563_v51 = vpack.c.bf16 %v982_v40, %v976_v39  ;;  %v1020_v29 = vld [vmem:[#allocation6 + $0x1180] sm:$0xff]  ;;  %v1033_v33 = vld [vmem:[#allocation6 + $0x11e8] sm:$0xff]  ;;  %v2577_v39 = vpack.c.bf16 %v1031_v31, %v1025_v30 }
 0x154   : > { %v1030_v40 = vld [vmem:[#allocation6 + $0x11d0] sm:$0xff]  ;;  %v537_v31 = vld [vmem:[#allocation6 + $0x268] sm:$0xff] }
 0x155   : > { %v530_v30 = vld [vmem:[#allocation6 + $0x230] sm:$0xff] }
 0x156   : > { %2548 = vmatpush1.bf16.msra.mxu0 %v2547_v52  ;;  %2740 = vmatpush1.bf16.msra.mxu1 %v2739_v53  ;;  %v2755_v52 = vpack.c.bf16 %v984_v46, %v978_v45  ;;  %v988_v53 = vld [vmem:[#allocation6 + $0x1080] sm:$0xff]  ;;  %v465_v46 = vld [vmem:[#allocation6 + $0x28] sm:$0xff] }
 0x157   : > { %2550 = vmatprep.subr.bf16.mxu0 %v2549_v57  ;;  %2742 = vmatprep.subr.bf16.mxu1 %v2741_v16  ;;  %v2757_v57 = vpack.c.bf16 %v997_v50, %v991_v49  ;;  %v990_v16 = vld [vmem:[#allocation6 + $0x1090] sm:$0xff]  ;;  %v2567_v62 = vpack.c.bf16 %v994_v55, %v988_v53  ;;  %v1032_v45 = vld [vmem:[#allocation6 + $0x11e0] sm:$0xff]  ;;  %v477_v55 = vld [vmem:[#allocation6 + $0x88] sm:$0xff] }
 0x158   : > { %v470_v53 = vld [vmem:[#allocation6 + $0x50] sm:$0xff] }
 0x15a   : > { %2552 = vmatpush1.bf16.msra.mxu0 %v2551_v63  ;;  %2744 = vmatpush1.bf16.msra.mxu1 %v2743_v2  ;;  %v2759_v63 = vpack.c.bf16 %v996_v35, %v990_v16  ;;  %v1000_v2 = vld [vmem:[#allocation6 + $0x10e0] sm:$0xff] }
 0x15b   : > { %2554 = vmatprep.subr.bf16.mxu0 %v2553_v7  ;;  %2746 = vmatprep.subr.bf16.mxu1 %v2745_v8  ;;  %v2761_v7 = vpack.c.bf16 %v1009_v61, %v1003_v60  ;;  %v1002_v8 = vld [vmem:[#allocation6 + $0x10f0] sm:$0xff]  ;;  %v2571_v17 = vpack.c.bf16 %v1006_v5, %v1000_v2  ;;  %v489_v60 = vld [vmem:[#allocation6 + $0xe8] sm:$0xff]  ;;  %v495_v61 = vld [vmem:[#allocation6 + $0x118] sm:$0xff] }
 0x15c   : > { %v488_v2 = vld [vmem:[#allocation6 + $0xe0] sm:$0xff]  ;;  %v494_v5 = vld [vmem:[#allocation6 + $0x110] sm:$0xff] }
 0x15e   : > { %2556 = vmatpush1.bf16.msra.mxu0 %v2555_v18  ;;  %2748 = vmatpush1.bf16.msra.mxu1 %v2747_v19  ;;  %v2763_v18 = vpack.c.bf16 %v1008_v9, %v1002_v8  ;;  %v1012_v19 = vld [vmem:[#allocation6 + $0x1140] sm:$0xff]  ;;  %v2783_v8 = vpack.c.bf16 %v494_v5, %v488_v2  ;;  %v1750_v5 = vld [vmem:[#allocation9 + $0x30] sm:$0xff] }
 0x15f   : > { %2558 = vmatprep.subr.bf16.mxu0 %v2557_v24  ;;  %2750 = vmatprep.subr.bf16.mxu1 %v2749_v25  ;;  %v2765_v24 = vpack.c.bf16 %v1021_v15, %v1015_v12  ;;  %v1014_v25 = vld [vmem:[#allocation6 + $0x1150] sm:$0xff]  ;;  %v2575_v34 = vpack.c.bf16 %v1018_v21, %v1012_v19  ;;  %v513_v12 = vld [vmem:[#allocation6 + $0x1a8] sm:$0xff]  ;;  %v519_v15 = vld [vmem:[#allocation6 + $0x1d8] sm:$0xff] }
 0x160   : > { %v512_v19 = vld [vmem:[#allocation6 + $0x1a0] sm:$0xff]  ;;  %v525_v21 = vld [vmem:[#allocation6 + $0x208] sm:$0xff] }
 0x161   : > { %v1748_v2 = vld [vmem:[#allocation9 + $0x20] sm:$0xff] }
 0x162   : > { %2560 = vmatpush1.bf16.msra.mxu0 %v2559_v37  ;;  %2752 = vmatpush1.bf16.msra.mxu1 %v2751_v38  ;;  %v2767_v37 = vpack.c.bf16 %v1020_v29, %v1014_v25  ;;  %v1024_v38 = vld [vmem:[#allocation6 + $0x11a0] sm:$0xff] }
 0x163   : > { %2562 = vmatprep.subr.bf16.mxu0 %v2561_v41  ;;  %2754 = vmatprep.subr.bf16.mxu1 %v2753_v42  ;;  %v2769_v41 = vpack.c.bf16 %v1033_v33, %v1027_v32  ;;  %v1026_v42 = vld [vmem:[#allocation6 + $0x11b0] sm:$0xff]  ;;  %v2579_v49 = vpack.c.bf16 %v1030_v40, %v1024_v38  ;;  %v524_v29 = vld [vmem:[#allocation6 + $0x200] sm:$0xff]  ;;  %v543_v32 = vld [vmem:[#allocation6 + $0x298] sm:$0xff] }
 0x164   : > { %v2771_v50 = vpack.c.bf16 %v1032_v45, %v1026_v42  ;;  %v2795_v33 = vpack.c.bf16 %v530_v30, %v524_v29  ;;  %v542_v38 = vld [vmem:[#allocation6 + $0x290] sm:$0xff]  ;;  %v555_v40 = vld [vmem:[#allocation6 + $0x2f8] sm:$0xff]  ;;  %v548_v42 = vld [vmem:[#allocation6 + $0x2c0] sm:$0xff] }
 0x165   : > { %v554_v45 = vld [vmem:[#allocation6 + $0x2f0] sm:$0xff] }
 0x166   : > { %2564 = vmatpush1.bf16.msra.mxu0 %v2563_v51  ;;  %2756 = vmatpush1.bf16.msra.mxu1 %v2755_v52  ;;  %v2773_v51 = vpack.c.bf16 %v471_v47, %v465_v46  ;;  %v464_v52 = vld [vmem:[#allocation6 + $0x20] sm:$0xff]  ;;  %v561_v47 = vld [vmem:[#allocation6 + $0x328] sm:$0xff]  ;;  %v590_v29 = vld [vmem:[#allocation6 + $0x410] sm:$0xff] }
 0x167   : > { %2566 = vmatprep.subr.bf16.mxu0 %v2565_v56  ;;  %2758 = vmatprep.subr.bf16.mxu1 %v2757_v57  ;;  %v483_v56 = vld [vmem:[#allocation6 + $0xb8] sm:$0xff]  ;;  %v3950_v57 = vrot.slane %v3908_v22, %v1056_v48  ;;  %v2775_v16 = vpack.c.bf16 %v470_v53, %v464_v52  ;;  %v1744_v52 = vld [vmem:[#allocation9] sm:$0xff] }
 0x168   : > { %v2777_v35 = vpack.c.bf16 %v483_v56, %v477_v55  ;;  %v1746_v53 = vld [vmem:[#allocation9 + $0x10] sm:$0xff] }
 0x169   : > { %v2967_v56 = vpack.c.bf16 %v1746_v53, %v1744_v52  ;;  %v1760_v52 = vld [vmem:[#allocation9 + $0x80] sm:$0xff]  ;;  %v1762_v53 = vld [vmem:[#allocation9 + $0x90] sm:$0xff] }
 0x16a   : > { %2568 = vmatpush1.bf16.msra.mxu0 %v2567_v62  ;;  %2760 = vmatpush1.bf16.msra.mxu1 %v2759_v63  ;;  %v2779_v62 = vpack.c.bf16 %v482_v59, %v476_v58  ;;  %v2781_v63 = vpack.c.bf16 %v495_v61, %v489_v60  ;;  %v566_v58 = vld [vmem:[#allocation6 + $0x350] sm:$0xff]  ;;  %v573_v60 = vld [vmem:[#allocation6 + $0x388] sm:$0xff]  ;;  %v579_v61 = vld [vmem:[#allocation6 + $0x3b8] sm:$0xff] }
 0x16b   : > { %2570 = vmatprep.subr.bf16.mxu0 %v2569_v6  ;;  %2762 = vmatprep.subr.bf16.mxu1 %v2761_v7  ;;  %v501_v6 = vld [vmem:[#allocation6 + $0x148] sm:$0xff]  ;;  %v507_v7 = vld [vmem:[#allocation6 + $0x178] sm:$0xff] }
 0x16c   : > { %v2785_v9 = vpack.c.bf16 %v507_v7, %v501_v6  ;;  %v2971_v7 = vpack.c.bf16 %v1750_v5, %v1748_v2  ;;  %v1764_v2 = vld [vmem:[#allocation9 + $0xa0] sm:$0xff]  ;;  %v1766_v5 = vld [vmem:[#allocation9 + $0xb0] sm:$0xff] }
 0x16e   : > { %2572 = vmatpush1.bf16.msra.mxu0 %v2571_v17  ;;  %2764 = vmatpush1.bf16.msra.mxu1 %v2763_v18  ;;  %v2787_v17 = vpack.c.bf16 %v506_v11, %v500_v10  ;;  %v2789_v18 = vpack.c.bf16 %v519_v15, %v513_v12  ;;  %v578_v10 = vld [vmem:[#allocation6 + $0x3b0] sm:$0xff]  ;;  %v2809_v11 = vpack.c.bf16 %v579_v61, %v573_v60  ;;  %v585_v12 = vld [vmem:[#allocation6 + $0x3e8] sm:$0xff]  ;;  %v591_v15 = vld [vmem:[#allocation6 + $0x418] sm:$0xff] }
 0x16f   : > { %2574 = vmatprep.subr.bf16.mxu0 %v2573_v23  ;;  %2766 = vmatprep.subr.bf16.mxu1 %v2765_v24  ;;  %v531_v23 = vld [vmem:[#allocation6 + $0x238] sm:$0xff]  ;;  %v2813_v30 = vpack.c.bf16 %v591_v15, %v585_v12  ;;  %v621_v60 = vld [vmem:[#allocation6 + $0x508] sm:$0xff] }
 0x170   : > { %v2793_v25 = vpack.c.bf16 %v531_v23, %v525_v21  ;;  %v627_v61 = vld [vmem:[#allocation6 + $0x538] sm:$0xff]  ;;  %v633_v12 = vld [vmem:[#allocation6 + $0x568] sm:$0xff] }
 0x171   : > { %v639_v15 = vld [vmem:[#allocation6 + $0x598] sm:$0xff] }
 0x172   : > { %2576 = vmatpush1.bf16.msra.mxu0 %v2575_v34  ;;  %2768 = vmatpush1.bf16.msra.mxu1 %v2767_v37  ;;  %v2797_v34 = vpack.c.bf16 %v543_v32, %v537_v31  ;;  %v536_v37 = vld [vmem:[#allocation6 + $0x260] sm:$0xff]  ;;  %v597_v31 = vld [vmem:[#allocation6 + $0x448] sm:$0xff]  ;;  %v603_v32 = vld [vmem:[#allocation6 + $0x478] sm:$0xff] }
 0x173   : > { %2578 = vmatprep.subr.bf16.mxu0 %v2577_v39  ;;  %2770 = vmatprep.subr.bf16.mxu1 %v2769_v41  ;;  %v549_v39 = vld [vmem:[#allocation6 + $0x2c8] sm:$0xff]  ;;  %v2799_v41 = vpack.c.bf16 %v542_v38, %v536_v37  ;;  %v1758_v38 = vld [vmem:[#allocation9 + $0x70] sm:$0xff] }
 0x174   : > { %v2801_v46 = vpack.c.bf16 %v555_v40, %v549_v39  ;;  %v1756_v37 = vld [vmem:[#allocation9 + $0x60] sm:$0xff] }
 0x175   : > { %v2979_v40 = vpack.c.bf16 %v1758_v38, %v1756_v37  ;;  %v1772_v37 = vld [vmem:[#allocation9 + $0xe0] sm:$0xff]  ;;  %v1774_v38 = vld [vmem:[#allocation9 + $0xf0] sm:$0xff] }
 0x176   : > { %2580 = vmatpush1.bf16.msra.mxu0 %v2579_v49  ;;  %2772 = vmatpush1.bf16.msra.mxu1 %v2771_v50  ;;  %v567_v49 = vld [vmem:[#allocation6 + $0x358] sm:$0xff]  ;;  %v1745_v50 = vld [vmem:[#allocation9 + $0x8] sm:$0xff] }
 0x177   : > { %2774 = vmatprep.subr.bf16.mxu0 %v2773_v51  ;;  %v1747_v51 = vld [vmem:[#allocation9 + $0x18] sm:$0xff]  ;;  %v2805_v59 = vpack.c.bf16 %v567_v49, %v561_v47  ;;  %v609_v47 = vld [vmem:[#allocation6 + $0x4a8] sm:$0xff] }
 0x178   : > { %v2965_v55 = vpack.c.bf16 %v1747_v51, %v1745_v50  ;;  %v615_v49 = vld [vmem:[#allocation6 + $0x4d8] sm:$0xff]  ;;  %v1761_v50 = vld [vmem:[#allocation9 + $0x88] sm:$0xff] }
 0x179   : > { %1306 = vmatmul.mubr.f32.vlgmr.msra.gmra.mrb[0].mxu0 %v3950_v57  ;;  %1519 = vmatmul.mubr.f32.vlgmr.msra.gmra.mrb[0].mxu1 %v3950_v57  ;;  %v1763_v51 = vld [vmem:[#allocation9 + $0x98] sm:$0xff] }
 0x17a   : > { %2776 = vmatpush1.bf16.msra.mxu0 %v2775_v16  ;;  %1589 = vmatprep.mubr.f32.mxu0 %v3913_v27  ;;  %v518_v27 = vld [vmem:[#allocation6 + $0x1d0] sm:$0xff]  ;;  %v2803_v16 = vpack.c.bf16 %v554_v45, %v548_v42  ;;  %v596_v42 = vld [vmem:[#allocation6 + $0x440] sm:$0xff] }
 0x17b   : > { %2778 = vmatprep.subr.bf16.mxu0 %v2777_v35  ;;  %v2791_v24 = vpack.c.bf16 %v518_v27, %v512_v19  ;;  %v560_v35 = vld [vmem:[#allocation6 + $0x320] sm:$0xff]  ;;  %2966 = vmatprep.subr.bf16.mxu1 %v2965_v55  ;;  %v1754_v27 = vld [vmem:[#allocation9 + $0x50] sm:$0xff]  ;;  %v2981_v55 = vpack.c.bf16 %v1763_v51, %v1761_v50  ;;  %v1777_v50 = vld [vmem:[#allocation9 + $0x108] sm:$0xff] }
 0x17c   : > { %2968 = vmatpush1.bf16.msra.mxu1 %v2967_v56  ;;  %v1752_v19 = vld [vmem:[#allocation9 + $0x40] sm:$0xff]  ;;  %v602_v45 = vld [vmem:[#allocation6 + $0x470] sm:$0xff]  ;;  %v2983_v56 = vpack.c.bf16 %v1762_v53, %v1760_v52  ;;  %v1779_v51 = vld [vmem:[#allocation9 + $0x118] sm:$0xff] }
 0x17d   : > { %v2975_v23 = vpack.c.bf16 %v1754_v27, %v1752_v19  ;;  %v1768_v19 = vld [vmem:[#allocation9 + $0xc0] sm:$0xff]  ;;  %v1770_v27 = vld [vmem:[#allocation9 + $0xd0] sm:$0xff] }
 0x17e   : > { %2780 = vmatpush1.bf16.msra.mxu0 %v2779_v62  ;;  %v1749_v62 = vld [vmem:[#allocation9 + $0x28] sm:$0xff]  ;;  %v1776_v52 = vld [vmem:[#allocation9 + $0x100] sm:$0xff]  ;;  %v1778_v53 = vld [vmem:[#allocation9 + $0x110] sm:$0xff] }
 0x17f   : > { %2782 = vmatprep.subr.bf16.mxu0 %v2781_v63  ;;  %v1751_v63 = vld [vmem:[#allocation9 + $0x38] sm:$0xff] }
 0x180   : > { %v2969_v6 = vpack.c.bf16 %v1751_v63, %v1749_v62  ;;  %v1765_v62 = vld [vmem:[#allocation9 + $0xa8] sm:$0xff]  ;;  %v1767_v63 = vld [vmem:[#allocation9 + $0xb8] sm:$0xff] }
 0x182   : > { %2784 = vmatpush1.bf16.msra.mxu0 %v2783_v8  ;;  %v2807_v8 = vpack.c.bf16 %v566_v58, %v560_v35  ;;  %2970 = vmatprep.subr.bf16.mxu1 %v2969_v6  ;;  %v608_v35 = vld [vmem:[#allocation6 + $0x4a0] sm:$0xff]  ;;  %v614_v58 = vld [vmem:[#allocation6 + $0x4d0] sm:$0xff]  ;;  %v2985_v6 = vpack.c.bf16 %v1767_v63, %v1765_v62 }
 0x183   : > { %2786 = vmatprep.subr.bf16.mxu0 %v2785_v9  ;;  %v572_v9 = vld [vmem:[#allocation6 + $0x380] sm:$0xff]  ;;  %2972 = vmatpush1.bf16.msra.mxu1 %v2971_v7  ;;  %v2987_v7 = vpack.c.bf16 %v1766_v5, %v1764_v2  ;;  %v1781_v62 = vld [vmem:[#allocation9 + $0x128] sm:$0xff]  ;;  %v1782_v5 = vld [vmem:[#allocation9 + $0x130] sm:$0xff] }
 0x184   : > { %v1783_v63 = vld [vmem:[#allocation9 + $0x138] sm:$0xff]  ;;  %v1780_v2 = vld [vmem:[#allocation9 + $0x120] sm:$0xff] }
 0x186   : > { %2788 = vmatpush1.bf16.msra.mxu0 %v2787_v17  ;;  %v1753_v17 = vld [vmem:[#allocation9 + $0x48] sm:$0xff] }
 0x187   : > { %2790 = vmatprep.subr.bf16.mxu0 %v2789_v18  ;;  %v1755_v18 = vld [vmem:[#allocation9 + $0x58] sm:$0xff] }
 0x188   : > { %v2973_v21 = vpack.c.bf16 %v1755_v18, %v1753_v17  ;;  %v1769_v17 = vld [vmem:[#allocation9 + $0xc8] sm:$0xff]  ;;  %v1771_v18 = vld [vmem:[#allocation9 + $0xd8] sm:$0xff] }
 0x18a   : > { %2792 = vmatpush1.bf16.msra.mxu0 %v2791_v24  ;;  %v2811_v24 = vpack.c.bf16 %v578_v10, %v572_v9  ;;  %2974 = vmatprep.subr.bf16.mxu1 %v2973_v21  ;;  %v620_v9 = vld [vmem:[#allocation6 + $0x500] sm:$0xff]  ;;  %v626_v10 = vld [vmem:[#allocation6 + $0x530] sm:$0xff]  ;;  %v2989_v21 = vpack.c.bf16 %v1771_v18, %v1769_v17  ;;  %v687_v18 = vld [vmem:[#allocation6 + $0x718] sm:$0xff] }
 0x18b   : > { %2794 = vmatprep.subr.bf16.mxu0 %v2793_v25  ;;  %v584_v25 = vld [vmem:[#allocation6 + $0x3e0] sm:$0xff]  ;;  %2976 = vmatpush1.bf16.msra.mxu1 %v2975_v23  ;;  %v2991_v23 = vpack.c.bf16 %v1770_v27, %v1768_v19 }
 0x18c   : > { %v1787_v17 = vld [vmem:[#allocation9 + $0x158] sm:$0xff]  ;;  %v1784_v27 = vld [vmem:[#allocation9 + $0x140] sm:$0xff] }
 0x18e   : > { %2796 = vmatpush1.bf16.msra.mxu0 %v2795_v33  ;;  %v1757_v33 = vld [vmem:[#allocation9 + $0x68] sm:$0xff] }
 0x18f   : > { %2798 = vmatprep.subr.bf16.mxu0 %v2797_v34  ;;  %v1759_v34 = vld [vmem:[#allocation9 + $0x78] sm:$0xff] }
 0x190   : > { %v2977_v39 = vpack.c.bf16 %v1759_v34, %v1757_v33  ;;  %v1773_v33 = vld [vmem:[#allocation9 + $0xe8] sm:$0xff]  ;;  %v1775_v34 = vld [vmem:[#allocation9 + $0xf8] sm:$0xff] }
 0x192   : > { %2800 = vmatpush1.bf16.msra.mxu0 %v2799_v41  ;;  %v2815_v41 = vpack.c.bf16 %v590_v29, %v584_v25  ;;  %2978 = vmatprep.subr.bf16.mxu1 %v2977_v39  ;;  %v632_v25 = vld [vmem:[#allocation6 + $0x560] sm:$0xff]  ;;  %v638_v29 = vld [vmem:[#allocation6 + $0x590] sm:$0xff]  ;;  %v2993_v39 = vpack.c.bf16 %v1775_v34, %v1773_v33 }
 0x193   : > { %2802 = vmatprep.subr.bf16.mxu0 %v2801_v46  ;;  %v2817_v46 = vpack.c.bf16 %v603_v32, %v597_v31  ;;  %2980 = vmatpush1.bf16.msra.mxu1 %v2979_v40  ;;  %v645_v31 = vld [vmem:[#allocation6 + $0x5c8] sm:$0xff]  ;;  %v651_v32 = vld [vmem:[#allocation6 + $0x5f8] sm:$0xff]  ;;  %v2995_v40 = vpack.c.bf16 %v1774_v38, %v1772_v37  ;;  %v680_v38 = vld [vmem:[#allocation6 + $0x6e0] sm:$0xff] }
 0x194   : > { %2982 = vmatprep.subr.bf16.mxu1 %v2981_v55  ;;  %v2997_v55 = vpack.c.bf16 %v1779_v51, %v1777_v50  ;;  %v1793_v33 = vld [vmem:[#allocation9 + $0x188] sm:$0xff]  ;;  %v1795_v34 = vld [vmem:[#allocation9 + $0x198] sm:$0xff] }
 0x195   : > { %v692_v51 = vld [vmem:[#allocation6 + $0x740] sm:$0xff] }
 0x196   : > { %2804 = vmatpush1.bf16.msra.mxu0 %v2803_v16  ;;  %v2819_v16 = vpack.c.bf16 %v602_v45, %v596_v42  ;;  %v644_v42 = vld [vmem:[#allocation6 + $0x5c0] sm:$0xff]  ;;  %v650_v45 = vld [vmem:[#allocation6 + $0x5f0] sm:$0xff] }
 0x197   : > { %2806 = vmatprep.subr.bf16.mxu0 %v2805_v59  ;;  %v2821_v59 = vpack.c.bf16 %v615_v49, %v609_v47  ;;  %2984 = vmatpush1.bf16.msra.mxu1 %v2983_v56  ;;  %v657_v47 = vld [vmem:[#allocation6 + $0x628] sm:$0xff]  ;;  %v663_v49 = vld [vmem:[#allocation6 + $0x658] sm:$0xff]  ;;  %v2999_v56 = vpack.c.bf16 %v1778_v53, %v1776_v52  ;;  %v698_v52 = vld [vmem:[#allocation6 + $0x770] sm:$0xff] }
 0x198   : > { %2986 = vmatprep.subr.bf16.mxu1 %v2985_v6  ;;  %v3001_v6 = vpack.c.bf16 %v1783_v63, %v1781_v62  ;;  %v705_v53 = vld [vmem:[#allocation6 + $0x7a8] sm:$0xff]  ;;  %v704_v63 = vld [vmem:[#allocation6 + $0x7a0] sm:$0xff] }
 0x19a   : > { %2808 = vmatpush1.bf16.msra.mxu0 %v2807_v8  ;;  %v2823_v8 = vpack.c.bf16 %v614_v58, %v608_v35  ;;  %v656_v35 = vld [vmem:[#allocation6 + $0x620] sm:$0xff]  ;;  %v662_v58 = vld [vmem:[#allocation6 + $0x650] sm:$0xff] }
 0x19b   : > { %2810 = vmatprep.subr.bf16.mxu0 %v2809_v11  ;;  %v2825_v11 = vpack.c.bf16 %v627_v61, %v621_v60  ;;  %2988 = vmatpush1.bf16.msra.mxu1 %v2987_v7  ;;  %v669_v60 = vld [vmem:[#allocation6 + $0x688] sm:$0xff]  ;;  %v675_v61 = vld [vmem:[#allocation6 + $0x6b8] sm:$0xff]  ;;  %v3003_v7 = vpack.c.bf16 %v1782_v5, %v1780_v2  ;;  %v710_v2 = vld [vmem:[#allocation6 + $0x7d0] sm:$0xff] }
 0x19c   : > { %2990 = vmatprep.subr.bf16.mxu1 %v2989_v21  ;;  %v1786_v21 = vld [vmem:[#allocation9 + $0x150] sm:$0xff]  ;;  %v717_v5 = vld [vmem:[#allocation6 + $0x808] sm:$0xff] }
 0x19e   : > { %2812 = vmatpush1.bf16.msra.mxu0 %v2811_v24  ;;  %v2827_v24 = vpack.c.bf16 %v626_v10, %v620_v9  ;;  %v668_v9 = vld [vmem:[#allocation6 + $0x680] sm:$0xff]  ;;  %v674_v10 = vld [vmem:[#allocation6 + $0x6b0] sm:$0xff] }
 0x19f   : > { %2814 = vmatprep.subr.bf16.mxu0 %v2813_v30  ;;  %v2829_v30 = vpack.c.bf16 %v639_v15, %v633_v12  ;;  %2992 = vmatpush1.bf16.msra.mxu1 %v2991_v23  ;;  %v681_v12 = vld [vmem:[#allocation6 + $0x6e8] sm:$0xff]  ;;  %v3007_v23 = vpack.c.bf16 %v1786_v21, %v1784_v27 }
 0x1a0   : > { %2994 = vmatprep.subr.bf16.mxu1 %v2993_v39  ;;  %v1785_v15 = vld [vmem:[#allocation9 + $0x148] sm:$0xff]  ;;  %v2845_v37 = vpack.c.bf16 %v687_v18, %v681_v12 }
 0x1a1   : > { %v3005_v19 = vpack.c.bf16 %v1787_v17, %v1785_v15  ;;  %v686_v39 = vld [vmem:[#allocation6 + $0x710] sm:$0xff]  ;;  %v716_v15 = vld [vmem:[#allocation6 + $0x800] sm:$0xff]  ;;  %v729_v18 = vld [vmem:[#allocation6 + $0x868] sm:$0xff] }
 0x1a2   : > { %2816 = vmatpush1.bf16.msra.mxu0 %v2815_v41  ;;  %v2831_v41 = vpack.c.bf16 %v638_v29, %v632_v25  ;;  %v1791_v25 = vld [vmem:[#allocation9 + $0x178] sm:$0xff]  ;;  %v1788_v29 = vld [vmem:[#allocation9 + $0x160] sm:$0xff]  ;;  %v722_v17 = vld [vmem:[#allocation6 + $0x830] sm:$0xff] }
 0x1a3   : > { %2818 = vmatprep.subr.bf16.mxu0 %v2817_v46  ;;  %v2833_v46 = vpack.c.bf16 %v651_v32, %v645_v31  ;;  %2996 = vmatpush1.bf16.msra.mxu1 %v2995_v40  ;;  %v1790_v32 = vld [vmem:[#allocation9 + $0x170] sm:$0xff]  ;;  %v693_v40 = vld [vmem:[#allocation6 + $0x748] sm:$0xff]  ;;  %v2859_v21 = vpack.c.bf16 %v722_v17, %v716_v15 }
 0x1a4   : > { %2998 = vmatprep.subr.bf16.mxu1 %v2997_v55  ;;  %v711_v55 = vld [vmem:[#allocation6 + $0x7d8] sm:$0xff] }
 0x1a5   : > { %v2853_v62 = vpack.c.bf16 %v711_v55, %v705_v53  ;;  %v765_v53 = vld [vmem:[#allocation6 + $0x988] sm:$0xff]  ;;  %v771_v55 = vld [vmem:[#allocation6 + $0x9b8] sm:$0xff] }
 0x1a6   : > { %2820 = vmatpush1.bf16.msra.mxu0 %v2819_v16  ;;  %v2835_v16 = vpack.c.bf16 %v650_v45, %v644_v42  ;;  %v3013_v42 = vpack.c.bf16 %v1795_v34, %v1793_v33  ;;  %v1792_v45 = vld [vmem:[#allocation9 + $0x180] sm:$0xff] }
 0x1a7   : > { %2822 = vmatprep.subr.bf16.mxu0 %v2821_v59  ;;  %v2837_v59 = vpack.c.bf16 %v663_v49, %v657_v47  ;;  %3000 = vmatpush1.bf16.msra.mxu1 %v2999_v56  ;;  %v2847_v47 = vpack.c.bf16 %v686_v39, %v680_v38  ;;  %v1799_v49 = vld [vmem:[#allocation9 + $0x1b8] sm:$0xff]  ;;  %v1804_v34 = vld [vmem:[#allocation9 + $0x1e0] sm:$0xff] }
 0x1a8   : > { %3002 = vmatprep.subr.bf16.mxu1 %v3001_v6  ;;  %v723_v6 = vld [vmem:[#allocation6 + $0x838] sm:$0xff] }
 0x1a9   : > { %v2857_v12 = vpack.c.bf16 %v723_v6, %v717_v5  ;;  %v789_v5 = vld [vmem:[#allocation6 + $0xa48] sm:$0xff]  ;;  %v795_v6 = vld [vmem:[#allocation6 + $0xa78] sm:$0xff] }
 0x1aa   : > { %2824 = vmatpush1.bf16.msra.mxu0 %v2823_v8  ;;  %v2839_v8 = vpack.c.bf16 %v662_v58, %v656_v35  ;;  %v1796_v35 = vld [vmem:[#allocation9 + $0x1a0] sm:$0xff]  ;;  %v1798_v58 = vld [vmem:[#allocation9 + $0x1b0] sm:$0xff] }
 0x1ab   : > { %2826 = vmatprep.subr.bf16.mxu0 %v2825_v11  ;;  %v2841_v11 = vpack.c.bf16 %v675_v61, %v669_v60  ;;  %3004 = vmatpush1.bf16.msra.mxu1 %v3003_v7  ;;  %v1801_v60 = vld [vmem:[#allocation9 + $0x1c8] sm:$0xff]  ;;  %v1803_v61 = vld [vmem:[#allocation9 + $0x1d8] sm:$0xff]  ;;  %v3019_v7 = vpack.c.bf16 %v1798_v58, %v1796_v35 }
 0x1ac   : > { %3006 = vmatprep.subr.bf16.mxu1 %v3005_v19  ;;  %v735_v19 = vld [vmem:[#allocation6 + $0x898] sm:$0xff]  ;;  %v764_v35 = vld [vmem:[#allocation6 + $0x980] sm:$0xff]  ;;  %v770_v58 = vld [vmem:[#allocation6 + $0x9b0] sm:$0xff] }
 0x1ae   : > { %2828 = vmatpush1.bf16.msra.mxu0 %v2827_v24  ;;  %v1789_v24 = vld [vmem:[#allocation9 + $0x168] sm:$0xff] }
 0x1af   : > { %2830 = vmatprep.subr.bf16.mxu0 %v2829_v30  ;;  %v2843_v30 = vpack.c.bf16 %v674_v10, %v668_v9  ;;  %v3009_v31 = vpack.c.bf16 %v1791_v25, %v1789_v24  ;;  %3008 = vmatpush1.bf16.msra.mxu1 %v3007_v23  ;;  %v1800_v9 = vld [vmem:[#allocation9 + $0x1c0] sm:$0xff]  ;;  %v1802_v10 = vld [vmem:[#allocation9 + $0x1d0] sm:$0xff]  ;;  %v2861_v25 = vpack.c.bf16 %v735_v19, %v729_v18 }
 0x1b0   : > { %v3023_v27 = vpack.c.bf16 %v1802_v10, %v1800_v9  ;;  %v728_v23 = vld [vmem:[#allocation6 + $0x860] sm:$0xff]  ;;  %v734_v24 = vld [vmem:[#allocation6 + $0x890] sm:$0xff] }
 0x1b1   : > { %3010 = vmatprep.subr.bf16.mxu1 %v3009_v31  ;;  %v1807_v31 = vld [vmem:[#allocation9 + $0x1f8] sm:$0xff]  ;;  %v2863_v39 = vpack.c.bf16 %v734_v24, %v728_v23  ;;  %v794_v10 = vld [vmem:[#allocation6 + $0xa70] sm:$0xff] }
 0x1b2   : > { %2832 = vmatpush1.bf16.msra.mxu0 %v2831_v41  ;;  %v699_v41 = vld [vmem:[#allocation6 + $0x778] sm:$0xff]  ;;  %v788_v9 = vld [vmem:[#allocation6 + $0xa40] sm:$0xff]  ;;  %v806_v19 = vld [vmem:[#allocation6 + $0xad0] sm:$0xff] }
 0x1b3   : > { %2834 = vmatprep.subr.bf16.mxu0 %v2833_v46  ;;  %v1794_v46 = vld [vmem:[#allocation9 + $0x190] sm:$0xff]  ;;  %v2849_v50 = vpack.c.bf16 %v699_v41, %v693_v40  ;;  %v740_v40 = vld [vmem:[#allocation6 + $0x8c0] sm:$0xff]  ;;  %v2883_v15 = vpack.c.bf16 %v794_v10, %v788_v9  ;;  %v897_v9 = vld [vmem:[#allocation6 + $0xda8] sm:$0xff] }
 0x1b4   : > { %v3015_v56 = vpack.c.bf16 %v1794_v46, %v1792_v45  ;;  %v1811_v45 = vld [vmem:[#allocation9 + $0x218] sm:$0xff]  ;;  %v753_v46 = vld [vmem:[#allocation6 + $0x928] sm:$0xff] }
 0x1b5   : > { %v800_v18 = vld [vmem:[#allocation6 + $0xaa0] sm:$0xff]  ;;  %v903_v10 = vld [vmem:[#allocation6 + $0xdd8] sm:$0xff] }
 0x1b6   : > { %2836 = vmatpush1.bf16.msra.mxu0 %v2835_v16  ;;  %v2887_v23 = vpack.c.bf16 %v806_v19, %v800_v18 }
 0x1b7   : > { %2838 = vmatprep.subr.bf16.mxu0 %v2837_v59  ;;  %v2851_v59 = vpack.c.bf16 %v698_v52, %v692_v51  ;;  %v752_v51 = vld [vmem:[#allocation6 + $0x920] sm:$0xff]  ;;  %v758_v52 = vld [vmem:[#allocation6 + $0x950] sm:$0xff] }
 0x1b9   : > { %1590 = vmatmul.mubr.f32.vlgmr.msra.gmra.mrb[2].mxu0 %v3917_v28  ;;  %v3011_v28 = vpack.c.bf16 %v1790_v32, %v1788_v29  ;;  %v741_v29 = vld [vmem:[#allocation6 + $0x8c8] sm:$0xff]  ;;  %v747_v32 = vld [vmem:[#allocation6 + $0x8f8] sm:$0xff] }
 0x1ba   : > { %2840 = vmatpush1.bf16.msra.mxu0 %v2839_v8  ;;  %1660 = vmatprep.mubr.f32.mxu0 %v3924_v44  ;;  %v1797_v44 = vld [vmem:[#allocation9 + $0x1a8] sm:$0xff]  ;;  %v3021_v8 = vpack.c.bf16 %v1803_v61, %v1801_v60  ;;  %v2865_v41 = vpack.c.bf16 %v747_v32, %v741_v29  ;;  %v783_v60 = vld [vmem:[#allocation6 + $0xa18] sm:$0xff]  ;;  %v2875_v61 = vpack.c.bf16 %v770_v58, %v764_v35 }
 0x1bb   : > { %2842 = vmatprep.subr.bf16.mxu0 %v2841_v11  ;;  %3012 = vmatpush1.bf16.msra.mxu1 %v3011_v28  ;;  %v3017_v16 = vpack.c.bf16 %v1799_v49, %v1797_v44  ;;  %v2855_v11 = vpack.c.bf16 %v710_v2, %v704_v63  ;;  %v746_v28 = vld [vmem:[#allocation6 + $0x8f0] sm:$0xff]  ;;  %v776_v63 = vld [vmem:[#allocation6 + $0x9e0] sm:$0xff]  ;;  %v873_v35 = vld [vmem:[#allocation6 + $0xce8] sm:$0xff] }
 0x1bc   : > { %3014 = vmatprep.subr.bf16.mxu1 %v3013_v42  ;;  %v1809_v42 = vld [vmem:[#allocation9 + $0x208] sm:$0xff]  ;;  %v2867_v49 = vpack.c.bf16 %v746_v28, %v740_v40  ;;  %v836_v28 = vld [vmem:[#allocation6 + $0xbc0] sm:$0xff]  ;;  %v879_v58 = vld [vmem:[#allocation6 + $0xd18] sm:$0xff] }
 0x1bd   : > { %v3029_v44 = vpack.c.bf16 %v1811_v45, %v1809_v42  ;;  %v782_v2 = vld [vmem:[#allocation6 + $0xa10] sm:$0xff]  ;;  %v849_v45 = vld [vmem:[#allocation6 + $0xc28] sm:$0xff] }
 0x1be   : > { %2844 = vmatpush1.bf16.msra.mxu0 %v2843_v30  ;;  %v1805_v30 = vld [vmem:[#allocation9 + $0x1e8] sm:$0xff] }
 0x1bf   : > { %2846 = vmatprep.subr.bf16.mxu0 %v2845_v37  ;;  %3016 = vmatpush1.bf16.msra.mxu1 %v3015_v56  ;;  %v3025_v33 = vpack.c.bf16 %v1807_v31, %v1805_v30  ;;  %v1806_v37 = vld [vmem:[#allocation9 + $0x1f0] sm:$0xff]  ;;  %v2871_v56 = vpack.c.bf16 %v758_v52, %v752_v51  ;;  %v825_v30 = vld [vmem:[#allocation6 + $0xb68] sm:$0xff] }
 0x1c0   : > { %3018 = vmatprep.subr.bf16.mxu1 %v3017_v16  ;;  %v3027_v38 = vpack.c.bf16 %v1806_v37, %v1804_v34  ;;  %v2873_v16 = vpack.c.bf16 %v771_v55, %v765_v53  ;;  %v818_v29 = vld [vmem:[#allocation6 + $0xb30] sm:$0xff]  ;;  %v831_v31 = vld [vmem:[#allocation6 + $0xb98] sm:$0xff]  ;;  %v824_v34 = vld [vmem:[#allocation6 + $0xb60] sm:$0xff] }
 0x1c1   : > { %v830_v37 = vld [vmem:[#allocation6 + $0xb90] sm:$0xff]  ;;  %v861_v51 = vld [vmem:[#allocation6 + $0xc88] sm:$0xff]  ;;  %v867_v52 = vld [vmem:[#allocation6 + $0xcb8] sm:$0xff] }
 0x1c2   : > { %2848 = vmatpush1.bf16.msra.mxu0 %v2847_v47  ;;  %v759_v47 = vld [vmem:[#allocation6 + $0x958] sm:$0xff]  ;;  %v2895_v40 = vpack.c.bf16 %v830_v37, %v824_v34  ;;  %v842_v42 = vld [vmem:[#allocation6 + $0xbf0] sm:$0xff]  ;;  %v2905_v55 = vpack.c.bf16 %v867_v52, %v861_v51  ;;  %v956_v51 = vld [vmem:[#allocation6 + $0xf80] sm:$0xff] }
 0x1c3   : > { %2850 = vmatprep.subr.bf16.mxu0 %v2849_v50  ;;  %3020 = vmatpush1.bf16.msra.mxu1 %v3019_v7  ;;  %v2869_v50 = vpack.c.bf16 %v759_v47, %v753_v46  ;;  %v2879_v7 = vpack.c.bf16 %v782_v2, %v776_v63  ;;  %v855_v46 = vld [vmem:[#allocation6 + $0xc58] sm:$0xff]  ;;  %v2899_v47 = vpack.c.bf16 %v842_v42, %v836_v28  ;;  %v885_v63 = vld [vmem:[#allocation6 + $0xd48] sm:$0xff]  ;;  %v962_v52 = vld [vmem:[#allocation6 + $0xfb0] sm:$0xff] }
 0x1c4   : > { %3022 = vmatprep.subr.bf16.mxu1 %v3021_v8  ;;  %v2881_v8 = vpack.c.bf16 %v795_v6, %v789_v5  ;;  %v891_v2 = vld [vmem:[#allocation6 + $0xd78] sm:$0xff] }
 0x1c5   : > { %v2913_v6 = vpack.c.bf16 %v891_v2, %v885_v63  ;;  %v980_v63 = vld [vmem:[#allocation6 + $0x1040] sm:$0xff]  ;;  %v986_v2 = vld [vmem:[#allocation6 + $0x1070] sm:$0xff] }
 0x1c6   : > { %2852 = vmatpush1.bf16.msra.mxu0 %v2851_v59  ;;  %v777_v59 = vld [vmem:[#allocation6 + $0x9e8] sm:$0xff] }
 0x1c7   : > { %2854 = vmatprep.subr.bf16.mxu0 %v2853_v62  ;;  %3024 = vmatpush1.bf16.msra.mxu1 %v3023_v27  ;;  %v2877_v62 = vpack.c.bf16 %v783_v60, %v777_v59  ;;  %v813_v27 = vld [vmem:[#allocation6 + $0xb08] sm:$0xff]  ;;  %v2909_v60 = vpack.c.bf16 %v879_v58, %v873_v35  ;;  %v968_v35 = vld [vmem:[#allocation6 + $0xfe0] sm:$0xff]  ;;  %v974_v58 = vld [vmem:[#allocation6 + $0x1010] sm:$0xff] }
 0x1c8   : > { %3026 = vmatprep.subr.bf16.mxu1 %v3025_v33  ;;  %v2893_v33 = vpack.c.bf16 %v831_v31, %v825_v30  ;;  %v920_v30 = vld [vmem:[#allocation6 + $0xe60] sm:$0xff]  ;;  %v926_v31 = vld [vmem:[#allocation6 + $0xe90] sm:$0xff] }
 0x1c9   : > { %v2927_v34 = vpack.c.bf16 %v926_v31, %v920_v30 }
 0x1ca   : > { %2856 = vmatpush1.bf16.msra.mxu0 %v2855_v11  ;;  %v801_v11 = vld [vmem:[#allocation6 + $0xaa8] sm:$0xff] }
 0x1cb   : > { %2858 = vmatprep.subr.bf16.mxu0 %v2857_v12  ;;  %3028 = vmatpush1.bf16.msra.mxu1 %v3027_v38  ;;  %v807_v12 = vld [vmem:[#allocation6 + $0xad8] sm:$0xff]  ;;  %v837_v38 = vld [vmem:[#allocation6 + $0xbc8] sm:$0xff] }
 0x1cc   : > { %3030 = vmatprep.subr.bf16.mxu1 %v3029_v44  ;;  %v2885_v17 = vpack.c.bf16 %v807_v12, %v801_v11  ;;  %v2901_v44 = vpack.c.bf16 %v855_v46, %v849_v45  ;;  %v2917_v11 = vpack.c.bf16 %v903_v10, %v897_v9  ;;  %v896_v12 = vld [vmem:[#allocation6 + $0xda0] sm:$0xff]  ;;  %v950_v46 = vld [vmem:[#allocation6 + $0xf50] sm:$0xff] }
 0x1cd   : > { %v944_v45 = vld [vmem:[#allocation6 + $0xf20] sm:$0xff]  ;;  %v998_v10 = vld [vmem:[#allocation6 + $0x10d0] sm:$0xff] }
 0x1ce   : > { %2860 = vmatpush1.bf16.msra.mxu0 %v2859_v21  ;;  %v819_v21 = vld [vmem:[#allocation6 + $0xb38] sm:$0xff]  ;;  %v992_v9 = vld [vmem:[#allocation6 + $0x10a0] sm:$0xff] }
 0x1cf   : > { %2862 = vmatprep.subr.bf16.mxu0 %v2861_v25  ;;  %v2889_v24 = vpack.c.bf16 %v819_v21, %v813_v27  ;;  %v812_v25 = vld [vmem:[#allocation6 + $0xb00] sm:$0xff]  ;;  %v914_v21 = vld [vmem:[#allocation6 + $0xe30] sm:$0xff] }
 0x1d0   : > { %v2891_v32 = vpack.c.bf16 %v818_v29, %v812_v25  ;;  %v908_v27 = vld [vmem:[#allocation6 + $0xe00] sm:$0xff] }
 0x1d1   : > { %v2923_v25 = vpack.c.bf16 %v914_v21, %v908_v27 }
 0x1d2   : > { %2864 = vmatpush1.bf16.msra.mxu0 %v2863_v39  ;;  %v843_v39 = vld [vmem:[#allocation6 + $0xbf8] sm:$0xff] }
 0x1d3   : > { %2866 = vmatprep.subr.bf16.mxu0 %v2865_v41  ;;  %v2897_v41 = vpack.c.bf16 %v843_v39, %v837_v38  ;;  %v932_v38 = vld [vmem:[#allocation6 + $0xec0] sm:$0xff]  ;;  %v938_v39 = vld [vmem:[#allocation6 + $0xef0] sm:$0xff] }
 0x1d4   : > { %v2931_v28 = vpack.c.bf16 %v938_v39, %v932_v38 }
 0x1d6   : > { %2868 = vmatpush1.bf16.msra.mxu0 %v2867_v49  ;;  %v848_v49 = vld [vmem:[#allocation6 + $0xc20] sm:$0xff] }
 0x1d7   : > { %2870 = vmatprep.subr.bf16.mxu0 %v2869_v50  ;;  %v854_v50 = vld [vmem:[#allocation6 + $0xc50] sm:$0xff] }
 0x1d8   : > { %v2903_v53 = vpack.c.bf16 %v854_v50, %v848_v49  ;;  %v2935_v49 = vpack.c.bf16 %v950_v46, %v944_v45 }
 0x1da   : > { %2872 = vmatpush1.bf16.msra.mxu0 %v2871_v56  ;;  %v860_v56 = vld [vmem:[#allocation6 + $0xc80] sm:$0xff] }
 0x1db   : > { %2874 = vmatprep.subr.bf16.mxu0 %v2873_v16  ;;  %v866_v16 = vld [vmem:[#allocation6 + $0xcb0] sm:$0xff] }
 0x1dc   : > { %v2907_v59 = vpack.c.bf16 %v866_v16, %v860_v56  ;;  %v2939_v56 = vpack.c.bf16 %v962_v52, %v956_v51  ;;  %v1815_v51 = vld [vmem:[#allocation9 + $0x238] sm:$0xff] }
 0x1de   : > { %2876 = vmatpush1.bf16.msra.mxu0 %v2875_v61  ;;  %v872_v61 = vld [vmem:[#allocation6 + $0xce0] sm:$0xff] }
 0x1df   : > { %2878 = vmatprep.subr.bf16.mxu0 %v2877_v62  ;;  %v878_v62 = vld [vmem:[#allocation6 + $0xd10] sm:$0xff] }
 0x1e0   : > { %v2911_v5 = vpack.c.bf16 %v878_v62, %v872_v61  ;;  %v2943_v61 = vpack.c.bf16 %v974_v58, %v968_v35  ;;  %v1812_v35 = vld [vmem:[#allocation9 + $0x220] sm:$0xff]  ;;  %v1814_v58 = vld [vmem:[#allocation9 + $0x230] sm:$0xff] }
 0x1e2   : > { %2880 = vmatpush1.bf16.msra.mxu0 %v2879_v7  ;;  %v884_v7 = vld [vmem:[#allocation6 + $0xd40] sm:$0xff] }
 0x1e3   : > { %2882 = vmatprep.subr.bf16.mxu0 %v2881_v8  ;;  %v890_v8 = vld [vmem:[#allocation6 + $0xd70] sm:$0xff] }
 0x1e6   : > { %2884 = vmatpush1.bf16.msra.mxu0 %v2883_v15  ;;  %v909_v15 = vld [vmem:[#allocation6 + $0xe08] sm:$0xff] }
 0x1e7   : > { %2886 = vmatprep.subr.bf16.mxu0 %v2885_v17  ;;  %v915_v17 = vld [vmem:[#allocation6 + $0xe38] sm:$0xff] }
 0x1e8   : > { %v2921_v19 = vpack.c.bf16 %v915_v17, %v909_v15  ;;  %v1004_v15 = vld [vmem:[#allocation6 + $0x1100] sm:$0xff]  ;;  %v1010_v17 = vld [vmem:[#allocation6 + $0x1130] sm:$0xff] }
 0x1e9   : > { %v2955_v27 = vpack.c.bf16 %v1010_v17, %v1004_v15  ;;  %v1826_v15 = vld [vmem:[#allocation9 + $0x290] sm:$0xff]  ;;  %v1829_v17 = vld [vmem:[#allocation9 + $0x2a8] sm:$0xff] }
 0x1ea   : > { %2888 = vmatpush1.bf16.msra.mxu0 %v2887_v23  ;;  %v921_v23 = vld [vmem:[#allocation6 + $0xe68] sm:$0xff] }
 0x1eb   : > { %2890 = vmatprep.subr.bf16.mxu0 %v2889_v24  ;;  %v927_v24 = vld [vmem:[#allocation6 + $0xe98] sm:$0xff] }
 0x1ec   : > { %v2925_v29 = vpack.c.bf16 %v927_v24, %v921_v23  ;;  %v1016_v23 = vld [vmem:[#allocation6 + $0x1160] sm:$0xff]  ;;  %v1022_v24 = vld [vmem:[#allocation6 + $0x1190] sm:$0xff] }
 0x1ed   : > { %v2959_v30 = vpack.c.bf16 %v1022_v24, %v1016_v23  ;;  %v1830_v23 = vld [vmem:[#allocation9 + $0x2b0] sm:$0xff]  ;;  %v1833_v24 = vld [vmem:[#allocation9 + $0x2c8] sm:$0xff] }
 0x1ee   : > { %2892 = vmatpush1.bf16.msra.mxu0 %v2891_v32  ;;  %v933_v32 = vld [vmem:[#allocation6 + $0xec8] sm:$0xff] }
 0x1ef   : > { %2894 = vmatprep.subr.bf16.mxu0 %v2893_v33  ;;  %v939_v33 = vld [vmem:[#allocation6 + $0xef8] sm:$0xff] }
 0x1f0   : > { %v2929_v37 = vpack.c.bf16 %v939_v33, %v933_v32  ;;  %v1028_v32 = vld [vmem:[#allocation6 + $0x11c0] sm:$0xff]  ;;  %v1034_v33 = vld [vmem:[#allocation6 + $0x11f0] sm:$0xff] }
 0x1f2   : > { %2896 = vmatpush1.bf16.msra.mxu0 %v2895_v40  ;;  %v945_v40 = vld [vmem:[#allocation6 + $0xf28] sm:$0xff] }
 0x1f3   : > { %2898 = vmatprep.subr.bf16.mxu0 %v2897_v41  ;;  %v951_v41 = vld [vmem:[#allocation6 + $0xf58] sm:$0xff] }
 0x1f4   : > { %v2933_v42 = vpack.c.bf16 %v951_v41, %v945_v40 }
 0x1f6   : > { %2900 = vmatpush1.bf16.msra.mxu0 %v2899_v47  ;;  %v957_v47 = vld [vmem:[#allocation6 + $0xf88] sm:$0xff] }
 0x1f7   : > { %2902 = vmatprep.subr.bf16.mxu0 %v2901_v44  ;;  %v963_v44 = vld [vmem:[#allocation6 + $0xfb8] sm:$0xff] }
 0x1f8   : > { %v2937_v50 = vpack.c.bf16 %v963_v44, %v957_v47  ;;  %v1808_v47 = vld [vmem:[#allocation9 + $0x200] sm:$0xff] }
 0x1f9   : > { %1661 = vmatmul.mubr.f32.vlgmr.msra.gmra.mrb[2].mxu0 %v3935_v4  ;;  %v2915_v4 = vpack.c.bf16 %v890_v8, %v884_v7  ;;  %v2947_v7 = vpack.c.bf16 %v986_v2, %v980_v63  ;;  %v1818_v63 = vld [vmem:[#allocation9 + $0x250] sm:$0xff]  ;;  %v1821_v2 = vld [vmem:[#allocation9 + $0x268] sm:$0xff] }
 0x1fa   : > { %2904 = vmatpush1.bf16.msra.mxu0 %v2903_v53  ;;  %1731 = vmatprep.mubr.f32.mxu0 %v3940_v20  ;;  %v902_v20 = vld [vmem:[#allocation6 + $0xdd0] sm:$0xff]  ;;  %v969_v53 = vld [vmem:[#allocation6 + $0xfe8] sm:$0xff] }
 0x1fb   : > { %2906 = vmatprep.subr.bf16.mxu0 %v2905_v55  ;;  %v2919_v18 = vpack.c.bf16 %v902_v20, %v896_v12  ;;  %v975_v55 = vld [vmem:[#allocation6 + $0x1018] sm:$0xff]  ;;  %v2951_v12 = vpack.c.bf16 %v998_v10, %v992_v9  ;;  %v1825_v10 = vld [vmem:[#allocation9 + $0x288] sm:$0xff] }
 0x1fc   : > { %v2941_v16 = vpack.c.bf16 %v975_v55, %v969_v53  ;;  %v1822_v9 = vld [vmem:[#allocation9 + $0x270] sm:$0xff] }
 0x1fe   : > { %2908 = vmatpush1.bf16.msra.mxu0 %v2907_v59  ;;  %v981_v59 = vld [vmem:[#allocation6 + $0x1048] sm:$0xff] }
 0x1ff   : > { %2910 = vmatprep.subr.bf16.mxu0 %v2909_v60  ;;  %v987_v60 = vld [vmem:[#allocation6 + $0x1078] sm:$0xff] }
 0x200   : > { %v2945_v62 = vpack.c.bf16 %v987_v60, %v981_v59  ;;  %v1819_v59 = vld [vmem:[#allocation9 + $0x258] sm:$0xff]  ;;  %v3035_v60 = vpack.c.bf16 %v1814_v58, %v1812_v35 }
 0x202   : > { %2912 = vmatpush1.bf16.msra.mxu0 %v2911_v5  ;;  %v993_v5 = vld [vmem:[#allocation6 + $0x10a8] sm:$0xff] }
 0x203   : > { %2914 = vmatprep.subr.bf16.mxu0 %v2913_v6  ;;  %v999_v6 = vld [vmem:[#allocation6 + $0x10d8] sm:$0xff] }
 0x204   : > { %v2949_v8 = vpack.c.bf16 %v999_v6, %v993_v5  ;;  %v1823_v5 = vld [vmem:[#allocation9 + $0x278] sm:$0xff] }
 0x206   : > { %2916 = vmatpush1.bf16.msra.mxu0 %v2915_v4  ;;  %v1005_v4 = vld [vmem:[#allocation6 + $0x1108] sm:$0xff] }
 0x207   : > { %2918 = vmatprep.subr.bf16.mxu0 %v2917_v11  ;;  %v1011_v11 = vld [vmem:[#allocation6 + $0x1138] sm:$0xff] }
 0x208   : > { %v2953_v20 = vpack.c.bf16 %v1011_v11, %v1005_v4  ;;  %v1827_v4 = vld [vmem:[#allocation9 + $0x298] sm:$0xff] }
 0x20a   : > { %2920 = vmatpush1.bf16.msra.mxu0 %v2919_v18  ;;  %v1017_v18 = vld [vmem:[#allocation6 + $0x1168] sm:$0xff] }
 0x20b   : > { %2922 = vmatprep.subr.bf16.mxu0 %v2921_v19  ;;  %v1023_v19 = vld [vmem:[#allocation6 + $0x1198] sm:$0xff] }
 0x20c   : > { %v2957_v21 = vpack.c.bf16 %v1023_v19, %v1017_v18  ;;  %v1831_v18 = vld [vmem:[#allocation9 + $0x2b8] sm:$0xff] }
 0x20e   : > { %2924 = vmatpush1.bf16.msra.mxu0 %v2923_v25  ;;  %v1029_v25 = vld [vmem:[#allocation6 + $0x11c8] sm:$0xff] }
 0x20f   : > { %2926 = vmatprep.subr.bf16.mxu0 %v2925_v29  ;;  %v1035_v29 = vld [vmem:[#allocation6 + $0x11f8] sm:$0xff] }
 0x210   : > { %v2961_v31 = vpack.c.bf16 %v1035_v29, %v1029_v25  ;;  %v1835_v25 = vld [vmem:[#allocation9 + $0x2d8] sm:$0xff] }
 0x212   : > { %2928 = vmatpush1.bf16.msra.mxu0 %v2927_v34  ;;  %v2963_v34 = vpack.c.bf16 %v1034_v33, %v1028_v32  ;;  %v1834_v32 = vld [vmem:[#allocation9 + $0x2d0] sm:$0xff]  ;;  %v1837_v33 = vld [vmem:[#allocation9 + $0x2e8] sm:$0xff] }
 0x213   : > { %2930 = vmatprep.subr.bf16.mxu0 %v2929_v37  ;;  %v3960_v37 = vld [vmem:[#allocation8] sm:$0x3f] }
 0x214   : > { %v1072_v38 = vrot.slane %v3960_v37, %v3906_v14  ;;  %v1076_v39 = vrot.slane %v3960_v37, %v3903_v13  ;;  %v1084_v40 = vrot.slane %v3960_v37, %v1052_v26  ;;  %v1817_v26 = vld [vmem:[#allocation9 + $0x248] sm:$0xff] }
 0x216   : > { %2932 = vmatpush1.bf16.msra.mxu0 %v2931_v28 }
 0x217   : > { %2934 = vmatprep.subr.bf16.mxu0 %v2933_v42 }
 0x21a   : > { %2936 = vmatpush1.bf16.msra.mxu0 %v2935_v49 }
 0x21b   : > { %2938 = vmatprep.subr.bf16.mxu0 %v2937_v50  ;;  %v1813_v50 = vld [vmem:[#allocation9 + $0x228] sm:$0xff] }
 0x21e   : > { %2940 = vmatpush1.bf16.msra.mxu0 %v2939_v56 }
 0x21f   : > { %2942 = vmatprep.subr.bf16.mxu0 %v2941_v16  ;;  %v3033_v16 = vpack.c.bf16 %v1815_v51, %v1813_v50  ;;  %v1847_v50 = vld [vmem:[#allocation9 + $0x338] sm:$0xff] }
 0x222   : > { %2944 = vmatpush1.bf16.msra.mxu0 %v2943_v61  ;;  %v3037_v61 = vpack.c.bf16 %v1819_v59, %v1817_v26  ;;  %v1848_v26 = vld [vmem:[#allocation9 + $0x340] sm:$0xff]  ;;  %v1850_v59 = vld [vmem:[#allocation9 + $0x350] sm:$0xff] }
 0x223   : > { %2946 = vmatprep.subr.bf16.mxu0 %v2945_v62  ;;  %v1816_v62 = vld [vmem:[#allocation9 + $0x240] sm:$0xff] }
 0x224   : > { %v3039_v6 = vpack.c.bf16 %v1818_v63, %v1816_v62  ;;  %v3071_v62 = vpack.c.bf16 %v1850_v59, %v1848_v26  ;;  %v1887_v26 = vld [vmem:[#allocation9 + $0x478] sm:$0xff] }
 0x226   : > { %2948 = vmatpush1.bf16.msra.mxu0 %v2947_v7  ;;  %v3041_v7 = vpack.c.bf16 %v1823_v5, %v1821_v2  ;;  %v1852_v2 = vld [vmem:[#allocation9 + $0x360] sm:$0xff]  ;;  %v1854_v5 = vld [vmem:[#allocation9 + $0x370] sm:$0xff] }
 0x227   : > { %2950 = vmatprep.subr.bf16.mxu0 %v2949_v8  ;;  %v1820_v8 = vld [vmem:[#allocation9 + $0x260] sm:$0xff] }
 0x228   : > { %v3043_v11 = vpack.c.bf16 %v1822_v9, %v1820_v8  ;;  %v3075_v8 = vpack.c.bf16 %v1854_v5, %v1852_v2  ;;  %v1891_v2 = vld [vmem:[#allocation9 + $0x498] sm:$0xff] }
 0x22a   : > { %2952 = vmatpush1.bf16.msra.mxu0 %v2951_v12  ;;  %v3045_v12 = vpack.c.bf16 %v1827_v4, %v1825_v10  ;;  %v1856_v10 = vld [vmem:[#allocation9 + $0x380] sm:$0xff]  ;;  %v1858_v4 = vld [vmem:[#allocation9 + $0x390] sm:$0xff] }
 0x22b   : > { %2954 = vmatprep.subr.bf16.mxu0 %v2953_v20  ;;  %v1824_v20 = vld [vmem:[#allocation9 + $0x280] sm:$0xff] }
 0x22c   : > { %v3047_v19 = vpack.c.bf16 %v1826_v15, %v1824_v20  ;;  %v3079_v20 = vpack.c.bf16 %v1858_v4, %v1856_v10  ;;  %v1895_v10 = vld [vmem:[#allocation9 + $0x4b8] sm:$0xff] }
 0x22e   : > { %2956 = vmatpush1.bf16.msra.mxu0 %v2955_v27  ;;  %v3049_v27 = vpack.c.bf16 %v1831_v18, %v1829_v17  ;;  %v1860_v17 = vld [vmem:[#allocation9 + $0x3a0] sm:$0xff]  ;;  %v1862_v18 = vld [vmem:[#allocation9 + $0x3b0] sm:$0xff] }
 0x22f   : > { %2958 = vmatprep.subr.bf16.mxu0 %v2957_v21  ;;  %v1828_v21 = vld [vmem:[#allocation9 + $0x2a0] sm:$0xff] }
 0x230   : > { %v3051_v29 = vpack.c.bf16 %v1830_v23, %v1828_v21  ;;  %v3083_v21 = vpack.c.bf16 %v1862_v18, %v1860_v17  ;;  %v1899_v17 = vld [vmem:[#allocation9 + $0x4d8] sm:$0xff] }
 0x232   : > { %2960 = vmatpush1.bf16.msra.mxu0 %v2959_v30  ;;  %v3053_v30 = vpack.c.bf16 %v1835_v25, %v1833_v24  ;;  %v1864_v24 = vld [vmem:[#allocation9 + $0x3c0] sm:$0xff]  ;;  %v1866_v25 = vld [vmem:[#allocation9 + $0x3d0] sm:$0xff] }
 0x233   : > { %2962 = vmatprep.subr.bf16.mxu0 %v2961_v31  ;;  %v1832_v31 = vld [vmem:[#allocation9 + $0x2c0] sm:$0xff] }
 0x236   : > { %2964 = vmatpush1.bf16.msra.mxu0 %v2963_v34  ;;  %v1839_v34 = vld [vmem:[#allocation9 + $0x2f8] sm:$0xff] }
 0x239   : > { %1732 = vmatmul.mubr.f32.vlgmr.msra.gmra.mrb[2].mxu0 %v3950_v57  ;;  %v1810_v57 = vld [vmem:[#allocation9 + $0x210] sm:$0xff] }
 0x23a   : > { %v3031_v55 = vpack.c.bf16 %v1810_v57, %v1808_v47  ;;  %v1840_v57 = vld [vmem:[#allocation9 + $0x300] sm:$0xff] }
 0x24c   : > { %v1307_v41 = vpop.f32.mrb[0].mxu0  ;;  %v3969_v28 = vpop.f32.mrb[0].mxu1 }
 0x24d   : > { %v3157_v42 = vadd.f32 %v1307_v41, %v1072_v38  ;;  %v1309_v45 = vpop.f32.mrb[1].mxu0  ;;  %v1522_v46 = vpop.f32.mrb[1].mxu1  ;;  %v3055_v38 = vpack.c.bf16 %v1834_v32, %v1832_v31  ;;  %v1838_v41 = vld [vmem:[#allocation9 + $0x2f0] sm:$0xff]  ;;  %v3087_v31 = vpack.c.bf16 %v1866_v25, %v1864_v24  ;;  %v1080_v32 = vrot.slane %v3960_v37, %v1048_v54  ;;  %v1903_v24 = vld [vmem:[#allocation9 + $0x4f8] sm:$0xff] }
 0x24e   : > { %v3158_v44 = vadd.f32 %v1309_v45, %v1076_v39  ;;  %v3160_v49 = vadd.f32 %v1522_v46, %v1084_v40  ;;  %v3057_v39 = vpack.c.bf16 %v1839_v34, %v1837_v33  ;;  %v1836_v40 = vld [vmem:[#allocation9 + $0x2e0] sm:$0xff]  ;;  %v1843_v45 = vld [vmem:[#allocation9 + $0x318] sm:$0xff] }
 0x24f   : > { %v1738_v56 = vmax.f32 %v3157_v42, 0.0  ;;  %v1841_v42 = vld [vmem:[#allocation9 + $0x308] sm:$0xff]  ;;  %v3059_v46 = vpack.c.bf16 %v1838_v41, %v1836_v40  ;;  %v1868_v34 = vld [vmem:[#allocation9 + $0x3e0] sm:$0xff]  ;;  %v1875_v40 = vld [vmem:[#allocation9 + $0x418] sm:$0xff] }
 0x250   : > { %v1739_v52 = vmax.f32 %v3158_v44, 0.0  ;;  %v1741_v53 = vmax.f32 %v3160_v49, 0.0  ;;  %v3061_v47 = vpack.c.bf16 %v1843_v45, %v1841_v42  ;;  %v1842_v44 = vld [vmem:[#allocation9 + $0x310] sm:$0xff]  ;;  %v1845_v49 = vld [vmem:[#allocation9 + $0x328] sm:$0xff]  ;;  %v3159_v42 = vadd.f32 %v3969_v28, %v1080_v32 }
 0x251   : > { %v3063_v51 = vpack.c.bf16 %v1842_v44, %v1840_v57  ;;  %v1877_v57 = vld [vmem:[#allocation9 + $0x428] sm:$0xff]  ;;  %v1879_v44 = vld [vmem:[#allocation9 + $0x438] sm:$0xff] }
 0x252   : > { %2012 = vmatprep.mubr.f32.mxu1 %v1739_v52  ;;  %v3065_v52 = vpack.c.bf16 %v1847_v50, %v1845_v49  ;;  %v1740_v50 = vmax.f32 %v3159_v42, 0.0  ;;  %v3097_v54 = vpack.c.bf16 %v1879_v44, %v1877_v57  ;;  %v1905_v32 = vld [vmem:[#allocation9 + $0x508] sm:$0xff]  ;;  %v1911_v42 = vld [vmem:[#allocation9 + $0x538] sm:$0xff]  ;;  %v1910_v57 = vld [vmem:[#allocation9 + $0x530] sm:$0xff] }
 0x253   : > { %2013 = vmatmul.mubr.f32.vlgmr.msra.gmra.mrb[2].mxu1 %v1738_v56  ;;  %v1849_v56 = vld [vmem:[#allocation9 + $0x348] sm:$0xff] }
 0x254   : > { %3032 = vmatpush1.bf16.msra.mxu1 %v3031_v55  ;;  %2083 = vmatprep.mubr.f32.mxu1 %v1741_v53  ;;  %v1844_v53 = vld [vmem:[#allocation9 + $0x320] sm:$0xff]  ;;  %v1846_v55 = vld [vmem:[#allocation9 + $0x330] sm:$0xff]  ;;  %v1913_v44 = vld [vmem:[#allocation9 + $0x548] sm:$0xff] }
 0x255   : > { %3034 = vmatprep.subr.bf16.mxu1 %v3033_v16  ;;  %v1851_v16 = vld [vmem:[#allocation9 + $0x358] sm:$0xff]  ;;  %v3067_v35 = vpack.c.bf16 %v1846_v55, %v1844_v53  ;;  %v1881_v53 = vld [vmem:[#allocation9 + $0x448] sm:$0xff] }
 0x256   : > { %v3069_v58 = vpack.c.bf16 %v1851_v16, %v1849_v56  ;;  %v1883_v55 = vld [vmem:[#allocation9 + $0x458] sm:$0xff]  ;;  %v1880_v16 = vld [vmem:[#allocation9 + $0x440] sm:$0xff] }
 0x257   : > { %v3101_v28 = vpack.c.bf16 %v1883_v55, %v1881_v53  ;;  %v1917_v53 = vld [vmem:[#allocation9 + $0x568] sm:$0xff]  ;;  %v1919_v55 = vld [vmem:[#allocation9 + $0x578] sm:$0xff] }
 0x258   : > { %3036 = vmatpush1.bf16.msra.mxu1 %v3035_v60  ;;  %v1853_v60 = vld [vmem:[#allocation9 + $0x368] sm:$0xff] }
 0x259   : > { %3038 = vmatprep.subr.bf16.mxu1 %v3037_v61  ;;  %v1855_v61 = vld [vmem:[#allocation9 + $0x378] sm:$0xff] }
 0x25a   : > { %v3073_v63 = vpack.c.bf16 %v1855_v61, %v1853_v60  ;;  %v1884_v61 = vld [vmem:[#allocation9 + $0x460] sm:$0xff] }
 0x25c   : > { %3040 = vmatpush1.bf16.msra.mxu1 %v3039_v6  ;;  %v1857_v6 = vld [vmem:[#allocation9 + $0x388] sm:$0xff] }
 0x25d   : > { %3042 = vmatprep.subr.bf16.mxu1 %v3041_v7  ;;  %v1859_v7 = vld [vmem:[#allocation9 + $0x398] sm:$0xff] }
 0x25e   : > { %v3077_v9 = vpack.c.bf16 %v1859_v7, %v1857_v6  ;;  %v1888_v7 = vld [vmem:[#allocation9 + $0x480] sm:$0xff] }
 0x260   : > { %3044 = vmatpush1.bf16.msra.mxu1 %v3043_v11  ;;  %v1861_v11 = vld [vmem:[#allocation9 + $0x3a8] sm:$0xff] }
 0x261   : > { %3046 = vmatprep.subr.bf16.mxu1 %v3045_v12  ;;  %v1863_v12 = vld [vmem:[#allocation9 + $0x3b8] sm:$0xff] }
 0x262   : > { %v3081_v15 = vpack.c.bf16 %v1863_v12, %v1861_v11  ;;  %v1892_v12 = vld [vmem:[#allocation9 + $0x4a0] sm:$0xff] }
 0x264   : > { %3048 = vmatpush1.bf16.msra.mxu1 %v3047_v19  ;;  %v1865_v19 = vld [vmem:[#allocation9 + $0x3c8] sm:$0xff] }
 0x265   : > { %3050 = vmatprep.subr.bf16.mxu1 %v3049_v27  ;;  %v1867_v27 = vld [vmem:[#allocation9 + $0x3d8] sm:$0xff] }
 0x266   : > { %v3085_v23 = vpack.c.bf16 %v1867_v27, %v1865_v19  ;;  %v1896_v27 = vld [vmem:[#allocation9 + $0x4c0] sm:$0xff] }
 0x268   : > { %3052 = vmatpush1.bf16.msra.mxu1 %v3051_v29  ;;  %v1869_v29 = vld [vmem:[#allocation9 + $0x3e8] sm:$0xff] }
 0x269   : > { %3054 = vmatprep.subr.bf16.mxu1 %v3053_v30  ;;  %v1871_v30 = vld [vmem:[#allocation9 + $0x3f8] sm:$0xff] }
 0x26a   : > { %v3089_v33 = vpack.c.bf16 %v1871_v30, %v1869_v29  ;;  %v1900_v30 = vld [vmem:[#allocation9 + $0x4e0] sm:$0xff] }
 0x26c   : > { %3056 = vmatpush1.bf16.msra.mxu1 %v3055_v38  ;;  %v1870_v38 = vld [vmem:[#allocation9 + $0x3f0] sm:$0xff] }
 0x26d   : > { %3058 = vmatprep.subr.bf16.mxu1 %v3057_v39  ;;  %v1873_v39 = vld [vmem:[#allocation9 + $0x408] sm:$0xff]  ;;  %v3091_v41 = vpack.c.bf16 %v1870_v38, %v1868_v34 }
 0x26e   : > { %v3093_v45 = vpack.c.bf16 %v1875_v40, %v1873_v39  ;;  %v1904_v39 = vld [vmem:[#allocation9 + $0x500] sm:$0xff]  ;;  %v1906_v40 = vld [vmem:[#allocation9 + $0x510] sm:$0xff] }
 0x270   : > { %3060 = vmatpush1.bf16.msra.mxu1 %v3059_v46  ;;  %v1872_v46 = vld [vmem:[#allocation9 + $0x400] sm:$0xff] }
 0x271   : > { %3062 = vmatprep.subr.bf16.mxu1 %v3061_v47  ;;  %v1874_v47 = vld [vmem:[#allocation9 + $0x410] sm:$0xff] }
 0x272   : > { %v3095_v49 = vpack.c.bf16 %v1874_v47, %v1872_v46  ;;  %v1908_v47 = vld [vmem:[#allocation9 + $0x520] sm:$0xff] }
 0x274   : > { %3064 = vmatpush1.bf16.msra.mxu1 %v3063_v51  ;;  %v1876_v51 = vld [vmem:[#allocation9 + $0x420] sm:$0xff] }
 0x275   : > { %3066 = vmatprep.subr.bf16.mxu1 %v3065_v52  ;;  %v1878_v52 = vld [vmem:[#allocation9 + $0x430] sm:$0xff] }
 0x276   : > { %v3099_v56 = vpack.c.bf16 %v1878_v52, %v1876_v51  ;;  %v1912_v51 = vld [vmem:[#allocation9 + $0x540] sm:$0xff]  ;;  %v1914_v52 = vld [vmem:[#allocation9 + $0x550] sm:$0xff] }
 0x278   : > { %3068 = vmatpush1.bf16.msra.mxu1 %v3067_v35  ;;  %v1882_v35 = vld [vmem:[#allocation9 + $0x450] sm:$0xff] }
 0x279   : > { %3070 = vmatprep.subr.bf16.mxu1 %v3069_v58  ;;  %v1885_v58 = vld [vmem:[#allocation9 + $0x468] sm:$0xff]  ;;  %v3103_v59 = vpack.c.bf16 %v1882_v35, %v1880_v16  ;;  %v1916_v16 = vld [vmem:[#allocation9 + $0x560] sm:$0xff]  ;;  %v1918_v35 = vld [vmem:[#allocation9 + $0x570] sm:$0xff] }
 0x27a   : > { %v3105_v60 = vpack.c.bf16 %v1887_v26, %v1885_v58  ;;  %v1921_v58 = vld [vmem:[#allocation9 + $0x588] sm:$0xff]  ;;  %v1923_v26 = vld [vmem:[#allocation9 + $0x598] sm:$0xff] }
 0x27c   : > { %3072 = vmatpush1.bf16.msra.mxu1 %v3071_v62  ;;  %v1886_v62 = vld [vmem:[#allocation9 + $0x470] sm:$0xff] }
 0x27d   : > { %3074 = vmatprep.subr.bf16.mxu1 %v3073_v63  ;;  %v1889_v63 = vld [vmem:[#allocation9 + $0x488] sm:$0xff]  ;;  %v3107_v5 = vpack.c.bf16 %v1886_v62, %v1884_v61  ;;  %v1920_v61 = vld [vmem:[#allocation9 + $0x580] sm:$0xff]  ;;  %v1922_v62 = vld [vmem:[#allocation9 + $0x590] sm:$0xff] }
 0x27e   : > { %v3109_v6 = vpack.c.bf16 %v1891_v2, %v1889_v63  ;;  %v1925_v63 = vld [vmem:[#allocation9 + $0x5a8] sm:$0xff]  ;;  %v1927_v2 = vld [vmem:[#allocation9 + $0x5b8] sm:$0xff] }
 0x280   : > { %3076 = vmatpush1.bf16.msra.mxu1 %v3075_v8  ;;  %v1890_v8 = vld [vmem:[#allocation9 + $0x490] sm:$0xff] }
 0x281   : > { %3078 = vmatprep.subr.bf16.mxu1 %v3077_v9  ;;  %v1893_v9 = vld [vmem:[#allocation9 + $0x4a8] sm:$0xff]  ;;  %v3111_v4 = vpack.c.bf16 %v1890_v8, %v1888_v7  ;;  %v1924_v7 = vld [vmem:[#allocation9 + $0x5a0] sm:$0xff]  ;;  %v1926_v8 = vld [vmem:[#allocation9 + $0x5b0] sm:$0xff] }
 0x282   : > { %v3113_v11 = vpack.c.bf16 %v1895_v10, %v1893_v9  ;;  %v1929_v9 = vld [vmem:[#allocation9 + $0x5c8] sm:$0xff]  ;;  %v1931_v10 = vld [vmem:[#allocation9 + $0x5d8] sm:$0xff] }
 0x284   : > { %3080 = vmatpush1.bf16.msra.mxu1 %v3079_v20  ;;  %v1894_v20 = vld [vmem:[#allocation9 + $0x4b0] sm:$0xff] }
 0x285   : > { %3082 = vmatprep.subr.bf16.mxu1 %v3081_v15  ;;  %v1897_v15 = vld [vmem:[#allocation9 + $0x4c8] sm:$0xff]  ;;  %v3115_v18 = vpack.c.bf16 %v1894_v20, %v1892_v12  ;;  %v1928_v12 = vld [vmem:[#allocation9 + $0x5c0] sm:$0xff]  ;;  %v1930_v20 = vld [vmem:[#allocation9 + $0x5d0] sm:$0xff] }
 0x286   : > { %v3117_v19 = vpack.c.bf16 %v1899_v17, %v1897_v15  ;;  %v1933_v15 = vld [vmem:[#allocation9 + $0x5e8] sm:$0xff]  ;;  %v1935_v17 = vld [vmem:[#allocation9 + $0x5f8] sm:$0xff] }
 0x288   : > { %3084 = vmatpush1.bf16.msra.mxu1 %v3083_v21  ;;  %v1898_v21 = vld [vmem:[#allocation9 + $0x4d0] sm:$0xff] }
 0x289   : > { %3086 = vmatprep.subr.bf16.mxu1 %v3085_v23  ;;  %v1901_v23 = vld [vmem:[#allocation9 + $0x4e8] sm:$0xff]  ;;  %v3119_v25 = vpack.c.bf16 %v1898_v21, %v1896_v27  ;;  %v1932_v27 = vld [vmem:[#allocation9 + $0x5e0] sm:$0xff]  ;;  %v1934_v21 = vld [vmem:[#allocation9 + $0x5f0] sm:$0xff] }
 0x28a   : > { %v3121_v29 = vpack.c.bf16 %v1903_v24, %v1901_v23  ;;  %v3155_v23 = vpack.c.bf16 %v1934_v21, %v1932_v27  ;;  %v1088_v24 = vrot.slane %v3960_v37, %v1056_v48 }
 0x28c   : > { %3088 = vmatpush1.bf16.msra.mxu1 %v3087_v31  ;;  %v1902_v31 = vld [vmem:[#allocation9 + $0x4f0] sm:$0xff] }
 0x28d   : > { %3090 = vmatprep.subr.bf16.mxu1 %v3089_v33  ;;  %v1907_v33 = vld [vmem:[#allocation9 + $0x518] sm:$0xff]  ;;  %v3123_v34 = vpack.c.bf16 %v1902_v31, %v1900_v30 }
 0x28e   : > { %v3125_v38 = vpack.c.bf16 %v1907_v33, %v1905_v32 }
 0x290   : > { %3092 = vmatpush1.bf16.msra.mxu1 %v3091_v41  ;;  %v1909_v41 = vld [vmem:[#allocation9 + $0x528] sm:$0xff] }
 0x291   : > { %3094 = vmatprep.subr.bf16.mxu1 %v3093_v45  ;;  %v3127_v45 = vpack.c.bf16 %v1906_v40, %v1904_v39  ;;  %v3129_v46 = vpack.c.bf16 %v1911_v42, %v1909_v41 }
 0x293   : > { %2084 = vmatmul.mubr.f32.vlgmr.msra.gmra.mrb[2].mxu1 %v1740_v50  ;;  %v3131_v50 = vpack.c.bf16 %v1910_v57, %v1908_v47 }
 0x294   : > { %3096 = vmatpush1.bf16.msra.mxu1 %v3095_v49  ;;  %v1915_v49 = vld [vmem:[#allocation9 + $0x558] sm:$0xff] }
 0x295   : > { %3098 = vmatprep.subr.bf16.mxu1 %v3097_v54  ;;  %v3133_v54 = vpack.c.bf16 %v1915_v49, %v1913_v44 }
 0x298   : > { %3100 = vmatpush1.bf16.msra.mxu1 %v3099_v56  ;;  %v3135_v56 = vpack.c.bf16 %v1914_v52, %v1912_v51 }
 0x299   : > { %3102 = vmatprep.subr.bf16.mxu1 %v3101_v28  ;;  %v3137_v28 = vpack.c.bf16 %v1919_v55, %v1917_v53 }
 0x29c   : > { %3104 = vmatpush1.bf16.msra.mxu1 %v3103_v59  ;;  %v3139_v59 = vpack.c.bf16 %v1918_v35, %v1916_v16 }
 0x29d   : > { %3106 = vmatprep.subr.bf16.mxu1 %v3105_v60  ;;  %v3141_v60 = vpack.c.bf16 %v1923_v26, %v1921_v58 }
 0x2a0   : > { %3108 = vmatpush1.bf16.msra.mxu1 %v3107_v5  ;;  %v3143_v5 = vpack.c.bf16 %v1922_v62, %v1920_v61 }
 0x2a1   : > { %3110 = vmatprep.subr.bf16.mxu1 %v3109_v6  ;;  %v3145_v6 = vpack.c.bf16 %v1927_v2, %v1925_v63 }
 0x2a4   : > { %3112 = vmatpush1.bf16.msra.mxu1 %v3111_v4  ;;  %v3147_v4 = vpack.c.bf16 %v1926_v8, %v1924_v7 }
 0x2a5   : > { %3114 = vmatprep.subr.bf16.mxu1 %v3113_v11  ;;  %v3149_v11 = vpack.c.bf16 %v1931_v10, %v1929_v9 }
 0x2a8   : > { %3116 = vmatpush1.bf16.msra.mxu1 %v3115_v18  ;;  %v3151_v18 = vpack.c.bf16 %v1930_v20, %v1928_v12 }
 0x2a9   : > { %3118 = vmatprep.subr.bf16.mxu1 %v3117_v19  ;;  %v3153_v19 = vpack.c.bf16 %v1935_v17, %v1933_v15 }
 0x2ac   : > { %3120 = vmatpush1.bf16.msra.mxu1 %v3119_v25  ;;  %v1092_v25 = vrot.slane %v3960_v37, %v1060_v3 }
 0x2ad   : > { %3122 = vmatprep.subr.bf16.mxu1 %v3121_v29 }
 0x2b0   : > { %3124 = vmatpush1.bf16.msra.mxu1 %v3123_v34 }
 0x2b1   : > { %3126 = vmatprep.subr.bf16.mxu1 %v3125_v38 }
 0x2b4   : > { %3128 = vmatpush1.bf16.msra.mxu1 %v3127_v45 }
 0x2b5   : > { %3130 = vmatprep.subr.bf16.mxu1 %v3129_v46 }
 0x2b8   : > { %3132 = vmatpush1.bf16.msra.mxu1 %v3131_v50 }
 0x2b9   : > { %3134 = vmatprep.subr.bf16.mxu1 %v3133_v54 }
 0x2bc   : > { %3136 = vmatpush1.bf16.msra.mxu1 %v3135_v56 }
 0x2bd   : > { %3138 = vmatprep.subr.bf16.mxu1 %v3137_v28 }
 0x2c0   : > { %3140 = vmatpush1.bf16.msra.mxu1 %v3139_v59 }
 0x2c1   : > { %3142 = vmatprep.subr.bf16.mxu1 %v3141_v60 }
 0x2c4   : > { %3144 = vmatpush1.bf16.msra.mxu1 %v3143_v5 }
 0x2c5   : > { %3146 = vmatprep.subr.bf16.mxu1 %v3145_v6 }
 0x2c8   : > { %3148 = vmatpush1.bf16.msra.mxu1 %v3147_v4 }
 0x2c9   : > { %3150 = vmatprep.subr.bf16.mxu1 %v3149_v11 }
 0x2cc   : > { %3152 = vmatpush1.bf16.msra.mxu1 %v3151_v18 }
 0x2cd   : > { %3154 = vmatprep.subr.bf16.mxu1 %v3153_v19 }
 0x2d0   : > { %3156 = vmatpush1.bf16.msra.mxu1 %v3155_v23 }
 0x30c   : > { %v1733_v29 = vpop.f32.mrb[2].mxu0 }
 0x30d   : > { %v3161_v30 = vadd.f32 %v1733_v29, %v1088_v24  ;;  %v1735_v31 = vpop.f32.mrb[3].mxu0 }
 0x30e   : > { %v3162_v32 = vadd.f32 %v1735_v31, %v1092_v25 }
 0x30f   : > { %v1742_v34 = vmax.f32 %v3161_v30, 0.0 }
 0x310   : > { %v1743_v33 = vmax.f32 %v3162_v32, 0.0 }
 0x312   : > { %2154 = vmatprep.mubr.f32.mxu1 %v1743_v33 }
 0x313   : > { %2155 = vmatmul.mubr.f32.vlgmr.msra.gmra.mrb[2].mxu1 %v1742_v34 }
 0x314   : > { %3455 = shalt.err (!%p3452_p8)
}
 0x315   : > { %s3456_s30 = scalar_lea.hbm %s3989_s15, 96  ;;  %s3460_s28 = scalar_lea.hbm %s4073_s5, 192 }
 0x316   : > { %p3457_p12 = scmp.ne.s32.totalorder %s3989_s15, %s3456_s30  ;;  %p3461_p3 = scmp.lt.u32.totalorder %s3989_s15, %s4073_s5 }
 0x317   : > { %p3462_p13 = scmp.lt.u32.totalorder %s3460_s28, %s3456_s30  ;;  %p3464_p2 = scmp.lt.u32.totalorder %s3456_s30, %s3989_s15 }
 0x318   : > { %p3458_p1 = pnand %p3457_p12, %p4099_p9 }
 0x319   : > { %p3463_p4 = por %p3462_p13, %p3461_p3 }
 0x31a   : > { %p3459_p6 = pneg %p3458_p1 }
 0x31b   : > { %p3465_p10 = por %p3464_p2, %p3463_p4 }
 0x31d   : > { %p3466_p11 = pnand %p3465_p10, %p3459_p6 }
 0x31f   : > { %3469 = shalt.err (!%p3466_p11)
}
 0x320   : > { %3204 = dma.vmem_to_hbm [thread:$0]  (%p4099_p9), %s2203_s27, 96, %s3989_s15, %s2183_s10   ;;  %v1936_v1 = vld [vmem:[#allocation11] sm:$0x3]  ;;  %vm2179_vm1 = vcmp.lt.s32.totalorder %v353_v0, 256 }
 0x321   : > { %v1941_v36 = vrot.slane %v1936_v1, %v3906_v14  ;;  %v1945_v22 = vrot.slane %v1936_v1, %v3903_v13  ;;  %s2381_s13 = sshll.u32 %s3844_s2, 1  ;;  %s2388_s16 = sshll.u32 %s3556_s24, 5 }
 0x322   : > { %s348_s18 = scalar_lea.vmem [#allocation13], %s2381_s13  ;;  %s4019_s10 = scalar_lea.hbm %s4074_s6, %s2388_s16 }
 0x323   : > { %s2216_s7 = sshll.u32 %s348_s18, 4  ;;  %s2188_s24 = scalar_lea.sflag [#allocation14], %s3844_s2  ;;  %s4021_s7 = int_to_ptr.vmem [resolvable:$true] %s2216_s7 }
 0x324   : > { %s3470_s8 = scalar_lea.vmem %s4021_s7, 32  ;;  %s3578_s1 = smov [#allocation13]  }
 0x325   : > { %p3471_p0 = scmp.ne.s32.totalorder %s4021_s7, %s3470_s8  ;;  %s3474_s30 = sshll.u32 %s3578_s1, 4  ;;  %s3475_s30 = int_to_ptr.vmem [resolvable:$false] %s3474_s30 }
 0x326   : > { %s3476_s9 = scalar_lea.vmem %s3475_s30, 64  ;;  %p3477_p8 = scmp.lt.s32.totalorder %s4021_s7, %s3475_s30 }
 0x327   : > { %p3472_p7 = pnand %p3471_p0, %p4099_p9  ;;  %p3478_p12 = scmp.lt.s32.totalorder %s3476_s9, %s3470_s8 }
 0x329   : > { %p3473_p5 = pneg %p3472_p7  ;;  %p3479_p1 = por %p3478_p12, %p3477_p8 }
 0x32b   : > { %p3480_p6 = pnand %p3479_p1, %p3473_p5 }
 0x3e6   : > { %v2156_v3 = vpop.f32.mrb[2].mxu1 }
 0x3e7   : > { %v3163_v48 = vadd.f32 %v2156_v3, %v1941_v36  ;;  %v2158_v37 = vpop.f32.mrb[3].mxu1 }
 0x3e8   : > { %v3164_v38 = vadd.f32 %v2158_v37, %v1945_v22 }
 0x3ea   : > { %v2163_v39 = vcombine.low %v3163_v48, %v3164_v38 }
 0x3ec   : > { %v2170_v40 = vrot.slane %v2163_v39, %v3893_v43 }
 0x3ee   : > { %v2177_v41 = vrot.slane %v2170_v40, %v3893_v43 }
 0x3f0   : > { %2181 = vst.msk [vmem:[%s348_s18] sm:$0x3] %vm2179_vm1, %v2177_v41 }
 0x3f1   : > { %3483 = shalt.err (!%p3480_p6)
}
 0x3f2   : > { %s3484_s2 = scalar_lea.hbm %s4019_s10, 32  ;;  %s3488_s29 = scalar_lea.hbm %s4074_s6, 64 }
 0x3f3   : > { %p3485_p3 = scmp.ne.s32.totalorder %s4019_s10, %s3484_s2  ;;  %p3489_p2 = scmp.lt.u32.totalorder %s4019_s10, %s4074_s6 }
 0x3f4   : > { %p3490_p10 = scmp.lt.u32.totalorder %s3488_s29, %s3484_s2  ;;  %p3492_p0 = scmp.lt.u32.totalorder %s3484_s2, %s4019_s10 }
 0x3f5   : > { %p3486_p13 = pnand %p3485_p3, %p4099_p9 }
 0x3f6   : > { %p3491_p11 = por %p3490_p10, %p3489_p2 }
 0x3f7   : > { %p3487_p4 = pneg %p3486_p13 }
 0x3f8   : > { %p3493_p7 = por %p3492_p0, %p3491_p11 }
 0x3fa   : > { %p3494_p5 = pnand %p3493_p7, %p3487_p4 }
 0x3fc   : > { %3497 = shalt.err (!%p3494_p5)
}
 0x3fd   : > { %3205 = dma.vmem_to_hbm [thread:$0]  (%p4099_p9), %s4021_s7, 32, %s4019_s10, %s2188_s24  }
 0x3fe PF: > { %s2228_s16 = sand.u32 1, %s3544_s21   ;;  %p4100_p8 = scmp.ne.s32.totalorder %s4093_s17, 0 }
 0x3ff   : > { %p4101_p12 = scmp.ge.s32.totalorder %s3564_s26, 2  ;;  %s2229_s18 = scalar_lea.sflag [#allocation5], %s2228_s16 }
 0x401   : > { %p3226_p1 = pnand %p4101_p12, %p4100_p8 }
 0x403   : > { %3535 = dma.done.wait (!%p3226_p1), %s2229_s18, 96  }
 0x404   : > { %3537 = vsyncadd (!%p3226_p1), %s2229_s18, 4294967200  ;;  %s2238_s15 = scalar_lea.sflag [#allocation14], %s2228_s16 }
 0x405   : > { %3539 = dma.done.wait (!%p3226_p1), %s2238_s15, 32  }
 0x406   : > { %3541 = vsyncadd (!%p3226_p1), %s2238_s15, 4294967264  ;;  %s28_s26 = sadd.s32 1, %s3564_s26   ;;  %s4102_s21 = smov %s3548_s22 }
 0x407   : > { %p25_p6 = scmp.ge.s32.totalorder %s28_s26, 4   ;;  %s4103_s22 = smov %s3552_s23 }
 0x408   : > { %s4104_s23 = smov %s3794_s14  ;;  %s4105_s24 = smov %s3560_s25 }
 0x409   : > { %s4106_s25 = smov %s4108_s20  ;;  %27 = sbr.rel (!%p25_p6) target bundleno = 13 (0xd), region = 126 }
 0x410   :  { %2243 = vsyncpa [#allocation4], 1 }
 0x411   :  { %2245 = vsyncpa [#allocation4 + $0x1], 1 }
 0x412   :  { %2246 = vsyncpa [#allocation7], 1 }
 0x413   :  { %2247 = vsyncpa [#allocation10], 1 }
 0x414   :  { %2248 = vsyncpa [#allocation5], 1 }
 0x415   :  { %2250 = vsyncpa [#allocation5 + $0x1], 1 }
 0x416   :  { %2251 = vsyncpa [#allocation14], 1 }
 0x417   :  { %2253 = vsyncpa [#allocation14 + $0x1], 1 }

// kernel: tpu_custom_call.1
= control target key start
LH: loop header
LB: loop body
LE: loop exit
PB: predicated region body
PF: predicated region fallthrough
CT: control target
= control target key end

     0   :  { %s4068_s0 = inlined_call_operand.hbm [shape: f32[2,8,768], index: 0, kind: input, shape index: {}]   ;;  %s4069_s1 = inlined_call_operand.hbm [shape: f32[768,768], index: 1, kind: input, shape index: {}]   ;;  %s4070_s2 = inlined_call_operand.hbm [shape: f32[1,768], index: 2, kind: input, shape index: {}]   ;;  %s4071_s3 = inlined_call_operand.hbm [shape: f32[768,256], index: 3, kind: input, shape index: {}]   ;;  %s4072_s4 = inlined_call_operand.hbm [shape: f32[1,256], index: 4, kind: input, shape index: {}]   ;;  %s4073_s5 = inlined_call_operand.hbm [shape: f32[2,1,768], index: 5, kind: output, shape index: {0}]   ;;  %s4074_s6 = inlined_call_operand.hbm [shape: f32[2,1,256], index: 6, kind: output, shape index: {1}]  }
   0x1   :  { %4080 = sst [smem:[#allocation20_spill]] %s4069_s1 }
   0x2   :  { %4081 = sst [smem:[#allocation21_spill]] %s4070_s2 }
   0x3   :  { %12 = vsyncpa [#allocation4], 0 }
   0x4   :  { %14 = vsyncpa [#allocation4 + $0x1], 0 }
   0x5   :  { %15 = vsyncpa [#allocation7], 0 }
   0x6   :  { %16 = vsyncpa [#allocation10], 0 }
   0x7   :  { %17 = vsyncpa [#allocation5], 0 }
   0x8   :  { %19 = vsyncpa [#allocation5 + $0x1], 0 }
   0x9   :  { %20 = vsyncpa [#allocation14], 0 }
   0xa   :  { %22 = vsyncpa [#allocation14 + $0x1], 0  ;;  %s3614_s21 = smov 0   ;;  %s3616_s22 = smov 0  }
   0xb   :  { %s3618_s23 = smov 0   ;;  %s3620_s24 = smov 0  }
   0xc   :  { %s3622_s25 = smov 0   ;;  %s3624_s26 = smov 0  }
   0xd LB: > { %s4075_s27 = sadd.s32 4294967295, %s3564_s26   ;;  %p2369_p0 = scmp.ge.s32.totalorder %s3564_s26, 1  ;;  %s3564_s26 = sphi %s3624_s26, %s28_s26   ;;  %s3560_s25 = sphi %s3622_s25, %s4106_s25   ;;  %s3556_s24 = sphi %s3620_s24, %s4105_s24   ;;  %s3552_s23 = sphi %s3618_s23, %s4104_s23   ;;  %s3548_s22 = sphi %s3616_s22, %s4103_s22   ;;  %s3544_s21 = sphi %s3614_s21, %s4102_s21  }
   0xe   : > { %p3648_p1 = scmp.eq.s32.totalorder %s4075_s27, 0  ;;  %p209_p2 = scmp.lt.s32.totalorder %s3564_s26, 3 }
   0xf   : > { %s3566_s30 = smov [#allocation6]   ;;  %s3567_s9 = smov [#allocation9]  }
  0x10   : > { %s4082_s28 = scalar_select %p3648_p1, 1, 0 }
  0x11   : > { %p3653_p3 = pnand %p2369_p0, %p209_p2  ;;  %s221_s7 = sshll.u32 %s3566_s30, 4  ;;  %s3657_s7 = int_to_ptr.vmem [resolvable:$true] %s221_s7 }
  0x12   : > { %s245_s10 = sshll.u32 %s3567_s9, 4  ;;  %s4085_s1 = sld [smem:[#allocation20_spill]]  ;;  %s3668_s10 = int_to_ptr.vmem [resolvable:$true] %s245_s10 }
  0x13   : > { %s4083_s29 = scalar_select %p3653_p3, 1, 0 }
  0x14   : > { %p3208_p4 = pneg %p3653_p3 }
  0x16   : > { %p3664_p6 = pnand %p3208_p4, %p3648_p1 }
  0x18   : > { %s3300_s13 = scalar_lea.hbm %s4085_s1, 73728  ;;  %p3678_p8 = pneg %p3664_p6 }
  0x19   : > { %p3301_p7 = scmp.ne.s32.totalorder %s4085_s1, %s3300_s13  ;;  %p3307_p11 = scmp.lt.u32.totalorder %s3300_s13, %s4085_s1 }
  0x1b   : > { %p3303_p9 = pnand %p3678_p8, %p3301_p7 }
  0x1d   : > { %p3304_p10 = pneg %p3303_p9 }
  0x1f   : > { %p3309_p12 = pnand %p3307_p11, %p3304_p10 }
  0x21   : > { %3312 = shalt.err (!%p3309_p12)
}
  0x22   : > { %s3313_s19 = scalar_lea.vmem %s3657_s7, 73728  ;;  %p3321_p4 = scmp.lt.s32.totalorder %s3657_s7, %s3657_s7 }
  0x23   : > { %p3314_p13 = scmp.ne.s32.totalorder %s3657_s7, %s3313_s19  ;;  %p3322_p5 = scmp.lt.s32.totalorder %s3313_s19, %s3313_s19 }
  0x25   : > { %p3316_p0 = pnand %p3314_p13, %p3678_p8  ;;  %p3323_p7 = por %p3322_p5, %p3321_p4 }
  0x27   : > { %p3317_p2 = pneg %p3316_p0 }
  0x29   : > { %p3324_p9 = pnand %p3323_p7, %p3317_p2 }
  0x2b   : > { %3327 = shalt.err (!%p3324_p9)
}
  0x2c   : > { %s3568_s20 = smov 768   ;;  %s3569_s30 = smov 48  }
  0x2d   : > { %3211 = dma.hbm_to_vmem [thread:$0]  (!%p3664_p6), %s4085_s1, 73728, %s3657_s7, [#allocation7], %s3568_s20, %s3568_s20, %s3569_s30  }
  0x2e   : > { %s3328_s14 = scalar_lea.hbm %s4071_s3, 24576 }
  0x2f   : > { %p3329_p5 = scmp.ne.s32.totalorder %s4071_s3, %s3328_s14  ;;  %p3335_p12 = scmp.lt.u32.totalorder %s3328_s14, %s4071_s3 }
  0x31   : > { %p3331_p10 = pnand %p3329_p5, %p3678_p8 }
  0x33   : > { %p3332_p11 = pneg %p3331_p10 }
  0x35   : > { %p3337_p13 = pnand %p3335_p12, %p3332_p11 }
  0x37   : > { %3340 = shalt.err (!%p3337_p13)
}
  0x38   : > { %s3341_s7 = scalar_lea.vmem %s3668_s10, 24576  ;;  %p3349_p7 = scmp.lt.s32.totalorder %s3668_s10, %s3668_s10 }
  0x39   : > { %p3342_p0 = scmp.ne.s32.totalorder %s3668_s10, %s3341_s7  ;;  %p3350_p9 = scmp.lt.s32.totalorder %s3341_s7, %s3341_s7 }
  0x3b   : > { %p3344_p2 = pnand %p3342_p0, %p3678_p8  ;;  %p3351_p5 = por %p3350_p9, %p3349_p7 }
  0x3d   : > { %p3345_p4 = pneg %p3344_p2 }
  0x3f   : > { %p3352_p10 = pnand %p3351_p5, %p3345_p4 }
  0x41   : > { %3355 = shalt.err (!%p3352_p10)
}
  0x42   : > { %s3570_s20 = smov 256   ;;  %s3571_s30 = smov 16  }
  0x43   : > { %3217 = dma.hbm_to_vmem [thread:$0]  (!%p3664_p6), %s4071_s3, 24576, %s3668_s10, [#allocation10], %s3570_s20, %s3570_s20, %s3571_s30  }
  0x44   : > { %s3572_s12 = smov [#allocation8]   ;;  %s3573_s14 = smov [#allocation11]  }
  0x45   : > { %s235_s13 = sshll.u32 %s3572_s12, 4  ;;  %s259_s15 = sshll.u32 %s3573_s14, 4  ;;  %s236_s13 = int_to_ptr.vmem [resolvable:$true] %s235_s13  ;;  %s3722_s15 = int_to_ptr.vmem [resolvable:$true] %s259_s15 }
  0x46   : > { %s4087_s2 = sld [smem:[#allocation21_spill]] }
  0x4c   : > { %s3356_s19 = scalar_lea.hbm %s4087_s2, 96 }
  0x4d   : > { %p3357_p11 = scmp.ne.s32.totalorder %s4087_s2, %s3356_s19  ;;  %p3363_p0 = scmp.lt.u32.totalorder %s3356_s19, %s4087_s2 }
  0x4f   : > { %p3359_p12 = pnand %p3357_p11, %p3678_p8 }
  0x51   : > { %p3360_p13 = pneg %p3359_p12 }
  0x53   : > { %p3365_p2 = pnand %p3363_p0, %p3360_p13 }
  0x55   : > { %3368 = shalt.err (!%p3365_p2)
}
  0x56   : > { %s3369_s20 = scalar_lea.vmem %s236_s13, 96  ;;  %p3377_p5 = scmp.lt.s32.totalorder %s236_s13, %s236_s13 }
  0x57   : > { %p3370_p4 = scmp.ne.s32.totalorder %s236_s13, %s3369_s20  ;;  %p3378_p10 = scmp.lt.s32.totalorder %s3369_s20, %s3369_s20 }
  0x59   : > { %p3372_p7 = pnand %p3370_p4, %p3678_p8  ;;  %p3379_p3 = por %p3378_p10, %p3377_p5 }
  0x5b   : > { %p3373_p9 = pneg %p3372_p7 }
  0x5d   : > { %p3380_p1 = pnand %p3379_p3, %p3373_p9 }
  0x5f   : > { %3383 = shalt.err (!%p3380_p1)
}
  0x60   : > { %3214 = dma.hbm_to_vmem [thread:$0]  (!%p3664_p6), %s4087_s2, 96, %s236_s13, [#allocation7]  }
  0x61   : > { %s3384_s14 = scalar_lea.hbm %s4072_s4, 32 }
  0x62   : > { %p3385_p11 = scmp.ne.s32.totalorder %s4072_s4, %s3384_s14  ;;  %p3391_p1 = scmp.lt.u32.totalorder %s3384_s14, %s4072_s4 }
  0x64   : > { %p3387_p12 = pnand %p3385_p11, %p3678_p8 }
  0x66   : > { %p3388_p13 = pneg %p3387_p12 }
  0x68   : > { %p3393_p3 = pnand %p3391_p1, %p3388_p13 }
  0x6a   : > { %3396 = shalt.err (!%p3393_p3)
}
  0x6b   : > { %s3397_s13 = scalar_lea.vmem %s3722_s15, 32  ;;  %p3405_p7 = scmp.lt.s32.totalorder %s3722_s15, %s3722_s15 }
  0x6c   : > { %p3398_p0 = scmp.ne.s32.totalorder %s3722_s15, %s3397_s13  ;;  %p3406_p9 = scmp.lt.s32.totalorder %s3397_s13, %s3397_s13 }
  0x6e   : > { %p3400_p2 = pnand %p3398_p0, %p3678_p8  ;;  %p3407_p5 = por %p3406_p9, %p3405_p7 }
  0x70   : > { %p3401_p4 = pneg %p3400_p2 }
  0x72   : > { %p3408_p10 = pnand %p3407_p5, %p3401_p4 }
  0x74   : > { %3411 = shalt.err (!%p3408_p10)
}
  0x75   : > { %3220 = dma.hbm_to_vmem [thread:$0]  (!%p3664_p6), %s4072_s4, 32, %s3722_s15, [#allocation10]  }
  0x76   : > { %s2368_s16 = sadd.s32 4294967294, %s3564_s26   ;;  %s40_s20 = sadd.s32 1, %s3560_s25 }
  0x77   : > { %p42_p8 = scmp.ge.s32.totalorder %s40_s20, 2  ;;  %s49_s8 = sadd.s32 1, %s3552_s23 }
  0x78   : > { %p56_p11 = scmp.ne.s32.totalorder %s3552_s23, %s3548_s22  ;;  %p57_p12 = scmp.eq.s32.totalorder %s3564_s26, 0 }
  0x79   : > { %s4108_s20 = smov (%p42_p8, %s40_s20), 0  ;;  %p62_p1 = scmp.ne.s32.totalorder %s3548_s22, %s3544_s21 }
  0x7a   : > { %p3773_p13 = por %p57_p12, %p56_p11  ;;  %s44_s15 = ssub.s32 %s3560_s25, %s4108_s20 }
  0x7b   : > { %s4089_s30 = sadd.s32 4294967295, %s3564_s26   ;;  %p47_p3 = scmp.eq.s32.totalorder %s44_s15, 0 }
  0x7c   : > { %p170_p6 = scmp.eq.s32.totalorder %s4089_s30, 1  ;;  %p4090_p0 = scmp.ne.s32.totalorder %s4082_s28, 0 }
  0x7d   : > { %p176_p7 = scmp.eq.s32.totalorder %s2368_s16, 1  ;;  %p3236_p5 = scmp.lt.s32.totalorder %s3564_s26, 2 }
  0x7e   : > { %p3785_p2 = por %p4090_p0, %p62_p1  ;;  %p3789_p4 = por %p170_p6, %p56_p11 }
  0x7f   : > { %s3794_s14 = scalar_select %p47_p3, %s3552_s23, %s49_s8  }
  0x80   : > { %s4092_s12 = scalar_select %p3789_p4, 1, 0 }
  0x81   : > { %p3796_p9 = por %p176_p7, %p62_p1  ;;  %s270_s18 = sand.u32 1, %s3552_s23  }
  0x82   : > { %s3182_s19 = smul.u32 768, %s3560_s25  ;;  %p3805_p10 = pnand %p3236_p5, %p3773_p13 }
  0x83   : > { %s4093_s17 = scalar_select %p3796_p9, 1, 0 }
  0x84   : > { %s3181_s7 = smul.u32 48, %s270_s18  ;;  %s3812_s16 = scalar_lea.hbm %s4068_s0, %s3182_s19 }
  0x85   : > { %s271_s27 = scalar_lea.sflag [#allocation4], %s270_s18  ;;  %s3412_s30 = scalar_lea.hbm %s3812_s16, 768 }
  0x86   : > { %s274_s8 = scalar_lea.vmem [#allocation3], %s3181_s7  ;;  %p3413_p8 = scmp.ne.s32.totalorder %s3812_s16, %s3412_s30 }
  0x87   : > { %s284_s15 = sshll.u32 %s274_s8, 4  ;;  %p3414_p11 = pneg %p3805_p10  ;;  %s3814_s15 = int_to_ptr.vmem [resolvable:$true] %s284_s15 }
  0x88   : > { %s3417_s10 = scalar_lea.hbm %s4068_s0, 1536  ;;  %p3418_p1 = scmp.lt.u32.totalorder %s3812_s16, %s4068_s0 }
  0x89   : > { %p3415_p12 = pnand %p3414_p11, %p3413_p8  ;;  %p3419_p6 = scmp.lt.u32.totalorder %s3417_s10, %s3412_s30 }
  0x8a   : > { %p3421_p0 = scmp.lt.u32.totalorder %s3412_s30, %s3812_s16 }
  0x8b   : > { %p3416_p13 = pneg %p3415_p12  ;;  %p3420_p3 = por %p3419_p6, %p3418_p1 }
  0x8d   : > { %p3422_p7 = por %p3421_p0, %p3420_p3 }
  0x8f   : > { %p3423_p5 = pnand %p3422_p7, %p3416_p13 }
  0x91   : > { %3426 = shalt.err (!%p3423_p5)
}
  0x92   : > { %s3427_s18 = scalar_lea.vmem %s3814_s15, 768  ;;  %s3574_s7 = smov [#allocation3]  }
  0x93   : > { %p3428_p8 = scmp.ne.s32.totalorder %s3814_s15, %s3427_s18  ;;  %s3432_s8 = sshll.u32 %s3574_s7, 4  ;;  %s3433_s8 = int_to_ptr.vmem [resolvable:$false] %s3432_s8 }
  0x94   : > { %s3434_s1 = scalar_lea.vmem %s3433_s8, 1536  ;;  %p3435_p4 = scmp.lt.s32.totalorder %s3814_s15, %s3433_s8 }
  0x95   : > { %p3430_p12 = pnand %p3428_p8, %p3414_p11  ;;  %p3436_p1 = scmp.lt.s32.totalorder %s3434_s1, %s3427_s18 }
  0x97   : > { %p3431_p9 = pneg %p3430_p12  ;;  %p3437_p6 = por %p3436_p1, %p3435_p4 }
  0x99   : > { %p3438_p3 = pnand %p3437_p6, %p3431_p9 }
  0x9b   : > { %3441 = shalt.err (!%p3438_p3)
}
  0x9c   : > { %3224 = dma.hbm_to_vmem [thread:$0]  (!%p3805_p10), %s3812_s16, 768, %s3814_s15, %s271_s27  }
  0x9d   : > { %p4095_p13 = scmp.ne.s32.totalorder %s4083_s29, 0 }
  0x9e   : > { %s3844_s2 = sand.u32 (!%p4095_p13), 1, %s3548_s22  }
  0x9f   : > { %293 = sbr.rel (%p4095_p13) target bundleno = 1022 (0x3fe), region = 40  ;;  %s296_s9 = scalar_lea.sflag (!%p4095_p13), [#allocation4], %s3844_s2 }
  0xa0   : > { %s3183_s30 = smul.u32 (!%p4095_p13), 48, %s3844_s2 }
  0xa2   : > { %s3848_s19 = scalar_lea.vmem (!%p4095_p13), [#allocation3], %s3183_s30 }
  0xa6   : > { %3523 = dma.done.wait (%p3785_p2), %s296_s9, 768  }
  0xa7   : > { %3525 = vsyncadd (%p3785_p2), %s296_s9, 4294966528  ;;  %p4096_p4 = scmp.ne.s32.totalorder %s4082_s28, 0 }
  0xa9   : > { %3527 = dma.done.wait (%p4096_p4), [#allocation7], 73824  }
  0xaa   : > { %3529 = vsyncadd (%p4096_p4), [#allocation7], 4294893472 }
  0xab   : > { %3531 = dma.done.wait (%p4096_p4), [#allocation10], 24608  }
  0xac   : > { %3533 = vsyncadd (%p4096_p4), [#allocation10], 4294942688  ;;  %v353_v0 = vlaneseq  ;;  %v3575_v2 = vmov 0.0   ;;  %v461_v3 = vld [vmem:[#allocation6 + $0x8] sm:$0xff]  ;;  %v467_v4 = vld [vmem:[#allocation6 + $0x38] sm:$0xff]  ;;  %s3184_s28 = smul.u32 6, %s3844_s2 }
  0xad   : > { %v460_v5 = vld [vmem:[#allocation6] sm:$0xff]  ;;  %v2389_v6 = vpack.c.bf16 %v467_v4, %v461_v3  ;;  %v466_v7 = vld [vmem:[#allocation6 + $0x30] sm:$0xff]  ;;  %v463_v8 = vld [vmem:[#allocation6 + $0x18] sm:$0xff]  ;;  %s3185_s29 = smul.u32 96, %s3556_s24  ;;  %s2183_s10 = scalar_lea.sflag [#allocation5], %s3844_s2 }
  0xae   : > { %vm3863_vm0 = vcmp.lt.s32.totalorder %v353_v0, 768  ;;  %v469_v9 = vld [vmem:[#allocation6 + $0x48] sm:$0xff]  ;;  %v2391_v10 = vpack.c.bf16 %v466_v7, %v460_v5  ;;  %v462_v12 = vld [vmem:[#allocation6 + $0x10] sm:$0xff]  ;;  %v468_v13 = vld [vmem:[#allocation6 + $0x40] sm:$0xff]  ;;  %s341_s11 = scalar_lea.vmem [#allocation12], %s3184_s28  ;;  %p4099_p9 = scmp.ne.s32.totalorder %s4092_s12, 0 }
  0xaf   : > { %357 = vst.msk [vmem:[#allocation2] sm:$0x3f] %vm3863_vm0, %v3575_v2  ;;  %v2581_v11 = vpack.c.bf16 %v469_v9, %v463_v8  ;;  %v473_v14 = vld [vmem:[#allocation6 + $0x68] sm:$0xff]  ;;  %2390 = vmatprep.subr.bf16.mxu0 %v2389_v6  ;;  %v2583_v15 = vpack.c.bf16 %v468_v13, %v462_v12  ;;  %v479_v16 = vld [vmem:[#allocation6 + $0x98] sm:$0xff]  ;;  %v472_v17 = vld [vmem:[#allocation6 + $0x60] sm:$0xff]  ;;  %s3989_s15 = scalar_lea.hbm %s4073_s5, %s3185_s29  ;;  %s2202_s27 = sshll.u32 %s341_s11, 4  ;;  %s2203_s27 = int_to_ptr.vmem [resolvable:$true] %s2202_s27 }
  0xb0   : > { %v478_v18 = vld [vmem:[#allocation6 + $0x90] sm:$0xff]  ;;  %2392 = vmatpush1.bf16.msra.mxu0 %v2391_v10  ;;  %v2393_v19 = vpack.c.bf16 %v479_v16, %v473_v14  ;;  %v475_v21 = vld [vmem:[#allocation6 + $0x78] sm:$0xff]  ;;  %v481_v22 = vld [vmem:[#allocation6 + $0xa8] sm:$0xff]  ;;  %s3442_s18 = scalar_lea.vmem %s2203_s27, 96  ;;  %s3577_s7 = smov [#allocation12]  }
  0xb1   : > { %2582 = vmatprep.subr.bf16.mxu1 %v2581_v11  ;;  %v2395_v20 = vpack.c.bf16 %v478_v18, %v472_v17  ;;  %v474_v23 = vld [vmem:[#allocation6 + $0x70] sm:$0xff]  ;;  %v2585_v24 = vpack.c.bf16 %v481_v22, %v475_v21  ;;  %v480_v25 = vld [vmem:[#allocation6 + $0xa0] sm:$0xff]  ;;  %v485_v26 = vld [vmem:[#allocation6 + $0xc8] sm:$0xff]  ;;  %p3443_p2 = scmp.ne.s32.totalorder %s2203_s27, %s3442_s18  ;;  %s3446_s8 = sshll.u32 %s3577_s7, 4  ;;  %s3447_s8 = int_to_ptr.vmem [resolvable:$false] %s3446_s8 }
  0xb2   : > { %2584 = vmatpush1.bf16.msra.mxu1 %v2583_v15  ;;  %v491_v27 = vld [vmem:[#allocation6 + $0xf8] sm:$0xff]  ;;  %2394 = vmatprep.subr.bf16.mxu0 %v2393_v19  ;;  %v2587_v28 = vpack.c.bf16 %v480_v25, %v474_v23  ;;  %v484_v30 = vld [vmem:[#allocation6 + $0xc0] sm:$0xff]  ;;  %v490_v31 = vld [vmem:[#allocation6 + $0xf0] sm:$0xff]  ;;  %s3448_s1 = scalar_lea.vmem %s3447_s8, 192  ;;  %p3449_p0 = scmp.lt.s32.totalorder %s2203_s27, %s3447_s8 }
  0xb3   : > { %v2397_v29 = vpack.c.bf16 %v491_v27, %v485_v26  ;;  %v487_v32 = vld [vmem:[#allocation6 + $0xd8] sm:$0xff]  ;;  %2586 = vmatprep.subr.bf16.mxu1 %v2585_v24  ;;  %v493_v33 = vld [vmem:[#allocation6 + $0x108] sm:$0xff]  ;;  %v486_v34 = vld [vmem:[#allocation6 + $0xd0] sm:$0xff]  ;;  %v2399_v36 = vpack.c.bf16 %v490_v31, %v484_v30  ;;  %p3444_p10 = pnand %p3443_p2, %p4099_p9  ;;  %p3450_p7 = scmp.lt.s32.totalorder %s3448_s1, %s3442_s18 }
  0xb4   : > { %v492_v35 = vld [vmem:[#allocation6 + $0x100] sm:$0xff]  ;;  %2396 = vmatpush1.bf16.msra.mxu0 %v2395_v20  ;;  %v2589_v37 = vpack.c.bf16 %v493_v33, %v487_v32  ;;  %v497_v38 = vld [vmem:[#allocation6 + $0x128] sm:$0xff]  ;;  %v503_v39 = vld [vmem:[#allocation6 + $0x158] sm:$0xff] }
  0xb5   : > { %v496_v40 = vld [vmem:[#allocation6 + $0x120] sm:$0xff]  ;;  %2398 = vmatprep.subr.bf16.mxu0 %v2397_v29  ;;  %v2591_v41 = vpack.c.bf16 %v492_v35, %v486_v34  ;;  %v2401_v42 = vpack.c.bf16 %v503_v39, %v497_v38  ;;  %v502_v43 = vld [vmem:[#allocation6 + $0x150] sm:$0xff]  ;;  %v499_v44 = vld [vmem:[#allocation6 + $0x138] sm:$0xff]  ;;  %p3445_p11 = pneg %p3444_p10  ;;  %p3451_p5 = por %p3450_p7, %p3449_p0 }
  0xb6   : > { %2588 = vmatpush1.bf16.msra.mxu1 %v2587_v28  ;;  %v505_v45 = vld [vmem:[#allocation6 + $0x168] sm:$0xff]  ;;  %v498_v47 = vld [vmem:[#allocation6 + $0x130] sm:$0xff]  ;;  %v504_v48 = vld [vmem:[#allocation6 + $0x160] sm:$0xff]  ;;  %v2403_v51 = vpack.c.bf16 %v502_v43, %v496_v40 }
  0xb7   : > { %2590 = vmatprep.subr.bf16.mxu1 %v2589_v37  ;;  %v2593_v46 = vpack.c.bf16 %v505_v45, %v499_v44  ;;  %v509_v49 = vld [vmem:[#allocation6 + $0x188] sm:$0xff]  ;;  %v515_v50 = vld [vmem:[#allocation6 + $0x1b8] sm:$0xff]  ;;  %v2595_v54 = vpack.c.bf16 %v504_v48, %v498_v47  ;;  %v508_v56 = vld [vmem:[#allocation6 + $0x180] sm:$0xff]  ;;  %p3452_p8 = pnand %p3451_p5, %p3445_p11 }
  0xb8   : > { %2400 = vmatpush1.bf16.msra.mxu0 %v2399_v36  ;;  %v511_v52 = vld [vmem:[#allocation6 + $0x198] sm:$0xff]  ;;  %v517_v53 = vld [vmem:[#allocation6 + $0x1c8] sm:$0xff]  ;;  %v2405_v55 = vpack.c.bf16 %v515_v50, %v509_v49  ;;  %v514_v57 = vld [vmem:[#allocation6 + $0x1b0] sm:$0xff] }
  0xb9   : > { %2402 = vmatprep.subr.bf16.mxu0 %v2401_v42  ;;  %v510_v58 = vld [vmem:[#allocation6 + $0x190] sm:$0xff]  ;;  %v2597_v59 = vpack.c.bf16 %v517_v53, %v511_v52  ;;  %v516_v60 = vld [vmem:[#allocation6 + $0x1c0] sm:$0xff]  ;;  %v521_v61 = vld [vmem:[#allocation6 + $0x1e8] sm:$0xff]  ;;  %v2407_v3 = vpack.c.bf16 %v514_v57, %v508_v56 }
  0xba   : > { %2592 = vmatpush1.bf16.msra.mxu1 %v2591_v41  ;;  %v527_v62 = vld [vmem:[#allocation6 + $0x218] sm:$0xff]  ;;  %v529_v2 = vld [vmem:[#allocation6 + $0x228] sm:$0xff]  ;;  %v2599_v4 = vpack.c.bf16 %v516_v60, %v510_v58  ;;  %v520_v6 = vld [vmem:[#allocation6 + $0x1e0] sm:$0xff] }
  0xbb   : > { %2594 = vmatprep.subr.bf16.mxu1 %v2593_v46  ;;  %v523_v63 = vld [vmem:[#allocation6 + $0x1f8] sm:$0xff]  ;;  %v2409_v5 = vpack.c.bf16 %v527_v62, %v521_v61  ;;  %v526_v7 = vld [vmem:[#allocation6 + $0x210] sm:$0xff]  ;;  %v528_v10 = vld [vmem:[#allocation6 + $0x220] sm:$0xff] }
  0xbc   : > { %2404 = vmatpush1.bf16.msra.mxu0 %v2403_v51  ;;  %v522_v8 = vld [vmem:[#allocation6 + $0x1f0] sm:$0xff]  ;;  %v2601_v9 = vpack.c.bf16 %v529_v2, %v523_v63  ;;  %v533_v11 = vld [vmem:[#allocation6 + $0x248] sm:$0xff]  ;;  %v539_v12 = vld [vmem:[#allocation6 + $0x278] sm:$0xff]  ;;  %v2411_v15 = vpack.c.bf16 %v526_v7, %v520_v6 }
  0xbd   : > { %2406 = vmatprep.subr.bf16.mxu0 %v2405_v55  ;;  %v535_v13 = vld [vmem:[#allocation6 + $0x258] sm:$0xff]  ;;  %v541_v14 = vld [vmem:[#allocation6 + $0x288] sm:$0xff]  ;;  %v2603_v16 = vpack.c.bf16 %v528_v10, %v522_v8  ;;  %v2413_v17 = vpack.c.bf16 %v539_v12, %v533_v11  ;;  %v532_v18 = vld [vmem:[#allocation6 + $0x240] sm:$0xff] }
  0xbe   : > { %2596 = vmatpush1.bf16.msra.mxu1 %v2595_v54  ;;  %v538_v19 = vld [vmem:[#allocation6 + $0x270] sm:$0xff]  ;;  %v2605_v21 = vpack.c.bf16 %v541_v14, %v535_v13  ;;  %v540_v22 = vld [vmem:[#allocation6 + $0x280] sm:$0xff]  ;;  %v545_v23 = vld [vmem:[#allocation6 + $0x2a8] sm:$0xff] }
  0xbf   : > { %2598 = vmatprep.subr.bf16.mxu1 %v2597_v59  ;;  %v534_v20 = vld [vmem:[#allocation6 + $0x250] sm:$0xff]  ;;  %v551_v24 = vld [vmem:[#allocation6 + $0x2d8] sm:$0xff]  ;;  %v553_v26 = vld [vmem:[#allocation6 + $0x2e8] sm:$0xff]  ;;  %v2415_v27 = vpack.c.bf16 %v538_v19, %v532_v18 }
  0xc0   : > { %2408 = vmatpush1.bf16.msra.mxu0 %v2407_v3  ;;  %v547_v25 = vld [vmem:[#allocation6 + $0x2b8] sm:$0xff]  ;;  %v2607_v28 = vpack.c.bf16 %v540_v22, %v534_v20  ;;  %v2417_v29 = vpack.c.bf16 %v551_v24, %v545_v23  ;;  %v544_v30 = vld [vmem:[#allocation6 + $0x2a0] sm:$0xff]  ;;  %v550_v31 = vld [vmem:[#allocation6 + $0x2d0] sm:$0xff] }
  0xc1   : > { %2410 = vmatprep.subr.bf16.mxu0 %v2409_v5  ;;  %v546_v32 = vld [vmem:[#allocation6 + $0x2b0] sm:$0xff]  ;;  %v2609_v33 = vpack.c.bf16 %v553_v26, %v547_v25  ;;  %v552_v34 = vld [vmem:[#allocation6 + $0x2e0] sm:$0xff]  ;;  %v557_v35 = vld [vmem:[#allocation6 + $0x308] sm:$0xff]  ;;  %v2419_v39 = vpack.c.bf16 %v550_v31, %v544_v30 }
  0xc2   : > { %2600 = vmatpush1.bf16.msra.mxu1 %v2599_v4  ;;  %v563_v36 = vld [vmem:[#allocation6 + $0x338] sm:$0xff]  ;;  %v565_v38 = vld [vmem:[#allocation6 + $0x348] sm:$0xff]  ;;  %v2611_v40 = vpack.c.bf16 %v552_v34, %v546_v32  ;;  %v556_v42 = vld [vmem:[#allocation6 + $0x300] sm:$0xff] }
  0xc3   : > { %2602 = vmatprep.subr.bf16.mxu1 %v2601_v9  ;;  %v559_v37 = vld [vmem:[#allocation6 + $0x318] sm:$0xff]  ;;  %v2421_v41 = vpack.c.bf16 %v563_v36, %v557_v35  ;;  %v562_v43 = vld [vmem:[#allocation6 + $0x330] sm:$0xff]  ;;  %v564_v46 = vld [vmem:[#allocation6 + $0x340] sm:$0xff]  ;;  %v3881_v36 = vshrl.u32 %v353_v0, 7 }
  0xc4   : > { %2412 = vmatpush1.bf16.msra.mxu0 %v2411_v15  ;;  %v558_v44 = vld [vmem:[#allocation6 + $0x310] sm:$0xff]  ;;  %v2613_v45 = vpack.c.bf16 %v565_v38, %v559_v37  ;;  %v569_v47 = vld [vmem:[#allocation6 + $0x368] sm:$0xff]  ;;  %v575_v48 = vld [vmem:[#allocation6 + $0x398] sm:$0xff]  ;;  %v2423_v51 = vpack.c.bf16 %v562_v43, %v556_v42  ;;  %v3576_v15 = vmov 1966171168  }
  0xc5   : > { %2414 = vmatprep.subr.bf16.mxu0 %v2413_v17  ;;  %v571_v49 = vld [vmem:[#allocation6 + $0x378] sm:$0xff]  ;;  %v577_v50 = vld [vmem:[#allocation6 + $0x3a8] sm:$0xff]  ;;  %v2615_v52 = vpack.c.bf16 %v564_v46, %v558_v44  ;;  %v2425_v53 = vpack.c.bf16 %v575_v48, %v569_v47  ;;  %v568_v54 = vld [vmem:[#allocation6 + $0x360] sm:$0xff] }
  0xc6   : > { %2604 = vmatpush1.bf16.msra.mxu1 %v2603_v16  ;;  %v574_v55 = vld [vmem:[#allocation6 + $0x390] sm:$0xff]  ;;  %v2617_v57 = vpack.c.bf16 %v577_v50, %v571_v49  ;;  %v576_v58 = vld [vmem:[#allocation6 + $0x3a0] sm:$0xff]  ;;  %v581_v59 = vld [vmem:[#allocation6 + $0x3c8] sm:$0xff]  ;;  %v3869_v16 = vunpack.c.l.s4 %v3576_v15 }
  0xc7   : > { %2606 = vmatprep.subr.bf16.mxu1 %v2605_v21  ;;  %v570_v56 = vld [vmem:[#allocation6 + $0x370] sm:$0xff]  ;;  %v587_v60 = vld [vmem:[#allocation6 + $0x3f8] sm:$0xff]  ;;  %v589_v62 = vld [vmem:[#allocation6 + $0x408] sm:$0xff]  ;;  %v2427_v63 = vpack.c.bf16 %v574_v55, %v568_v54 }
  0xc8   : > { %2416 = vmatpush1.bf16.msra.mxu0 %v2415_v27  ;;  %v583_v61 = vld [vmem:[#allocation6 + $0x3d8] sm:$0xff]  ;;  %v580_v2 = vld [vmem:[#allocation6 + $0x3c0] sm:$0xff]  ;;  %v2619_v3 = vpack.c.bf16 %v576_v58, %v570_v56  ;;  %v2429_v4 = vpack.c.bf16 %v587_v60, %v581_v59  ;;  %v586_v5 = vld [vmem:[#allocation6 + $0x3f0] sm:$0xff]  ;;  %v412_v35 = vunpack.c.0.s8 %v3869_v16 }
  0xc9   : > { %2418 = vmatprep.subr.bf16.mxu0 %v2417_v29  ;;  %v582_v6 = vld [vmem:[#allocation6 + $0x3d0] sm:$0xff]  ;;  %v588_v7 = vld [vmem:[#allocation6 + $0x400] sm:$0xff]  ;;  %v2621_v8 = vpack.c.bf16 %v589_v62, %v583_v61  ;;  %v593_v9 = vld [vmem:[#allocation6 + $0x428] sm:$0xff]  ;;  %v2431_v17 = vpack.c.bf16 %v586_v5, %v580_v2 }
  0xca   : > { %2608 = vmatpush1.bf16.msra.mxu1 %v2607_v28  ;;  %v599_v10 = vld [vmem:[#allocation6 + $0x458] sm:$0xff]  ;;  %v592_v11 = vld [vmem:[#allocation6 + $0x420] sm:$0xff]  ;;  %v598_v12 = vld [vmem:[#allocation6 + $0x450] sm:$0xff]  ;;  %v2623_v21 = vpack.c.bf16 %v588_v7, %v582_v6 }
  0xcb   : > { %2610 = vmatprep.subr.bf16.mxu1 %v2609_v33  ;;  %v595_v13 = vld [vmem:[#allocation6 + $0x438] sm:$0xff]  ;;  %v601_v14 = vld [vmem:[#allocation6 + $0x468] sm:$0xff]  ;;  %v594_v18 = vld [vmem:[#allocation6 + $0x430] sm:$0xff]  ;;  %v2433_v22 = vpack.c.bf16 %v599_v10, %v593_v9  ;;  %v2435_v30 = vpack.c.bf16 %v598_v12, %v592_v11 }
  0xcc   : > { %2420 = vmatpush1.bf16.msra.mxu0 %v2419_v39  ;;  %v600_v19 = vld [vmem:[#allocation6 + $0x460] sm:$0xff]  ;;  %v605_v20 = vld [vmem:[#allocation6 + $0x488] sm:$0xff]  ;;  %v611_v23 = vld [vmem:[#allocation6 + $0x4b8] sm:$0xff]  ;;  %v2625_v26 = vpack.c.bf16 %v601_v14, %v595_v13 }
  0xcd   : > { %2422 = vmatprep.subr.bf16.mxu0 %v2421_v41  ;;  %v3871_v24 = vld [vmem:[#allocation6 + $0x480] sm:$0xff]  ;;  %v3873_v25 = vld [vmem:[#allocation6 + $0x4b0] sm:$0xff]  ;;  %v607_v27 = vld [vmem:[#allocation6 + $0x498] sm:$0xff]  ;;  %v2627_v37 = vpack.c.bf16 %v600_v19, %v594_v18  ;;  %v2437_v38 = vpack.c.bf16 %v611_v23, %v605_v20 }
  0xce   : > { %2612 = vmatpush1.bf16.msra.mxu1 %v2611_v40  ;;  %v613_v28 = vld [vmem:[#allocation6 + $0x4c8] sm:$0xff]  ;;  %v358_v29 = vld [vmem:[%s3848_s19] sm:$0xff]  ;;  %v360_v32 = vld [vmem:[%s3848_s19 + $0x10] sm:$0xff] }
  0xcf   : > { %2614 = vmatprep.subr.bf16.mxu1 %v2613_v45  ;;  %v359_v31 = vld [vmem:[%s3848_s19 + $0x8] sm:$0xff]  ;;  %v361_v33 = vld [vmem:[%s3848_s19 + $0x18] sm:$0xff]  ;;  %v365_v34 = vrot.slane %v358_v29, 4  ;;  %v606_v39 = vld [vmem:[#allocation6 + $0x490] sm:$0xff]  ;;  %v377_v43 = vrot.slane %v360_v32, 4 }
  0xd0   : > { %2424 = vmatpush1.bf16.msra.mxu0 %v2423_v51  ;;  %v362_v40 = vld [vmem:[%s3848_s19 + $0x20] sm:$0xff]  ;;  %v363_v41 = vld [vmem:[%s3848_s19 + $0x28] sm:$0xff]  ;;  %v371_v42 = vrot.slane %v359_v31, 4  ;;  %v383_v48 = vrot.slane %v361_v33, 4  ;;  %v2439_v51 = vpack.c.bf16 %v3873_v25, %v3871_v24 }
  0xd1   : > { %2426 = vmatprep.subr.bf16.mxu0 %v2425_v53  ;;  %v612_v44 = vld [vmem:[#allocation6 + $0x4c0] sm:$0xff]  ;;  %v617_v45 = vld [vmem:[#allocation6 + $0x4e8] sm:$0xff]  ;;  %v623_v46 = vld [vmem:[#allocation6 + $0x518] sm:$0xff]  ;;  %v366_v47 = vadd.f32 %v365_v34, %v358_v29  ;;  %v389_v49 = vrot.slane %v362_v40, 4  ;;  %v395_v50 = vrot.slane %v363_v41, 4  ;;  %v378_v55 = vadd.f32 %v377_v43, %v360_v32 }
  0xd2   : > { %2616 = vmatpush1.bf16.msra.mxu1 %v2615_v52  ;;  %v2629_v52 = vpack.c.bf16 %v613_v28, %v607_v27  ;;  %v3887_v53 = vld [vmem:[#allocation6 + $0x4e0] sm:$0xff]  ;;  %v372_v54 = vadd.f32 %v371_v42, %v359_v31  ;;  %v622_v56 = vld [vmem:[#allocation6 + $0x510] sm:$0xff]  ;;  %v625_v58 = vld [vmem:[#allocation6 + $0x528] sm:$0xff]  ;;  %v384_v60 = vadd.f32 %v383_v48, %v361_v33  ;;  %v2441_v2 = vpack.c.bf16 %v623_v46, %v617_v45 }
  0xd3   : > { %2618 = vmatprep.subr.bf16.mxu1 %v2617_v57  ;;  %v619_v57 = vld [vmem:[#allocation6 + $0x4f8] sm:$0xff]  ;;  %v367_v59 = vrot.slane %v366_v47, 2  ;;  %v390_v61 = vadd.f32 %v389_v49, %v362_v40  ;;  %v396_v62 = vadd.f32 %v395_v50, %v363_v41  ;;  %v379_v5 = vrot.slane %v378_v55, 2  ;;  %v624_v6 = vld [vmem:[#allocation6 + $0x520] sm:$0xff]  ;;  %v629_v7 = vld [vmem:[#allocation6 + $0x548] sm:$0xff] }
  0xd4   : > { %2428 = vmatpush1.bf16.msra.mxu0 %v2427_v63  ;;  %v2631_v63 = vpack.c.bf16 %v612_v44, %v606_v39  ;;  %v385_v10 = vrot.slane %v384_v60, 2  ;;  %v2443_v13 = vpack.c.bf16 %v622_v56, %v3887_v53  ;;  %v2633_v14 = vpack.c.bf16 %v625_v58, %v619_v57  ;;  %v631_v18 = vld [vmem:[#allocation6 + $0x558] sm:$0xff]  ;;  %v637_v19 = vld [vmem:[#allocation6 + $0x588] sm:$0xff]  ;;  %v634_v29 = vld [vmem:[#allocation6 + $0x570] sm:$0xff] }
  0xd5   : > { %2430 = vmatprep.subr.bf16.mxu0 %v2429_v4  ;;  %v373_v4 = vrot.slane %v372_v54, 2  ;;  %v368_v9 = vadd.f32 %v367_v59, %v366_v47  ;;  %v391_v11 = vrot.slane %v390_v61, 2  ;;  %v397_v12 = vrot.slane %v396_v62, 2  ;;  %v636_v31 = vld [vmem:[#allocation6 + $0x580] sm:$0xff]  ;;  %v641_v39 = vld [vmem:[#allocation6 + $0x5a8] sm:$0xff]  ;;  %v647_v40 = vld [vmem:[#allocation6 + $0x5d8] sm:$0xff] }
  0xd6   : > { %2620 = vmatpush1.bf16.msra.mxu1 %v2619_v3  ;;  %v618_v3 = vld [vmem:[#allocation6 + $0x4f0] sm:$0xff]  ;;  %v3893_v43 = vsub.s32 %v412_v35, %v3881_v36  ;;  %v643_v44 = vld [vmem:[#allocation6 + $0x5b8] sm:$0xff]  ;;  %v649_v45 = vld [vmem:[#allocation6 + $0x5e8] sm:$0xff]  ;;  %v2449_v53 = vpack.c.bf16 %v647_v40, %v641_v39 }
  0xd7   : > { %2622 = vmatprep.subr.bf16.mxu1 %v2621_v8  ;;  %v635_v8 = vld [vmem:[#allocation6 + $0x578] sm:$0xff]  ;;  %v374_v15 = vadd.f32 %v373_v4, %v372_v54  ;;  %v369_v20 = vrot.slane %v368_v9, 1  ;;  %v398_v23 = vadd.f32 %v397_v12, %v396_v62  ;;  %v2635_v24 = vpack.c.bf16 %v624_v6, %v618_v3  ;;  %v646_v54 = vld [vmem:[#allocation6 + $0x5d0] sm:$0xff]  ;;  %v648_v56 = vld [vmem:[#allocation6 + $0x5e0] sm:$0xff] }
  0xd8   : > { %2432 = vmatpush1.bf16.msra.mxu0 %v2431_v17  ;;  %v380_v17 = vadd.f32 %v379_v5, %v378_v55  ;;  %v2445_v25 = vpack.c.bf16 %v635_v8, %v629_v7  ;;  %v642_v55 = vld [vmem:[#allocation6 + $0x5b0] sm:$0xff]  ;;  %v2641_v35 = vpack.c.bf16 %v649_v45, %v643_v44  ;;  %v653_v59 = vld [vmem:[#allocation6 + $0x608] sm:$0xff]  ;;  %v683_v40 = vld [vmem:[#allocation6 + $0x6f8] sm:$0xff] }
  0xd9   : > { %2434 = vmatprep.subr.bf16.mxu0 %v2433_v22  ;;  %v392_v22 = vadd.f32 %v391_v11, %v390_v61  ;;  %v375_v27 = vrot.slane %v374_v15, 1  ;;  %v370_v32 = vadd.f32 %v369_v20, %v368_v9  ;;  %v2643_v4 = vpack.c.bf16 %v648_v56, %v642_v55  ;;  %v660_v20 = vld [vmem:[#allocation6 + $0x640] sm:$0xff]  ;;  %v677_v39 = vld [vmem:[#allocation6 + $0x6c8] sm:$0xff]  ;;  %v691_v55 = vld [vmem:[#allocation6 + $0x738] sm:$0xff] }
  0xda   : > { %2624 = vmatpush1.bf16.msra.mxu1 %v2623_v21  ;;  %v386_v21 = vadd.f32 %v385_v10, %v384_v60  ;;  %v381_v28 = vrot.slane %v380_v17, 1  ;;  %v659_v60 = vld [vmem:[#allocation6 + $0x638] sm:$0xff]  ;;  %v697_v56 = vld [vmem:[#allocation6 + $0x768] sm:$0xff] }
  0xdb   : > { %2626 = vmatprep.subr.bf16.mxu1 %v2625_v26  ;;  %v628_v26 = vld [vmem:[#allocation6 + $0x540] sm:$0xff]  ;;  %v393_v34 = vrot.slane %v392_v22, 1  ;;  %v376_v41 = vadd.f32 %v375_v27, %v374_v15  ;;  %v2453_v7 = vpack.c.bf16 %v659_v60, %v653_v59  ;;  %v364_v10 = vld [vmem:[#allocation2] sm:$0x3f]  ;;  %v2657_v60 = vpack.c.bf16 %v697_v56, %v691_v55  ;;  %v742_v55 = vld [vmem:[#allocation6 + $0x8d0] sm:$0xff] }
  0xdc   : > { %2436 = vmatpush1.bf16.msra.mxu0 %v2435_v30  ;;  %v630_v30 = vld [vmem:[#allocation6 + $0x550] sm:$0xff]  ;;  %v387_v33 = vrot.slane %v386_v21, 1  ;;  %v382_v42 = vadd.f32 %v381_v28, %v380_v17  ;;  %v2447_v49 = vpack.c.bf16 %v634_v29, %v628_v26  ;;  %v652_v15 = vld [vmem:[#allocation6 + $0x600] sm:$0xff]  ;;  %v1052_v26 = vsub.s32 3, %v3881_v36 }
  0xdd   : > { %2438 = vmatprep.subr.bf16.mxu0 %v2437_v38  ;;  %v2637_v38 = vpack.c.bf16 %v637_v19, %v631_v18  ;;  %v394_v47 = vadd.f32 %v393_v34, %v392_v22  ;;  %v2639_v50 = vpack.c.bf16 %v636_v31, %v630_v30  ;;  %v658_v17 = vld [vmem:[#allocation6 + $0x630] sm:$0xff]  ;;  %v664_v31 = vld [vmem:[#allocation6 + $0x660] sm:$0xff] }
  0xde   : > { %2628 = vmatpush1.bf16.msra.mxu1 %v2627_v37  ;;  %v399_v37 = vrot.slane %v398_v23, 1  ;;  %v388_v46 = vadd.f32 %v387_v33, %v386_v21  ;;  %v654_v18 = vld [vmem:[#allocation6 + $0x610] sm:$0xff]  ;;  %v665_v21 = vld [vmem:[#allocation6 + $0x668] sm:$0xff]  ;;  %v2455_v29 = vpack.c.bf16 %v658_v17, %v652_v15  ;;  %v719_v17 = vld [vmem:[#allocation6 + $0x818] sm:$0xff] }
  0xdf   : > { %2630 = vmatprep.subr.bf16.mxu1 %v2629_v52  ;;  %v407_v52 = vcombine.low %v370_v32, %v376_v41  ;;  %v2647_v30 = vpack.c.bf16 %v660_v20, %v654_v18  ;;  %v670_v32 = vld [vmem:[#allocation6 + $0x690] sm:$0xff]  ;;  %v679_v41 = vld [vmem:[#allocation6 + $0x6d8] sm:$0xff]  ;;  %v713_v15 = vld [vmem:[#allocation6 + $0x7e8] sm:$0xff] }
  0xe0   : > { %2440 = vmatpush1.bf16.msra.mxu0 %v2439_v51  ;;  %v400_v48 = vadd.f32 %v399_v37, %v398_v23  ;;  %v640_v51 = vld [vmem:[#allocation6 + $0x5a0] sm:$0xff]  ;;  %v408_v57 = vcombine.low %v382_v42, %v388_v46  ;;  %v671_v23 = vld [vmem:[#allocation6 + $0x698] sm:$0xff]  ;;  %v666_v37 = vld [vmem:[#allocation6 + $0x670] sm:$0xff]  ;;  %v2459_v45 = vpack.c.bf16 %v670_v32, %v664_v31 }
  0xe1   : > { %2442 = vmatprep.subr.bf16.mxu0 %v2441_v2  ;;  %v416_v58 = vrot.slane %v407_v52, %v3893_v43  ;;  %v661_v2 = vld [vmem:[#allocation6 + $0x648] sm:$0xff]  ;;  %v2451_v3 = vpack.c.bf16 %v646_v54, %v640_v51  ;;  %v2457_v33 = vpack.c.bf16 %v671_v23, %v665_v21  ;;  %v678_v51 = vld [vmem:[#allocation6 + $0x6d0] sm:$0xff]  ;;  %v684_v52 = vld [vmem:[#allocation6 + $0x700] sm:$0xff] }
  0xe2   : > { %2632 = vmatpush1.bf16.msra.mxu1 %v2631_v63  ;;  %v409_v16 = vcombine.low %v394_v47, %v400_v48  ;;  %v423_v61 = vrot.slane %v408_v57, %v3893_v43  ;;  %v655_v63 = vld [vmem:[#allocation6 + $0x618] sm:$0xff]  ;;  %v685_v42 = vld [vmem:[#allocation6 + $0x708] sm:$0xff]  ;;  %v676_v47 = vld [vmem:[#allocation6 + $0x6c0] sm:$0xff] }
  0xe3   : > { %2634 = vmatprep.subr.bf16.mxu1 %v2633_v14  ;;  %v2645_v8 = vpack.c.bf16 %v661_v2, %v655_v63  ;;  %v3906_v14 = vsub.s32 0, %v3881_v36  ;;  %v682_v48 = vld [vmem:[#allocation6 + $0x6f0] sm:$0xff]  ;;  %v695_v54 = vld [vmem:[#allocation6 + $0x758] sm:$0xff]  ;;  %v701_v63 = vld [vmem:[#allocation6 + $0x788] sm:$0xff] }
  0xe4   : > { %2444 = vmatpush1.bf16.msra.mxu0 %v2443_v13  ;;  %v430_v62 = vrot.slane %v409_v16, %v3893_v43  ;;  %v431_v5 = vcombine.low %v416_v58, %v423_v61  ;;  %v3903_v13 = vsub.s32 1, %v3881_v36  ;;  %v2463_v57 = vpack.c.bf16 %v682_v48, %v676_v47  ;;  %v694_v58 = vld [vmem:[#allocation6 + $0x750] sm:$0xff]  ;;  %v707_v2 = vld [vmem:[#allocation6 + $0x7b8] sm:$0xff]  ;;  %v712_v23 = vld [vmem:[#allocation6 + $0x7e0] sm:$0xff] }
  0xe5   : > { %2446 = vmatprep.subr.bf16.mxu0 %v2445_v25  ;;  %v673_v25 = vld [vmem:[#allocation6 + $0x6a8] sm:$0xff]  ;;  %v2655_v16 = vpack.c.bf16 %v684_v52, %v678_v51  ;;  %v690_v61 = vld [vmem:[#allocation6 + $0x730] sm:$0xff]  ;;  %v715_v18 = vld [vmem:[#allocation6 + $0x7f8] sm:$0xff] }
  0xe6   : > { %2636 = vmatpush1.bf16.msra.mxu1 %v2635_v24  ;;  %v445_v6 = vrot.slane %v430_v62, %v3893_v43  ;;  %v438_v9 = vrot.slane %v431_v5, %v3893_v43  ;;  %v667_v24 = vld [vmem:[#allocation6 + $0x678] sm:$0xff]  ;;  %v696_v62 = vld [vmem:[#allocation6 + $0x760] sm:$0xff]  ;;  %v725_v32 = vld [vmem:[#allocation6 + $0x848] sm:$0xff] }
  0xe7   : > { %2638 = vmatprep.subr.bf16.mxu1 %v2637_v38  ;;  %v2649_v34 = vpack.c.bf16 %v673_v25, %v667_v24  ;;  %v672_v38 = vld [vmem:[#allocation6 + $0x6a0] sm:$0xff]  ;;  %v718_v24 = vld [vmem:[#allocation6 + $0x810] sm:$0xff]  ;;  %v2473_v25 = vpack.c.bf16 %v719_v17, %v713_v15  ;;  %v737_v48 = vld [vmem:[#allocation6 + $0x8a8] sm:$0xff] }
  0xe8   : > { %2448 = vmatpush1.bf16.msra.mxu0 %v2447_v49  ;;  %v446_v11 = vcombine.low %v438_v9, %v445_v6  ;;  %v2651_v46 = vpack.c.bf16 %v672_v38, %v666_v37  ;;  %v2461_v49 = vpack.c.bf16 %v683_v40, %v677_v39  ;;  %v2659_v6 = vpack.c.bf16 %v696_v62, %v690_v61  ;;  %v720_v31 = vld [vmem:[#allocation6 + $0x820] sm:$0xff]  ;;  %v733_v37 = vld [vmem:[#allocation6 + $0x888] sm:$0xff] }
  0xe9   : > { %2450 = vmatprep.subr.bf16.mxu0 %v2449_v53  ;;  %v689_v53 = vld [vmem:[#allocation6 + $0x728] sm:$0xff]  ;;  %v2469_v9 = vpack.c.bf16 %v707_v2, %v701_v63  ;;  %v2475_v38 = vpack.c.bf16 %v718_v24, %v712_v23  ;;  %v724_v40 = vld [vmem:[#allocation6 + $0x840] sm:$0xff] }
  0xea   : > { %2640 = vmatpush1.bf16.msra.mxu1 %v2639_v50  ;;  %v448_v12 = vadd.f32 %v446_v11, %v364_v10  ;;  %v2653_v50 = vpack.c.bf16 %v685_v42, %v679_v41  ;;  %v2465_v59 = vpack.c.bf16 %v695_v54, %v689_v53  ;;  %v702_v11 = vld [vmem:[#allocation6 + $0x790] sm:$0xff]  ;;  %v732_v47 = vld [vmem:[#allocation6 + $0x880] sm:$0xff]  ;;  %v745_v51 = vld [vmem:[#allocation6 + $0x8e8] sm:$0xff] }
  0xeb   : > { %2642 = vmatprep.subr.bf16.mxu1 %v2641_v35  ;;  %v688_v35 = vld [vmem:[#allocation6 + $0x720] sm:$0xff]  ;;  %v730_v41 = vld [vmem:[#allocation6 + $0x870] sm:$0xff]  ;;  %v757_v61 = vld [vmem:[#allocation6 + $0x948] sm:$0xff] }
  0xec   : > { %2452 = vmatpush1.bf16.msra.mxu0 %v2451_v3  ;;  %453 = vst.msk [vmem:[#allocation2] sm:$0x3f] %vm3863_vm0, %v448_v12  ;;  %v703_v3 = vld [vmem:[#allocation6 + $0x798] sm:$0xff]  ;;  %v2467_v5 = vpack.c.bf16 %v694_v58, %v688_v35  ;;  %v708_v12 = vld [vmem:[#allocation6 + $0x7c0] sm:$0xff]  ;;  %v2479_v52 = vpack.c.bf16 %v730_v41, %v724_v40  ;;  %v749_v58 = vld [vmem:[#allocation6 + $0x908] sm:$0xff] }
  0xed   : > { %2454 = vmatprep.subr.bf16.mxu0 %v2453_v7  ;;  %v700_v7 = vld [vmem:[#allocation6 + $0x780] sm:$0xff]  ;;  %v2663_v21 = vpack.c.bf16 %v708_v12, %v702_v11  ;;  %v769_v11 = vld [vmem:[#allocation6 + $0x9a8] sm:$0xff] }
  0xee   : > { %2644 = vmatpush1.bf16.msra.mxu1 %v2643_v4  ;;  %v709_v4 = vld [vmem:[#allocation6 + $0x7c8] sm:$0xff]  ;;  %v736_v54 = vld [vmem:[#allocation6 + $0x8a0] sm:$0xff] }
  0xef   : > { %2646 = vmatprep.subr.bf16.mxu1 %v2645_v8  ;;  %v706_v8 = vld [vmem:[#allocation6 + $0x7b0] sm:$0xff]  ;;  %v2661_v10 = vpack.c.bf16 %v709_v4, %v703_v3  ;;  %v744_v35 = vld [vmem:[#allocation6 + $0x8e0] sm:$0xff]  ;;  %v2483_v62 = vpack.c.bf16 %v742_v55, %v736_v54  ;;  %v773_v24 = vld [vmem:[#allocation6 + $0x9c8] sm:$0xff] }
  0xf0   : > { %v2471_v20 = vpack.c.bf16 %v706_v8, %v700_v7  ;;  %v748_v2 = vld [vmem:[#allocation6 + $0x900] sm:$0xff]  ;;  %v754_v3 = vld [vmem:[#allocation6 + $0x930] sm:$0xff]  ;;  %v761_v8 = vld [vmem:[#allocation6 + $0x968] sm:$0xff] }
  0xf1   : > { %v756_v7 = vld [vmem:[#allocation6 + $0x940] sm:$0xff]  ;;  %v2487_v12 = vpack.c.bf16 %v754_v3, %v748_v2  ;;  %v785_v41 = vld [vmem:[#allocation6 + $0xa28] sm:$0xff] }
  0xf2   : > { %v760_v17 = vld [vmem:[#allocation6 + $0x960] sm:$0xff]  ;;  %v797_v55 = vld [vmem:[#allocation6 + $0xa88] sm:$0xff] }
  0xf3   : > { %v457_v19 = vld [vmem:[#allocation2] sm:$0x3f]  ;;  %v768_v23 = vld [vmem:[#allocation6 + $0x9a0] sm:$0xff]  ;;  %v809_v3 = vld [vmem:[#allocation6 + $0xae8] sm:$0xff] }
  0xf4   : > { %v3908_v22 = vmul.f32 0.125, %v457_v19  ;;  %v721_v19 = vld [vmem:[#allocation6 + $0x828] sm:$0xff]  ;;  %v780_v40 = vld [vmem:[#allocation6 + $0xa00] sm:$0xff] }
  0xf5   : > { %v792_v54 = vld [vmem:[#allocation6 + $0xa60] sm:$0xff] }
  0xf6   : > { %v3913_v27 = vrot.slane %v3908_v22, %v3903_v13  ;;  %v3917_v28 = vrot.slane %v3908_v22, %v3906_v14  ;;  %v3924_v44 = vrot.slane %v3908_v22, %v1052_v26  ;;  %v804_v2 = vld [vmem:[#allocation6 + $0xac0] sm:$0xff]  ;;  %459 = vst.msk [vmem:[%s341_s11] sm:$0x3f] %vm3863_vm0, %v3908_v22 }
  0xf8   : > { %1163 = vmatprep.mubr.f32.mxu0 %v3913_v27  ;;  %1376 = vmatprep.mubr.f32.mxu1 %v3913_v27 }
  0xf9   : > { %1164 = vmatmul.mubr.f32.vlgmr.msra.gmra.mrb[0].mxu0 %v3917_v28  ;;  %1377 = vmatmul.mubr.f32.vlgmr.msra.gmra.mrb[0].mxu1 %v3917_v28 }
  0xfa   : > { %2456 = vmatpush1.bf16.msra.mxu0 %v2455_v29  ;;  %2648 = vmatpush1.bf16.msra.mxu1 %v2647_v30  ;;  %v2665_v29 = vpack.c.bf16 %v721_v19, %v715_v18  ;;  %v714_v30 = vld [vmem:[#allocation6 + $0x7f0] sm:$0xff] }
  0xfb   : > { %2458 = vmatprep.subr.bf16.mxu0 %v2457_v33  ;;  %2650 = vmatprep.subr.bf16.mxu1 %v2649_v34  ;;  %v731_v33 = vld [vmem:[#allocation6 + $0x878] sm:$0xff]  ;;  %v2667_v39 = vpack.c.bf16 %v720_v31, %v714_v30  ;;  %v766_v18 = vld [vmem:[#allocation6 + $0x990] sm:$0xff]  ;;  %v781_v30 = vld [vmem:[#allocation6 + $0xa08] sm:$0xff] }
  0xfc   : > { %1234 = vmatprep.mubr.f32.mxu0 %v3924_v44  ;;  %1447 = vmatprep.mubr.f32.mxu1 %v3924_v44  ;;  %v727_v34 = vld [vmem:[#allocation6 + $0x858] sm:$0xff]  ;;  %v2477_v42 = vpack.c.bf16 %v731_v33, %v725_v32  ;;  %v2491_v31 = vpack.c.bf16 %v766_v18, %v760_v17  ;;  %v772_v33 = vld [vmem:[#allocation6 + $0x9c0] sm:$0xff]  ;;  %v821_v18 = vld [vmem:[#allocation6 + $0xb48] sm:$0xff] }
  0xfd   : > { %v816_v17 = vld [vmem:[#allocation6 + $0xb20] sm:$0xff] }
  0xfe   : > { %2460 = vmatpush1.bf16.msra.mxu0 %v2459_v45  ;;  %2652 = vmatpush1.bf16.msra.mxu1 %v2651_v46  ;;  %v2669_v45 = vpack.c.bf16 %v733_v37, %v727_v34  ;;  %v726_v46 = vld [vmem:[#allocation6 + $0x850] sm:$0xff] }
  0xff   : > { %2462 = vmatprep.subr.bf16.mxu0 %v2461_v49  ;;  %2654 = vmatprep.subr.bf16.mxu1 %v2653_v50  ;;  %v743_v49 = vld [vmem:[#allocation6 + $0x8d8] sm:$0xff]  ;;  %v2671_v53 = vpack.c.bf16 %v732_v47, %v726_v46  ;;  %v778_v34 = vld [vmem:[#allocation6 + $0x9f0] sm:$0xff]  ;;  %v793_v46 = vld [vmem:[#allocation6 + $0xa68] sm:$0xff] }
 0x100   : > { %v739_v50 = vld [vmem:[#allocation6 + $0x8b8] sm:$0xff]  ;;  %v2481_v56 = vpack.c.bf16 %v743_v49, %v737_v48  ;;  %v2495_v47 = vpack.c.bf16 %v778_v34, %v772_v33  ;;  %v784_v49 = vld [vmem:[#allocation6 + $0xa20] sm:$0xff]  ;;  %v833_v34 = vld [vmem:[#allocation6 + $0xba8] sm:$0xff] }
 0x101   : > { %v828_v33 = vld [vmem:[#allocation6 + $0xb80] sm:$0xff] }
 0x102   : > { %2464 = vmatpush1.bf16.msra.mxu0 %v2463_v57  ;;  %2656 = vmatpush1.bf16.msra.mxu1 %v2655_v16  ;;  %v2673_v57 = vpack.c.bf16 %v745_v51, %v739_v50  ;;  %v738_v16 = vld [vmem:[#allocation6 + $0x8b0] sm:$0xff] }
 0x103   : > { %2466 = vmatprep.subr.bf16.mxu0 %v2465_v59  ;;  %2658 = vmatprep.subr.bf16.mxu1 %v2657_v60  ;;  %v755_v59 = vld [vmem:[#allocation6 + $0x938] sm:$0xff]  ;;  %v2675_v63 = vpack.c.bf16 %v744_v35, %v738_v16  ;;  %v790_v50 = vld [vmem:[#allocation6 + $0xa50] sm:$0xff]  ;;  %v805_v16 = vld [vmem:[#allocation6 + $0xac8] sm:$0xff] }
 0x104   : > { %v751_v60 = vld [vmem:[#allocation6 + $0x918] sm:$0xff]  ;;  %v2485_v4 = vpack.c.bf16 %v755_v59, %v749_v58  ;;  %v2499_v35 = vpack.c.bf16 %v790_v50, %v784_v49  ;;  %v796_v59 = vld [vmem:[#allocation6 + $0xa80] sm:$0xff]  ;;  %v845_v50 = vld [vmem:[#allocation6 + $0xc08] sm:$0xff] }
 0x105   : > { %v840_v49 = vld [vmem:[#allocation6 + $0xbe0] sm:$0xff] }
 0x106   : > { %2468 = vmatpush1.bf16.msra.mxu0 %v2467_v5  ;;  %2660 = vmatpush1.bf16.msra.mxu1 %v2659_v6  ;;  %v2677_v5 = vpack.c.bf16 %v757_v61, %v751_v60  ;;  %v750_v6 = vld [vmem:[#allocation6 + $0x910] sm:$0xff] }
 0x107   : > { %2470 = vmatprep.subr.bf16.mxu0 %v2469_v9  ;;  %2662 = vmatprep.subr.bf16.mxu1 %v2661_v10  ;;  %v767_v9 = vld [vmem:[#allocation6 + $0x998] sm:$0xff]  ;;  %v2679_v15 = vpack.c.bf16 %v756_v7, %v750_v6  ;;  %v802_v60 = vld [vmem:[#allocation6 + $0xab0] sm:$0xff]  ;;  %v817_v6 = vld [vmem:[#allocation6 + $0xb28] sm:$0xff] }
 0x108   : > { %v763_v10 = vld [vmem:[#allocation6 + $0x978] sm:$0xff]  ;;  %v2489_v19 = vpack.c.bf16 %v767_v9, %v761_v8  ;;  %v2503_v7 = vpack.c.bf16 %v802_v60, %v796_v59  ;;  %v808_v9 = vld [vmem:[#allocation6 + $0xae0] sm:$0xff]  ;;  %v846_v59 = vld [vmem:[#allocation6 + $0xc10] sm:$0xff] }
 0x109   : > { %v852_v60 = vld [vmem:[#allocation6 + $0xc40] sm:$0xff] }
 0x10a   : > { %2472 = vmatpush1.bf16.msra.mxu0 %v2471_v20  ;;  %2664 = vmatpush1.bf16.msra.mxu1 %v2663_v21  ;;  %v2681_v20 = vpack.c.bf16 %v769_v11, %v763_v10  ;;  %v762_v21 = vld [vmem:[#allocation6 + $0x970] sm:$0xff] }
 0x10b   : > { %2474 = vmatprep.subr.bf16.mxu0 %v2473_v25  ;;  %2666 = vmatprep.subr.bf16.mxu1 %v2665_v29  ;;  %v779_v25 = vld [vmem:[#allocation6 + $0x9f8] sm:$0xff]  ;;  %v2683_v32 = vpack.c.bf16 %v768_v23, %v762_v21  ;;  %v814_v10 = vld [vmem:[#allocation6 + $0xb10] sm:$0xff]  ;;  %v829_v21 = vld [vmem:[#allocation6 + $0xb88] sm:$0xff] }
 0x10c   : > { %v775_v29 = vld [vmem:[#allocation6 + $0x9d8] sm:$0xff]  ;;  %v2493_v37 = vpack.c.bf16 %v779_v25, %v773_v24  ;;  %v2507_v23 = vpack.c.bf16 %v814_v10, %v808_v9  ;;  %v820_v25 = vld [vmem:[#allocation6 + $0xb40] sm:$0xff] }
 0x10e   : > { %2476 = vmatpush1.bf16.msra.mxu0 %v2475_v38  ;;  %2668 = vmatpush1.bf16.msra.mxu1 %v2667_v39  ;;  %v2685_v38 = vpack.c.bf16 %v781_v30, %v775_v29  ;;  %v774_v39 = vld [vmem:[#allocation6 + $0x9d0] sm:$0xff] }
 0x10f   : > { %2478 = vmatprep.subr.bf16.mxu0 %v2477_v42  ;;  %2670 = vmatprep.subr.bf16.mxu1 %v2669_v45  ;;  %v791_v42 = vld [vmem:[#allocation6 + $0xa58] sm:$0xff]  ;;  %v2687_v48 = vpack.c.bf16 %v780_v40, %v774_v39  ;;  %v826_v29 = vld [vmem:[#allocation6 + $0xb70] sm:$0xff]  ;;  %v841_v39 = vld [vmem:[#allocation6 + $0xbe8] sm:$0xff] }
 0x110   : > { %v787_v45 = vld [vmem:[#allocation6 + $0xa38] sm:$0xff]  ;;  %v2497_v51 = vpack.c.bf16 %v791_v42, %v785_v41  ;;  %v2511_v40 = vpack.c.bf16 %v826_v29, %v820_v25  ;;  %v832_v42 = vld [vmem:[#allocation6 + $0xba0] sm:$0xff]  ;;  %v874_v25 = vld [vmem:[#allocation6 + $0xcf0] sm:$0xff] }
 0x112   : > { %2480 = vmatpush1.bf16.msra.mxu0 %v2479_v52  ;;  %2672 = vmatpush1.bf16.msra.mxu1 %v2671_v53  ;;  %v2689_v52 = vpack.c.bf16 %v793_v46, %v787_v45  ;;  %v786_v53 = vld [vmem:[#allocation6 + $0xa30] sm:$0xff] }
 0x113   : > { %2482 = vmatprep.subr.bf16.mxu0 %v2481_v56  ;;  %2674 = vmatprep.subr.bf16.mxu1 %v2673_v57  ;;  %v803_v56 = vld [vmem:[#allocation6 + $0xab8] sm:$0xff]  ;;  %v2691_v58 = vpack.c.bf16 %v792_v54, %v786_v53  ;;  %v838_v45 = vld [vmem:[#allocation6 + $0xbd0] sm:$0xff]  ;;  %v853_v53 = vld [vmem:[#allocation6 + $0xc48] sm:$0xff]  ;;  %v1048_v54 = vsub.s32 2, %v3881_v36 }
 0x114   : > { %v799_v57 = vld [vmem:[#allocation6 + $0xa98] sm:$0xff]  ;;  %v2501_v61 = vpack.c.bf16 %v803_v56, %v797_v55  ;;  %v2515_v55 = vpack.c.bf16 %v838_v45, %v832_v42  ;;  %v886_v42 = vld [vmem:[#allocation6 + $0xd50] sm:$0xff] }
 0x116   : > { %2484 = vmatpush1.bf16.msra.mxu0 %v2483_v62  ;;  %2676 = vmatpush1.bf16.msra.mxu1 %v2675_v63  ;;  %v2693_v62 = vpack.c.bf16 %v805_v16, %v799_v57  ;;  %v798_v63 = vld [vmem:[#allocation6 + $0xa90] sm:$0xff]  ;;  %v844_v57 = vld [vmem:[#allocation6 + $0xc00] sm:$0xff] }
 0x117   : > { %2486 = vmatprep.subr.bf16.mxu0 %v2485_v4  ;;  %2678 = vmatprep.subr.bf16.mxu1 %v2677_v5  ;;  %v815_v4 = vld [vmem:[#allocation6 + $0xb18] sm:$0xff]  ;;  %v2695_v8 = vpack.c.bf16 %v804_v2, %v798_v63  ;;  %v850_v16 = vld [vmem:[#allocation6 + $0xc30] sm:$0xff]  ;;  %v865_v2 = vld [vmem:[#allocation6 + $0xca8] sm:$0xff] }
 0x118   : > { %v811_v5 = vld [vmem:[#allocation6 + $0xaf8] sm:$0xff]  ;;  %v2505_v11 = vpack.c.bf16 %v815_v4, %v809_v3  ;;  %v1060_v3 = vsub.s32 5, %v3881_v36  ;;  %v3935_v4 = vrot.slane %v3908_v22, %v1048_v54 }
 0x119   : > { %v859_v63 = vld [vmem:[#allocation6 + $0xc78] sm:$0xff] }
 0x11a   : > { %2488 = vmatpush1.bf16.msra.mxu0 %v2487_v12  ;;  %2680 = vmatpush1.bf16.msra.mxu1 %v2679_v15  ;;  %v2697_v12 = vpack.c.bf16 %v817_v6, %v811_v5  ;;  %v810_v15 = vld [vmem:[#allocation6 + $0xaf0] sm:$0xff]  ;;  %v2519_v5 = vpack.c.bf16 %v850_v16, %v844_v57  ;;  %v2711_v6 = vpack.c.bf16 %v852_v60, %v846_v59  ;;  %v900_v59 = vld [vmem:[#allocation6 + $0xdc0] sm:$0xff]  ;;  %v905_v60 = vld [vmem:[#allocation6 + $0xde8] sm:$0xff] }
 0x11b   : > { %2490 = vmatprep.subr.bf16.mxu0 %v2489_v19  ;;  %2682 = vmatprep.subr.bf16.mxu1 %v2681_v20  ;;  %v827_v19 = vld [vmem:[#allocation6 + $0xb78] sm:$0xff]  ;;  %v2699_v24 = vpack.c.bf16 %v816_v17, %v810_v15  ;;  %v2713_v10 = vpack.c.bf16 %v865_v2, %v859_v63  ;;  %v869_v15 = vld [vmem:[#allocation6 + $0xcc8] sm:$0xff]  ;;  %v898_v57 = vld [vmem:[#allocation6 + $0xdb0] sm:$0xff] }
 0x11c   : > { %v823_v20 = vld [vmem:[#allocation6 + $0xb58] sm:$0xff]  ;;  %v2509_v30 = vpack.c.bf16 %v827_v19, %v821_v18  ;;  %v877_v19 = vld [vmem:[#allocation6 + $0xd08] sm:$0xff] }
 0x11d   : > { %v875_v17 = vld [vmem:[#allocation6 + $0xcf8] sm:$0xff]  ;;  %v913_v63 = vld [vmem:[#allocation6 + $0xe28] sm:$0xff] }
 0x11e   : > { %2492 = vmatpush1.bf16.msra.mxu0 %v2491_v31  ;;  %2684 = vmatpush1.bf16.msra.mxu1 %v2683_v32  ;;  %v2701_v31 = vpack.c.bf16 %v829_v21, %v823_v20  ;;  %v822_v32 = vld [vmem:[#allocation6 + $0xb50] sm:$0xff]  ;;  %v871_v18 = vld [vmem:[#allocation6 + $0xcd8] sm:$0xff]  ;;  %v3940_v20 = vrot.slane %v3908_v22, %v1060_v3  ;;  %v2525_v29 = vpack.c.bf16 %v875_v17, %v869_v15 }
 0x11f   : > { %2494 = vmatprep.subr.bf16.mxu0 %v2493_v37  ;;  %2686 = vmatprep.subr.bf16.mxu1 %v2685_v38  ;;  %v839_v37 = vld [vmem:[#allocation6 + $0xbd8] sm:$0xff]  ;;  %v2703_v41 = vpack.c.bf16 %v828_v33, %v822_v32  ;;  %v876_v32 = vld [vmem:[#allocation6 + $0xd00] sm:$0xff]  ;;  %v881_v33 = vld [vmem:[#allocation6 + $0xd28] sm:$0xff] }
 0x120   : > { %v835_v38 = vld [vmem:[#allocation6 + $0xbb8] sm:$0xff]  ;;  %v2513_v46 = vpack.c.bf16 %v839_v37, %v833_v34 }
 0x121   : > { %v887_v34 = vld [vmem:[#allocation6 + $0xd58] sm:$0xff] }
 0x122   : > { %2496 = vmatpush1.bf16.msra.mxu0 %v2495_v47  ;;  %2688 = vmatpush1.bf16.msra.mxu1 %v2687_v48  ;;  %v2705_v47 = vpack.c.bf16 %v841_v39, %v835_v38  ;;  %v834_v48 = vld [vmem:[#allocation6 + $0xbb0] sm:$0xff]  ;;  %v883_v37 = vld [vmem:[#allocation6 + $0xd38] sm:$0xff]  ;;  %v889_v38 = vld [vmem:[#allocation6 + $0xd68] sm:$0xff]  ;;  %v2529_v45 = vpack.c.bf16 %v887_v34, %v881_v33 }
 0x123   : > { %2498 = vmatprep.subr.bf16.mxu0 %v2497_v51  ;;  %2690 = vmatprep.subr.bf16.mxu1 %v2689_v52  ;;  %v851_v51 = vld [vmem:[#allocation6 + $0xc38] sm:$0xff]  ;;  %v2707_v56 = vpack.c.bf16 %v840_v49, %v834_v48  ;;  %v888_v48 = vld [vmem:[#allocation6 + $0xd60] sm:$0xff]  ;;  %v893_v49 = vld [vmem:[#allocation6 + $0xd88] sm:$0xff] }
 0x124   : > { %v847_v52 = vld [vmem:[#allocation6 + $0xc18] sm:$0xff] }
 0x125   : > { %v923_v15 = vld [vmem:[#allocation6 + $0xe78] sm:$0xff] }
 0x126   : > { %2500 = vmatpush1.bf16.msra.mxu0 %v2499_v35  ;;  %2692 = vmatpush1.bf16.msra.mxu1 %v2691_v58  ;;  %v2517_v35 = vpack.c.bf16 %v851_v51, %v845_v50  ;;  %v2709_v58 = vpack.c.bf16 %v853_v53, %v847_v52  ;;  %v899_v50 = vld [vmem:[#allocation6 + $0xdb8] sm:$0xff]  ;;  %v901_v52 = vld [vmem:[#allocation6 + $0xdc8] sm:$0xff] }
 0x127   : > { %2502 = vmatprep.subr.bf16.mxu0 %v2501_v61  ;;  %2694 = vmatprep.subr.bf16.mxu1 %v2693_v62  ;;  %v857_v61 = vld [vmem:[#allocation6 + $0xc68] sm:$0xff]  ;;  %v863_v62 = vld [vmem:[#allocation6 + $0xc98] sm:$0xff]  ;;  %v2533_v16 = vpack.c.bf16 %v899_v50, %v893_v49 }
 0x128   : > { %v2521_v9 = vpack.c.bf16 %v863_v62, %v857_v61  ;;  %v895_v51 = vld [vmem:[#allocation6 + $0xd98] sm:$0xff] }
 0x129   : > { %v911_v61 = vld [vmem:[#allocation6 + $0xe18] sm:$0xff] }
 0x12a   : > { %2504 = vmatpush1.bf16.msra.mxu0 %v2503_v7  ;;  %2696 = vmatpush1.bf16.msra.mxu1 %v2695_v8  ;;  %v856_v7 = vld [vmem:[#allocation6 + $0xc60] sm:$0xff]  ;;  %v862_v8 = vld [vmem:[#allocation6 + $0xc90] sm:$0xff]  ;;  %v907_v62 = vld [vmem:[#allocation6 + $0xdf8] sm:$0xff] }
 0x12b   : > { %2506 = vmatprep.subr.bf16.mxu0 %v2505_v11  ;;  %2698 = vmatprep.subr.bf16.mxu1 %v2697_v12  ;;  %v858_v11 = vld [vmem:[#allocation6 + $0xc70] sm:$0xff]  ;;  %v864_v12 = vld [vmem:[#allocation6 + $0xca0] sm:$0xff]  ;;  %v2523_v21 = vpack.c.bf16 %v862_v8, %v856_v7  ;;  %v2537_v8 = vpack.c.bf16 %v911_v61, %v905_v60  ;;  %v919_v17 = vld [vmem:[#allocation6 + $0xe58] sm:$0xff] }
 0x12c   : > { %v910_v7 = vld [vmem:[#allocation6 + $0xe10] sm:$0xff]  ;;  %v935_v33 = vld [vmem:[#allocation6 + $0xed8] sm:$0xff] }
 0x12d   : > { %v931_v34 = vld [vmem:[#allocation6 + $0xeb8] sm:$0xff] }
 0x12e   : > { %2508 = vmatpush1.bf16.msra.mxu0 %v2507_v23  ;;  %2700 = vmatpush1.bf16.msra.mxu1 %v2699_v24  ;;  %v2715_v23 = vpack.c.bf16 %v864_v12, %v858_v11  ;;  %v868_v24 = vld [vmem:[#allocation6 + $0xcc0] sm:$0xff]  ;;  %v917_v12 = vld [vmem:[#allocation6 + $0xe48] sm:$0xff]  ;;  %v947_v49 = vld [vmem:[#allocation6 + $0xf38] sm:$0xff] }
 0x12f   : > { %2510 = vmatprep.subr.bf16.mxu0 %v2509_v30  ;;  %2702 = vmatprep.subr.bf16.mxu1 %v2701_v31  ;;  %v2717_v30 = vpack.c.bf16 %v877_v19, %v871_v18  ;;  %v870_v31 = vld [vmem:[#allocation6 + $0xcd0] sm:$0xff]  ;;  %v2527_v39 = vpack.c.bf16 %v874_v25, %v868_v24  ;;  %v912_v11 = vld [vmem:[#allocation6 + $0xe20] sm:$0xff]  ;;  %v925_v18 = vld [vmem:[#allocation6 + $0xe88] sm:$0xff]  ;;  %v2541_v25 = vpack.c.bf16 %v923_v15, %v917_v12 }
 0x130   : > { %v922_v24 = vld [vmem:[#allocation6 + $0xe70] sm:$0xff]  ;;  %v943_v50 = vld [vmem:[#allocation6 + $0xf18] sm:$0xff] }
 0x131   : > { %v959_v60 = vld [vmem:[#allocation6 + $0xf98] sm:$0xff] }
 0x132   : > { %2512 = vmatpush1.bf16.msra.mxu0 %v2511_v40  ;;  %2704 = vmatpush1.bf16.msra.mxu1 %v2703_v41  ;;  %v2719_v40 = vpack.c.bf16 %v876_v32, %v870_v31  ;;  %v880_v41 = vld [vmem:[#allocation6 + $0xd20] sm:$0xff]  ;;  %v929_v32 = vld [vmem:[#allocation6 + $0xea8] sm:$0xff]  ;;  %v955_v61 = vld [vmem:[#allocation6 + $0xf78] sm:$0xff] }
 0x133   : > { %2514 = vmatprep.subr.bf16.mxu0 %v2513_v46  ;;  %2706 = vmatprep.subr.bf16.mxu1 %v2705_v47  ;;  %v2721_v46 = vpack.c.bf16 %v889_v38, %v883_v37  ;;  %v882_v47 = vld [vmem:[#allocation6 + $0xd30] sm:$0xff]  ;;  %v2531_v53 = vpack.c.bf16 %v886_v42, %v880_v41  ;;  %v924_v31 = vld [vmem:[#allocation6 + $0xe80] sm:$0xff]  ;;  %v937_v37 = vld [vmem:[#allocation6 + $0xee8] sm:$0xff]  ;;  %v2545_v42 = vpack.c.bf16 %v935_v33, %v929_v32 }
 0x134   : > { %v934_v41 = vld [vmem:[#allocation6 + $0xed0] sm:$0xff]  ;;  %v971_v12 = vld [vmem:[#allocation6 + $0xff8] sm:$0xff] }
 0x135   : > { %v967_v15 = vld [vmem:[#allocation6 + $0xfd8] sm:$0xff] }
 0x136   : > { %2516 = vmatpush1.bf16.msra.mxu0 %v2515_v55  ;;  %2708 = vmatpush1.bf16.msra.mxu1 %v2707_v56  ;;  %v2723_v55 = vpack.c.bf16 %v888_v48, %v882_v47  ;;  %v892_v56 = vld [vmem:[#allocation6 + $0xd80] sm:$0xff]  ;;  %v941_v48 = vld [vmem:[#allocation6 + $0xf08] sm:$0xff]  ;;  %v983_v32 = vld [vmem:[#allocation6 + $0x1058] sm:$0xff] }
 0x137   : > { %2518 = vmatprep.subr.bf16.mxu0 %v2517_v35  ;;  %2710 = vmatprep.subr.bf16.mxu1 %v2709_v58  ;;  %v2725_v35 = vpack.c.bf16 %v901_v52, %v895_v51  ;;  %v894_v58 = vld [vmem:[#allocation6 + $0xd90] sm:$0xff]  ;;  %v2535_v2 = vpack.c.bf16 %v898_v57, %v892_v56  ;;  %v936_v47 = vld [vmem:[#allocation6 + $0xee0] sm:$0xff]  ;;  %v949_v51 = vld [vmem:[#allocation6 + $0xf48] sm:$0xff]  ;;  %v2549_v57 = vpack.c.bf16 %v947_v49, %v941_v48 }
 0x138   : > { %v946_v56 = vld [vmem:[#allocation6 + $0xf30] sm:$0xff]  ;;  %v979_v33 = vld [vmem:[#allocation6 + $0x1038] sm:$0xff] }
 0x139   : > { %1235 = vmatmul.mubr.f32.vlgmr.msra.gmra.mrb[0].mxu0 %v3935_v4  ;;  %1448 = vmatmul.mubr.f32.vlgmr.msra.gmra.mrb[0].mxu1 %v3935_v4  ;;  %v995_v48 = vld [vmem:[#allocation6 + $0x10b8] sm:$0xff] }
 0x13a   : > { %2520 = vmatpush1.bf16.msra.mxu0 %v2519_v5  ;;  %2712 = vmatpush1.bf16.msra.mxu1 %v2711_v6  ;;  %v2727_v5 = vpack.c.bf16 %v900_v59, %v894_v58  ;;  %v904_v6 = vld [vmem:[#allocation6 + $0xde0] sm:$0xff]  ;;  %v953_v59 = vld [vmem:[#allocation6 + $0xf68] sm:$0xff]  ;;  %v991_v49 = vld [vmem:[#allocation6 + $0x1098] sm:$0xff] }
 0x13b   : > { %2522 = vmatprep.subr.bf16.mxu0 %v2521_v9  ;;  %2714 = vmatprep.subr.bf16.mxu1 %v2713_v10  ;;  %v2729_v9 = vpack.c.bf16 %v913_v63, %v907_v62  ;;  %v906_v10 = vld [vmem:[#allocation6 + $0xdf0] sm:$0xff]  ;;  %v2539_v19 = vpack.c.bf16 %v910_v7, %v904_v6  ;;  %v948_v58 = vld [vmem:[#allocation6 + $0xf40] sm:$0xff]  ;;  %v961_v62 = vld [vmem:[#allocation6 + $0xfa8] sm:$0xff]  ;;  %v2553_v7 = vpack.c.bf16 %v959_v60, %v953_v59 }
 0x13c   : > { %1305 = vmatprep.mubr.f32.mxu0 %v3940_v20  ;;  %1518 = vmatprep.mubr.f32.mxu1 %v3940_v20  ;;  %v958_v6 = vld [vmem:[#allocation6 + $0xf90] sm:$0xff]  ;;  %v1007_v59 = vld [vmem:[#allocation6 + $0x1118] sm:$0xff] }
 0x13d   : > { %v1003_v60 = vld [vmem:[#allocation6 + $0x10f8] sm:$0xff] }
 0x13e   : > { %2524 = vmatpush1.bf16.msra.mxu0 %v2523_v21  ;;  %2716 = vmatpush1.bf16.msra.mxu1 %v2715_v23  ;;  %v2731_v21 = vpack.c.bf16 %v912_v11, %v906_v10  ;;  %v916_v23 = vld [vmem:[#allocation6 + $0xe40] sm:$0xff]  ;;  %v965_v11 = vld [vmem:[#allocation6 + $0xfc8] sm:$0xff] }
 0x13f   : > { %2526 = vmatprep.subr.bf16.mxu0 %v2525_v29  ;;  %2718 = vmatprep.subr.bf16.mxu1 %v2717_v30  ;;  %v2733_v29 = vpack.c.bf16 %v925_v18, %v919_v17  ;;  %v918_v30 = vld [vmem:[#allocation6 + $0xe50] sm:$0xff]  ;;  %v2543_v38 = vpack.c.bf16 %v922_v24, %v916_v23  ;;  %v960_v10 = vld [vmem:[#allocation6 + $0xfa0] sm:$0xff]  ;;  %v973_v17 = vld [vmem:[#allocation6 + $0x1008] sm:$0xff]  ;;  %v2557_v24 = vpack.c.bf16 %v971_v12, %v965_v11 }
 0x140   : > { %v970_v23 = vld [vmem:[#allocation6 + $0xff0] sm:$0xff]  ;;  %v1019_v11 = vld [vmem:[#allocation6 + $0x1178] sm:$0xff] }
 0x141   : > { %v1015_v12 = vld [vmem:[#allocation6 + $0x1158] sm:$0xff] }
 0x142   : > { %2528 = vmatpush1.bf16.msra.mxu0 %v2527_v39  ;;  %2720 = vmatpush1.bf16.msra.mxu1 %v2719_v40  ;;  %v2735_v39 = vpack.c.bf16 %v924_v31, %v918_v30  ;;  %v928_v40 = vld [vmem:[#allocation6 + $0xea0] sm:$0xff]  ;;  %v977_v31 = vld [vmem:[#allocation6 + $0x1028] sm:$0xff] }
 0x143   : > { %2530 = vmatprep.subr.bf16.mxu0 %v2529_v45  ;;  %2722 = vmatprep.subr.bf16.mxu1 %v2721_v46  ;;  %v2737_v45 = vpack.c.bf16 %v937_v37, %v931_v34  ;;  %v930_v46 = vld [vmem:[#allocation6 + $0xeb0] sm:$0xff]  ;;  %v2547_v52 = vpack.c.bf16 %v934_v41, %v928_v40  ;;  %v972_v30 = vld [vmem:[#allocation6 + $0x1000] sm:$0xff]  ;;  %v985_v34 = vld [vmem:[#allocation6 + $0x1068] sm:$0xff]  ;;  %v2561_v41 = vpack.c.bf16 %v983_v32, %v977_v31 }
 0x144   : > { %v982_v40 = vld [vmem:[#allocation6 + $0x1050] sm:$0xff]  ;;  %v1031_v31 = vld [vmem:[#allocation6 + $0x11d8] sm:$0xff] }
 0x145   : > { %v1027_v32 = vld [vmem:[#allocation6 + $0x11b8] sm:$0xff] }
 0x146   : > { %2532 = vmatpush1.bf16.msra.mxu0 %v2531_v53  ;;  %2724 = vmatpush1.bf16.msra.mxu1 %v2723_v55  ;;  %v2739_v53 = vpack.c.bf16 %v936_v47, %v930_v46  ;;  %v940_v55 = vld [vmem:[#allocation6 + $0xf00] sm:$0xff]  ;;  %v989_v47 = vld [vmem:[#allocation6 + $0x1088] sm:$0xff] }
 0x147   : > { %2534 = vmatprep.subr.bf16.mxu0 %v2533_v16  ;;  %2726 = vmatprep.subr.bf16.mxu1 %v2725_v35  ;;  %v2741_v16 = vpack.c.bf16 %v949_v51, %v943_v50  ;;  %v942_v35 = vld [vmem:[#allocation6 + $0xf10] sm:$0xff]  ;;  %v2551_v63 = vpack.c.bf16 %v946_v56, %v940_v55  ;;  %v984_v46 = vld [vmem:[#allocation6 + $0x1060] sm:$0xff]  ;;  %v997_v50 = vld [vmem:[#allocation6 + $0x10c8] sm:$0xff]  ;;  %v2565_v56 = vpack.c.bf16 %v995_v48, %v989_v47  ;;  %v1056_v48 = vsub.s32 4, %v3881_v36 }
 0x148   : > { %v994_v55 = vld [vmem:[#allocation6 + $0x10b0] sm:$0xff]  ;;  %v471_v47 = vld [vmem:[#allocation6 + $0x58] sm:$0xff] }
 0x14a   : > { %2536 = vmatpush1.bf16.msra.mxu0 %v2535_v2  ;;  %2728 = vmatpush1.bf16.msra.mxu1 %v2727_v5  ;;  %v2743_v2 = vpack.c.bf16 %v948_v58, %v942_v35  ;;  %v952_v5 = vld [vmem:[#allocation6 + $0xf60] sm:$0xff]  ;;  %v1001_v58 = vld [vmem:[#allocation6 + $0x10e8] sm:$0xff] }
 0x14b   : > { %2538 = vmatprep.subr.bf16.mxu0 %v2537_v8  ;;  %2730 = vmatprep.subr.bf16.mxu1 %v2729_v9  ;;  %v2745_v8 = vpack.c.bf16 %v961_v62, %v955_v61  ;;  %v954_v9 = vld [vmem:[#allocation6 + $0xf70] sm:$0xff]  ;;  %v2555_v18 = vpack.c.bf16 %v958_v6, %v952_v5  ;;  %v996_v35 = vld [vmem:[#allocation6 + $0x10c0] sm:$0xff]  ;;  %v1009_v61 = vld [vmem:[#allocation6 + $0x1128] sm:$0xff]  ;;  %v2569_v6 = vpack.c.bf16 %v1007_v59, %v1001_v58 }
 0x14c   : > { %v1006_v5 = vld [vmem:[#allocation6 + $0x1110] sm:$0xff]  ;;  %v476_v58 = vld [vmem:[#allocation6 + $0x80] sm:$0xff] }
 0x14d   : > { %v482_v59 = vld [vmem:[#allocation6 + $0xb0] sm:$0xff] }
 0x14e   : > { %2540 = vmatpush1.bf16.msra.mxu0 %v2539_v19  ;;  %2732 = vmatpush1.bf16.msra.mxu1 %v2731_v21  ;;  %v2747_v19 = vpack.c.bf16 %v960_v10, %v954_v9  ;;  %v964_v21 = vld [vmem:[#allocation6 + $0xfc0] sm:$0xff]  ;;  %v1013_v10 = vld [vmem:[#allocation6 + $0x1148] sm:$0xff] }
 0x14f   : > { %2542 = vmatprep.subr.bf16.mxu0 %v2541_v25  ;;  %2734 = vmatprep.subr.bf16.mxu1 %v2733_v29  ;;  %v2749_v25 = vpack.c.bf16 %v973_v17, %v967_v15  ;;  %v966_v29 = vld [vmem:[#allocation6 + $0xfd0] sm:$0xff]  ;;  %v2559_v37 = vpack.c.bf16 %v970_v23, %v964_v21  ;;  %v1008_v9 = vld [vmem:[#allocation6 + $0x1120] sm:$0xff]  ;;  %v1021_v15 = vld [vmem:[#allocation6 + $0x1188] sm:$0xff]  ;;  %v2573_v23 = vpack.c.bf16 %v1019_v11, %v1013_v10 }
 0x150   : > { %v1018_v21 = vld [vmem:[#allocation6 + $0x1170] sm:$0xff]  ;;  %v500_v10 = vld [vmem:[#allocation6 + $0x140] sm:$0xff] }
 0x151   : > { %v506_v11 = vld [vmem:[#allocation6 + $0x170] sm:$0xff] }
 0x152   : > { %2544 = vmatpush1.bf16.msra.mxu0 %v2543_v38  ;;  %2736 = vmatpush1.bf16.msra.mxu1 %v2735_v39  ;;  %v2751_v38 = vpack.c.bf16 %v972_v30, %v966_v29  ;;  %v976_v39 = vld [vmem:[#allocation6 + $0x1020] sm:$0xff]  ;;  %v1025_v30 = vld [vmem:[#allocation6 + $0x11a8] sm:$0xff] }
 0x153   : > { %2546 = vmatprep.subr.bf16.mxu0 %v2545_v42  ;;  %2738 = vmatprep.subr.bf16.mxu1 %v2737_v45  ;;  %v2753_v42 = vpack.c.bf16 %v985_v34, %v979_v33  ;;  %v978_v45 = vld [vmem:[#allocation6 + $0x1030] sm:$0xff]  ;;  %v2563_v51 = vpack.c.bf16 %v982_v40, %v976_v39  ;;  %v1020_v29 = vld [vmem:[#allocation6 + $0x1180] sm:$0xff]  ;;  %v1033_v33 = vld [vmem:[#allocation6 + $0x11e8] sm:$0xff]  ;;  %v2577_v39 = vpack.c.bf16 %v1031_v31, %v1025_v30 }
 0x154   : > { %v1030_v40 = vld [vmem:[#allocation6 + $0x11d0] sm:$0xff]  ;;  %v537_v31 = vld [vmem:[#allocation6 + $0x268] sm:$0xff] }
 0x155   : > { %v530_v30 = vld [vmem:[#allocation6 + $0x230] sm:$0xff] }
 0x156   : > { %2548 = vmatpush1.bf16.msra.mxu0 %v2547_v52  ;;  %2740 = vmatpush1.bf16.msra.mxu1 %v2739_v53  ;;  %v2755_v52 = vpack.c.bf16 %v984_v46, %v978_v45  ;;  %v988_v53 = vld [vmem:[#allocation6 + $0x1080] sm:$0xff]  ;;  %v465_v46 = vld [vmem:[#allocation6 + $0x28] sm:$0xff] }
 0x157   : > { %2550 = vmatprep.subr.bf16.mxu0 %v2549_v57  ;;  %2742 = vmatprep.subr.bf16.mxu1 %v2741_v16  ;;  %v2757_v57 = vpack.c.bf16 %v997_v50, %v991_v49  ;;  %v990_v16 = vld [vmem:[#allocation6 + $0x1090] sm:$0xff]  ;;  %v2567_v62 = vpack.c.bf16 %v994_v55, %v988_v53  ;;  %v1032_v45 = vld [vmem:[#allocation6 + $0x11e0] sm:$0xff]  ;;  %v477_v55 = vld [vmem:[#allocation6 + $0x88] sm:$0xff] }
 0x158   : > { %v470_v53 = vld [vmem:[#allocation6 + $0x50] sm:$0xff] }
 0x15a   : > { %2552 = vmatpush1.bf16.msra.mxu0 %v2551_v63  ;;  %2744 = vmatpush1.bf16.msra.mxu1 %v2743_v2  ;;  %v2759_v63 = vpack.c.bf16 %v996_v35, %v990_v16  ;;  %v1000_v2 = vld [vmem:[#allocation6 + $0x10e0] sm:$0xff] }
 0x15b   : > { %2554 = vmatprep.subr.bf16.mxu0 %v2553_v7  ;;  %2746 = vmatprep.subr.bf16.mxu1 %v2745_v8  ;;  %v2761_v7 = vpack.c.bf16 %v1009_v61, %v1003_v60  ;;  %v1002_v8 = vld [vmem:[#allocation6 + $0x10f0] sm:$0xff]  ;;  %v2571_v17 = vpack.c.bf16 %v1006_v5, %v1000_v2  ;;  %v489_v60 = vld [vmem:[#allocation6 + $0xe8] sm:$0xff]  ;;  %v495_v61 = vld [vmem:[#allocation6 + $0x118] sm:$0xff] }
 0x15c   : > { %v488_v2 = vld [vmem:[#allocation6 + $0xe0] sm:$0xff]  ;;  %v494_v5 = vld [vmem:[#allocation6 + $0x110] sm:$0xff] }
 0x15e   : > { %2556 = vmatpush1.bf16.msra.mxu0 %v2555_v18  ;;  %2748 = vmatpush1.bf16.msra.mxu1 %v2747_v19  ;;  %v2763_v18 = vpack.c.bf16 %v1008_v9, %v1002_v8  ;;  %v1012_v19 = vld [vmem:[#allocation6 + $0x1140] sm:$0xff]  ;;  %v2783_v8 = vpack.c.bf16 %v494_v5, %v488_v2  ;;  %v1750_v5 = vld [vmem:[#allocation9 + $0x30] sm:$0xff] }
 0x15f   : > { %2558 = vmatprep.subr.bf16.mxu0 %v2557_v24  ;;  %2750 = vmatprep.subr.bf16.mxu1 %v2749_v25  ;;  %v2765_v24 = vpack.c.bf16 %v1021_v15, %v1015_v12  ;;  %v1014_v25 = vld [vmem:[#allocation6 + $0x1150] sm:$0xff]  ;;  %v2575_v34 = vpack.c.bf16 %v1018_v21, %v1012_v19  ;;  %v513_v12 = vld [vmem:[#allocation6 + $0x1a8] sm:$0xff]  ;;  %v519_v15 = vld [vmem:[#allocation6 + $0x1d8] sm:$0xff] }
 0x160   : > { %v512_v19 = vld [vmem:[#allocation6 + $0x1a0] sm:$0xff]  ;;  %v525_v21 = vld [vmem:[#allocation6 + $0x208] sm:$0xff] }
 0x161   : > { %v1748_v2 = vld [vmem:[#allocation9 + $0x20] sm:$0xff] }
 0x162   : > { %2560 = vmatpush1.bf16.msra.mxu0 %v2559_v37  ;;  %2752 = vmatpush1.bf16.msra.mxu1 %v2751_v38  ;;  %v2767_v37 = vpack.c.bf16 %v1020_v29, %v1014_v25  ;;  %v1024_v38 = vld [vmem:[#allocation6 + $0x11a0] sm:$0xff] }
 0x163   : > { %2562 = vmatprep.subr.bf16.mxu0 %v2561_v41  ;;  %2754 = vmatprep.subr.bf16.mxu1 %v2753_v42  ;;  %v2769_v41 = vpack.c.bf16 %v1033_v33, %v1027_v32  ;;  %v1026_v42 = vld [vmem:[#allocation6 + $0x11b0] sm:$0xff]  ;;  %v2579_v49 = vpack.c.bf16 %v1030_v40, %v1024_v38  ;;  %v524_v29 = vld [vmem:[#allocation6 + $0x200] sm:$0xff]  ;;  %v543_v32 = vld [vmem:[#allocation6 + $0x298] sm:$0xff] }
 0x164   : > { %v2771_v50 = vpack.c.bf16 %v1032_v45, %v1026_v42  ;;  %v2795_v33 = vpack.c.bf16 %v530_v30, %v524_v29  ;;  %v542_v38 = vld [vmem:[#allocation6 + $0x290] sm:$0xff]  ;;  %v555_v40 = vld [vmem:[#allocation6 + $0x2f8] sm:$0xff]  ;;  %v548_v42 = vld [vmem:[#allocation6 + $0x2c0] sm:$0xff] }
 0x165   : > { %v554_v45 = vld [vmem:[#allocation6 + $0x2f0] sm:$0xff] }
 0x166   : > { %2564 = vmatpush1.bf16.msra.mxu0 %v2563_v51  ;;  %2756 = vmatpush1.bf16.msra.mxu1 %v2755_v52  ;;  %v2773_v51 = vpack.c.bf16 %v471_v47, %v465_v46  ;;  %v464_v52 = vld [vmem:[#allocation6 + $0x20] sm:$0xff]  ;;  %v561_v47 = vld [vmem:[#allocation6 + $0x328] sm:$0xff]  ;;  %v590_v29 = vld [vmem:[#allocation6 + $0x410] sm:$0xff] }
 0x167   : > { %2566 = vmatprep.subr.bf16.mxu0 %v2565_v56  ;;  %2758 = vmatprep.subr.bf16.mxu1 %v2757_v57  ;;  %v483_v56 = vld [vmem:[#allocation6 + $0xb8] sm:$0xff]  ;;  %v3950_v57 = vrot.slane %v3908_v22, %v1056_v48  ;;  %v2775_v16 = vpack.c.bf16 %v470_v53, %v464_v52  ;;  %v1744_v52 = vld [vmem:[#allocation9] sm:$0xff] }
 0x168   : > { %v2777_v35 = vpack.c.bf16 %v483_v56, %v477_v55  ;;  %v1746_v53 = vld [vmem:[#allocation9 + $0x10] sm:$0xff] }
 0x169   : > { %v2967_v56 = vpack.c.bf16 %v1746_v53, %v1744_v52  ;;  %v1760_v52 = vld [vmem:[#allocation9 + $0x80] sm:$0xff]  ;;  %v1762_v53 = vld [vmem:[#allocation9 + $0x90] sm:$0xff] }
 0x16a   : > { %2568 = vmatpush1.bf16.msra.mxu0 %v2567_v62  ;;  %2760 = vmatpush1.bf16.msra.mxu1 %v2759_v63  ;;  %v2779_v62 = vpack.c.bf16 %v482_v59, %v476_v58  ;;  %v2781_v63 = vpack.c.bf16 %v495_v61, %v489_v60  ;;  %v566_v58 = vld [vmem:[#allocation6 + $0x350] sm:$0xff]  ;;  %v573_v60 = vld [vmem:[#allocation6 + $0x388] sm:$0xff]  ;;  %v579_v61 = vld [vmem:[#allocation6 + $0x3b8] sm:$0xff] }
 0x16b   : > { %2570 = vmatprep.subr.bf16.mxu0 %v2569_v6  ;;  %2762 = vmatprep.subr.bf16.mxu1 %v2761_v7  ;;  %v501_v6 = vld [vmem:[#allocation6 + $0x148] sm:$0xff]  ;;  %v507_v7 = vld [vmem:[#allocation6 + $0x178] sm:$0xff] }
 0x16c   : > { %v2785_v9 = vpack.c.bf16 %v507_v7, %v501_v6  ;;  %v2971_v7 = vpack.c.bf16 %v1750_v5, %v1748_v2  ;;  %v1764_v2 = vld [vmem:[#allocation9 + $0xa0] sm:$0xff]  ;;  %v1766_v5 = vld [vmem:[#allocation9 + $0xb0] sm:$0xff] }
 0x16e   : > { %2572 = vmatpush1.bf16.msra.mxu0 %v2571_v17  ;;  %2764 = vmatpush1.bf16.msra.mxu1 %v2763_v18  ;;  %v2787_v17 = vpack.c.bf16 %v506_v11, %v500_v10  ;;  %v2789_v18 = vpack.c.bf16 %v519_v15, %v513_v12  ;;  %v578_v10 = vld [vmem:[#allocation6 + $0x3b0] sm:$0xff]  ;;  %v2809_v11 = vpack.c.bf16 %v579_v61, %v573_v60  ;;  %v585_v12 = vld [vmem:[#allocation6 + $0x3e8] sm:$0xff]  ;;  %v591_v15 = vld [vmem:[#allocation6 + $0x418] sm:$0xff] }
 0x16f   : > { %2574 = vmatprep.subr.bf16.mxu0 %v2573_v23  ;;  %2766 = vmatprep.subr.bf16.mxu1 %v2765_v24  ;;  %v531_v23 = vld [vmem:[#allocation6 + $0x238] sm:$0xff]  ;;  %v2813_v30 = vpack.c.bf16 %v591_v15, %v585_v12  ;;  %v621_v60 = vld [vmem:[#allocation6 + $0x508] sm:$0xff] }
 0x170   : > { %v2793_v25 = vpack.c.bf16 %v531_v23, %v525_v21  ;;  %v627_v61 = vld [vmem:[#allocation6 + $0x538] sm:$0xff]  ;;  %v633_v12 = vld [vmem:[#allocation6 + $0x568] sm:$0xff] }
 0x171   : > { %v639_v15 = vld [vmem:[#allocation6 + $0x598] sm:$0xff] }
 0x172   : > { %2576 = vmatpush1.bf16.msra.mxu0 %v2575_v34  ;;  %2768 = vmatpush1.bf16.msra.mxu1 %v2767_v37  ;;  %v2797_v34 = vpack.c.bf16 %v543_v32, %v537_v31  ;;  %v536_v37 = vld [vmem:[#allocation6 + $0x260] sm:$0xff]  ;;  %v597_v31 = vld [vmem:[#allocation6 + $0x448] sm:$0xff]  ;;  %v603_v32 = vld [vmem:[#allocation6 + $0x478] sm:$0xff] }
 0x173   : > { %2578 = vmatprep.subr.bf16.mxu0 %v2577_v39  ;;  %2770 = vmatprep.subr.bf16.mxu1 %v2769_v41  ;;  %v549_v39 = vld [vmem:[#allocation6 + $0x2c8] sm:$0xff]  ;;  %v2799_v41 = vpack.c.bf16 %v542_v38, %v536_v37  ;;  %v1758_v38 = vld [vmem:[#allocation9 + $0x70] sm:$0xff] }
 0x174   : > { %v2801_v46 = vpack.c.bf16 %v555_v40, %v549_v39  ;;  %v1756_v37 = vld [vmem:[#allocation9 + $0x60] sm:$0xff] }
 0x175   : > { %v2979_v40 = vpack.c.bf16 %v1758_v38, %v1756_v37  ;;  %v1772_v37 = vld [vmem:[#allocation9 + $0xe0] sm:$0xff]  ;;  %v1774_v38 = vld [vmem:[#allocation9 + $0xf0] sm:$0xff] }
 0x176   : > { %2580 = vmatpush1.bf16.msra.mxu0 %v2579_v49  ;;  %2772 = vmatpush1.bf16.msra.mxu1 %v2771_v50  ;;  %v567_v49 = vld [vmem:[#allocation6 + $0x358] sm:$0xff]  ;;  %v1745_v50 = vld [vmem:[#allocation9 + $0x8] sm:$0xff] }
 0x177   : > { %2774 = vmatprep.subr.bf16.mxu0 %v2773_v51  ;;  %v1747_v51 = vld [vmem:[#allocation9 + $0x18] sm:$0xff]  ;;  %v2805_v59 = vpack.c.bf16 %v567_v49, %v561_v47  ;;  %v609_v47 = vld [vmem:[#allocation6 + $0x4a8] sm:$0xff] }
 0x178   : > { %v2965_v55 = vpack.c.bf16 %v1747_v51, %v1745_v50  ;;  %v615_v49 = vld [vmem:[#allocation6 + $0x4d8] sm:$0xff]  ;;  %v1761_v50 = vld [vmem:[#allocation9 + $0x88] sm:$0xff] }
 0x179   : > { %1306 = vmatmul.mubr.f32.vlgmr.msra.gmra.mrb[0].mxu0 %v3950_v57  ;;  %1519 = vmatmul.mubr.f32.vlgmr.msra.gmra.mrb[0].mxu1 %v3950_v57  ;;  %v1763_v51 = vld [vmem:[#allocation9 + $0x98] sm:$0xff] }
 0x17a   : > { %2776 = vmatpush1.bf16.msra.mxu0 %v2775_v16  ;;  %1589 = vmatprep.mubr.f32.mxu0 %v3913_v27  ;;  %v518_v27 = vld [vmem:[#allocation6 + $0x1d0] sm:$0xff]  ;;  %v2803_v16 = vpack.c.bf16 %v554_v45, %v548_v42  ;;  %v596_v42 = vld [vmem:[#allocation6 + $0x440] sm:$0xff] }
 0x17b   : > { %2778 = vmatprep.subr.bf16.mxu0 %v2777_v35  ;;  %v2791_v24 = vpack.c.bf16 %v518_v27, %v512_v19  ;;  %v560_v35 = vld [vmem:[#allocation6 + $0x320] sm:$0xff]  ;;  %2966 = vmatprep.subr.bf16.mxu1 %v2965_v55  ;;  %v1754_v27 = vld [vmem:[#allocation9 + $0x50] sm:$0xff]  ;;  %v2981_v55 = vpack.c.bf16 %v1763_v51, %v1761_v50  ;;  %v1777_v50 = vld [vmem:[#allocation9 + $0x108] sm:$0xff] }
 0x17c   : > { %2968 = vmatpush1.bf16.msra.mxu1 %v2967_v56  ;;  %v1752_v19 = vld [vmem:[#allocation9 + $0x40] sm:$0xff]  ;;  %v602_v45 = vld [vmem:[#allocation6 + $0x470] sm:$0xff]  ;;  %v2983_v56 = vpack.c.bf16 %v1762_v53, %v1760_v52  ;;  %v1779_v51 = vld [vmem:[#allocation9 + $0x118] sm:$0xff] }
 0x17d   : > { %v2975_v23 = vpack.c.bf16 %v1754_v27, %v1752_v19  ;;  %v1768_v19 = vld [vmem:[#allocation9 + $0xc0] sm:$0xff]  ;;  %v1770_v27 = vld [vmem:[#allocation9 + $0xd0] sm:$0xff] }
 0x17e   : > { %2780 = vmatpush1.bf16.msra.mxu0 %v2779_v62  ;;  %v1749_v62 = vld [vmem:[#allocation9 + $0x28] sm:$0xff]  ;;  %v1776_v52 = vld [vmem:[#allocation9 + $0x100] sm:$0xff]  ;;  %v1778_v53 = vld [vmem:[#allocation9 + $0x110] sm:$0xff] }
 0x17f   : > { %2782 = vmatprep.subr.bf16.mxu0 %v2781_v63  ;;  %v1751_v63 = vld [vmem:[#allocation9 + $0x38] sm:$0xff] }
 0x180   : > { %v2969_v6 = vpack.c.bf16 %v1751_v63, %v1749_v62  ;;  %v1765_v62 = vld [vmem:[#allocation9 + $0xa8] sm:$0xff]  ;;  %v1767_v63 = vld [vmem:[#allocation9 + $0xb8] sm:$0xff] }
 0x182   : > { %2784 = vmatpush1.bf16.msra.mxu0 %v2783_v8  ;;  %v2807_v8 = vpack.c.bf16 %v566_v58, %v560_v35  ;;  %2970 = vmatprep.subr.bf16.mxu1 %v2969_v6  ;;  %v608_v35 = vld [vmem:[#allocation6 + $0x4a0] sm:$0xff]  ;;  %v614_v58 = vld [vmem:[#allocation6 + $0x4d0] sm:$0xff]  ;;  %v2985_v6 = vpack.c.bf16 %v1767_v63, %v1765_v62 }
 0x183   : > { %2786 = vmatprep.subr.bf16.mxu0 %v2785_v9  ;;  %v572_v9 = vld [vmem:[#allocation6 + $0x380] sm:$0xff]  ;;  %2972 = vmatpush1.bf16.msra.mxu1 %v2971_v7  ;;  %v2987_v7 = vpack.c.bf16 %v1766_v5, %v1764_v2  ;;  %v1781_v62 = vld [vmem:[#allocation9 + $0x128] sm:$0xff]  ;;  %v1782_v5 = vld [vmem:[#allocation9 + $0x130] sm:$0xff] }
 0x184   : > { %v1783_v63 = vld [vmem:[#allocation9 + $0x138] sm:$0xff]  ;;  %v1780_v2 = vld [vmem:[#allocation9 + $0x120] sm:$0xff] }
 0x186   : > { %2788 = vmatpush1.bf16.msra.mxu0 %v2787_v17  ;;  %v1753_v17 = vld [vmem:[#allocation9 + $0x48] sm:$0xff] }
 0x187   : > { %2790 = vmatprep.subr.bf16.mxu0 %v2789_v18  ;;  %v1755_v18 = vld [vmem:[#allocation9 + $0x58] sm:$0xff] }
 0x188   : > { %v2973_v21 = vpack.c.bf16 %v1755_v18, %v1753_v17  ;;  %v1769_v17 = vld [vmem:[#allocation9 + $0xc8] sm:$0xff]  ;;  %v1771_v18 = vld [vmem:[#allocation9 + $0xd8] sm:$0xff] }
 0x18a   : > { %2792 = vmatpush1.bf16.msra.mxu0 %v2791_v24  ;;  %v2811_v24 = vpack.c.bf16 %v578_v10, %v572_v9  ;;  %2974 = vmatprep.subr.bf16.mxu1 %v2973_v21  ;;  %v620_v9 = vld [vmem:[#allocation6 + $0x500] sm:$0xff]  ;;  %v626_v10 = vld [vmem:[#allocation6 + $0x530] sm:$0xff]  ;;  %v2989_v21 = vpack.c.bf16 %v1771_v18, %v1769_v17  ;;  %v687_v18 = vld [vmem:[#allocation6 + $0x718] sm:$0xff] }
 0x18b   : > { %2794 = vmatprep.subr.bf16.mxu0 %v2793_v25  ;;  %v584_v25 = vld [vmem:[#allocation6 + $0x3e0] sm:$0xff]  ;;  %2976 = vmatpush1.bf16.msra.mxu1 %v2975_v23  ;;  %v2991_v23 = vpack.c.bf16 %v1770_v27, %v1768_v19 }
 0x18c   : > { %v1787_v17 = vld [vmem:[#allocation9 + $0x158] sm:$0xff]  ;;  %v1784_v27 = vld [vmem:[#allocation9 + $0x140] sm:$0xff] }
 0x18e   : > { %2796 = vmatpush1.bf16.msra.mxu0 %v2795_v33  ;;  %v1757_v33 = vld [vmem:[#allocation9 + $0x68] sm:$0xff] }
 0x18f   : > { %2798 = vmatprep.subr.bf16.mxu0 %v2797_v34  ;;  %v1759_v34 = vld [vmem:[#allocation9 + $0x78] sm:$0xff] }
 0x190   : > { %v2977_v39 = vpack.c.bf16 %v1759_v34, %v1757_v33  ;;  %v1773_v33 = vld [vmem:[#allocation9 + $0xe8] sm:$0xff]  ;;  %v1775_v34 = vld [vmem:[#allocation9 + $0xf8] sm:$0xff] }
 0x192   : > { %2800 = vmatpush1.bf16.msra.mxu0 %v2799_v41  ;;  %v2815_v41 = vpack.c.bf16 %v590_v29, %v584_v25  ;;  %2978 = vmatprep.subr.bf16.mxu1 %v2977_v39  ;;  %v632_v25 = vld [vmem:[#allocation6 + $0x560] sm:$0xff]  ;;  %v638_v29 = vld [vmem:[#allocation6 + $0x590] sm:$0xff]  ;;  %v2993_v39 = vpack.c.bf16 %v1775_v34, %v1773_v33 }
 0x193   : > { %2802 = vmatprep.subr.bf16.mxu0 %v2801_v46  ;;  %v2817_v46 = vpack.c.bf16 %v603_v32, %v597_v31  ;;  %2980 = vmatpush1.bf16.msra.mxu1 %v2979_v40  ;;  %v645_v31 = vld [vmem:[#allocation6 + $0x5c8] sm:$0xff]  ;;  %v651_v32 = vld [vmem:[#allocation6 + $0x5f8] sm:$0xff]  ;;  %v2995_v40 = vpack.c.bf16 %v1774_v38, %v1772_v37  ;;  %v680_v38 = vld [vmem:[#allocation6 + $0x6e0] sm:$0xff] }
 0x194   : > { %2982 = vmatprep.subr.bf16.mxu1 %v2981_v55  ;;  %v2997_v55 = vpack.c.bf16 %v1779_v51, %v1777_v50  ;;  %v1793_v33 = vld [vmem:[#allocation9 + $0x188] sm:$0xff]  ;;  %v1795_v34 = vld [vmem:[#allocation9 + $0x198] sm:$0xff] }
 0x195   : > { %v692_v51 = vld [vmem:[#allocation6 + $0x740] sm:$0xff] }
 0x196   : > { %2804 = vmatpush1.bf16.msra.mxu0 %v2803_v16  ;;  %v2819_v16 = vpack.c.bf16 %v602_v45, %v596_v42  ;;  %v644_v42 = vld [vmem:[#allocation6 + $0x5c0] sm:$0xff]  ;;  %v650_v45 = vld [vmem:[#allocation6 + $0x5f0] sm:$0xff] }
 0x197   : > { %2806 = vmatprep.subr.bf16.mxu0 %v2805_v59  ;;  %v2821_v59 = vpack.c.bf16 %v615_v49, %v609_v47  ;;  %2984 = vmatpush1.bf16.msra.mxu1 %v2983_v56  ;;  %v657_v47 = vld [vmem:[#allocation6 + $0x628] sm:$0xff]  ;;  %v663_v49 = vld [vmem:[#allocation6 + $0x658] sm:$0xff]  ;;  %v2999_v56 = vpack.c.bf16 %v1778_v53, %v1776_v52  ;;  %v698_v52 = vld [vmem:[#allocation6 + $0x770] sm:$0xff] }
 0x198   : > { %2986 = vmatprep.subr.bf16.mxu1 %v2985_v6  ;;  %v3001_v6 = vpack.c.bf16 %v1783_v63, %v1781_v62  ;;  %v705_v53 = vld [vmem:[#allocation6 + $0x7a8] sm:$0xff]  ;;  %v704_v63 = vld [vmem:[#allocation6 + $0x7a0] sm:$0xff] }
 0x19a   : > { %2808 = vmatpush1.bf16.msra.mxu0 %v2807_v8  ;;  %v2823_v8 = vpack.c.bf16 %v614_v58, %v608_v35  ;;  %v656_v35 = vld [vmem:[#allocation6 + $0x620] sm:$0xff]  ;;  %v662_v58 = vld [vmem:[#allocation6 + $0x650] sm:$0xff] }
 0x19b   : > { %2810 = vmatprep.subr.bf16.mxu0 %v2809_v11  ;;  %v2825_v11 = vpack.c.bf16 %v627_v61, %v621_v60  ;;  %2988 = vmatpush1.bf16.msra.mxu1 %v2987_v7  ;;  %v669_v60 = vld [vmem:[#allocation6 + $0x688] sm:$0xff]  ;;  %v675_v61 = vld [vmem:[#allocation6 + $0x6b8] sm:$0xff]  ;;  %v3003_v7 = vpack.c.bf16 %v1782_v5, %v1780_v2  ;;  %v710_v2 = vld [vmem:[#allocation6 + $0x7d0] sm:$0xff] }
 0x19c   : > { %2990 = vmatprep.subr.bf16.mxu1 %v2989_v21  ;;  %v1786_v21 = vld [vmem:[#allocation9 + $0x150] sm:$0xff]  ;;  %v717_v5 = vld [vmem:[#allocation6 + $0x808] sm:$0xff] }
 0x19e   : > { %2812 = vmatpush1.bf16.msra.mxu0 %v2811_v24  ;;  %v2827_v24 = vpack.c.bf16 %v626_v10, %v620_v9  ;;  %v668_v9 = vld [vmem:[#allocation6 + $0x680] sm:$0xff]  ;;  %v674_v10 = vld [vmem:[#allocation6 + $0x6b0] sm:$0xff] }
 0x19f   : > { %2814 = vmatprep.subr.bf16.mxu0 %v2813_v30  ;;  %v2829_v30 = vpack.c.bf16 %v639_v15, %v633_v12  ;;  %2992 = vmatpush1.bf16.msra.mxu1 %v2991_v23  ;;  %v681_v12 = vld [vmem:[#allocation6 + $0x6e8] sm:$0xff]  ;;  %v3007_v23 = vpack.c.bf16 %v1786_v21, %v1784_v27 }
 0x1a0   : > { %2994 = vmatprep.subr.bf16.mxu1 %v2993_v39  ;;  %v1785_v15 = vld [vmem:[#allocation9 + $0x148] sm:$0xff]  ;;  %v2845_v37 = vpack.c.bf16 %v687_v18, %v681_v12 }
 0x1a1   : > { %v3005_v19 = vpack.c.bf16 %v1787_v17, %v1785_v15  ;;  %v686_v39 = vld [vmem:[#allocation6 + $0x710] sm:$0xff]  ;;  %v716_v15 = vld [vmem:[#allocation6 + $0x800] sm:$0xff]  ;;  %v729_v18 = vld [vmem:[#allocation6 + $0x868] sm:$0xff] }
 0x1a2   : > { %2816 = vmatpush1.bf16.msra.mxu0 %v2815_v41  ;;  %v2831_v41 = vpack.c.bf16 %v638_v29, %v632_v25  ;;  %v1791_v25 = vld [vmem:[#allocation9 + $0x178] sm:$0xff]  ;;  %v1788_v29 = vld [vmem:[#allocation9 + $0x160] sm:$0xff]  ;;  %v722_v17 = vld [vmem:[#allocation6 + $0x830] sm:$0xff] }
 0x1a3   : > { %2818 = vmatprep.subr.bf16.mxu0 %v2817_v46  ;;  %v2833_v46 = vpack.c.bf16 %v651_v32, %v645_v31  ;;  %2996 = vmatpush1.bf16.msra.mxu1 %v2995_v40  ;;  %v1790_v32 = vld [vmem:[#allocation9 + $0x170] sm:$0xff]  ;;  %v693_v40 = vld [vmem:[#allocation6 + $0x748] sm:$0xff]  ;;  %v2859_v21 = vpack.c.bf16 %v722_v17, %v716_v15 }
 0x1a4   : > { %2998 = vmatprep.subr.bf16.mxu1 %v2997_v55  ;;  %v711_v55 = vld [vmem:[#allocation6 + $0x7d8] sm:$0xff] }
 0x1a5   : > { %v2853_v62 = vpack.c.bf16 %v711_v55, %v705_v53  ;;  %v765_v53 = vld [vmem:[#allocation6 + $0x988] sm:$0xff]  ;;  %v771_v55 = vld [vmem:[#allocation6 + $0x9b8] sm:$0xff] }
 0x1a6   : > { %2820 = vmatpush1.bf16.msra.mxu0 %v2819_v16  ;;  %v2835_v16 = vpack.c.bf16 %v650_v45, %v644_v42  ;;  %v3013_v42 = vpack.c.bf16 %v1795_v34, %v1793_v33  ;;  %v1792_v45 = vld [vmem:[#allocation9 + $0x180] sm:$0xff] }
 0x1a7   : > { %2822 = vmatprep.subr.bf16.mxu0 %v2821_v59  ;;  %v2837_v59 = vpack.c.bf16 %v663_v49, %v657_v47  ;;  %3000 = vmatpush1.bf16.msra.mxu1 %v2999_v56  ;;  %v2847_v47 = vpack.c.bf16 %v686_v39, %v680_v38  ;;  %v1799_v49 = vld [vmem:[#allocation9 + $0x1b8] sm:$0xff]  ;;  %v1804_v34 = vld [vmem:[#allocation9 + $0x1e0] sm:$0xff] }
 0x1a8   : > { %3002 = vmatprep.subr.bf16.mxu1 %v3001_v6  ;;  %v723_v6 = vld [vmem:[#allocation6 + $0x838] sm:$0xff] }
 0x1a9   : > { %v2857_v12 = vpack.c.bf16 %v723_v6, %v717_v5  ;;  %v789_v5 = vld [vmem:[#allocation6 + $0xa48] sm:$0xff]  ;;  %v795_v6 = vld [vmem:[#allocation6 + $0xa78] sm:$0xff] }
 0x1aa   : > { %2824 = vmatpush1.bf16.msra.mxu0 %v2823_v8  ;;  %v2839_v8 = vpack.c.bf16 %v662_v58, %v656_v35  ;;  %v1796_v35 = vld [vmem:[#allocation9 + $0x1a0] sm:$0xff]  ;;  %v1798_v58 = vld [vmem:[#allocation9 + $0x1b0] sm:$0xff] }
 0x1ab   : > { %2826 = vmatprep.subr.bf16.mxu0 %v2825_v11  ;;  %v2841_v11 = vpack.c.bf16 %v675_v61, %v669_v60  ;;  %3004 = vmatpush1.bf16.msra.mxu1 %v3003_v7  ;;  %v1801_v60 = vld [vmem:[#allocation9 + $0x1c8] sm:$0xff]  ;;  %v1803_v61 = vld [vmem:[#allocation9 + $0x1d8] sm:$0xff]  ;;  %v3019_v7 = vpack.c.bf16 %v1798_v58, %v1796_v35 }
 0x1ac   : > { %3006 = vmatprep.subr.bf16.mxu1 %v3005_v19  ;;  %v735_v19 = vld [vmem:[#allocation6 + $0x898] sm:$0xff]  ;;  %v764_v35 = vld [vmem:[#allocation6 + $0x980] sm:$0xff]  ;;  %v770_v58 = vld [vmem:[#allocation6 + $0x9b0] sm:$0xff] }
 0x1ae   : > { %2828 = vmatpush1.bf16.msra.mxu0 %v2827_v24  ;;  %v1789_v24 = vld [vmem:[#allocation9 + $0x168] sm:$0xff] }
 0x1af   : > { %2830 = vmatprep.subr.bf16.mxu0 %v2829_v30  ;;  %v2843_v30 = vpack.c.bf16 %v674_v10, %v668_v9  ;;  %v3009_v31 = vpack.c.bf16 %v1791_v25, %v1789_v24  ;;  %3008 = vmatpush1.bf16.msra.mxu1 %v3007_v23  ;;  %v1800_v9 = vld [vmem:[#allocation9 + $0x1c0] sm:$0xff]  ;;  %v1802_v10 = vld [vmem:[#allocation9 + $0x1d0] sm:$0xff]  ;;  %v2861_v25 = vpack.c.bf16 %v735_v19, %v729_v18 }
 0x1b0   : > { %v3023_v27 = vpack.c.bf16 %v1802_v10, %v1800_v9  ;;  %v728_v23 = vld [vmem:[#allocation6 + $0x860] sm:$0xff]  ;;  %v734_v24 = vld [vmem:[#allocation6 + $0x890] sm:$0xff] }
 0x1b1   : > { %3010 = vmatprep.subr.bf16.mxu1 %v3009_v31  ;;  %v1807_v31 = vld [vmem:[#allocation9 + $0x1f8] sm:$0xff]  ;;  %v2863_v39 = vpack.c.bf16 %v734_v24, %v728_v23  ;;  %v794_v10 = vld [vmem:[#allocation6 + $0xa70] sm:$0xff] }
 0x1b2   : > { %2832 = vmatpush1.bf16.msra.mxu0 %v2831_v41  ;;  %v699_v41 = vld [vmem:[#allocation6 + $0x778] sm:$0xff]  ;;  %v788_v9 = vld [vmem:[#allocation6 + $0xa40] sm:$0xff]  ;;  %v806_v19 = vld [vmem:[#allocation6 + $0xad0] sm:$0xff] }
 0x1b3   : > { %2834 = vmatprep.subr.bf16.mxu0 %v2833_v46  ;;  %v1794_v46 = vld [vmem:[#allocation9 + $0x190] sm:$0xff]  ;;  %v2849_v50 = vpack.c.bf16 %v699_v41, %v693_v40  ;;  %v740_v40 = vld [vmem:[#allocation6 + $0x8c0] sm:$0xff]  ;;  %v2883_v15 = vpack.c.bf16 %v794_v10, %v788_v9  ;;  %v897_v9 = vld [vmem:[#allocation6 + $0xda8] sm:$0xff] }
 0x1b4   : > { %v3015_v56 = vpack.c.bf16 %v1794_v46, %v1792_v45  ;;  %v1811_v45 = vld [vmem:[#allocation9 + $0x218] sm:$0xff]  ;;  %v753_v46 = vld [vmem:[#allocation6 + $0x928] sm:$0xff] }
 0x1b5   : > { %v800_v18 = vld [vmem:[#allocation6 + $0xaa0] sm:$0xff]  ;;  %v903_v10 = vld [vmem:[#allocation6 + $0xdd8] sm:$0xff] }
 0x1b6   : > { %2836 = vmatpush1.bf16.msra.mxu0 %v2835_v16  ;;  %v2887_v23 = vpack.c.bf16 %v806_v19, %v800_v18 }
 0x1b7   : > { %2838 = vmatprep.subr.bf16.mxu0 %v2837_v59  ;;  %v2851_v59 = vpack.c.bf16 %v698_v52, %v692_v51  ;;  %v752_v51 = vld [vmem:[#allocation6 + $0x920] sm:$0xff]  ;;  %v758_v52 = vld [vmem:[#allocation6 + $0x950] sm:$0xff] }
 0x1b9   : > { %1590 = vmatmul.mubr.f32.vlgmr.msra.gmra.mrb[2].mxu0 %v3917_v28  ;;  %v3011_v28 = vpack.c.bf16 %v1790_v32, %v1788_v29  ;;  %v741_v29 = vld [vmem:[#allocation6 + $0x8c8] sm:$0xff]  ;;  %v747_v32 = vld [vmem:[#allocation6 + $0x8f8] sm:$0xff] }
 0x1ba   : > { %2840 = vmatpush1.bf16.msra.mxu0 %v2839_v8  ;;  %1660 = vmatprep.mubr.f32.mxu0 %v3924_v44  ;;  %v1797_v44 = vld [vmem:[#allocation9 + $0x1a8] sm:$0xff]  ;;  %v3021_v8 = vpack.c.bf16 %v1803_v61, %v1801_v60  ;;  %v2865_v41 = vpack.c.bf16 %v747_v32, %v741_v29  ;;  %v783_v60 = vld [vmem:[#allocation6 + $0xa18] sm:$0xff]  ;;  %v2875_v61 = vpack.c.bf16 %v770_v58, %v764_v35 }
 0x1bb   : > { %2842 = vmatprep.subr.bf16.mxu0 %v2841_v11  ;;  %3012 = vmatpush1.bf16.msra.mxu1 %v3011_v28  ;;  %v3017_v16 = vpack.c.bf16 %v1799_v49, %v1797_v44  ;;  %v2855_v11 = vpack.c.bf16 %v710_v2, %v704_v63  ;;  %v746_v28 = vld [vmem:[#allocation6 + $0x8f0] sm:$0xff]  ;;  %v776_v63 = vld [vmem:[#allocation6 + $0x9e0] sm:$0xff]  ;;  %v873_v35 = vld [vmem:[#allocation6 + $0xce8] sm:$0xff] }
 0x1bc   : > { %3014 = vmatprep.subr.bf16.mxu1 %v3013_v42  ;;  %v1809_v42 = vld [vmem:[#allocation9 + $0x208] sm:$0xff]  ;;  %v2867_v49 = vpack.c.bf16 %v746_v28, %v740_v40  ;;  %v836_v28 = vld [vmem:[#allocation6 + $0xbc0] sm:$0xff]  ;;  %v879_v58 = vld [vmem:[#allocation6 + $0xd18] sm:$0xff] }
 0x1bd   : > { %v3029_v44 = vpack.c.bf16 %v1811_v45, %v1809_v42  ;;  %v782_v2 = vld [vmem:[#allocation6 + $0xa10] sm:$0xff]  ;;  %v849_v45 = vld [vmem:[#allocation6 + $0xc28] sm:$0xff] }
 0x1be   : > { %2844 = vmatpush1.bf16.msra.mxu0 %v2843_v30  ;;  %v1805_v30 = vld [vmem:[#allocation9 + $0x1e8] sm:$0xff] }
 0x1bf   : > { %2846 = vmatprep.subr.bf16.mxu0 %v2845_v37  ;;  %3016 = vmatpush1.bf16.msra.mxu1 %v3015_v56  ;;  %v3025_v33 = vpack.c.bf16 %v1807_v31, %v1805_v30  ;;  %v1806_v37 = vld [vmem:[#allocation9 + $0x1f0] sm:$0xff]  ;;  %v2871_v56 = vpack.c.bf16 %v758_v52, %v752_v51  ;;  %v825_v30 = vld [vmem:[#allocation6 + $0xb68] sm:$0xff] }
 0x1c0   : > { %3018 = vmatprep.subr.bf16.mxu1 %v3017_v16  ;;  %v3027_v38 = vpack.c.bf16 %v1806_v37, %v1804_v34  ;;  %v2873_v16 = vpack.c.bf16 %v771_v55, %v765_v53  ;;  %v818_v29 = vld [vmem:[#allocation6 + $0xb30] sm:$0xff]  ;;  %v831_v31 = vld [vmem:[#allocation6 + $0xb98] sm:$0xff]  ;;  %v824_v34 = vld [vmem:[#allocation6 + $0xb60] sm:$0xff] }
 0x1c1   : > { %v830_v37 = vld [vmem:[#allocation6 + $0xb90] sm:$0xff]  ;;  %v861_v51 = vld [vmem:[#allocation6 + $0xc88] sm:$0xff]  ;;  %v867_v52 = vld [vmem:[#allocation6 + $0xcb8] sm:$0xff] }
 0x1c2   : > { %2848 = vmatpush1.bf16.msra.mxu0 %v2847_v47  ;;  %v759_v47 = vld [vmem:[#allocation6 + $0x958] sm:$0xff]  ;;  %v2895_v40 = vpack.c.bf16 %v830_v37, %v824_v34  ;;  %v842_v42 = vld [vmem:[#allocation6 + $0xbf0] sm:$0xff]  ;;  %v2905_v55 = vpack.c.bf16 %v867_v52, %v861_v51  ;;  %v956_v51 = vld [vmem:[#allocation6 + $0xf80] sm:$0xff] }
 0x1c3   : > { %2850 = vmatprep.subr.bf16.mxu0 %v2849_v50  ;;  %3020 = vmatpush1.bf16.msra.mxu1 %v3019_v7  ;;  %v2869_v50 = vpack.c.bf16 %v759_v47, %v753_v46  ;;  %v2879_v7 = vpack.c.bf16 %v782_v2, %v776_v63  ;;  %v855_v46 = vld [vmem:[#allocation6 + $0xc58] sm:$0xff]  ;;  %v2899_v47 = vpack.c.bf16 %v842_v42, %v836_v28  ;;  %v885_v63 = vld [vmem:[#allocation6 + $0xd48] sm:$0xff]  ;;  %v962_v52 = vld [vmem:[#allocation6 + $0xfb0] sm:$0xff] }
 0x1c4   : > { %3022 = vmatprep.subr.bf16.mxu1 %v3021_v8  ;;  %v2881_v8 = vpack.c.bf16 %v795_v6, %v789_v5  ;;  %v891_v2 = vld [vmem:[#allocation6 + $0xd78] sm:$0xff] }
 0x1c5   : > { %v2913_v6 = vpack.c.bf16 %v891_v2, %v885_v63  ;;  %v980_v63 = vld [vmem:[#allocation6 + $0x1040] sm:$0xff]  ;;  %v986_v2 = vld [vmem:[#allocation6 + $0x1070] sm:$0xff] }
 0x1c6   : > { %2852 = vmatpush1.bf16.msra.mxu0 %v2851_v59  ;;  %v777_v59 = vld [vmem:[#allocation6 + $0x9e8] sm:$0xff] }
 0x1c7   : > { %2854 = vmatprep.subr.bf16.mxu0 %v2853_v62  ;;  %3024 = vmatpush1.bf16.msra.mxu1 %v3023_v27  ;;  %v2877_v62 = vpack.c.bf16 %v783_v60, %v777_v59  ;;  %v813_v27 = vld [vmem:[#allocation6 + $0xb08] sm:$0xff]  ;;  %v2909_v60 = vpack.c.bf16 %v879_v58, %v873_v35  ;;  %v968_v35 = vld [vmem:[#allocation6 + $0xfe0] sm:$0xff]  ;;  %v974_v58 = vld [vmem:[#allocation6 + $0x1010] sm:$0xff] }
 0x1c8   : > { %3026 = vmatprep.subr.bf16.mxu1 %v3025_v33  ;;  %v2893_v33 = vpack.c.bf16 %v831_v31, %v825_v30  ;;  %v920_v30 = vld [vmem:[#allocation6 + $0xe60] sm:$0xff]  ;;  %v926_v31 = vld [vmem:[#allocation6 + $0xe90] sm:$0xff] }
 0x1c9   : > { %v2927_v34 = vpack.c.bf16 %v926_v31, %v920_v30 }
 0x1ca   : > { %2856 = vmatpush1.bf16.msra.mxu0 %v2855_v11  ;;  %v801_v11 = vld [vmem:[#allocation6 + $0xaa8] sm:$0xff] }
 0x1cb   : > { %2858 = vmatprep.subr.bf16.mxu0 %v2857_v12  ;;  %3028 = vmatpush1.bf16.msra.mxu1 %v3027_v38  ;;  %v807_v12 = vld [vmem:[#allocation6 + $0xad8] sm:$0xff]  ;;  %v837_v38 = vld [vmem:[#allocation6 + $0xbc8] sm:$0xff] }
 0x1cc   : > { %3030 = vmatprep.subr.bf16.mxu1 %v3029_v44  ;;  %v2885_v17 = vpack.c.bf16 %v807_v12, %v801_v11  ;;  %v2901_v44 = vpack.c.bf16 %v855_v46, %v849_v45  ;;  %v2917_v11 = vpack.c.bf16 %v903_v10, %v897_v9  ;;  %v896_v12 = vld [vmem:[#allocation6 + $0xda0] sm:$0xff]  ;;  %v950_v46 = vld [vmem:[#allocation6 + $0xf50] sm:$0xff] }
 0x1cd   : > { %v944_v45 = vld [vmem:[#allocation6 + $0xf20] sm:$0xff]  ;;  %v998_v10 = vld [vmem:[#allocation6 + $0x10d0] sm:$0xff] }
 0x1ce   : > { %2860 = vmatpush1.bf16.msra.mxu0 %v2859_v21  ;;  %v819_v21 = vld [vmem:[#allocation6 + $0xb38] sm:$0xff]  ;;  %v992_v9 = vld [vmem:[#allocation6 + $0x10a0] sm:$0xff] }
 0x1cf   : > { %2862 = vmatprep.subr.bf16.mxu0 %v2861_v25  ;;  %v2889_v24 = vpack.c.bf16 %v819_v21, %v813_v27  ;;  %v812_v25 = vld [vmem:[#allocation6 + $0xb00] sm:$0xff]  ;;  %v914_v21 = vld [vmem:[#allocation6 + $0xe30] sm:$0xff] }
 0x1d0   : > { %v2891_v32 = vpack.c.bf16 %v818_v29, %v812_v25  ;;  %v908_v27 = vld [vmem:[#allocation6 + $0xe00] sm:$0xff] }
 0x1d1   : > { %v2923_v25 = vpack.c.bf16 %v914_v21, %v908_v27 }
 0x1d2   : > { %2864 = vmatpush1.bf16.msra.mxu0 %v2863_v39  ;;  %v843_v39 = vld [vmem:[#allocation6 + $0xbf8] sm:$0xff] }
 0x1d3   : > { %2866 = vmatprep.subr.bf16.mxu0 %v2865_v41  ;;  %v2897_v41 = vpack.c.bf16 %v843_v39, %v837_v38  ;;  %v932_v38 = vld [vmem:[#allocation6 + $0xec0] sm:$0xff]  ;;  %v938_v39 = vld [vmem:[#allocation6 + $0xef0] sm:$0xff] }
 0x1d4   : > { %v2931_v28 = vpack.c.bf16 %v938_v39, %v932_v38 }
 0x1d6   : > { %2868 = vmatpush1.bf16.msra.mxu0 %v2867_v49  ;;  %v848_v49 = vld [vmem:[#allocation6 + $0xc20] sm:$0xff] }
 0x1d7   : > { %2870 = vmatprep.subr.bf16.mxu0 %v2869_v50  ;;  %v854_v50 = vld [vmem:[#allocation6 + $0xc50] sm:$0xff] }
 0x1d8   : > { %v2903_v53 = vpack.c.bf16 %v854_v50, %v848_v49  ;;  %v2935_v49 = vpack.c.bf16 %v950_v46, %v944_v45 }
 0x1da   : > { %2872 = vmatpush1.bf16.msra.mxu0 %v2871_v56  ;;  %v860_v56 = vld [vmem:[#allocation6 + $0xc80] sm:$0xff] }
 0x1db   : > { %2874 = vmatprep.subr.bf16.mxu0 %v2873_v16  ;;  %v866_v16 = vld [vmem:[#allocation6 + $0xcb0] sm:$0xff] }
 0x1dc   : > { %v2907_v59 = vpack.c.bf16 %v866_v16, %v860_v56  ;;  %v2939_v56 = vpack.c.bf16 %v962_v52, %v956_v51  ;;  %v1815_v51 = vld [vmem:[#allocation9 + $0x238] sm:$0xff] }
 0x1de   : > { %2876 = vmatpush1.bf16.msra.mxu0 %v2875_v61  ;;  %v872_v61 = vld [vmem:[#allocation6 + $0xce0] sm:$0xff] }
 0x1df   : > { %2878 = vmatprep.subr.bf16.mxu0 %v2877_v62  ;;  %v878_v62 = vld [vmem:[#allocation6 + $0xd10] sm:$0xff] }
 0x1e0   : > { %v2911_v5 = vpack.c.bf16 %v878_v62, %v872_v61  ;;  %v2943_v61 = vpack.c.bf16 %v974_v58, %v968_v35  ;;  %v1812_v35 = vld [vmem:[#allocation9 + $0x220] sm:$0xff]  ;;  %v1814_v58 = vld [vmem:[#allocation9 + $0x230] sm:$0xff] }
 0x1e2   : > { %2880 = vmatpush1.bf16.msra.mxu0 %v2879_v7  ;;  %v884_v7 = vld [vmem:[#allocation6 + $0xd40] sm:$0xff] }
 0x1e3   : > { %2882 = vmatprep.subr.bf16.mxu0 %v2881_v8  ;;  %v890_v8 = vld [vmem:[#allocation6 + $0xd70] sm:$0xff] }
 0x1e6   : > { %2884 = vmatpush1.bf16.msra.mxu0 %v2883_v15  ;;  %v909_v15 = vld [vmem:[#allocation6 + $0xe08] sm:$0xff] }
 0x1e7   : > { %2886 = vmatprep.subr.bf16.mxu0 %v2885_v17  ;;  %v915_v17 = vld [vmem:[#allocation6 + $0xe38] sm:$0xff] }
 0x1e8   : > { %v2921_v19 = vpack.c.bf16 %v915_v17, %v909_v15  ;;  %v1004_v15 = vld [vmem:[#allocation6 + $0x1100] sm:$0xff]  ;;  %v1010_v17 = vld [vmem:[#allocation6 + $0x1130] sm:$0xff] }
 0x1e9   : > { %v2955_v27 = vpack.c.bf16 %v1010_v17, %v1004_v15  ;;  %v1826_v15 = vld [vmem:[#allocation9 + $0x290] sm:$0xff]  ;;  %v1829_v17 = vld [vmem:[#allocation9 + $0x2a8] sm:$0xff] }
 0x1ea   : > { %2888 = vmatpush1.bf16.msra.mxu0 %v2887_v23  ;;  %v921_v23 = vld [vmem:[#allocation6 + $0xe68] sm:$0xff] }
 0x1eb   : > { %2890 = vmatprep.subr.bf16.mxu0 %v2889_v24  ;;  %v927_v24 = vld [vmem:[#allocation6 + $0xe98] sm:$0xff] }
 0x1ec   : > { %v2925_v29 = vpack.c.bf16 %v927_v24, %v921_v23  ;;  %v1016_v23 = vld [vmem:[#allocation6 + $0x1160] sm:$0xff]  ;;  %v1022_v24 = vld [vmem:[#allocation6 + $0x1190] sm:$0xff] }
 0x1ed   : > { %v2959_v30 = vpack.c.bf16 %v1022_v24, %v1016_v23  ;;  %v1830_v23 = vld [vmem:[#allocation9 + $0x2b0] sm:$0xff]  ;;  %v1833_v24 = vld [vmem:[#allocation9 + $0x2c8] sm:$0xff] }
 0x1ee   : > { %2892 = vmatpush1.bf16.msra.mxu0 %v2891_v32  ;;  %v933_v32 = vld [vmem:[#allocation6 + $0xec8] sm:$0xff] }
 0x1ef   : > { %2894 = vmatprep.subr.bf16.mxu0 %v2893_v33  ;;  %v939_v33 = vld [vmem:[#allocation6 + $0xef8] sm:$0xff] }
 0x1f0   : > { %v2929_v37 = vpack.c.bf16 %v939_v33, %v933_v32  ;;  %v1028_v32 = vld [vmem:[#allocation6 + $0x11c0] sm:$0xff]  ;;  %v1034_v33 = vld [vmem:[#allocation6 + $0x11f0] sm:$0xff] }
 0x1f2   : > { %2896 = vmatpush1.bf16.msra.mxu0 %v2895_v40  ;;  %v945_v40 = vld [vmem:[#allocation6 + $0xf28] sm:$0xff] }
 0x1f3   : > { %2898 = vmatprep.subr.bf16.mxu0 %v2897_v41  ;;  %v951_v41 = vld [vmem:[#allocation6 + $0xf58] sm:$0xff] }
 0x1f4   : > { %v2933_v42 = vpack.c.bf16 %v951_v41, %v945_v40 }
 0x1f6   : > { %2900 = vmatpush1.bf16.msra.mxu0 %v2899_v47  ;;  %v957_v47 = vld [vmem:[#allocation6 + $0xf88] sm:$0xff] }
 0x1f7   : > { %2902 = vmatprep.subr.bf16.mxu0 %v2901_v44  ;;  %v963_v44 = vld [vmem:[#allocation6 + $0xfb8] sm:$0xff] }
 0x1f8   : > { %v2937_v50 = vpack.c.bf16 %v963_v44, %v957_v47  ;;  %v1808_v47 = vld [vmem:[#allocation9 + $0x200] sm:$0xff] }
 0x1f9   : > { %1661 = vmatmul.mubr.f32.vlgmr.msra.gmra.mrb[2].mxu0 %v3935_v4  ;;  %v2915_v4 = vpack.c.bf16 %v890_v8, %v884_v7  ;;  %v2947_v7 = vpack.c.bf16 %v986_v2, %v980_v63  ;;  %v1818_v63 = vld [vmem:[#allocation9 + $0x250] sm:$0xff]  ;;  %v1821_v2 = vld [vmem:[#allocation9 + $0x268] sm:$0xff] }
 0x1fa   : > { %2904 = vmatpush1.bf16.msra.mxu0 %v2903_v53  ;;  %1731 = vmatprep.mubr.f32.mxu0 %v3940_v20  ;;  %v902_v20 = vld [vmem:[#allocation6 + $0xdd0] sm:$0xff]  ;;  %v969_v53 = vld [vmem:[#allocation6 + $0xfe8] sm:$0xff] }
 0x1fb   : > { %2906 = vmatprep.subr.bf16.mxu0 %v2905_v55  ;;  %v2919_v18 = vpack.c.bf16 %v902_v20, %v896_v12  ;;  %v975_v55 = vld [vmem:[#allocation6 + $0x1018] sm:$0xff]  ;;  %v2951_v12 = vpack.c.bf16 %v998_v10, %v992_v9  ;;  %v1825_v10 = vld [vmem:[#allocation9 + $0x288] sm:$0xff] }
 0x1fc   : > { %v2941_v16 = vpack.c.bf16 %v975_v55, %v969_v53  ;;  %v1822_v9 = vld [vmem:[#allocation9 + $0x270] sm:$0xff] }
 0x1fe   : > { %2908 = vmatpush1.bf16.msra.mxu0 %v2907_v59  ;;  %v981_v59 = vld [vmem:[#allocation6 + $0x1048] sm:$0xff] }
 0x1ff   : > { %2910 = vmatprep.subr.bf16.mxu0 %v2909_v60  ;;  %v987_v60 = vld [vmem:[#allocation6 + $0x1078] sm:$0xff] }
 0x200   : > { %v2945_v62 = vpack.c.bf16 %v987_v60, %v981_v59  ;;  %v1819_v59 = vld [vmem:[#allocation9 + $0x258] sm:$0xff]  ;;  %v3035_v60 = vpack.c.bf16 %v1814_v58, %v1812_v35 }
 0x202   : > { %2912 = vmatpush1.bf16.msra.mxu0 %v2911_v5  ;;  %v993_v5 = vld [vmem:[#allocation6 + $0x10a8] sm:$0xff] }
 0x203   : > { %2914 = vmatprep.subr.bf16.mxu0 %v2913_v6  ;;  %v999_v6 = vld [vmem:[#allocation6 + $0x10d8] sm:$0xff] }
 0x204   : > { %v2949_v8 = vpack.c.bf16 %v999_v6, %v993_v5  ;;  %v1823_v5 = vld [vmem:[#allocation9 + $0x278] sm:$0xff] }
 0x206   : > { %2916 = vmatpush1.bf16.msra.mxu0 %v2915_v4  ;;  %v1005_v4 = vld [vmem:[#allocation6 + $0x1108] sm:$0xff] }
 0x207   : > { %2918 = vmatprep.subr.bf16.mxu0 %v2917_v11  ;;  %v1011_v11 = vld [vmem:[#allocation6 + $0x1138] sm:$0xff] }
 0x208   : > { %v2953_v20 = vpack.c.bf16 %v1011_v11, %v1005_v4  ;;  %v1827_v4 = vld [vmem:[#allocation9 + $0x298] sm:$0xff] }
 0x20a   : > { %2920 = vmatpush1.bf16.msra.mxu0 %v2919_v18  ;;  %v1017_v18 = vld [vmem:[#allocation6 + $0x1168] sm:$0xff] }
 0x20b   : > { %2922 = vmatprep.subr.bf16.mxu0 %v2921_v19  ;;  %v1023_v19 = vld [vmem:[#allocation6 + $0x1198] sm:$0xff] }
 0x20c   : > { %v2957_v21 = vpack.c.bf16 %v1023_v19, %v1017_v18  ;;  %v1831_v18 = vld [vmem:[#allocation9 + $0x2b8] sm:$0xff] }
 0x20e   : > { %2924 = vmatpush1.bf16.msra.mxu0 %v2923_v25  ;;  %v1029_v25 = vld [vmem:[#allocation6 + $0x11c8] sm:$0xff] }
 0x20f   : > { %2926 = vmatprep.subr.bf16.mxu0 %v2925_v29  ;;  %v1035_v29 = vld [vmem:[#allocation6 + $0x11f8] sm:$0xff] }
 0x210   : > { %v2961_v31 = vpack.c.bf16 %v1035_v29, %v1029_v25  ;;  %v1835_v25 = vld [vmem:[#allocation9 + $0x2d8] sm:$0xff] }
 0x212   : > { %2928 = vmatpush1.bf16.msra.mxu0 %v2927_v34  ;;  %v2963_v34 = vpack.c.bf16 %v1034_v33, %v1028_v32  ;;  %v1834_v32 = vld [vmem:[#allocation9 + $0x2d0] sm:$0xff]  ;;  %v1837_v33 = vld [vmem:[#allocation9 + $0x2e8] sm:$0xff] }
 0x213   : > { %2930 = vmatprep.subr.bf16.mxu0 %v2929_v37  ;;  %v3960_v37 = vld [vmem:[#allocation8] sm:$0x3f] }
 0x214   : > { %v1072_v38 = vrot.slane %v3960_v37, %v3906_v14  ;;  %v1076_v39 = vrot.slane %v3960_v37, %v3903_v13  ;;  %v1084_v40 = vrot.slane %v3960_v37, %v1052_v26  ;;  %v1817_v26 = vld [vmem:[#allocation9 + $0x248] sm:$0xff] }
 0x216   : > { %2932 = vmatpush1.bf16.msra.mxu0 %v2931_v28 }
 0x217   : > { %2934 = vmatprep.subr.bf16.mxu0 %v2933_v42 }
 0x21a   : > { %2936 = vmatpush1.bf16.msra.mxu0 %v2935_v49 }
 0x21b   : > { %2938 = vmatprep.subr.bf16.mxu0 %v2937_v50  ;;  %v1813_v50 = vld [vmem:[#allocation9 + $0x228] sm:$0xff] }
 0x21e   : > { %2940 = vmatpush1.bf16.msra.mxu0 %v2939_v56 }
 0x21f   : > { %2942 = vmatprep.subr.bf16.mxu0 %v2941_v16  ;;  %v3033_v16 = vpack.c.bf16 %v1815_v51, %v1813_v50  ;;  %v1847_v50 = vld [vmem:[#allocation9 + $0x338] sm:$0xff] }
 0x222   : > { %2944 = vmatpush1.bf16.msra.mxu0 %v2943_v61  ;;  %v3037_v61 = vpack.c.bf16 %v1819_v59, %v1817_v26  ;;  %v1848_v26 = vld [vmem:[#allocation9 + $0x340] sm:$0xff]  ;;  %v1850_v59 = vld [vmem:[#allocation9 + $0x350] sm:$0xff] }
 0x223   : > { %2946 = vmatprep.subr.bf16.mxu0 %v2945_v62  ;;  %v1816_v62 = vld [vmem:[#allocation9 + $0x240] sm:$0xff] }
 0x224   : > { %v3039_v6 = vpack.c.bf16 %v1818_v63, %v1816_v62  ;;  %v3071_v62 = vpack.c.bf16 %v1850_v59, %v1848_v26  ;;  %v1887_v26 = vld [vmem:[#allocation9 + $0x478] sm:$0xff] }
 0x226   : > { %2948 = vmatpush1.bf16.msra.mxu0 %v2947_v7  ;;  %v3041_v7 = vpack.c.bf16 %v1823_v5, %v1821_v2  ;;  %v1852_v2 = vld [vmem:[#allocation9 + $0x360] sm:$0xff]  ;;  %v1854_v5 = vld [vmem:[#allocation9 + $0x370] sm:$0xff] }
 0x227   : > { %2950 = vmatprep.subr.bf16.mxu0 %v2949_v8  ;;  %v1820_v8 = vld [vmem:[#allocation9 + $0x260] sm:$0xff] }
 0x228   : > { %v3043_v11 = vpack.c.bf16 %v1822_v9, %v1820_v8  ;;  %v3075_v8 = vpack.c.bf16 %v1854_v5, %v1852_v2  ;;  %v1891_v2 = vld [vmem:[#allocation9 + $0x498] sm:$0xff] }
 0x22a   : > { %2952 = vmatpush1.bf16.msra.mxu0 %v2951_v12  ;;  %v3045_v12 = vpack.c.bf16 %v1827_v4, %v1825_v10  ;;  %v1856_v10 = vld [vmem:[#allocation9 + $0x380] sm:$0xff]  ;;  %v1858_v4 = vld [vmem:[#allocation9 + $0x390] sm:$0xff] }
 0x22b   : > { %2954 = vmatprep.subr.bf16.mxu0 %v2953_v20  ;;  %v1824_v20 = vld [vmem:[#allocation9 + $0x280] sm:$0xff] }
 0x22c   : > { %v3047_v19 = vpack.c.bf16 %v1826_v15, %v1824_v20  ;;  %v3079_v20 = vpack.c.bf16 %v1858_v4, %v1856_v10  ;;  %v1895_v10 = vld [vmem:[#allocation9 + $0x4b8] sm:$0xff] }
 0x22e   : > { %2956 = vmatpush1.bf16.msra.mxu0 %v2955_v27  ;;  %v3049_v27 = vpack.c.bf16 %v1831_v18, %v1829_v17  ;;  %v1860_v17 = vld [vmem:[#allocation9 + $0x3a0] sm:$0xff]  ;;  %v1862_v18 = vld [vmem:[#allocation9 + $0x3b0] sm:$0xff] }
 0x22f   : > { %2958 = vmatprep.subr.bf16.mxu0 %v2957_v21  ;;  %v1828_v21 = vld [vmem:[#allocation9 + $0x2a0] sm:$0xff] }
 0x230   : > { %v3051_v29 = vpack.c.bf16 %v1830_v23, %v1828_v21  ;;  %v3083_v21 = vpack.c.bf16 %v1862_v18, %v1860_v17  ;;  %v1899_v17 = vld [vmem:[#allocation9 + $0x4d8] sm:$0xff] }
 0x232   : > { %2960 = vmatpush1.bf16.msra.mxu0 %v2959_v30  ;;  %v3053_v30 = vpack.c.bf16 %v1835_v25, %v1833_v24  ;;  %v1864_v24 = vld [vmem:[#allocation9 + $0x3c0] sm:$0xff]  ;;  %v1866_v25 = vld [vmem:[#allocation9 + $0x3d0] sm:$0xff] }
 0x233   : > { %2962 = vmatprep.subr.bf16.mxu0 %v2961_v31  ;;  %v1832_v31 = vld [vmem:[#allocation9 + $0x2c0] sm:$0xff] }
 0x236   : > { %2964 = vmatpush1.bf16.msra.mxu0 %v2963_v34  ;;  %v1839_v34 = vld [vmem:[#allocation9 + $0x2f8] sm:$0xff] }
 0x239   : > { %1732 = vmatmul.mubr.f32.vlgmr.msra.gmra.mrb[2].mxu0 %v3950_v57  ;;  %v1810_v57 = vld [vmem:[#allocation9 + $0x210] sm:$0xff] }
 0x23a   : > { %v3031_v55 = vpack.c.bf16 %v1810_v57, %v1808_v47  ;;  %v1840_v57 = vld [vmem:[#allocation9 + $0x300] sm:$0xff] }
 0x24c   : > { %v1307_v41 = vpop.f32.mrb[0].mxu0  ;;  %v3969_v28 = vpop.f32.mrb[0].mxu1 }
 0x24d   : > { %v3157_v42 = vadd.f32 %v1307_v41, %v1072_v38  ;;  %v1309_v45 = vpop.f32.mrb[1].mxu0  ;;  %v1522_v46 = vpop.f32.mrb[1].mxu1  ;;  %v3055_v38 = vpack.c.bf16 %v1834_v32, %v1832_v31  ;;  %v1838_v41 = vld [vmem:[#allocation9 + $0x2f0] sm:$0xff]  ;;  %v3087_v31 = vpack.c.bf16 %v1866_v25, %v1864_v24  ;;  %v1080_v32 = vrot.slane %v3960_v37, %v1048_v54  ;;  %v1903_v24 = vld [vmem:[#allocation9 + $0x4f8] sm:$0xff] }
 0x24e   : > { %v3158_v44 = vadd.f32 %v1309_v45, %v1076_v39  ;;  %v3160_v49 = vadd.f32 %v1522_v46, %v1084_v40  ;;  %v3057_v39 = vpack.c.bf16 %v1839_v34, %v1837_v33  ;;  %v1836_v40 = vld [vmem:[#allocation9 + $0x2e0] sm:$0xff]  ;;  %v1843_v45 = vld [vmem:[#allocation9 + $0x318] sm:$0xff] }
 0x24f   : > { %v1738_v56 = vmax.f32 %v3157_v42, 0.0  ;;  %v1841_v42 = vld [vmem:[#allocation9 + $0x308] sm:$0xff]  ;;  %v3059_v46 = vpack.c.bf16 %v1838_v41, %v1836_v40  ;;  %v1868_v34 = vld [vmem:[#allocation9 + $0x3e0] sm:$0xff]  ;;  %v1875_v40 = vld [vmem:[#allocation9 + $0x418] sm:$0xff] }
 0x250   : > { %v1739_v52 = vmax.f32 %v3158_v44, 0.0  ;;  %v1741_v53 = vmax.f32 %v3160_v49, 0.0  ;;  %v3061_v47 = vpack.c.bf16 %v1843_v45, %v1841_v42  ;;  %v1842_v44 = vld [vmem:[#allocation9 + $0x310] sm:$0xff]  ;;  %v1845_v49 = vld [vmem:[#allocation9 + $0x328] sm:$0xff]  ;;  %v3159_v42 = vadd.f32 %v3969_v28, %v1080_v32 }
 0x251   : > { %v3063_v51 = vpack.c.bf16 %v1842_v44, %v1840_v57  ;;  %v1877_v57 = vld [vmem:[#allocation9 + $0x428] sm:$0xff]  ;;  %v1879_v44 = vld [vmem:[#allocation9 + $0x438] sm:$0xff] }
 0x252   : > { %2012 = vmatprep.mubr.f32.mxu1 %v1739_v52  ;;  %v3065_v52 = vpack.c.bf16 %v1847_v50, %v1845_v49  ;;  %v1740_v50 = vmax.f32 %v3159_v42, 0.0  ;;  %v3097_v54 = vpack.c.bf16 %v1879_v44, %v1877_v57  ;;  %v1905_v32 = vld [vmem:[#allocation9 + $0x508] sm:$0xff]  ;;  %v1911_v42 = vld [vmem:[#allocation9 + $0x538] sm:$0xff]  ;;  %v1910_v57 = vld [vmem:[#allocation9 + $0x530] sm:$0xff] }
 0x253   : > { %2013 = vmatmul.mubr.f32.vlgmr.msra.gmra.mrb[2].mxu1 %v1738_v56  ;;  %v1849_v56 = vld [vmem:[#allocation9 + $0x348] sm:$0xff] }
 0x254   : > { %3032 = vmatpush1.bf16.msra.mxu1 %v3031_v55  ;;  %2083 = vmatprep.mubr.f32.mxu1 %v1741_v53  ;;  %v1844_v53 = vld [vmem:[#allocation9 + $0x320] sm:$0xff]  ;;  %v1846_v55 = vld [vmem:[#allocation9 + $0x330] sm:$0xff]  ;;  %v1913_v44 = vld [vmem:[#allocation9 + $0x548] sm:$0xff] }
 0x255   : > { %3034 = vmatprep.subr.bf16.mxu1 %v3033_v16  ;;  %v1851_v16 = vld [vmem:[#allocation9 + $0x358] sm:$0xff]  ;;  %v3067_v35 = vpack.c.bf16 %v1846_v55, %v1844_v53  ;;  %v1881_v53 = vld [vmem:[#allocation9 + $0x448] sm:$0xff] }
 0x256   : > { %v3069_v58 = vpack.c.bf16 %v1851_v16, %v1849_v56  ;;  %v1883_v55 = vld [vmem:[#allocation9 + $0x458] sm:$0xff]  ;;  %v1880_v16 = vld [vmem:[#allocation9 + $0x440] sm:$0xff] }
 0x257   : > { %v3101_v28 = vpack.c.bf16 %v1883_v55, %v1881_v53  ;;  %v1917_v53 = vld [vmem:[#allocation9 + $0x568] sm:$0xff]  ;;  %v1919_v55 = vld [vmem:[#allocation9 + $0x578] sm:$0xff] }
 0x258   : > { %3036 = vmatpush1.bf16.msra.mxu1 %v3035_v60  ;;  %v1853_v60 = vld [vmem:[#allocation9 + $0x368] sm:$0xff] }
 0x259   : > { %3038 = vmatprep.subr.bf16.mxu1 %v3037_v61  ;;  %v1855_v61 = vld [vmem:[#allocation9 + $0x378] sm:$0xff] }
 0x25a   : > { %v3073_v63 = vpack.c.bf16 %v1855_v61, %v1853_v60  ;;  %v1884_v61 = vld [vmem:[#allocation9 + $0x460] sm:$0xff] }
 0x25c   : > { %3040 = vmatpush1.bf16.msra.mxu1 %v3039_v6  ;;  %v1857_v6 = vld [vmem:[#allocation9 + $0x388] sm:$0xff] }
 0x25d   : > { %3042 = vmatprep.subr.bf16.mxu1 %v3041_v7  ;;  %v1859_v7 = vld [vmem:[#allocation9 + $0x398] sm:$0xff] }
 0x25e   : > { %v3077_v9 = vpack.c.bf16 %v1859_v7, %v1857_v6  ;;  %v1888_v7 = vld [vmem:[#allocation9 + $0x480] sm:$0xff] }
 0x260   : > { %3044 = vmatpush1.bf16.msra.mxu1 %v3043_v11  ;;  %v1861_v11 = vld [vmem:[#allocation9 + $0x3a8] sm:$0xff] }
 0x261   : > { %3046 = vmatprep.subr.bf16.mxu1 %v3045_v12  ;;  %v1863_v12 = vld [vmem:[#allocation9 + $0x3b8] sm:$0xff] }
 0x262   : > { %v3081_v15 = vpack.c.bf16 %v1863_v12, %v1861_v11  ;;  %v1892_v12 = vld [vmem:[#allocation9 + $0x4a0] sm:$0xff] }
 0x264   : > { %3048 = vmatpush1.bf16.msra.mxu1 %v3047_v19  ;;  %v1865_v19 = vld [vmem:[#allocation9 + $0x3c8] sm:$0xff] }
 0x265   : > { %3050 = vmatprep.subr.bf16.mxu1 %v3049_v27  ;;  %v1867_v27 = vld [vmem:[#allocation9 + $0x3d8] sm:$0xff] }
 0x266   : > { %v3085_v23 = vpack.c.bf16 %v1867_v27, %v1865_v19  ;;  %v1896_v27 = vld [vmem:[#allocation9 + $0x4c0] sm:$0xff] }
 0x268   : > { %3052 = vmatpush1.bf16.msra.mxu1 %v3051_v29  ;;  %v1869_v29 = vld [vmem:[#allocation9 + $0x3e8] sm:$0xff] }
 0x269   : > { %3054 = vmatprep.subr.bf16.mxu1 %v3053_v30  ;;  %v1871_v30 = vld [vmem:[#allocation9 + $0x3f8] sm:$0xff] }
 0x26a   : > { %v3089_v33 = vpack.c.bf16 %v1871_v30, %v1869_v29  ;;  %v1900_v30 = vld [vmem:[#allocation9 + $0x4e0] sm:$0xff] }
 0x26c   : > { %3056 = vmatpush1.bf16.msra.mxu1 %v3055_v38  ;;  %v1870_v38 = vld [vmem:[#allocation9 + $0x3f0] sm:$0xff] }
 0x26d   : > { %3058 = vmatprep.subr.bf16.mxu1 %v3057_v39  ;;  %v1873_v39 = vld [vmem:[#allocation9 + $0x408] sm:$0xff]  ;;  %v3091_v41 = vpack.c.bf16 %v1870_v38, %v1868_v34 }
 0x26e   : > { %v3093_v45 = vpack.c.bf16 %v1875_v40, %v1873_v39  ;;  %v1904_v39 = vld [vmem:[#allocation9 + $0x500] sm:$0xff]  ;;  %v1906_v40 = vld [vmem:[#allocation9 + $0x510] sm:$0xff] }
 0x270   : > { %3060 = vmatpush1.bf16.msra.mxu1 %v3059_v46  ;;  %v1872_v46 = vld [vmem:[#allocation9 + $0x400] sm:$0xff] }
 0x271   : > { %3062 = vmatprep.subr.bf16.mxu1 %v3061_v47  ;;  %v1874_v47 = vld [vmem:[#allocation9 + $0x410] sm:$0xff] }
 0x272   : > { %v3095_v49 = vpack.c.bf16 %v1874_v47, %v1872_v46  ;;  %v1908_v47 = vld [vmem:[#allocation9 + $0x520] sm:$0xff] }
 0x274   : > { %3064 = vmatpush1.bf16.msra.mxu1 %v3063_v51  ;;  %v1876_v51 = vld [vmem:[#allocation9 + $0x420] sm:$0xff] }
 0x275   : > { %3066 = vmatprep.subr.bf16.mxu1 %v3065_v52  ;;  %v1878_v52 = vld [vmem:[#allocation9 + $0x430] sm:$0xff] }
 0x276   : > { %v3099_v56 = vpack.c.bf16 %v1878_v52, %v1876_v51  ;;  %v1912_v51 = vld [vmem:[#allocation9 + $0x540] sm:$0xff]  ;;  %v1914_v52 = vld [vmem:[#allocation9 + $0x550] sm:$0xff] }
 0x278   : > { %3068 = vmatpush1.bf16.msra.mxu1 %v3067_v35  ;;  %v1882_v35 = vld [vmem:[#allocation9 + $0x450] sm:$0xff] }
 0x279   : > { %3070 = vmatprep.subr.bf16.mxu1 %v3069_v58  ;;  %v1885_v58 = vld [vmem:[#allocation9 + $0x468] sm:$0xff]  ;;  %v3103_v59 = vpack.c.bf16 %v1882_v35, %v1880_v16  ;;  %v1916_v16 = vld [vmem:[#allocation9 + $0x560] sm:$0xff]  ;;  %v1918_v35 = vld [vmem:[#allocation9 + $0x570] sm:$0xff] }
 0x27a   : > { %v3105_v60 = vpack.c.bf16 %v1887_v26, %v1885_v58  ;;  %v1921_v58 = vld [vmem:[#allocation9 + $0x588] sm:$0xff]  ;;  %v1923_v26 = vld [vmem:[#allocation9 + $0x598] sm:$0xff] }
 0x27c   : > { %3072 = vmatpush1.bf16.msra.mxu1 %v3071_v62  ;;  %v1886_v62 = vld [vmem:[#allocation9 + $0x470] sm:$0xff] }
 0x27d   : > { %3074 = vmatprep.subr.bf16.mxu1 %v3073_v63  ;;  %v1889_v63 = vld [vmem:[#allocation9 + $0x488] sm:$0xff]  ;;  %v3107_v5 = vpack.c.bf16 %v1886_v62, %v1884_v61  ;;  %v1920_v61 = vld [vmem:[#allocation9 + $0x580] sm:$0xff]  ;;  %v1922_v62 = vld [vmem:[#allocation9 + $0x590] sm:$0xff] }
 0x27e   : > { %v3109_v6 = vpack.c.bf16 %v1891_v2, %v1889_v63  ;;  %v1925_v63 = vld [vmem:[#allocation9 + $0x5a8] sm:$0xff]  ;;  %v1927_v2 = vld [vmem:[#allocation9 + $0x5b8] sm:$0xff] }
 0x280   : > { %3076 = vmatpush1.bf16.msra.mxu1 %v3075_v8  ;;  %v1890_v8 = vld [vmem:[#allocation9 + $0x490] sm:$0xff] }
 0x281   : > { %3078 = vmatprep.subr.bf16.mxu1 %v3077_v9  ;;  %v1893_v9 = vld [vmem:[#allocation9 + $0x4a8] sm:$0xff]  ;;  %v3111_v4 = vpack.c.bf16 %v1890_v8, %v1888_v7  ;;  %v1924_v7 = vld [vmem:[#allocation9 + $0x5a0] sm:$0xff]  ;;  %v1926_v8 = vld [vmem:[#allocation9 + $0x5b0] sm:$0xff] }
 0x282   : > { %v3113_v11 = vpack.c.bf16 %v1895_v10, %v1893_v9  ;;  %v1929_v9 = vld [vmem:[#allocation9 + $0x5c8] sm:$0xff]  ;;  %v1931_v10 = vld [vmem:[#allocation9 + $0x5d8] sm:$0xff] }
 0x284   : > { %3080 = vmatpush1.bf16.msra.mxu1 %v3079_v20  ;;  %v1894_v20 = vld [vmem:[#allocation9 + $0x4b0] sm:$0xff] }
 0x285   : > { %3082 = vmatprep.subr.bf16.mxu1 %v3081_v15  ;;  %v1897_v15 = vld [vmem:[#allocation9 + $0x4c8] sm:$0xff]  ;;  %v3115_v18 = vpack.c.bf16 %v1894_v20, %v1892_v12  ;;  %v1928_v12 = vld [vmem:[#allocation9 + $0x5c0] sm:$0xff]  ;;  %v1930_v20 = vld [vmem:[#allocation9 + $0x5d0] sm:$0xff] }
 0x286   : > { %v3117_v19 = vpack.c.bf16 %v1899_v17, %v1897_v15  ;;  %v1933_v15 = vld [vmem:[#allocation9 + $0x5e8] sm:$0xff]  ;;  %v1935_v17 = vld [vmem:[#allocation9 + $0x5f8] sm:$0xff] }
 0x288   : > { %3084 = vmatpush1.bf16.msra.mxu1 %v3083_v21  ;;  %v1898_v21 = vld [vmem:[#allocation9 + $0x4d0] sm:$0xff] }
 0x289   : > { %3086 = vmatprep.subr.bf16.mxu1 %v3085_v23  ;;  %v1901_v23 = vld [vmem:[#allocation9 + $0x4e8] sm:$0xff]  ;;  %v3119_v25 = vpack.c.bf16 %v1898_v21, %v1896_v27  ;;  %v1932_v27 = vld [vmem:[#allocation9 + $0x5e0] sm:$0xff]  ;;  %v1934_v21 = vld [vmem:[#allocation9 + $0x5f0] sm:$0xff] }
 0x28a   : > { %v3121_v29 = vpack.c.bf16 %v1903_v24, %v1901_v23  ;;  %v3155_v23 = vpack.c.bf16 %v1934_v21, %v1932_v27  ;;  %v1088_v24 = vrot.slane %v3960_v37, %v1056_v48 }
 0x28c   : > { %3088 = vmatpush1.bf16.msra.mxu1 %v3087_v31  ;;  %v1902_v31 = vld [vmem:[#allocation9 + $0x4f0] sm:$0xff] }
 0x28d   : > { %3090 = vmatprep.subr.bf16.mxu1 %v3089_v33  ;;  %v1907_v33 = vld [vmem:[#allocation9 + $0x518] sm:$0xff]  ;;  %v3123_v34 = vpack.c.bf16 %v1902_v31, %v1900_v30 }
 0x28e   : > { %v3125_v38 = vpack.c.bf16 %v1907_v33, %v1905_v32 }
 0x290   : > { %3092 = vmatpush1.bf16.msra.mxu1 %v3091_v41  ;;  %v1909_v41 = vld [vmem:[#allocation9 + $0x528] sm:$0xff] }
 0x291   : > { %3094 = vmatprep.subr.bf16.mxu1 %v3093_v45  ;;  %v3127_v45 = vpack.c.bf16 %v1906_v40, %v1904_v39  ;;  %v3129_v46 = vpack.c.bf16 %v1911_v42, %v1909_v41 }
 0x293   : > { %2084 = vmatmul.mubr.f32.vlgmr.msra.gmra.mrb[2].mxu1 %v1740_v50  ;;  %v3131_v50 = vpack.c.bf16 %v1910_v57, %v1908_v47 }
 0x294   : > { %3096 = vmatpush1.bf16.msra.mxu1 %v3095_v49  ;;  %v1915_v49 = vld [vmem:[#allocation9 + $0x558] sm:$0xff] }
 0x295   : > { %3098 = vmatprep.subr.bf16.mxu1 %v3097_v54  ;;  %v3133_v54 = vpack.c.bf16 %v1915_v49, %v1913_v44 }
 0x298   : > { %3100 = vmatpush1.bf16.msra.mxu1 %v3099_v56  ;;  %v3135_v56 = vpack.c.bf16 %v1914_v52, %v1912_v51 }
 0x299   : > { %3102 = vmatprep.subr.bf16.mxu1 %v3101_v28  ;;  %v3137_v28 = vpack.c.bf16 %v1919_v55, %v1917_v53 }
 0x29c   : > { %3104 = vmatpush1.bf16.msra.mxu1 %v3103_v59  ;;  %v3139_v59 = vpack.c.bf16 %v1918_v35, %v1916_v16 }
 0x29d   : > { %3106 = vmatprep.subr.bf16.mxu1 %v3105_v60  ;;  %v3141_v60 = vpack.c.bf16 %v1923_v26, %v1921_v58 }
 0x2a0   : > { %3108 = vmatpush1.bf16.msra.mxu1 %v3107_v5  ;;  %v3143_v5 = vpack.c.bf16 %v1922_v62, %v1920_v61 }
 0x2a1   : > { %3110 = vmatprep.subr.bf16.mxu1 %v3109_v6  ;;  %v3145_v6 = vpack.c.bf16 %v1927_v2, %v1925_v63 }
 0x2a4   : > { %3112 = vmatpush1.bf16.msra.mxu1 %v3111_v4  ;;  %v3147_v4 = vpack.c.bf16 %v1926_v8, %v1924_v7 }
 0x2a5   : > { %3114 = vmatprep.subr.bf16.mxu1 %v3113_v11  ;;  %v3149_v11 = vpack.c.bf16 %v1931_v10, %v1929_v9 }
 0x2a8   : > { %3116 = vmatpush1.bf16.msra.mxu1 %v3115_v18  ;;  %v3151_v18 = vpack.c.bf16 %v1930_v20, %v1928_v12 }
 0x2a9   : > { %3118 = vmatprep.subr.bf16.mxu1 %v3117_v19  ;;  %v3153_v19 = vpack.c.bf16 %v1935_v17, %v1933_v15 }
 0x2ac   : > { %3120 = vmatpush1.bf16.msra.mxu1 %v3119_v25  ;;  %v1092_v25 = vrot.slane %v3960_v37, %v1060_v3 }
 0x2ad   : > { %3122 = vmatprep.subr.bf16.mxu1 %v3121_v29 }
 0x2b0   : > { %3124 = vmatpush1.bf16.msra.mxu1 %v3123_v34 }
 0x2b1   : > { %3126 = vmatprep.subr.bf16.mxu1 %v3125_v38 }
 0x2b4   : > { %3128 = vmatpush1.bf16.msra.mxu1 %v3127_v45 }
 0x2b5   : > { %3130 = vmatprep.subr.bf16.mxu1 %v3129_v46 }
 0x2b8   : > { %3132 = vmatpush1.bf16.msra.mxu1 %v3131_v50 }
 0x2b9   : > { %3134 = vmatprep.subr.bf16.mxu1 %v3133_v54 }
 0x2bc   : > { %3136 = vmatpush1.bf16.msra.mxu1 %v3135_v56 }
 0x2bd   : > { %3138 = vmatprep.subr.bf16.mxu1 %v3137_v28 }
 0x2c0   : > { %3140 = vmatpush1.bf16.msra.mxu1 %v3139_v59 }
 0x2c1   : > { %3142 = vmatprep.subr.bf16.mxu1 %v3141_v60 }
 0x2c4   : > { %3144 = vmatpush1.bf16.msra.mxu1 %v3143_v5 }
 0x2c5   : > { %3146 = vmatprep.subr.bf16.mxu1 %v3145_v6 }
 0x2c8   : > { %3148 = vmatpush1.bf16.msra.mxu1 %v3147_v4 }
 0x2c9   : > { %3150 = vmatprep.subr.bf16.mxu1 %v3149_v11 }
 0x2cc   : > { %3152 = vmatpush1.bf16.msra.mxu1 %v3151_v18 }
 0x2cd   : > { %3154 = vmatprep.subr.bf16.mxu1 %v3153_v19 }
 0x2d0   : > { %3156 = vmatpush1.bf16.msra.mxu1 %v3155_v23 }
 0x30c   : > { %v1733_v29 = vpop.f32.mrb[2].mxu0 }
 0x30d   : > { %v3161_v30 = vadd.f32 %v1733_v29, %v1088_v24  ;;  %v1735_v31 = vpop.f32.mrb[3].mxu0 }
 0x30e   : > { %v3162_v32 = vadd.f32 %v1735_v31, %v1092_v25 }
 0x30f   : > { %v1742_v34 = vmax.f32 %v3161_v30, 0.0 }
 0x310   : > { %v1743_v33 = vmax.f32 %v3162_v32, 0.0 }
 0x312   : > { %2154 = vmatprep.mubr.f32.mxu1 %v1743_v33 }
 0x313   : > { %2155 = vmatmul.mubr.f32.vlgmr.msra.gmra.mrb[2].mxu1 %v1742_v34 }
 0x314   : > { %3455 = shalt.err (!%p3452_p8)
}
 0x315   : > { %s3456_s30 = scalar_lea.hbm %s3989_s15, 96  ;;  %s3460_s28 = scalar_lea.hbm %s4073_s5, 192 }
 0x316   : > { %p3457_p12 = scmp.ne.s32.totalorder %s3989_s15, %s3456_s30  ;;  %p3461_p3 = scmp.lt.u32.totalorder %s3989_s15, %s4073_s5 }
 0x317   : > { %p3462_p13 = scmp.lt.u32.totalorder %s3460_s28, %s3456_s30  ;;  %p3464_p2 = scmp.lt.u32.totalorder %s3456_s30, %s3989_s15 }
 0x318   : > { %p3458_p1 = pnand %p3457_p12, %p4099_p9 }
 0x319   : > { %p3463_p4 = por %p3462_p13, %p3461_p3 }
 0x31a   : > { %p3459_p6 = pneg %p3458_p1 }
 0x31b   : > { %p3465_p10 = por %p3464_p2, %p3463_p4 }
 0x31d   : > { %p3466_p11 = pnand %p3465_p10, %p3459_p6 }
 0x31f   : > { %3469 = shalt.err (!%p3466_p11)
}
 0x320   : > { %3204 = dma.vmem_to_hbm [thread:$0]  (%p4099_p9), %s2203_s27, 96, %s3989_s15, %s2183_s10   ;;  %v1936_v1 = vld [vmem:[#allocation11] sm:$0x3]  ;;  %vm2179_vm1 = vcmp.lt.s32.totalorder %v353_v0, 256 }
 0x321   : > { %v1941_v36 = vrot.slane %v1936_v1, %v3906_v14  ;;  %v1945_v22 = vrot.slane %v1936_v1, %v3903_v13  ;;  %s2381_s13 = sshll.u32 %s3844_s2, 1  ;;  %s2388_s16 = sshll.u32 %s3556_s24, 5 }
 0x322   : > { %s348_s18 = scalar_lea.vmem [#allocation13], %s2381_s13  ;;  %s4019_s10 = scalar_lea.hbm %s4074_s6, %s2388_s16 }
 0x323   : > { %s2216_s7 = sshll.u32 %s348_s18, 4  ;;  %s2188_s24 = scalar_lea.sflag [#allocation14], %s3844_s2  ;;  %s4021_s7 = int_to_ptr.vmem [resolvable:$true] %s2216_s7 }
 0x324   : > { %s3470_s8 = scalar_lea.vmem %s4021_s7, 32  ;;  %s3578_s1 = smov [#allocation13]  }
 0x325   : > { %p3471_p0 = scmp.ne.s32.totalorder %s4021_s7, %s3470_s8  ;;  %s3474_s30 = sshll.u32 %s3578_s1, 4  ;;  %s3475_s30 = int_to_ptr.vmem [resolvable:$false] %s3474_s30 }
 0x326   : > { %s3476_s9 = scalar_lea.vmem %s3475_s30, 64  ;;  %p3477_p8 = scmp.lt.s32.totalorder %s4021_s7, %s3475_s30 }
 0x327   : > { %p3472_p7 = pnand %p3471_p0, %p4099_p9  ;;  %p3478_p12 = scmp.lt.s32.totalorder %s3476_s9, %s3470_s8 }
 0x329   : > { %p3473_p5 = pneg %p3472_p7  ;;  %p3479_p1 = por %p3478_p12, %p3477_p8 }
 0x32b   : > { %p3480_p6 = pnand %p3479_p1, %p3473_p5 }
 0x3e6   : > { %v2156_v3 = vpop.f32.mrb[2].mxu1 }
 0x3e7   : > { %v3163_v48 = vadd.f32 %v2156_v3, %v1941_v36  ;;  %v2158_v37 = vpop.f32.mrb[3].mxu1 }
 0x3e8   : > { %v3164_v38 = vadd.f32 %v2158_v37, %v1945_v22 }
 0x3ea   : > { %v2163_v39 = vcombine.low %v3163_v48, %v3164_v38 }
 0x3ec   : > { %v2170_v40 = vrot.slane %v2163_v39, %v3893_v43 }
 0x3ee   : > { %v2177_v41 = vrot.slane %v2170_v40, %v3893_v43 }
 0x3f0   : > { %2181 = vst.msk [vmem:[%s348_s18] sm:$0x3] %vm2179_vm1, %v2177_v41 }
 0x3f1   : > { %3483 = shalt.err (!%p3480_p6)
}
 0x3f2   : > { %s3484_s2 = scalar_lea.hbm %s4019_s10, 32  ;;  %s3488_s29 = scalar_lea.hbm %s4074_s6, 64 }
 0x3f3   : > { %p3485_p3 = scmp.ne.s32.totalorder %s4019_s10, %s3484_s2  ;;  %p3489_p2 = scmp.lt.u32.totalorder %s4019_s10, %s4074_s6 }
 0x3f4   : > { %p3490_p10 = scmp.lt.u32.totalorder %s3488_s29, %s3484_s2  ;;  %p3492_p0 = scmp.lt.u32.totalorder %s3484_s2, %s4019_s10 }
 0x3f5   : > { %p3486_p13 = pnand %p3485_p3, %p4099_p9 }
 0x3f6   : > { %p3491_p11 = por %p3490_p10, %p3489_p2 }
 0x3f7   : > { %p3487_p4 = pneg %p3486_p13 }
 0x3f8   : > { %p3493_p7 = por %p3492_p0, %p3491_p11 }
 0x3fa   : > { %p3494_p5 = pnand %p3493_p7, %p3487_p4 }
 0x3fc   : > { %3497 = shalt.err (!%p3494_p5)
}
 0x3fd   : > { %3205 = dma.vmem_to_hbm [thread:$0]  (%p4099_p9), %s4021_s7, 32, %s4019_s10, %s2188_s24  }
 0x3fe PF: > { %s2228_s16 = sand.u32 1, %s3544_s21   ;;  %p4100_p8 = scmp.ne.s32.totalorder %s4093_s17, 0 }
 0x3ff   : > { %p4101_p12 = scmp.ge.s32.totalorder %s3564_s26, 2  ;;  %s2229_s18 = scalar_lea.sflag [#allocation5], %s2228_s16 }
 0x401   : > { %p3226_p1 = pnand %p4101_p12, %p4100_p8 }
 0x403   : > { %3535 = dma.done.wait (!%p3226_p1), %s2229_s18, 96  }
 0x404   : > { %3537 = vsyncadd (!%p3226_p1), %s2229_s18, 4294967200  ;;  %s2238_s15 = scalar_lea.sflag [#allocation14], %s2228_s16 }
 0x405   : > { %3539 = dma.done.wait (!%p3226_p1), %s2238_s15, 32  }
 0x406   : > { %3541 = vsyncadd (!%p3226_p1), %s2238_s15, 4294967264  ;;  %s28_s26 = sadd.s32 1, %s3564_s26   ;;  %s4102_s21 = smov %s3548_s22 }
 0x407   : > { %p25_p6 = scmp.ge.s32.totalorder %s28_s26, 4   ;;  %s4103_s22 = smov %s3552_s23 }
 0x408   : > { %s4104_s23 = smov %s3794_s14  ;;  %s4105_s24 = smov %s3560_s25 }
 0x409   : > { %s4106_s25 = smov %s4108_s20  ;;  %27 = sbr.rel (!%p25_p6) target bundleno = 13 (0xd), region = 126 }
 0x410   :  { %2243 = vsyncpa [#allocation4], 1 }
 0x411   :  { %2245 = vsyncpa [#allocation4 + $0x1], 1 }
 0x412   :  { %2246 = vsyncpa [#allocation7], 1 }
 0x413   :  { %2247 = vsyncpa [#allocation10], 1 }
 0x414   :  { %2248 = vsyncpa [#allocation5], 1 }
 0x415   :  { %2250 = vsyncpa [#allocation5 + $0x1], 1 }
 0x416   :  { %2251 = vsyncpa [#allocation14], 1 }
 0x417   :  { %2253 = vsyncpa [#allocation14 + $0x1], 1 }

</bundles_post_ra>
